<compile_context>
chip_gen: v5e
topology: v5e:2x2
jax: 0.10.0
libtpu: 0.0.40
codegen_flags: <defaults>
</compile_context>

<pallas_src>
import functools

import numpy as np

import jax
import jax.numpy as jnp
from jax import lax
from jax.experimental import pallas as pl
from jax.experimental.pallas import tpu as pltpu


# Fixed MNISTNet geometry (fc1 hard-codes 64*7*7, so spatial must be 28, cin=1).
H1 = 28                 # conv1 spatial (H == W)
C1 = 32                 # conv1 out channels
H2 = 14                 # spatial after pool1
C2 = 64                 # conv2 out channels
H3 = 7                  # spatial after pool2
L1IN = H1               # conv1 input lanes (cin=1 -> lanes = w)        = 28
L1OUT = C1 * H1         # conv1 banded output lanes                     = 896
CW1 = C1 * (H1 // 2)    # conv1 pooled lanes, (c, w')-major             = 448
L2OUT = C2 * H2         # conv2 banded output lanes                     = 896
CW2 = C2 * (H2 // 2)    # conv2 pooled lanes                            = 448
DH = 128                # fc1 width
DOUT = 128              # fc2 padded output lanes (logits are [:, :10])

assert CW1 == CW2       # both pooled slabs are 448 lanes -> one shared scratch


def _batch_block(batch, cap=16):
    """Largest divisor of `batch` that is <= cap (one batch block / grid step).

    No forced '>=2 grid blocks' rule: on single-TensorCore chips (v5e/v6e) one
    bigger block per step beats two tiny ones; large batches naturally produce
    multiple blocks for v7x's two cores."""
    best = 1
    for d in range(1, min(batch, cap) + 1):
        if batch % d == 0:
            best = d
    return best


# ----------------------------------------------------------------------------
# The single fused kernel.
#
# Block layout: activations are 2-D slabs with rows = h*bb + b  (h-major,
# batch-minor within the block) and lanes = c*W + w (channel-major, w-minor).
# ----------------------------------------------------------------------------
def mnist_fused_kernel(x_ref, band1_ref, bc1_ref, band2_ref, bc2_ref,
                       w1_ref, bf1_ref, w2_ref, bf2_ref,
                       o_ref,
                       xp1_sc, pool_sc, xp2_sc, a2_sc, *, bb):
    f32, bf16 = jnp.float32, jnp.bfloat16
    m1 = H1 * bb          # conv1 rows per block
    m2 = H2 * bb          # conv2 rows per block

    # ---------------- conv1 (3x3, pad=1) + bias + ReLU + 2x2 max-pool -------
    # h zero-padding: one zero row-BLOCK (bb rows) above and below the slab.
    # With (h, b) row order a shift of +-bb rows stays inside the same image,
    # so no cross-image masks are needed.  w padding is folded into the band.
    xp1_sc[pl.ds(0, bb), :] = jnp.zeros((bb, L1IN), f32)
    xp1_sc[pl.ds((H1 + 1) * bb, bb), :] = jnp.zeros((bb, L1IN), f32)
    xp1_sc[pl.ds(bb, m1), :] = x_ref[0, :, :]

    acc1 = jnp.zeros((m1, L1OUT), f32)
    for kh in range(3):                            # 3 large matmuls (kh taps)
        lhs = xp1_sc[pl.ds(kh * bb, m1), :].astype(bf16)
        acc1 = acc1 + jnp.dot(lhs, band1_ref[kh], preferred_element_type=f32)
    y1 = jnp.maximum(acc1 + bc1_ref[...], 0.0)

    # w-pool: band output columns are pre-permuted [even-w | odd-w] so the
    # pool over w is one max of two contiguous 448-lane halves, already in the
    # (c, w')-major lane order conv2 consumes.
    pool_sc[pl.ds(0, m1), :] = jnp.maximum(y1[:, :CW1], y1[:, CW1:])

    # h-pool: max of adjacent row-blocks, compacted straight into conv2's
    # padded input scratch (interior rows [bb, (H2+1)*bb)).
    xp2_sc[pl.ds(0, bb), :] = jnp.zeros((bb, CW1), f32)
    xp2_sc[pl.ds((H2 + 1) * bb, bb), :] = jnp.zeros((bb, CW1), f32)
    for ho in range(H2):
        blk = jnp.maximum(pool_sc[pl.ds((2 * ho) * bb, bb), :],
                          pool_sc[pl.ds((2 * ho + 1) * bb, bb), :])
        xp2_sc[pl.ds((ho + 1) * bb, bb), :] = blk

    # ---------------- conv2 (3x3, pad=1) + bias + ReLU + 2x2 max-pool -------
    acc2 = jnp.zeros((m2, L2OUT), f32)
    for kh in range(3):
        lhs = xp2_sc[pl.ds(kh * bb, m2), :].astype(bf16)
        acc2 = acc2 + jnp.dot(lhs, band2_ref[kh], preferred_element_type=f32)
    y2 = jnp.maximum(acc2 + bc2_ref[...], 0.0)

    pool_sc[pl.ds(0, m2), :] = jnp.maximum(y2[:, :CW2], y2[:, CW2:])
    for ho in range(H3):
        blk = jnp.maximum(pool_sc[pl.ds((2 * ho) * bb, bb), :],
                          pool_sc[pl.ds((2 * ho + 1) * bb, bb), :])
        a2_sc[pl.ds(ho * bb, bb), :] = blk

    # ---------------- fc1 + ReLU  (Dropout(0.5) == identity at inference) ---
    # Flatten is free: fc1 weights were pre-split into per-h' blocks with rows
    # in the kernel's (c, w') lane order, so fc1 is H3 contiguous-slice matmuls.
    h = jnp.zeros((bb, DH), f32)
    for hp in range(H3):
        lhs = a2_sc[pl.ds(hp * bb, bb), :].astype(bf16)
        h = h + jnp.dot(lhs, w1_ref[hp], preferred_element_type=f32)
    h = jnp.maximum(h + bf1_ref[...], 0.0)

    # ---------------- fc2 (padded to 128 lanes; logits live in [:, :10]) ----
    o_ref[0, :, :] = (jnp.dot(h.astype(bf16), w2_ref[...],
                              preferred_element_type=f32) + bf2_ref[...])


# ----------------------------------------------------------------------------
# Wrapper
# ----------------------------------------------------------------------------
def mnist_net_forward(x_nchw, kp):
    """x_nchw: (B, 1, 28, 28) f32  ->  logits (B, 10) f32."""
    B = x_nchw.shape[0]
    bb = _batch_block(B, cap=16)
    nb = B // bb

    # (B, 1, 28, 28) -> (nb, 28*bb, 28) with rows ordered (h, b) per block.
    x = x_nchw.astype(jnp.float32).reshape(nb, bb, H1, H1)
    x = jnp.transpose(x, (0, 2, 1, 3)).reshape(nb, H1 * bb, H1)

    out = pl.pallas_call(
        functools.partial(mnist_fused_kernel, bb=bb),
        out_shape=jax.ShapeDtypeStruct((nb, bb, DOUT), jnp.float32),
        grid_spec=pltpu.PrefetchScalarGridSpec(
            num_scalar_prefetch=0,
            grid=(nb,),
            in_specs=[
                pl.BlockSpec((1, H1 * bb, L1IN), lambda i: (i, 0, 0)),   # x block
                pl.BlockSpec((3, L1IN, L1OUT), lambda i: (0, 0, 0)),     # band1
                pl.BlockSpec((1, L1OUT), lambda i: (0, 0)),              # conv1 bias
                pl.BlockSpec((3, CW1, L2OUT), lambda i: (0, 0, 0)),      # band2
                pl.BlockSpec((1, L2OUT), lambda i: (0, 0)),              # conv2 bias
                pl.BlockSpec((H3, CW2, DH), lambda i: (0, 0, 0)),        # fc1 w
                pl.BlockSpec((1, DH), lambda i: (0, 0)),                 # fc1 b
                pl.BlockSpec((DH, DOUT), lambda i: (0, 0)),              # fc2 w (padded)
                pl.BlockSpec((1, DOUT), lambda i: (0, 0)),               # fc2 b (padded)
            ],
            out_specs=pl.BlockSpec((1, bb, DOUT), lambda i: (i, 0, 0)),
            scratch_shapes=[
                pltpu.VMEM(((H1 + 2) * bb, L1IN), jnp.float32),   # padded conv1 input
                pltpu.VMEM((H1 * bb, CW1), jnp.float32),          # shared w-pool slab
                pltpu.VMEM(((H2 + 2) * bb, CW1), jnp.float32),    # padded conv2 input
                pltpu.VMEM((H3 * bb, CW2), jnp.float32),          # conv2 pooled output
            ],
        ),
        compiler_params=pltpu.CompilerParams(
            dimension_semantics=("parallel",),
            vmem_limit_bytes=32 * 1024 * 1024,   # v5e default is 16 MiB; safe on v7x
        ),
    )(x, kp["band1"], kp["bc1"], kp["band2"], kp["bc2"],
      kp["w1"], kp["bf1"], kp["w2"], kp["bf2"])

    return out.reshape(B, DOUT)[:, :10]


# ----------------------------------------------------------------------------
# Parameters: torch-layout init + one-time conversion to kernel layouts
# ----------------------------------------------------------------------------
def init_params(key):
    """PyTorch-layout parameters (same shapes/semantics as MNISTNet)."""
    ks = jax.random.split(key, 8)

    def u(k, shape, fan_in):
        bound = 1.0 / float(fan_in) ** 0.5
        return jax.random.uniform(k, shape, jnp.float32, -bound, bound)

    return {
        "conv1_w": u(ks[0], (C1, 1, 3, 3), 1 * 9),
        "conv1_b": u(ks[1], (C1,), 1 * 9),
        "conv2_w": u(ks[2], (C2, C1, 3, 3), C1 * 9),
        "conv2_b": u(ks[3], (C2,), C1 * 9),
        "fc1_w": u(ks[4], (DH, C2 * H3 * H3), C2 * H3 * H3),
        "fc1_b": u(ks[5], (DH,), C2 * H3 * H3),
        "fc2_w": u(ks[6], (10, DH), DH),
        "fc2_b": u(ks[7], (10,), DH),
    }


def _band_conv(wt, bias, W):
    """Torch (Cout,Cin,3,3) conv weight -> (3, Cin*W, Cout*W) banded matrices
    (bf16).  Output columns are permuted to [even-w | odd-w], each half
    (c, w//2)-major, which makes the 2x2 w-pool a max of two contiguous lane
    halves.  Missing band entries implement the w zero-padding exactly.  Also
    returns the matching (1, Cout*W) bias row (f32)."""
    wt = np.asarray(wt, np.float32)
    b = np.asarray(bias, np.float32)
    cout, cin = wt.shape[0], wt.shape[1]
    wo = W // 2
    cwo = cout * wo
    ci = np.arange(cin)[:, None]                 # (Cin, 1)
    co = np.arange(cout)[None, :]                # (1, Cout)
    band = np.zeros((3, cin * W, cout * W), np.float32)
    bvec = np.zeros((1, cout * W), np.float32)
    for w in range(W):
        q = (w % 2) * cwo + co * wo + (w // 2)   # permuted output lanes
        bvec[0, q[0]] = b
        for kh in range(3):
            for kw in range(3):
                u = w + kw - 1
                if 0 <= u < W:
                    band[kh, ci * W + u, q] = wt[co, ci, kh, kw]
    return jnp.asarray(band, jnp.bfloat16), jnp.asarray(bvec, jnp.float32)


def prepare_kernel_params(params):
    """One-time conversion of torch-layout params into kernel layouts."""
    band1, bc1 = _band_conv(params["conv1_w"], params["conv1_b"], H1)
    band2, bc2 = _band_conv(params["conv2_w"], params["conv2_b"], H2)

    # fc1: torch flatten order is (c, h, w); the kernel consumes per-h' blocks
    # whose rows are (c, w')-major -> reorganize to (h', c*7+w', out) once.
    w1t = np.asarray(params["fc1_w"], np.float32)                 # (128, 3136)
    w1r = w1t.T.reshape(C2, H3, H3, DH)                           # (c, h, w, out)
    w1k = np.transpose(w1r, (1, 0, 2, 3)).reshape(H3, C2 * H3, DH)

    # fc2: pad to 128 output lanes for a lane-dense final store.
    w2t = np.asarray(params["fc2_w"], np.float32)                 # (10, 128)
    w2k = np.zeros((DH, DOUT), np.float32)
    w2k[:, :10] = w2t.T
    b2k = np.zeros((1, DOUT), np.float32)
    b2k[0, :10] = np.asarray(params["fc2_b"], np.float32)

    return {
        "band1": band1, "bc1": bc1,
        "band2": band2, "bc2": bc2,
        "w1": jnp.asarray(w1k, jnp.bfloat16),
        "bf1": jnp.asarray(params["fc1_b"], jnp.float32).reshape(1, DH),
        "w2": jnp.asarray(w2k, jnp.bfloat16),
        "bf2": jnp.asarray(b2k, jnp.float32),
    }


# ----------------------------------------------------------------------------
# Pure-JAX reference (for a loose sanity check against the torch semantics)
# ----------------------------------------------------------------------------
def mnist_ref(x_nchw, params):
    x = x_nchw.astype(jnp.float32)

    def conv(x, w, b):
        y = lax.conv_general_dilated(x, w, window_strides=(1, 1),
                                     padding=((1, 1), (1, 1)),
                                     dimension_numbers=("NCHW", "OIHW", "NCHW"))
        return jax.nn.relu(y + b[None, :, None, None])

    def pool(x):
        return lax.reduce_window(x, -jnp.inf, lax.max,
                                 (1, 1, 2, 2), (1, 1, 2, 2), "VALID")

    x = pool(conv(x, params["conv1_w"], params["conv1_b"]))
    x = pool(conv(x, params["conv2_w"], params["conv2_b"]))
    x = x.reshape(x.shape[0], -1)                     # torch (c, h, w) flatten
    x = jax.nn.relu(x @ params["fc1_w"].T + params["fc1_b"])
    return x @ params["fc2_w"].T + params["fc2_b"]    # dropout == identity (eval)


if __name__ == "__main__":
    key = jax.random.PRNGKey(0)
    pkey, xkey = jax.random.split(key)
    params = init_params(pkey)
    kparams = prepare_kernel_params(params)           # one-time layout prep

    # MNIST-shaped input (fc1 hard-codes 64*7*7, so spatial must be 28, cin=1).
    x = jax.random.normal(xkey, (2, 1, 28, 28), jnp.float32)

    out = jax.jit(mnist_net_forward)(x, kparams)
    jax.block_until_ready(out)
    assert out.shape == (2, 10) and out.dtype == jnp.float32

    ref = mnist_ref(x, params)
    err = float(jnp.max(jnp.abs(out - ref)))
    # bf16 MXU operands with f32 accumulation -> small, non-bit-exact diffs.
    assert err < 3e-2, f"max abs error vs reference: {err}"

    print("KERNEL_OK")
</pallas_src>

<mosaic_0001>
module attributes {stable_mosaic.version = 11 : i64} {
  func.func @mnist_fused_kernel(%arg0: i32, %arg1: memref<1x56x28xf32, #tpu.memory_space<vmem>>, %arg2: memref<3x28x896xbf16, #tpu.memory_space<vmem>>, %arg3: memref<1x896xf32, #tpu.memory_space<vmem>>, %arg4: memref<3x448x896xbf16, #tpu.memory_space<vmem>>, %arg5: memref<1x896xf32, #tpu.memory_space<vmem>>, %arg6: memref<7x448x128xbf16, #tpu.memory_space<vmem>>, %arg7: memref<1x128xf32, #tpu.memory_space<vmem>>, %arg8: memref<128x128xbf16, #tpu.memory_space<vmem>>, %arg9: memref<1x128xf32, #tpu.memory_space<vmem>>, %arg10: memref<1x2x128xf32, #tpu.memory_space<vmem>>, %arg11: memref<60x28xf32, #tpu.memory_space<vmem>>, %arg12: memref<56x448xf32, #tpu.memory_space<vmem>>, %arg13: memref<32x448xf32, #tpu.memory_space<vmem>>, %arg14: memref<14x448xf32, #tpu.memory_space<vmem>>) attributes {dimension_semantics = [#tpu.dimension_semantics<parallel>], iteration_bounds = array<i64: 1>, scalar_prefetch = 0 : i64, scratch_operands = 4 : i64, tpu.core_type = #tpu.core_type<tc>, window_params = [{transform_indices = @transform_0, window_bounds = array<i64: 1, 56, 28>}, {pipeline_mode = #tpu.pipeline_mode<synchronous>, transform_indices = @transform_1, window_bounds = array<i64: 3, 28, 896>}, {pipeline_mode = #tpu.pipeline_mode<synchronous>, transform_indices = @transform_2, window_bounds = array<i64: 1, 896>}, {pipeline_mode = #tpu.pipeline_mode<synchronous>, transform_indices = @transform_3, window_bounds = array<i64: 3, 448, 896>}, {pipeline_mode = #tpu.pipeline_mode<synchronous>, transform_indices = @transform_4, window_bounds = array<i64: 1, 896>}, {pipeline_mode = #tpu.pipeline_mode<synchronous>, transform_indices = @transform_5, window_bounds = array<i64: 7, 448, 128>}, {pipeline_mode = #tpu.pipeline_mode<synchronous>, transform_indices = @transform_6, window_bounds = array<i64: 1, 128>}, {pipeline_mode = #tpu.pipeline_mode<synchronous>, transform_indices = @transform_7, window_bounds = array<i64: 128, 128>}, {pipeline_mode = #tpu.pipeline_mode<synchronous>, transform_indices = @transform_8, window_bounds = array<i64: 1, 128>}, {transform_indices = @transform_9, window_bounds = array<i64: 1, 2, 128>}]} {
    %cst = arith.constant 0.000000e+00 : f32
    %0 = vector.broadcast %cst : f32 to vector<2x28xf32>
    %c0 = arith.constant 0 : index
    %c0_0 = arith.constant 0 : index
    %1 = vector.load %arg11[%c0, %c0_0] : memref<60x28xf32, #tpu.memory_space<vmem>>, vector<2x28xf32>
    tpu.vector_store %arg11[%c0, %c0_0], %0 {strides = array<i32>} : memref<60x28xf32, #tpu.memory_space<vmem>>, vector<2x28xf32>,
    %cst_1 = arith.constant 0.000000e+00 : f32
    %2 = vector.broadcast %cst_1 : f32 to vector<2x28xf32>
    %c58 = arith.constant 58 : index
    %c0_2 = arith.constant 0 : index
    %3 = vector.load %arg11[%c58, %c0_2] : memref<60x28xf32, #tpu.memory_space<vmem>>, vector<2x28xf32>
    tpu.vector_store %arg11[%c58, %c0_2], %2 {strides = array<i32>} : memref<60x28xf32, #tpu.memory_space<vmem>>, vector<2x28xf32>,
    %c0_3 = arith.constant 0 : index
    %c0_4 = arith.constant 0 : index
    %c0_5 = arith.constant 0 : index
    %4 = vector.load %arg1[%c0_3, %c0_4, %c0_5] : memref<1x56x28xf32, #tpu.memory_space<vmem>>, vector<1x56x28xf32>
    %5 = vector.shape_cast %4 : vector<1x56x28xf32> to vector<56x28xf32>
    %c2 = arith.constant 2 : index
    %c0_6 = arith.constant 0 : index
    %6 = vector.load %arg11[%c2, %c0_6] : memref<60x28xf32, #tpu.memory_space<vmem>>, vector<56x28xf32>
    tpu.vector_store %arg11[%c2, %c0_6], %5 {strides = array<i32>} : memref<60x28xf32, #tpu.memory_space<vmem>>, vector<56x28xf32>,
    %cst_7 = arith.constant 0.000000e+00 : f32
    %7 = vector.broadcast %cst_7 : f32 to vector<56x896xf32>
    %c0_8 = arith.constant 0 : index
    %c0_9 = arith.constant 0 : index
    %8 = vector.load %arg11[%c0_8, %c0_9] : memref<60x28xf32, #tpu.memory_space<vmem>>, vector<56x28xf32>
    %9 = arith.truncf %8 : vector<56x28xf32> to vector<56x28xbf16>
    %c0_10 = arith.constant 0 : index
    %c0_11 = arith.constant 0 : index
    %c0_12 = arith.constant 0 : index
    %10 = vector.load %arg2[%c0_10, %c0_11, %c0_12] : memref<3x28x896xbf16, #tpu.memory_space<vmem>>, vector<1x28x896xbf16>
    %11 = vector.shape_cast %10 : vector<1x28x896xbf16> to vector<28x896xbf16>
    %cst_13 = arith.constant dense<0.000000e+00> : vector<56x896xf32>
    %12 = tpu.matmul %9, %11, %cst_13 {dimension_numbers = #tpu.dot_dimension_numbers<[1], [0], [0], [1], [0, 0, 1, 1], [], []>} : vector<56x28xbf16>, vector<28x896xbf16>, vector<56x896xf32> -> vector<56x896xf32>
    %13 = arith.addf %7, %12 : vector<56x896xf32>
    %c2_14 = arith.constant 2 : index
    %c0_15 = arith.constant 0 : index
    %14 = vector.load %arg11[%c2_14, %c0_15] : memref<60x28xf32, #tpu.memory_space<vmem>>, vector<56x28xf32>
    %15 = arith.truncf %14 : vector<56x28xf32> to vector<56x28xbf16>
    %c1 = arith.constant 1 : index
    %c0_16 = arith.constant 0 : index
    %c0_17 = arith.constant 0 : index
    %16 = vector.load %arg2[%c1, %c0_16, %c0_17] : memref<3x28x896xbf16, #tpu.memory_space<vmem>>, vector<1x28x896xbf16>
    %17 = vector.shape_cast %16 : vector<1x28x896xbf16> to vector<28x896xbf16>
    %cst_18 = arith.constant dense<0.000000e+00> : vector<56x896xf32>
    %18 = tpu.matmul %15, %17, %cst_18 {dimension_numbers = #tpu.dot_dimension_numbers<[1], [0], [0], [1], [0, 0, 1, 1], [], []>} : vector<56x28xbf16>, vector<28x896xbf16>, vector<56x896xf32> -> vector<56x896xf32>
    %19 = arith.addf %13, %18 : vector<56x896xf32>
    %c4 = arith.constant 4 : index
    %c0_19 = arith.constant 0 : index
    %20 = vector.load %arg11[%c4, %c0_19] : memref<60x28xf32, #tpu.memory_space<vmem>>, vector<56x28xf32>
    %21 = arith.truncf %20 : vector<56x28xf32> to vector<56x28xbf16>
    %c2_20 = arith.constant 2 : index
    %c0_21 = arith.constant 0 : index
    %c0_22 = arith.constant 0 : index
    %22 = vector.load %arg2[%c2_20, %c0_21, %c0_22] : memref<3x28x896xbf16, #tpu.memory_space<vmem>>, vector<1x28x896xbf16>
    %23 = vector.shape_cast %22 : vector<1x28x896xbf16> to vector<28x896xbf16>
    %cst_23 = arith.constant dense<0.000000e+00> : vector<56x896xf32>
    %24 = tpu.matmul %21, %23, %cst_23 {dimension_numbers = #tpu.dot_dimension_numbers<[1], [0], [0], [1], [0, 0, 1, 1], [], []>} : vector<56x28xbf16>, vector<28x896xbf16>, vector<56x896xf32> -> vector<56x896xf32>
    %25 = arith.addf %19, %24 : vector<56x896xf32>
    %c0_24 = arith.constant 0 : index
    %c0_25 = arith.constant 0 : index
    %26 = vector.load %arg3[%c0_24, %c0_25] : memref<1x896xf32, #tpu.memory_space<vmem>>, vector<1x896xf32>
    %27 = vector.broadcast %26 : vector<1x896xf32> to vector<56x896xf32>
    %28 = arith.addf %25, %27 : vector<56x896xf32>
    %cst_26 = arith.constant 0.000000e+00 : f32
    %29 = vector.broadcast %cst_26 : f32 to vector<56x896xf32>
    %30 = arith.maximumf %28, %29 : vector<56x896xf32>
    %31 = vector.extract_strided_slice %30 {offsets = [0, 0], sizes = [56, 448], strides = [1, 1]} : vector<56x896xf32> to vector<56x448xf32>
    %32 = vector.extract_strided_slice %30 {offsets = [0, 448], sizes = [56, 448], strides = [1, 1]} : vector<56x896xf32> to vector<56x448xf32>
    %33 = arith.maximumf %31, %32 : vector<56x448xf32>
    %c0_27 = arith.constant 0 : index
    %c0_28 = arith.constant 0 : index
    %34 = vector.load %arg12[%c0_27, %c0_28] : memref<56x448xf32, #tpu.memory_space<vmem>>, vector<56x448xf32>
    tpu.vector_store %arg12[%c0_27, %c0_28], %33 {strides = array<i32>} : memref<56x448xf32, #tpu.memory_space<vmem>>, vector<56x448xf32>,
    %cst_29 = arith.constant 0.000000e+00 : f32
    %35 = vector.broadcast %cst_29 : f32 to vector<2x448xf32>
    %c0_30 = arith.constant 0 : index
    %c0_31 = arith.constant 0 : index
    %36 = vector.load %arg13[%c0_30, %c0_31] : memref<32x448xf32, #tpu.memory_space<vmem>>, vector<2x448xf32>
    tpu.vector_store %arg13[%c0_30, %c0_31], %35 {strides = array<i32>} : memref<32x448xf32, #tpu.memory_space<vmem>>, vector<2x448xf32>,
    %cst_32 = arith.constant 0.000000e+00 : f32
    %37 = vector.broadcast %cst_32 : f32 to vector<2x448xf32>
    %c30 = arith.constant 30 : index
    %c0_33 = arith.constant 0 : index
    %38 = vector.load %arg13[%c30, %c0_33] : memref<32x448xf32, #tpu.memory_space<vmem>>, vector<2x448xf32>
    tpu.vector_store %arg13[%c30, %c0_33], %37 {strides = array<i32>} : memref<32x448xf32, #tpu.memory_space<vmem>>, vector<2x448xf32>,
    %c0_34 = arith.constant 0 : index
    %c0_35 = arith.constant 0 : index
    %39 = vector.load %arg12[%c0_34, %c0_35] : memref<56x448xf32, #tpu.memory_space<vmem>>, vector<2x448xf32>
    %c2_36 = arith.constant 2 : index
    %c0_37 = arith.constant 0 : index
    %40 = vector.load %arg12[%c2_36, %c0_37] : memref<56x448xf32, #tpu.memory_space<vmem>>, vector<2x448xf32>
    %41 = arith.maximumf %39, %40 : vector<2x448xf32>
    %c2_38 = arith.constant 2 : index
    %c0_39 = arith.constant 0 : index
    %42 = vector.load %arg13[%c2_38, %c0_39] : memref<32x448xf32, #tpu.memory_space<vmem>>, vector<2x448xf32>
    tpu.vector_store %arg13[%c2_38, %c0_39], %41 {strides = array<i32>} : memref<32x448xf32, #tpu.memory_space<vmem>>, vector<2x448xf32>,
    %c4_40 = arith.constant 4 : index
    %c0_41 = arith.constant 0 : index
    %43 = vector.load %arg12[%c4_40, %c0_41] : memref<56x448xf32, #tpu.memory_space<vmem>>, vector<2x448xf32>
    %c6 = arith.constant 6 : index
    %c0_42 = arith.constant 0 : index
    %44 = vector.load %arg12[%c6, %c0_42] : memref<56x448xf32, #tpu.memory_space<vmem>>, vector<2x448xf32>
    %45 = arith.maximumf %43, %44 : vector<2x448xf32>
    %c4_43 = arith.constant 4 : index
    %c0_44 = arith.constant 0 : index
    %46 = vector.load %arg13[%c4_43, %c0_44] : memref<32x448xf32, #tpu.memory_space<vmem>>, vector<2x448xf32>
    tpu.vector_store %arg13[%c4_43, %c0_44], %45 {strides = array<i32>} : memref<32x448xf32, #tpu.memory_space<vmem>>, vector<2x448xf32>,
    %c8 = arith.constant 8 : index
    %c0_45 = arith.constant 0 : index
    %47 = vector.load %arg12[%c8, %c0_45] : memref<56x448xf32, #tpu.memory_space<vmem>>, vector<2x448xf32>
    %c10 = arith.constant 10 : index
    %c0_46 = arith.constant 0 : index
    %48 = vector.load %arg12[%c10, %c0_46] : memref<56x448xf32, #tpu.memory_space<vmem>>, vector<2x448xf32>
    %49 = arith.maximumf %47, %48 : vector<2x448xf32>
    %c6_47 = arith.constant 6 : index
    %c0_48 = arith.constant 0 : index
    %50 = vector.load %arg13[%c6_47, %c0_48] : memref<32x448xf32, #tpu.memory_space<vmem>>, vector<2x448xf32>
    tpu.vector_store %arg13[%c6_47, %c0_48], %49 {strides = array<i32>} : memref<32x448xf32, #tpu.memory_space<vmem>>, vector<2x448xf32>,
    %c12 = arith.constant 12 : index
    %c0_49 = arith.constant 0 : index
    %51 = vector.load %arg12[%c12, %c0_49] : memref<56x448xf32, #tpu.memory_space<vmem>>, vector<2x448xf32>
    %c14 = arith.constant 14 : index
    %c0_50 = arith.constant 0 : index
    %52 = vector.load %arg12[%c14, %c0_50] : memref<56x448xf32, #tpu.memory_space<vmem>>, vector<2x448xf32>
    %53 = arith.maximumf %51, %52 : vector<2x448xf32>
    %c8_51 = arith.constant 8 : index
    %c0_52 = arith.constant 0 : index
    %54 = vector.load %arg13[%c8_51, %c0_52] : memref<32x448xf32, #tpu.memory_space<vmem>>, vector<2x448xf32>
    tpu.vector_store %arg13[%c8_51, %c0_52], %53 {strides = array<i32>} : memref<32x448xf32, #tpu.memory_space<vmem>>, vector<2x448xf32>,
    %c16 = arith.constant 16 : index
    %c0_53 = arith.constant 0 : index
    %55 = vector.load %arg12[%c16, %c0_53] : memref<56x448xf32, #tpu.memory_space<vmem>>, vector<2x448xf32>
    %c18 = arith.constant 18 : index
    %c0_54 = arith.constant 0 : index
    %56 = vector.load %arg12[%c18, %c0_54] : memref<56x448xf32, #tpu.memory_space<vmem>>, vector<2x448xf32>
    %57 = arith.maximumf %55, %56 : vector<2x448xf32>
    %c10_55 = arith.constant 10 : index
    %c0_56 = arith.constant 0 : index
    %58 = vector.load %arg13[%c10_55, %c0_56] : memref<32x448xf32, #tpu.memory_space<vmem>>, vector<2x448xf32>
    tpu.vector_store %arg13[%c10_55, %c0_56], %57 {strides = array<i32>} : memref<32x448xf32, #tpu.memory_space<vmem>>, vector<2x448xf32>,
    %c20 = arith.constant 20 : index
    %c0_57 = arith.constant 0 : index
    %59 = vector.load %arg12[%c20, %c0_57] : memref<56x448xf32, #tpu.memory_space<vmem>>, vector<2x448xf32>
    %c22 = arith.constant 22 : index
    %c0_58 = arith.constant 0 : index
    %60 = vector.load %arg12[%c22, %c0_58] : memref<56x448xf32, #tpu.memory_space<vmem>>, vector<2x448xf32>
    %61 = arith.maximumf %59, %60 : vector<2x448xf32>
    %c12_59 = arith.constant 12 : index
    %c0_60 = arith.constant 0 : index
    %62 = vector.load %arg13[%c12_59, %c0_60] : memref<32x448xf32, #tpu.memory_space<vmem>>, vector<2x448xf32>
    tpu.vector_store %arg13[%c12_59, %c0_60], %61 {strides = array<i32>} : memref<32x448xf32, #tpu.memory_space<vmem>>, vector<2x448xf32>,
    %c24 = arith.constant 24 : index
    %c0_61 = arith.constant 0 : index
    %63 = vector.load %arg12[%c24, %c0_61] : memref<56x448xf32, #tpu.memory_space<vmem>>, vector<2x448xf32>
    %c26 = arith.constant 26 : index
    %c0_62 = arith.constant 0 : index
    %64 = vector.load %arg12[%c26, %c0_62] : memref<56x448xf32, #tpu.memory_space<vmem>>, vector<2x448xf32>
    %65 = arith.maximumf %63, %64 : vector<2x448xf32>
    %c14_63 = arith.constant 14 : index
    %c0_64 = arith.constant 0 : index
    %66 = vector.load %arg13[%c14_63, %c0_64] : memref<32x448xf32, #tpu.memory_space<vmem>>, vector<2x448xf32>
    tpu.vector_store %arg13[%c14_63, %c0_64], %65 {strides = array<i32>} : memref<32x448xf32, #tpu.memory_space<vmem>>, vector<2x448xf32>,
    %c28 = arith.constant 28 : index
    %c0_65 = arith.constant 0 : index
    %67 = vector.load %arg12[%c28, %c0_65] : memref<56x448xf32, #tpu.memory_space<vmem>>, vector<2x448xf32>
    %c30_66 = arith.constant 30 : index
    %c0_67 = arith.constant 0 : index
    %68 = vector.load %arg12[%c30_66, %c0_67] : memref<56x448xf32, #tpu.memory_space<vmem>>, vector<2x448xf32>
    %69 = arith.maximumf %67, %68 : vector<2x448xf32>
    %c16_68 = arith.constant 16 : index
    %c0_69 = arith.constant 0 : index
    %70 = vector.load %arg13[%c16_68, %c0_69] : memref<32x448xf32, #tpu.memory_space<vmem>>, vector<2x448xf32>
    tpu.vector_store %arg13[%c16_68, %c0_69], %69 {strides = array<i32>} : memref<32x448xf32, #tpu.memory_space<vmem>>, vector<2x448xf32>,
    %c32 = arith.constant 32 : index
    %c0_70 = arith.constant 0 : index
    %71 = vector.load %arg12[%c32, %c0_70] : memref<56x448xf32, #tpu.memory_space<vmem>>, vector<2x448xf32>
    %c34 = arith.constant 34 : index
    %c0_71 = arith.constant 0 : index
    %72 = vector.load %arg12[%c34, %c0_71] : memref<56x448xf32, #tpu.memory_space<vmem>>, vector<2x448xf32>
    %73 = arith.maximumf %71, %72 : vector<2x448xf32>
    %c18_72 = arith.constant 18 : index
    %c0_73 = arith.constant 0 : index
    %74 = vector.load %arg13[%c18_72, %c0_73] : memref<32x448xf32, #tpu.memory_space<vmem>>, vector<2x448xf32>
    tpu.vector_store %arg13[%c18_72, %c0_73], %73 {strides = array<i32>} : memref<32x448xf32, #tpu.memory_space<vmem>>, vector<2x448xf32>,
    %c36 = arith.constant 36 : index
    %c0_74 = arith.constant 0 : index
    %75 = vector.load %arg12[%c36, %c0_74] : memref<56x448xf32, #tpu.memory_space<vmem>>, vector<2x448xf32>
    %c38 = arith.constant 38 : index
    %c0_75 = arith.constant 0 : index
    %76 = vector.load %arg12[%c38, %c0_75] : memref<56x448xf32, #tpu.memory_space<vmem>>, vector<2x448xf32>
    %77 = arith.maximumf %75, %76 : vector<2x448xf32>
    %c20_76 = arith.constant 20 : index
    %c0_77 = arith.constant 0 : index
    %78 = vector.load %arg13[%c20_76, %c0_77] : memref<32x448xf32, #tpu.memory_space<vmem>>, vector<2x448xf32>
    tpu.vector_store %arg13[%c20_76, %c0_77], %77 {strides = array<i32>} : memref<32x448xf32, #tpu.memory_space<vmem>>, vector<2x448xf32>,
    %c40 = arith.constant 40 : index
    %c0_78 = arith.constant 0 : index
    %79 = vector.load %arg12[%c40, %c0_78] : memref<56x448xf32, #tpu.memory_space<vmem>>, vector<2x448xf32>
    %c42 = arith.constant 42 : index
    %c0_79 = arith.constant 0 : index
    %80 = vector.load %arg12[%c42, %c0_79] : memref<56x448xf32, #tpu.memory_space<vmem>>, vector<2x448xf32>
    %81 = arith.maximumf %79, %80 : vector<2x448xf32>
    %c22_80 = arith.constant 22 : index
    %c0_81 = arith.constant 0 : index
    %82 = vector.load %arg13[%c22_80, %c0_81] : memref<32x448xf32, #tpu.memory_space<vmem>>, vector<2x448xf32>
    tpu.vector_store %arg13[%c22_80, %c0_81], %81 {strides = array<i32>} : memref<32x448xf32, #tpu.memory_space<vmem>>, vector<2x448xf32>,
    %c44 = arith.constant 44 : index
    %c0_82 = arith.constant 0 : index
    %83 = vector.load %arg12[%c44, %c0_82] : memref<56x448xf32, #tpu.memory_space<vmem>>, vector<2x448xf32>
    %c46 = arith.constant 46 : index
    %c0_83 = arith.constant 0 : index
    %84 = vector.load %arg12[%c46, %c0_83] : memref<56x448xf32, #tpu.memory_space<vmem>>, vector<2x448xf32>
    %85 = arith.maximumf %83, %84 : vector<2x448xf32>
    %c24_84 = arith.constant 24 : index
    %c0_85 = arith.constant 0 : index
    %86 = vector.load %arg13[%c24_84, %c0_85] : memref<32x448xf32, #tpu.memory_space<vmem>>, vector<2x448xf32>
    tpu.vector_store %arg13[%c24_84, %c0_85], %85 {strides = array<i32>} : memref<32x448xf32, #tpu.memory_space<vmem>>, vector<2x448xf32>,
    %c48 = arith.constant 48 : index
    %c0_86 = arith.constant 0 : index
    %87 = vector.load %arg12[%c48, %c0_86] : memref<56x448xf32, #tpu.memory_space<vmem>>, vector<2x448xf32>
    %c50 = arith.constant 50 : index
    %c0_87 = arith.constant 0 : index
    %88 = vector.load %arg12[%c50, %c0_87] : memref<56x448xf32, #tpu.memory_space<vmem>>, vector<2x448xf32>
    %89 = arith.maximumf %87, %88 : vector<2x448xf32>
    %c26_88 = arith.constant 26 : index
    %c0_89 = arith.constant 0 : index
    %90 = vector.load %arg13[%c26_88, %c0_89] : memref<32x448xf32, #tpu.memory_space<vmem>>, vector<2x448xf32>
    tpu.vector_store %arg13[%c26_88, %c0_89], %89 {strides = array<i32>} : memref<32x448xf32, #tpu.memory_space<vmem>>, vector<2x448xf32>,
    %c52 = arith.constant 52 : index
    %c0_90 = arith.constant 0 : index
    %91 = vector.load %arg12[%c52, %c0_90] : memref<56x448xf32, #tpu.memory_space<vmem>>, vector<2x448xf32>
    %c54 = arith.constant 54 : index
    %c0_91 = arith.constant 0 : index
    %92 = vector.load %arg12[%c54, %c0_91] : memref<56x448xf32, #tpu.memory_space<vmem>>, vector<2x448xf32>
    %93 = arith.maximumf %91, %92 : vector<2x448xf32>
    %c28_92 = arith.constant 28 : index
    %c0_93 = arith.constant 0 : index
    %94 = vector.load %arg13[%c28_92, %c0_93] : memref<32x448xf32, #tpu.memory_space<vmem>>, vector<2x448xf32>
    tpu.vector_store %arg13[%c28_92, %c0_93], %93 {strides = array<i32>} : memref<32x448xf32, #tpu.memory_space<vmem>>, vector<2x448xf32>,
    %cst_94 = arith.constant 0.000000e+00 : f32
    %95 = vector.broadcast %cst_94 : f32 to vector<28x896xf32>
    %c0_95 = arith.constant 0 : index
    %c0_96 = arith.constant 0 : index
    %96 = vector.load %arg13[%c0_95, %c0_96] : memref<32x448xf32, #tpu.memory_space<vmem>>, vector<28x448xf32>
    %97 = arith.truncf %96 : vector<28x448xf32> to vector<28x448xbf16>
    %c0_97 = arith.constant 0 : index
    %c0_98 = arith.constant 0 : index
    %c0_99 = arith.constant 0 : index
    %98 = vector.load %arg4[%c0_97, %c0_98, %c0_99] : memref<3x448x896xbf16, #tpu.memory_space<vmem>>, vector<1x448x896xbf16>
    %99 = vector.shape_cast %98 : vector<1x448x896xbf16> to vector<448x896xbf16>
    %cst_100 = arith.constant dense<0.000000e+00> : vector<28x896xf32>
    %100 = tpu.matmul %97, %99, %cst_100 {dimension_numbers = #tpu.dot_dimension_numbers<[1], [0], [0], [1], [0, 0, 1, 1], [], []>} : vector<28x448xbf16>, vector<448x896xbf16>, vector<28x896xf32> -> vector<28x896xf32>
    %101 = arith.addf %95, %100 : vector<28x896xf32>
    %c2_101 = arith.constant 2 : index
    %c0_102 = arith.constant 0 : index
    %102 = vector.load %arg13[%c2_101, %c0_102] : memref<32x448xf32, #tpu.memory_space<vmem>>, vector<28x448xf32>
    %103 = arith.truncf %102 : vector<28x448xf32> to vector<28x448xbf16>
    %c1_103 = arith.constant 1 : index
    %c0_104 = arith.constant 0 : index
    %c0_105 = arith.constant 0 : index
    %104 = vector.load %arg4[%c1_103, %c0_104, %c0_105] : memref<3x448x896xbf16, #tpu.memory_space<vmem>>, vector<1x448x896xbf16>
    %105 = vector.shape_cast %104 : vector<1x448x896xbf16> to vector<448x896xbf16>
    %cst_106 = arith.constant dense<0.000000e+00> : vector<28x896xf32>
    %106 = tpu.matmul %103, %105, %cst_106 {dimension_numbers = #tpu.dot_dimension_numbers<[1], [0], [0], [1], [0, 0, 1, 1], [], []>} : vector<28x448xbf16>, vector<448x896xbf16>, vector<28x896xf32> -> vector<28x896xf32>
    %107 = arith.addf %101, %106 : vector<28x896xf32>
    %c4_107 = arith.constant 4 : index
    %c0_108 = arith.constant 0 : index
    %108 = vector.load %arg13[%c4_107, %c0_108] : memref<32x448xf32, #tpu.memory_space<vmem>>, vector<28x448xf32>
    %109 = arith.truncf %108 : vector<28x448xf32> to vector<28x448xbf16>
    %c2_109 = arith.constant 2 : index
    %c0_110 = arith.constant 0 : index
    %c0_111 = arith.constant 0 : index
    %110 = vector.load %arg4[%c2_109, %c0_110, %c0_111] : memref<3x448x896xbf16, #tpu.memory_space<vmem>>, vector<1x448x896xbf16>
    %111 = vector.shape_cast %110 : vector<1x448x896xbf16> to vector<448x896xbf16>
    %cst_112 = arith.constant dense<0.000000e+00> : vector<28x896xf32>
    %112 = tpu.matmul %109, %111, %cst_112 {dimension_numbers = #tpu.dot_dimension_numbers<[1], [0], [0], [1], [0, 0, 1, 1], [], []>} : vector<28x448xbf16>, vector<448x896xbf16>, vector<28x896xf32> -> vector<28x896xf32>
    %113 = arith.addf %107, %112 : vector<28x896xf32>
    %c0_113 = arith.constant 0 : index
    %c0_114 = arith.constant 0 : index
    %114 = vector.load %arg5[%c0_113, %c0_114] : memref<1x896xf32, #tpu.memory_space<vmem>>, vector<1x896xf32>
    %115 = vector.broadcast %114 : vector<1x896xf32> to vector<28x896xf32>
    %116 = arith.addf %113, %115 : vector<28x896xf32>
    %cst_115 = arith.constant 0.000000e+00 : f32
    %117 = vector.broadcast %cst_115 : f32 to vector<28x896xf32>
    %118 = arith.maximumf %116, %117 : vector<28x896xf32>
    %119 = vector.extract_strided_slice %118 {offsets = [0, 0], sizes = [28, 448], strides = [1, 1]} : vector<28x896xf32> to vector<28x448xf32>
    %120 = vector.extract_strided_slice %118 {offsets = [0, 448], sizes = [28, 448], strides = [1, 1]} : vector<28x896xf32> to vector<28x448xf32>
    %121 = arith.maximumf %119, %120 : vector<28x448xf32>
    %c0_116 = arith.constant 0 : index
    %c0_117 = arith.constant 0 : index
    %122 = vector.load %arg12[%c0_116, %c0_117] : memref<56x448xf32, #tpu.memory_space<vmem>>, vector<28x448xf32>
    tpu.vector_store %arg12[%c0_116, %c0_117], %121 {strides = array<i32>} : memref<56x448xf32, #tpu.memory_space<vmem>>, vector<28x448xf32>,
    %c0_118 = arith.constant 0 : index
    %c0_119 = arith.constant 0 : index
    %123 = vector.load %arg12[%c0_118, %c0_119] : memref<56x448xf32, #tpu.memory_space<vmem>>, vector<2x448xf32>
    %c2_120 = arith.constant 2 : index
    %c0_121 = arith.constant 0 : index
    %124 = vector.load %arg12[%c2_120, %c0_121] : memref<56x448xf32, #tpu.memory_space<vmem>>, vector<2x448xf32>
    %125 = arith.maximumf %123, %124 : vector<2x448xf32>
    %c0_122 = arith.constant 0 : index
    %c0_123 = arith.constant 0 : index
    %126 = vector.load %arg14[%c0_122, %c0_123] : memref<14x448xf32, #tpu.memory_space<vmem>>, vector<2x448xf32>
    tpu.vector_store %arg14[%c0_122, %c0_123], %125 {strides = array<i32>} : memref<14x448xf32, #tpu.memory_space<vmem>>, vector<2x448xf32>,
    %c4_124 = arith.constant 4 : index
    %c0_125 = arith.constant 0 : index
    %127 = vector.load %arg12[%c4_124, %c0_125] : memref<56x448xf32, #tpu.memory_space<vmem>>, vector<2x448xf32>
    %c6_126 = arith.constant 6 : index
    %c0_127 = arith.constant 0 : index
    %128 = vector.load %arg12[%c6_126, %c0_127] : memref<56x448xf32, #tpu.memory_space<vmem>>, vector<2x448xf32>
    %129 = arith.maximumf %127, %128 : vector<2x448xf32>
    %c2_128 = arith.constant 2 : index
    %c0_129 = arith.constant 0 : index
    %130 = vector.load %arg14[%c2_128, %c0_129] : memref<14x448xf32, #tpu.memory_space<vmem>>, vector<2x448xf32>
    tpu.vector_store %arg14[%c2_128, %c0_129], %129 {strides = array<i32>} : memref<14x448xf32, #tpu.memory_space<vmem>>, vector<2x448xf32>,
    %c8_130 = arith.constant 8 : index
    %c0_131 = arith.constant 0 : index
    %131 = vector.load %arg12[%c8_130, %c0_131] : memref<56x448xf32, #tpu.memory_space<vmem>>, vector<2x448xf32>
    %c10_132 = arith.constant 10 : index
    %c0_133 = arith.constant 0 : index
    %132 = vector.load %arg12[%c10_132, %c0_133] : memref<56x448xf32, #tpu.memory_space<vmem>>, vector<2x448xf32>
    %133 = arith.maximumf %131, %132 : vector<2x448xf32>
    %c4_134 = arith.constant 4 : index
    %c0_135 = arith.constant 0 : index
    %134 = vector.load %arg14[%c4_134, %c0_135] : memref<14x448xf32, #tpu.memory_space<vmem>>, vector<2x448xf32>
    tpu.vector_store %arg14[%c4_134, %c0_135], %133 {strides = array<i32>} : memref<14x448xf32, #tpu.memory_space<vmem>>, vector<2x448xf32>,
    %c12_136 = arith.constant 12 : index
    %c0_137 = arith.constant 0 : index
    %135 = vector.load %arg12[%c12_136, %c0_137] : memref<56x448xf32, #tpu.memory_space<vmem>>, vector<2x448xf32>
    %c14_138 = arith.constant 14 : index
    %c0_139 = arith.constant 0 : index
    %136 = vector.load %arg12[%c14_138, %c0_139] : memref<56x448xf32, #tpu.memory_space<vmem>>, vector<2x448xf32>
    %137 = arith.maximumf %135, %136 : vector<2x448xf32>
    %c6_140 = arith.constant 6 : index
    %c0_141 = arith.constant 0 : index
    %138 = vector.load %arg14[%c6_140, %c0_141] : memref<14x448xf32, #tpu.memory_space<vmem>>, vector<2x448xf32>
    tpu.vector_store %arg14[%c6_140, %c0_141], %137 {strides = array<i32>} : memref<14x448xf32, #tpu.memory_space<vmem>>, vector<2x448xf32>,
    %c16_142 = arith.constant 16 : index
    %c0_143 = arith.constant 0 : index
    %139 = vector.load %arg12[%c16_142, %c0_143] : memref<56x448xf32, #tpu.memory_space<vmem>>, vector<2x448xf32>
    %c18_144 = arith.constant 18 : index
    %c0_145 = arith.constant 0 : index
    %140 = vector.load %arg12[%c18_144, %c0_145] : memref<56x448xf32, #tpu.memory_space<vmem>>, vector<2x448xf32>
    %141 = arith.maximumf %139, %140 : vector<2x448xf32>
    %c8_146 = arith.constant 8 : index
    %c0_147 = arith.constant 0 : index
    %142 = vector.load %arg14[%c8_146, %c0_147] : memref<14x448xf32, #tpu.memory_space<vmem>>, vector<2x448xf32>
    tpu.vector_store %arg14[%c8_146, %c0_147], %141 {strides = array<i32>} : memref<14x448xf32, #tpu.memory_space<vmem>>, vector<2x448xf32>,
    %c20_148 = arith.constant 20 : index
    %c0_149 = arith.constant 0 : index
    %143 = vector.load %arg12[%c20_148, %c0_149] : memref<56x448xf32, #tpu.memory_space<vmem>>, vector<2x448xf32>
    %c22_150 = arith.constant 22 : index
    %c0_151 = arith.constant 0 : index
    %144 = vector.load %arg12[%c22_150, %c0_151] : memref<56x448xf32, #tpu.memory_space<vmem>>, vector<2x448xf32>
    %145 = arith.maximumf %143, %144 : vector<2x448xf32>
    %c10_152 = arith.constant 10 : index
    %c0_153 = arith.constant 0 : index
    %146 = vector.load %arg14[%c10_152, %c0_153] : memref<14x448xf32, #tpu.memory_space<vmem>>, vector<2x448xf32>
    tpu.vector_store %arg14[%c10_152, %c0_153], %145 {strides = array<i32>} : memref<14x448xf32, #tpu.memory_space<vmem>>, vector<2x448xf32>,
    %c24_154 = arith.constant 24 : index
    %c0_155 = arith.constant 0 : index
    %147 = vector.load %arg12[%c24_154, %c0_155] : memref<56x448xf32, #tpu.memory_space<vmem>>, vector<2x448xf32>
    %c26_156 = arith.constant 26 : index
    %c0_157 = arith.constant 0 : index
    %148 = vector.load %arg12[%c26_156, %c0_157] : memref<56x448xf32, #tpu.memory_space<vmem>>, vector<2x448xf32>
    %149 = arith.maximumf %147, %148 : vector<2x448xf32>
    %c12_158 = arith.constant 12 : index
    %c0_159 = arith.constant 0 : index
    %150 = vector.load %arg14[%c12_158, %c0_159] : memref<14x448xf32, #tpu.memory_space<vmem>>, vector<2x448xf32>
    tpu.vector_store %arg14[%c12_158, %c0_159], %149 {strides = array<i32>} : memref<14x448xf32, #tpu.memory_space<vmem>>, vector<2x448xf32>,
    %cst_160 = arith.constant 0.000000e+00 : f32
    %151 = vector.broadcast %cst_160 : f32 to vector<2x128xf32>
    %c0_161 = arith.constant 0 : index
    %c0_162 = arith.constant 0 : index
    %152 = vector.load %arg14[%c0_161, %c0_162] : memref<14x448xf32, #tpu.memory_space<vmem>>, vector<2x448xf32>
    %153 = arith.truncf %152 : vector<2x448xf32> to vector<2x448xbf16>
    %c0_163 = arith.constant 0 : index
    %c0_164 = arith.constant 0 : index
    %c0_165 = arith.constant 0 : index
    %154 = vector.load %arg6[%c0_163, %c0_164, %c0_165] : memref<7x448x128xbf16, #tpu.memory_space<vmem>>, vector<1x448x128xbf16>
    %155 = vector.shape_cast %154 : vector<1x448x128xbf16> to vector<448x128xbf16>
    %cst_166 = arith.constant dense<0.000000e+00> : vector<2x128xf32>
    %156 = tpu.matmul %153, %155, %cst_166 {dimension_numbers = #tpu.dot_dimension_numbers<[1], [0], [0], [1], [0, 0, 1, 1], [], []>} : vector<2x448xbf16>, vector<448x128xbf16>, vector<2x128xf32> -> vector<2x128xf32>
    %157 = arith.addf %151, %156 : vector<2x128xf32>
    %c2_167 = arith.constant 2 : index
    %c0_168 = arith.constant 0 : index
    %158 = vector.load %arg14[%c2_167, %c0_168] : memref<14x448xf32, #tpu.memory_space<vmem>>, vector<2x448xf32>
    %159 = arith.truncf %158 : vector<2x448xf32> to vector<2x448xbf16>
    %c1_169 = arith.constant 1 : index
    %c0_170 = arith.constant 0 : index
    %c0_171 = arith.constant 0 : index
    %160 = vector.load %arg6[%c1_169, %c0_170, %c0_171] : memref<7x448x128xbf16, #tpu.memory_space<vmem>>, vector<1x448x128xbf16>
    %161 = vector.shape_cast %160 : vector<1x448x128xbf16> to vector<448x128xbf16>
    %cst_172 = arith.constant dense<0.000000e+00> : vector<2x128xf32>
    %162 = tpu.matmul %159, %161, %cst_172 {dimension_numbers = #tpu.dot_dimension_numbers<[1], [0], [0], [1], [0, 0, 1, 1], [], []>} : vector<2x448xbf16>, vector<448x128xbf16>, vector<2x128xf32> -> vector<2x128xf32>
    %163 = arith.addf %157, %162 : vector<2x128xf32>
    %c4_173 = arith.constant 4 : index
    %c0_174 = arith.constant 0 : index
    %164 = vector.load %arg14[%c4_173, %c0_174] : memref<14x448xf32, #tpu.memory_space<vmem>>, vector<2x448xf32>
    %165 = arith.truncf %164 : vector<2x448xf32> to vector<2x448xbf16>
    %c2_175 = arith.constant 2 : index
    %c0_176 = arith.constant 0 : index
    %c0_177 = arith.constant 0 : index
    %166 = vector.load %arg6[%c2_175, %c0_176, %c0_177] : memref<7x448x128xbf16, #tpu.memory_space<vmem>>, vector<1x448x128xbf16>
    %167 = vector.shape_cast %166 : vector<1x448x128xbf16> to vector<448x128xbf16>
    %cst_178 = arith.constant dense<0.000000e+00> : vector<2x128xf32>
    %168 = tpu.matmul %165, %167, %cst_178 {dimension_numbers = #tpu.dot_dimension_numbers<[1], [0], [0], [1], [0, 0, 1, 1], [], []>} : vector<2x448xbf16>, vector<448x128xbf16>, vector<2x128xf32> -> vector<2x128xf32>
    %169 = arith.addf %163, %168 : vector<2x128xf32>
    %c6_179 = arith.constant 6 : index
    %c0_180 = arith.constant 0 : index
    %170 = vector.load %arg14[%c6_179, %c0_180] : memref<14x448xf32, #tpu.memory_space<vmem>>, vector<2x448xf32>
    %171 = arith.truncf %170 : vector<2x448xf32> to vector<2x448xbf16>
    %c3 = arith.constant 3 : index
    %c0_181 = arith.constant 0 : index
    %c0_182 = arith.constant 0 : index
    %172 = vector.load %arg6[%c3, %c0_181, %c0_182] : memref<7x448x128xbf16, #tpu.memory_space<vmem>>, vector<1x448x128xbf16>
    %173 = vector.shape_cast %172 : vector<1x448x128xbf16> to vector<448x128xbf16>
    %cst_183 = arith.constant dense<0.000000e+00> : vector<2x128xf32>
    %174 = tpu.matmul %171, %173, %cst_183 {dimension_numbers = #tpu.dot_dimension_numbers<[1], [0], [0], [1], [0, 0, 1, 1], [], []>} : vector<2x448xbf16>, vector<448x128xbf16>, vector<2x128xf32> -> vector<2x128xf32>
    %175 = arith.addf %169, %174 : vector<2x128xf32>
    %c8_184 = arith.constant 8 : index
    %c0_185 = arith.constant 0 : index
    %176 = vector.load %arg14[%c8_184, %c0_185] : memref<14x448xf32, #tpu.memory_space<vmem>>, vector<2x448xf32>
    %177 = arith.truncf %176 : vector<2x448xf32> to vector<2x448xbf16>
    %c4_186 = arith.constant 4 : index
    %c0_187 = arith.constant 0 : index
    %c0_188 = arith.constant 0 : index
    %178 = vector.load %arg6[%c4_186, %c0_187, %c0_188] : memref<7x448x128xbf16, #tpu.memory_space<vmem>>, vector<1x448x128xbf16>
    %179 = vector.shape_cast %178 : vector<1x448x128xbf16> to vector<448x128xbf16>
    %cst_189 = arith.constant dense<0.000000e+00> : vector<2x128xf32>
    %180 = tpu.matmul %177, %179, %cst_189 {dimension_numbers = #tpu.dot_dimension_numbers<[1], [0], [0], [1], [0, 0, 1, 1], [], []>} : vector<2x448xbf16>, vector<448x128xbf16>, vector<2x128xf32> -> vector<2x128xf32>
    %181 = arith.addf %175, %180 : vector<2x128xf32>
    %c10_190 = arith.constant 10 : index
    %c0_191 = arith.constant 0 : index
    %182 = vector.load %arg14[%c10_190, %c0_191] : memref<14x448xf32, #tpu.memory_space<vmem>>, vector<2x448xf32>
    %183 = arith.truncf %182 : vector<2x448xf32> to vector<2x448xbf16>
    %c5 = arith.constant 5 : index
    %c0_192 = arith.constant 0 : index
    %c0_193 = arith.constant 0 : index
    %184 = vector.load %arg6[%c5, %c0_192, %c0_193] : memref<7x448x128xbf16, #tpu.memory_space<vmem>>, vector<1x448x128xbf16>
    %185 = vector.shape_cast %184 : vector<1x448x128xbf16> to vector<448x128xbf16>
    %cst_194 = arith.constant dense<0.000000e+00> : vector<2x128xf32>
    %186 = tpu.matmul %183, %185, %cst_194 {dimension_numbers = #tpu.dot_dimension_numbers<[1], [0], [0], [1], [0, 0, 1, 1], [], []>} : vector<2x448xbf16>, vector<448x128xbf16>, vector<2x128xf32> -> vector<2x128xf32>
    %187 = arith.addf %181, %186 : vector<2x128xf32>
    %c12_195 = arith.constant 12 : index
    %c0_196 = arith.constant 0 : index
    %188 = vector.load %arg14[%c12_195, %c0_196] : memref<14x448xf32, #tpu.memory_space<vmem>>, vector<2x448xf32>
    %189 = arith.truncf %188 : vector<2x448xf32> to vector<2x448xbf16>
    %c6_197 = arith.constant 6 : index
    %c0_198 = arith.constant 0 : index
    %c0_199 = arith.constant 0 : index
    %190 = vector.load %arg6[%c6_197, %c0_198, %c0_199] : memref<7x448x128xbf16, #tpu.memory_space<vmem>>, vector<1x448x128xbf16>
    %191 = vector.shape_cast %190 : vector<1x448x128xbf16> to vector<448x128xbf16>
    %cst_200 = arith.constant dense<0.000000e+00> : vector<2x128xf32>
    %192 = tpu.matmul %189, %191, %cst_200 {dimension_numbers = #tpu.dot_dimension_numbers<[1], [0], [0], [1], [0, 0, 1, 1], [], []>} : vector<2x448xbf16>, vector<448x128xbf16>, vector<2x128xf32> -> vector<2x128xf32>
    %193 = arith.addf %187, %192 : vector<2x128xf32>
    %c0_201 = arith.constant 0 : index
    %c0_202 = arith.constant 0 : index
    %194 = vector.load %arg7[%c0_201, %c0_202] : memref<1x128xf32, #tpu.memory_space<vmem>>, vector<1x128xf32>
    %195 = vector.broadcast %194 : vector<1x128xf32> to vector<2x128xf32>
    %196 = arith.addf %193, %195 : vector<2x128xf32>
    %cst_203 = arith.constant 0.000000e+00 : f32
    %197 = vector.broadcast %cst_203 : f32 to vector<2x128xf32>
    %198 = arith.maximumf %196, %197 : vector<2x128xf32>
    %199 = arith.truncf %198 : vector<2x128xf32> to vector<2x128xbf16>
    %c0_204 = arith.constant 0 : index
    %c0_205 = arith.constant 0 : index
    %200 = vector.load %arg8[%c0_204, %c0_205] : memref<128x128xbf16, #tpu.memory_space<vmem>>, vector<128x128xbf16>
    %cst_206 = arith.constant dense<0.000000e+00> : vector<2x128xf32>
    %201 = tpu.matmul %199, %200, %cst_206 {dimension_numbers = #tpu.dot_dimension_numbers<[1], [0], [0], [1], [0, 0, 1, 1], [], []>} : vector<2x128xbf16>, vector<128x128xbf16>, vector<2x128xf32> -> vector<2x128xf32>
    %c0_207 = arith.constant 0 : index
    %c0_208 = arith.constant 0 : index
    %202 = vector.load %arg9[%c0_207, %c0_208] : memref<1x128xf32, #tpu.memory_space<vmem>>, vector<1x128xf32>
    %203 = vector.broadcast %202 : vector<1x128xf32> to vector<2x128xf32>
    %204 = arith.addf %201, %203 : vector<2x128xf32>
    %c0_209 = arith.constant 0 : index
    %c0_210 = arith.constant 0 : index
    %c0_211 = arith.constant 0 : index
    %205 = vector.load %arg10[%c0_209, %c0_210, %c0_211] : memref<1x2x128xf32, #tpu.memory_space<vmem>>, vector<1x2x128xf32>
    %206 = vector.shape_cast %205 : vector<1x2x128xf32> to vector<2x128xf32>
    %207 = vector.shape_cast %204 : vector<2x128xf32> to vector<1x2x128xf32>
    tpu.vector_store %arg10[%c0_209, %c0_210, %c0_211], %207 {strides = array<i32>} : memref<1x2x128xf32, #tpu.memory_space<vmem>>, vector<1x2x128xf32>,
    return
  }
  func.func @transform_0(%arg0: i32) -> (i32, i32, i32) {
    %c0_i32 = arith.constant 0 : i32
    %c0_i32_0 = arith.constant 0 : i32
    %c0_i32_1 = arith.constant 0 : i32
    return %arg0, %c0_i32, %c0_i32_0 : i32, i32, i32
  }
  func.func @transform_1(%arg0: i32) -> (i32, i32, i32) {
    %c0_i32 = arith.constant 0 : i32
    %c0_i32_0 = arith.constant 0 : i32
    %c0_i32_1 = arith.constant 0 : i32
    %c0_i32_2 = arith.constant 0 : i32
    return %c0_i32, %c0_i32_0, %c0_i32_1 : i32, i32, i32
  }
  func.func @transform_2(%arg0: i32) -> (i32, i32) {
    %c0_i32 = arith.constant 0 : i32
    %c0_i32_0 = arith.constant 0 : i32
    %c0_i32_1 = arith.constant 0 : i32
    return %c0_i32, %c0_i32_0 : i32, i32
  }
  func.func @transform_3(%arg0: i32) -> (i32, i32, i32) {
    %c0_i32 = arith.constant 0 : i32
    %c0_i32_0 = arith.constant 0 : i32
    %c0_i32_1 = arith.constant 0 : i32
    %c0_i32_2 = arith.constant 0 : i32
    return %c0_i32, %c0_i32_0, %c0_i32_1 : i32, i32, i32
  }
  func.func @transform_4(%arg0: i32) -> (i32, i32) {
    %c0_i32 = arith.constant 0 : i32
    %c0_i32_0 = arith.constant 0 : i32
    %c0_i32_1 = arith.constant 0 : i32
    return %c0_i32, %c0_i32_0 : i32, i32
  }
  func.func @transform_5(%arg0: i32) -> (i32, i32, i32) {
    %c0_i32 = arith.constant 0 : i32
    %c0_i32_0 = arith.constant 0 : i32
    %c0_i32_1 = arith.constant 0 : i32
    %c0_i32_2 = arith.constant 0 : i32
    return %c0_i32, %c0_i32_0, %c0_i32_1 : i32, i32, i32
  }
  func.func @transform_6(%arg0: i32) -> (i32, i32) {
    %c0_i32 = arith.constant 0 : i32
    %c0_i32_0 = arith.constant 0 : i32
    %c0_i32_1 = arith.constant 0 : i32
    return %c0_i32, %c0_i32_0 : i32, i32
  }
  func.func @transform_7(%arg0: i32) -> (i32, i32) {
    %c0_i32 = arith.constant 0 : i32
    %c0_i32_0 = arith.constant 0 : i32
    %c0_i32_1 = arith.constant 0 : i32
    return %c0_i32, %c0_i32_0 : i32, i32
  }
  func.func @transform_8(%arg0: i32) -> (i32, i32) {
    %c0_i32 = arith.constant 0 : i32
    %c0_i32_0 = arith.constant 0 : i32
    %c0_i32_1 = arith.constant 0 : i32
    return %c0_i32, %c0_i32_0 : i32, i32
  }
  func.func @transform_9(%arg0: i32) -> (i32, i32, i32) {
    %c0_i32 = arith.constant 0 : i32
    %c0_i32_0 = arith.constant 0 : i32
    %c0_i32_1 = arith.constant 0 : i32
    return %arg0, %c0_i32, %c0_i32_0 : i32, i32, i32
  }
}

</mosaic_0001>

<bundles_post_ra>
// kernel: mnist_net_forward.1
= control target key start
LH: loop header
LB: loop body
LE: loop exit
PB: predicated region body
PF: predicated region fallthrough
CT: control target
= control target key end

     0   :  { %14 = vsyncpa [#allocation7], 0  ;;  %s16802_s0 = inlined_call_operand.vmem [shape: f32[1,56,28], index: 0, kind: input, shape index: {}]   ;;  %s16803_s1 = inlined_call_operand.hbm [shape: bf16[3,28,896], index: 1, kind: input, shape index: {}]   ;;  %s16804_s2 = inlined_call_operand.hbm [shape: f32[1,896], index: 2, kind: input, shape index: {}]   ;;  %s16805_s3 = inlined_call_operand.hbm [shape: bf16[3,448,896], index: 3, kind: input, shape index: {}]   ;;  %s16806_s4 = inlined_call_operand.hbm [shape: f32[1,896], index: 4, kind: input, shape index: {}]   ;;  %s16807_s5 = inlined_call_operand.hbm [shape: bf16[7,448,128], index: 5, kind: input, shape index: {}]   ;;  %s16808_s6 = inlined_call_operand.hbm [shape: f32[1,128], index: 6, kind: input, shape index: {}]   ;;  %s16809_s7 = inlined_call_operand.hbm [shape: bf16[128,128], index: 7, kind: input, shape index: {}]   ;;  %s16810_s8 = inlined_call_operand.hbm [shape: f32[1,128], index: 8, kind: input, shape index: {}]   ;;  %s16811_s9 = inlined_call_operand.hbm [shape: f32[1,2,128], index: 9, kind: output, shape index: {}]  }
   0x1   :  { %15 = vsyncpa [#allocation10], 0 }
   0x2   :  { %16 = vsyncpa [#allocation13], 0 }
   0x3   :  { %17 = vsyncpa [#allocation16], 0 }
   0x4   :  { %18 = vsyncpa [#allocation19], 0  ;;  %s40_s11 = sshll.u32 %s16804_s2, 4  ;;  %s41_s11 = int_to_ptr.hbm [resolvable:$true] %s40_s11 }
   0x5   :  { %19 = vsyncpa [#allocation8], 0  ;;  %s14649_s12 = smov [#allocation9]   ;;  %s64_s16 = sshll.u32 %s16806_s4, 4  ;;  %s65_s16 = int_to_ptr.hbm [resolvable:$true] %s64_s16 }
   0x6   :  { %s42_s13 = sshll.u32 %s14649_s12, 4  ;;  %s14650_s17 = smov [#allocation12]   ;;  %s43_s13 = int_to_ptr.vmem [resolvable:$true] %s42_s13 }
   0x7   :  { %45 = dma.hbm_to_vmem [thread:$0]  %s41_s11, 112, %s43_s13, [#allocation10]  }
   0x8   :  { %s66_s18 = sshll.u32 %s14650_s17, 4  ;;  %s88_s21 = sshll.u32 %s16808_s6, 4  ;;  %s67_s18 = int_to_ptr.vmem [resolvable:$true] %s66_s18  ;;  %s89_s21 = int_to_ptr.hbm [resolvable:$true] %s88_s21 }
   0x9   :  { %69 = dma.hbm_to_vmem [thread:$0]  %s65_s16, 112, %s67_s18, [#allocation13]  }
   0xa   :  { %s26_s23 = sshll.u32 %s16803_s1, 4  ;;  %s14651_s24 = smov [#allocation15]   ;;  %s27_s23 = int_to_ptr.hbm [resolvable:$true] %s26_s23 }
   0xb   :  { %s90_s25 = sshll.u32 %s14651_s24, 4  ;;  %s14652_s4 = smov [#allocation6]   ;;  %s91_s25 = int_to_ptr.vmem [resolvable:$true] %s90_s25 }
   0xc   :  { %93 = dma.hbm_to_vmem [thread:$0]  %s89_s21, 16, %s91_s25, [#allocation16]  }
   0xd   :  { %s28_s26 = sshll.u32 %s14652_s4, 4  ;;  %s14653_s27 = smov 448   ;;  %s29_s26 = int_to_ptr.vmem [resolvable:$true] %s28_s26 }
   0xe   :  { %s14654_s28 = smov 28   ;;  %s50_s30 = sshll.u32 %s16805_s3, 4  ;;  %s51_s30 = int_to_ptr.hbm [resolvable:$true] %s50_s30 }
   0xf   :  { %34 = dma.hbm_to_vmem [thread:$0]  %s27_s23, 5376, %s29_s26, [#allocation7], %s14653_s27, %s14653_s27, %s14654_s28  }
  0x10   :  { %s14655_s10 = smov [#allocation11]   ;;  %s74_s13 = sshll.u32 %s16807_s5, 4  ;;  %s75_s13 = int_to_ptr.hbm [resolvable:$true] %s74_s13 }
  0x11   :  { %s52_s11 = sshll.u32 %s14655_s10, 4  ;;  %s14656_s14 = smov [#allocation14]   ;;  %s53_s11 = int_to_ptr.vmem [resolvable:$true] %s52_s11 }
  0x12   :  { %58 = dma.hbm_to_vmem [thread:$0]  %s51_s30, 75264, %s53_s11, [#allocation10], %s14653_s27, %s14653_s27, %s14654_s28  }
  0x13   :  { %s76_s15 = sshll.u32 %s14656_s14, 4  ;;  %s14657_s16 = smov 64   ;;  %s77_s15 = int_to_ptr.vmem [resolvable:$true] %s76_s15 }
  0x14   :  { %s14658_s17 = smov 4   ;;  %s98_s19 = sshll.u32 %s16809_s7, 4  ;;  %s99_s19 = int_to_ptr.hbm [resolvable:$true] %s98_s19 }
  0x15   :  { %82 = dma.hbm_to_vmem [thread:$0]  %s75_s13, 25088, %s77_s15, [#allocation13], %s14657_s16, %s14657_s16, %s14658_s17  }
  0x16   :  { %s14659_s20 = smov [#allocation17]   ;;  %s112_s22 = sshll.u32 %s16810_s8, 4  ;;  %s113_s22 = int_to_ptr.hbm [resolvable:$true] %s112_s22 }
  0x17   :  { %s100_s21 = sshll.u32 %s14659_s20, 4  ;;  %s14660_s23 = smov [#allocation18]   ;;  %s101_s21 = int_to_ptr.vmem [resolvable:$true] %s100_s21 }
  0x18   :  { %106 = dma.hbm_to_vmem [thread:$0]  %s99_s19, 1024, %s101_s21, [#allocation16], %s14657_s16, %s14657_s16, %s14658_s17  }
  0x19   :  { %s114_s24 = sshll.u32 %s14660_s23, 4  ;;  %s115_s24 = int_to_ptr.vmem [resolvable:$true] %s114_s24 }
  0x1a   :  { %117 = dma.hbm_to_vmem [thread:$0]  %s113_s22, 16, %s115_s24, [#allocation19]  }
  0x1b   :  { %14637 = dma.done.wait [#allocation7], 5376  }
  0x1c   :  { %14638 = vsyncadd [#allocation7], 4294961920 }
  0x1d   :  { %14639 = dma.done.wait [#allocation10], 75376  }
  0x1e   :  { %14640 = vsyncadd [#allocation10], 4294891920 }
  0x1f   :  { %14641 = dma.done.wait [#allocation13], 25200  }
  0x20   :  { %14642 = vsyncadd [#allocation13], 4294942096 }
  0x21   :  { %14643 = dma.done.wait [#allocation16], 1040  }
  0x22   :  { %14644 = vsyncadd [#allocation16], 4294966256 }
  0x23   :  { %14645 = dma.done.wait [#allocation19], 16  }
  0x24   :  { %14646 = vsyncadd [#allocation19], 4294967280  ;;  %vm301_vm0 = vcmask 1045504   ;;  %vm161_vm1 = vcmask 228352   ;;  %v10114_v0 = vld [vmem:[#allocation6 + $0xa8] sm:$0xf] }
  0x25   :  { %v13577_v1 = vld [vmem:[#allocation6 + $0xc0] sm:$0x30]  ;;  %v13574_v2 = vld [vmem:[#allocation6 + $0xac] sm:$0xf]  ;;  %v10116_v4 = vld [vmem:[#allocation6 + $0xc4] sm:$0x30] }
  0x26   :  { %v10115_v3 = vor.u32 %v13577_v1, %v10114_v0  ;;  %v13575_v5 = vld [vmem:[#allocation6 + $0xb4] sm:$0xf]  ;;  %v10124_v6 = vld [vmem:[#allocation6 + $0xcc] sm:$0x30]  ;;  %v10119_v7 = vor.u32 %v13574_v2, %v10116_v4  ;;  %v13570_v10 = vld [vmem:[#allocation6 + $0x88] sm:$0xf0] }
  0x27   :  { %v10127_v8 = vor.u32 %v13575_v5, %v10124_v6  ;;  %v10086_v9 = vld [vmem:[#allocation6 + $0x70] sm:$0xf]  ;;  %v13567_v11 = vld [vmem:[#allocation6 + $0x74] sm:$0xf]  ;;  %v13568_v14 = vld [vmem:[#allocation6 + $0x7c] sm:$0xf] }
  0x28   :  { %v303_v12 = vsel %vm301_vm0, %v10115_v3, 0  ;;  %v10088_v13 = vld [vmem:[#allocation6 + $0x8c] sm:$0xf0]  ;;  %v154_v15 = vld [vmem:[%s16802_s0] sm:$0xff]  ;;  %v306_v16 = vsel %vm301_vm0, %v10119_v7, 0  ;;  %v10087_v18 = vor.u32 %v13570_v10, %v10086_v9  ;;  %v155_v20 = vld [vmem:[%s16802_s0 + $0x8] sm:$0xff] }
  0x29   :  { %329 = vmatpush.bf16.msra.mxu0 %v303_v12  ;;  %v312_v17 = vsel %vm301_vm0, %v10127_v8, 0  ;;  %v10096_v19 = vld [vmem:[#allocation6 + $0x94] sm:$0xf0]  ;;  %162 = vst.msk [vmem:[#allocation2 + $0x2] sm:$0xff] %vm161_vm1, %v154_v15  ;;  %357 = vmatpush.bf16.msra.mxu1 %v306_v16  ;;  %v10091_v21 = vor.u32 %v13567_v11, %v10088_v13  ;;  %v160_v22 = vld [vmem:[%s16802_s0 + $0x30] sm:$0xff]  ;;  %v158_v35 = vld [vmem:[%s16802_s0 + $0x20] sm:$0xff] }
  0x2a   :  { %14387 = vmatpush.bf16.msra.mxu2 %v306_v16  ;;  %163 = vst.msk [vmem:[#allocation2 + $0xa] sm:$0xff] %vm161_vm1, %v155_v20  ;;  %v10122_v23 = vld [vmem:[#allocation6 + $0xb0] sm:$0xf]  ;;  %v13578_v24 = vld [vmem:[#allocation6 + $0xc8] sm:$0x30]  ;;  %413 = vmatpush.bf16.msra.mxu3 %v312_v17  ;;  %v10099_v25 = vor.u32 %v13568_v14, %v10096_v19  ;;  %v157_v30 = vld [vmem:[%s16802_s0 + $0x18] sm:$0xff] }
  0x2b   :  { %168 = vst.msk [vmem:[#allocation2 + $0x32] sm:$0xff] %vm161_vm1, %v160_v22  ;;  %v10123_v26 = vor.u32 %v13578_v24, %v10122_v23  ;;  %v10094_v27 = vld [vmem:[#allocation6 + $0x78] sm:$0xf]  ;;  %v13571_v28 = vld [vmem:[#allocation6 + $0x90] sm:$0xf0]  ;;  %v159_v36 = vld [vmem:[%s16802_s0 + $0x28] sm:$0xff] }
  0x2c   :  { %v156_v29 = vld [vmem:[%s16802_s0 + $0x10] sm:$0xff]  ;;  %v10130_v31 = vld [vmem:[#allocation6 + $0xb8] sm:$0xf]  ;;  %165 = vst.msk [vmem:[#allocation2 + $0x1a] sm:$0xff] %vm161_vm1, %v157_v30  ;;  %v10095_v37 = vor.u32 %v13571_v28, %v10094_v27  ;;  %v13576_v44 = vld [vmem:[#allocation6 + $0xbc] sm:$0xf] }
  0x2d   :  { %164 = vst.msk [vmem:[#allocation2 + $0x12] sm:$0xff] %vm161_vm1, %v156_v29  ;;  %v13579_v32 = vld [vmem:[#allocation6 + $0xd0] sm:$0x30]  ;;  %330 = vmatpush.bf16.msra.mxu0 %v10087_v18  ;;  %v309_v33 = vsel %vm301_vm0, %v10123_v26, 0  ;;  %358 = vmatpush.bf16.msra.mxu1 %v10091_v21  ;;  %v10132_v45 = vld [vmem:[#allocation6 + $0xd4] sm:$0x30] }
  0x2e   :  { %v10131_v34 = vor.u32 %v13579_v32, %v10130_v31  ;;  %14388 = vmatpush.bf16.msra.mxu2 %v10091_v21  ;;  %166 = vst.msk [vmem:[#allocation2 + $0x22] sm:$0xff] %vm161_vm1, %v158_v35  ;;  %414 = vmatpush.bf16.msra.mxu3 %v10099_v25  ;;  %v10135_v46 = vor.u32 %v13576_v44, %v10132_v45  ;;  %v13569_v47 = vld [vmem:[#allocation6 + $0x84] sm:$0xf]  ;;  %v10104_v48 = vld [vmem:[#allocation6 + $0x9c] sm:$0xf0]  ;;  %vm151_vm2 = vcmask 222208  }
  0x2f   :  { %167 = vst.msk [vmem:[#allocation2 + $0x2a] sm:$0xff] %vm161_vm1, %v159_v36  ;;  %v10107_v50 = vor.u32 %v13569_v47, %v10104_v48  ;;  %v10198_v54 = vld [vmem:[#allocation6 + $0x38] sm:$0xf]  ;;  %v13563_v55 = vld [vmem:[#allocation6 + $0x50] sm:$0x30]  ;;  %v16812_v4 = vmov 0.0  }
  0x30   :  { %v315_v38 = vsel %vm301_vm0, %v10131_v34, 0  ;;  %v196_v39 = vld [vmem:[#allocation2 + $0x2] sm:$0xff]  ;;  %v318_v49 = vsel %vm301_vm0, %v10135_v46, 0  ;;  %v10199_v57 = vor.u32 %v13563_v55, %v10198_v54  ;;  %v13572_v58 = vld [vmem:[#allocation6 + $0x98] sm:$0xf0]  ;;  %vm1382_vm3 = vcmask 523264  }
  0x31   :  { %441 = vmatpush.bf16.msrb.mxu0 %v315_v38  ;;  %v197_v40 = vld [vmem:[#allocation2 + $0xa] sm:$0xff]  ;;  %469 = vmatpush.bf16.msrb.mxu1 %v318_v49  ;;  %v10102_v56 = vld [vmem:[#allocation6 + $0x80] sm:$0xf]  ;;  %v13556_v60 = vld [vmem:[#allocation6 + $0x18] sm:$0xf0]  ;;  %vm1496_vm4 = vcmask 523270  }
  0x32   :  { %385 = vmatpush.bf16.msrb.mxu2 %v309_v33  ;;  %v14774_v41 = vpack.c.bf16 %v197_v40, %v196_v39  ;;  %v202_v42 = vld [vmem:[#allocation2 + $0x32] sm:$0xff]  ;;  %v10170_v59 = vld [vmem:[#allocation6] sm:$0xf]  ;;  %v10103_v61 = vor.u32 %v13572_v58, %v10102_v56  ;;  %v13580_v63 = vld [vmem:[#allocation6 + $0xd8] sm:$0x30]  ;;  %v597_v0 = vsel %vm301_vm0, %v10199_v57, 0 }
  0x33   :  { %v14776_v43 = vpack.c.bf16 %v202_v42, %v202_v42  ;;  %v199_v52 = vld [vmem:[#allocation2 + $0x1a] sm:$0xff]  ;;  %623 = vmatpush.bf16.msrb.mxu3 %v597_v0  ;;  %v10171_v2 = vor.u32 %v13556_v60, %v10170_v59  ;;  %152 = vst.msk [vmem:[#allocation2] sm:$0x3] %vm151_vm2, %v16812_v4  ;;  %v10110_v8 = vld [vmem:[#allocation6 + $0x88] sm:$0xf]  ;;  %vm1491_vm5 = vcmask 517120  }
  0x34   :  { %10140 = vmatmul.msk.bf16.vlgmr.msra.gmra.mxu0 %vm161_vm1, %v14774_v41  ;;  %10144 = vmatmul.msk.bf16.vlgmr.msra.gmra.mxu1 %vm161_vm1, %v14774_v41  ;;  %v198_v51 = vld [vmem:[#allocation2 + $0x12] sm:$0xff]  ;;  %v10138_v62 = vld [vmem:[#allocation6 + $0xc0] sm:$0xf]  ;;  %153 = vst.msk [vmem:[#allocation2 + $0x3a] sm:$0x3] %vm151_vm2, %v16812_v4  ;;  %v170_v16 = vld [vmem:[#allocation2 + $0x8] sm:$0xff] }
  0x35   :  { %10147 = vmatmul.msk.bf16.vlgmr.msra.gmra.mxu2 %vm161_vm1, %v14776_v43  ;;  %10152 = vmatmul.msk.bf16.vlgmr.msra.gmra.mxu3 %vm161_vm1, %v14774_v41  ;;  %v14787_v53 = vpack.c.bf16 %v199_v52, %v198_v51  ;;  %v10139_v1 = vor.u32 %v13580_v63, %v10138_v62  ;;  %v200_v5 = vld [vmem:[#allocation2 + $0x22] sm:$0xff]  ;;  %1488 = vst [vmem:[#allocation4] sm:$0x3] %v16812_v4  ;;  %v13560_v11 = vld [vmem:[#allocation6 + $0x3c] sm:$0xf]  ;;  %v171_v25 = vld [vmem:[#allocation2 + $0x10] sm:$0xff] }
  0x36   :  { %386 = vmatpush.bf16.msrb.mxu2 %v10095_v37  ;;  %470 = vmatpush.bf16.msrb.mxu1 %v10107_v50  ;;  %v201_v6 = vld [vmem:[#allocation2 + $0x2a] sm:$0xff]  ;;  %1489 = vst [vmem:[#allocation4 + $0x8] sm:$0x3] %v16812_v4  ;;  %v13573_v9 = vld [vmem:[#allocation6 + $0xa0] sm:$0xf0]  ;;  %v172_v26 = vld [vmem:[#allocation2 + $0x18] sm:$0xff] }
  0x37   :  { %442 = vmatpush.bf16.msrb.mxu0 %v10103_v61  ;;  %v321_v3 = vsel %vm301_vm0, %v10139_v1, 0  ;;  %624 = vmatpush.bf16.msrb.mxu3 %v10171_v2  ;;  %1490 = vst [vmem:[#allocation4 + $0x10] sm:$0x3] %v16812_v4  ;;  %v14804_v7 = vpack.c.bf16 %v201_v6, %v200_v5  ;;  %v10111_v10 = vor.u32 %v13573_v9, %v10110_v8  ;;  %v10200_v12 = vld [vmem:[#allocation6 + $0x54] sm:$0x30]  ;;  %v173_v35 = vld [vmem:[#allocation2 + $0x20] sm:$0xff] }
  0x38   :  { %1493 = vst [vmem:[#allocation4 + $0x60] sm:$0xc0] %v16812_v4  ;;  %v10203_v13 = vor.u32 %v13560_v11, %v10200_v12  ;;  %v10206_v18 = vld [vmem:[#allocation6 + $0x40] sm:$0xf]  ;;  %v13564_v19 = vld [vmem:[#allocation6 + $0x58] sm:$0x30]  ;;  %v14837_v27 = vpack.c.bf16 %v172_v26, %v171_v25 }
  0x39   :  { %1494 = vst [vmem:[#allocation4 + $0x68] sm:$0xc0] %v16812_v4  ;;  %v10207_v20 = vor.u32 %v13564_v19, %v10206_v18  ;;  %v10178_v21 = vld [vmem:[#allocation6 + $0x8] sm:$0xf]  ;;  %v13557_v22 = vld [vmem:[#allocation6 + $0x20] sm:$0xf0] }
  0x3a   :  { %497 = vmatpush.bf16.msra.mxu2 %v321_v3  ;;  %1495 = vst [vmem:[#allocation4 + $0x70] sm:$0xc0] %v16812_v4  ;;  %v600_v14 = vsel %vm301_vm0, %v10203_v13, 0  ;;  %v169_v15 = vld [vmem:[#allocation2] sm:$0xff]  ;;  %v10179_v24 = vor.u32 %v13557_v22, %v10178_v21  ;;  %v10214_v28 = vld [vmem:[#allocation6 + $0x48] sm:$0xf] }
  0x3b   :  { %651 = vmatpush.bf16.msra.mxu0 %v600_v14  ;;  %v14826_v17 = vpack.c.bf16 %v170_v16, %v169_v15  ;;  %v603_v23 = vsel %vm301_vm0, %v10207_v20, 0  ;;  %v13565_v29 = vld [vmem:[#allocation6 + $0x60] sm:$0x30]  ;;  %v10172_v32 = vld [vmem:[#allocation6 + $0x1c] sm:$0xf0]  ;;  %v174_v36 = vld [vmem:[#allocation2 + $0x28] sm:$0xff] }
  0x3c   :  { %679 = vmatpush.bf16.msra.mxu1 %v603_v23  ;;  %v13553_v30 = vld [vmem:[#allocation6 + $0x4] sm:$0xf]  ;;  %v10215_v31 = vor.u32 %v13565_v29, %v10214_v28  ;;  %v10186_v37 = vld [vmem:[#allocation6 + $0x10] sm:$0xf]  ;;  %v13558_v38 = vld [vmem:[#allocation6 + $0x28] sm:$0xf0]  ;;  %v14848_v40 = vpack.c.bf16 %v174_v36, %v173_v35 }
  0x3d   :  { %v10175_v33 = vor.u32 %v13553_v30, %v10172_v32  ;;  %v10187_v39 = vor.u32 %v13558_v38, %v10186_v37  ;;  %v10208_v42 = vld [vmem:[#allocation6 + $0x5c] sm:$0x30]  ;;  %v175_v46 = vld [vmem:[#allocation2 + $0x30] sm:$0xff]  ;;  %v13554_v47 = vld [vmem:[#allocation6 + $0xc] sm:$0xf]  ;;  %vm1537_vm6 = vcmask 519170  }
  0x3e   :  { %498 = vmatpush.bf16.msra.mxu2 %v10111_v10  ;;  %v609_v34 = vsel %vm301_vm0, %v10215_v31, 0  ;;  %v10180_v48 = vld [vmem:[#allocation6 + $0x24] sm:$0xf0]  ;;  %v14859_v50 = vpack.c.bf16 %v175_v46, %v175_v46  ;;  %v13562_v51 = vld [vmem:[#allocation6 + $0x4c] sm:$0xf]  ;;  %vm1566_vm7 = vcmask 521220  }
  0x3f   :  { %735 = vmatpush.bf16.msra.mxu3 %v609_v34  ;;  %652 = vmatpush.bf16.msra.mxu0 %v10175_v33  ;;  %v10183_v49 = vor.u32 %v13554_v47, %v10180_v48  ;;  %v10216_v52 = vld [vmem:[#allocation6 + $0x64] sm:$0x30]  ;;  %v10222_v61 = vld [vmem:[#allocation6 + $0x50] sm:$0xf]  ;;  %v13566_v62 = vld [vmem:[#allocation6 + $0x68] sm:$0x30] }
  0x40   :  { %680 = vmatpush.bf16.msra.mxu1 %v10179_v24  ;;  %v10219_v55 = vor.u32 %v13562_v51, %v10216_v52  ;;  %v10223_v63 = vor.u32 %v13566_v62, %v10222_v61  ;;  %v10194_v1 = vld [vmem:[#allocation6 + $0x18] sm:$0xf]  ;;  %v13588_v12 = vld [vmem:[#allocation6 + $0x11c] sm:$0xf]  ;;  %v13555_v16 = vld [vmem:[#allocation6 + $0x14] sm:$0xf] }
  0x41   :  { %v10284_v13 = vld [vmem:[#allocation6 + $0x134] sm:$0x30]  ;;  %v10188_v18 = vld [vmem:[#allocation6 + $0x2c] sm:$0xf0]  ;;  %v13581_v19 = vld [vmem:[#allocation6 + $0xe4] sm:$0xf] }
  0x42   :  { %v612_v56 = vsel %vm301_vm0, %v10219_v55, 0  ;;  %v615_v0 = vsel %vm301_vm0, %v10223_v63, 0  ;;  %v10287_v14 = vor.u32 %v13588_v12, %v10284_v13  ;;  %v10191_v22 = vor.u32 %v13555_v16, %v10188_v18  ;;  %v10256_v23 = vld [vmem:[#allocation6 + $0xfc] sm:$0xf0]  ;;  %v10282_v28 = vld [vmem:[#allocation6 + $0x118] sm:$0xf] }
  0x43   :  { %736 = vmatpush.bf16.msra.mxu3 %v10187_v39  ;;  %v10259_v26 = vor.u32 %v13581_v19, %v10256_v23  ;;  %v13591_v29 = vld [vmem:[#allocation6 + $0x130] sm:$0x30]  ;;  %v10254_v36 = vld [vmem:[#allocation6 + $0xe0] sm:$0xf]  ;;  %v13584_v37 = vld [vmem:[#allocation6 + $0xf8] sm:$0xf0] }
  0x44   :  { %10141 = vmatmul.msk.bf16.gmra.mxu0 %vm161_vm1, %v14787_v53  ;;  %10145 = vmatmul.msk.bf16.gmra.mxu1 %vm161_vm1, %v14787_v53  ;;  %v922_v15 = vsel %vm301_vm0, %v10287_v14, 0  ;;  %v10283_v30 = vor.u32 %v13591_v29, %v10282_v28  ;;  %v814_v51 = vld [vmem:[#allocation2 + $0xc] sm:$0xff]  ;;  %v10290_v63 = vld [vmem:[#allocation6 + $0x120] sm:$0xf]  ;;  %v13589_v14 = vld [vmem:[#allocation6 + $0x124] sm:$0xf] }
  0x45   :  { %10148 = vmatmul.msk.bf16.vlgmr.msrb.gmra.mxu2 %vm161_vm1, %v14774_v41  ;;  %10153 = vmatmul.msk.bf16.gmra.mxu3 %vm161_vm1, %v14787_v53  ;;  %v815_v19 = vld [vmem:[#allocation2 + $0x14] sm:$0xff]  ;;  %v13582_v23 = vld [vmem:[#allocation6 + $0xec] sm:$0xf]  ;;  %vm2509_vm8 = vcmask 1046528   ;;  %vm7641_vm9 = vcmask 519168   ;;  %s14662_s0 = smov [#allocation20]  }
  0x46   :  { %v919_v31 = vsel %vm301_vm0, %v10283_v30, 0  ;;  %s10068_s13 = sshll.u32 %s14662_s0, 4  ;;  %s10069_s13 = int_to_ptr.vmem [resolvable:$true] %s10068_s13 }
  0x54   :  { %10142 = vmatmul.msk.bf16.gmra.mxu0 %vm161_vm1, %v14804_v7  ;;  %10146 = vmatmul.msk.bf16.gmra.mxu1 %vm161_vm1, %v14804_v7 }
  0x55   :  { %10149 = vmatmul.msk.bf16.gmra.mxu2 %vm161_vm1, %v14787_v53  ;;  %10154 = vmatmul.msk.bf16.gmra.mxu3 %vm161_vm1, %v14804_v7 }
  0x64   :  { %10143 = vmatmul.msk.bf16.gmra.mxu0 %vm161_vm1, %v14776_v43  ;;  %10160 = vmatmul.msk.bf16.vlgmr.msrb.gmra.mxu1 %vm161_vm1, %v14774_v41 }
  0x65   :  { %10150 = vmatmul.msk.bf16.gmra.mxu2 %vm161_vm1, %v14804_v7  ;;  %10155 = vmatmul.msk.bf16.gmra.mxu3 %vm161_vm1, %v14776_v43 }
  0x66   :  { %791 = vmatpush.bf16.msrb.mxu1 %v615_v0  ;;  %v13592_v0 = vld [vmem:[#allocation6 + $0x138] sm:$0x30] }
  0x74   :  { %10156 = vmatmul.msk.bf16.vlgmr.msrb.gmra.mxu0 %vm161_vm1, %v14774_v41  ;;  %10161 = vmatmul.msk.bf16.gmra.mxu1 %vm161_vm1, %v14787_v53 }
  0x75   :  { %10151 = vmatmul.msk.bf16.gmra.mxu2 %vm161_vm1, %v14776_v43  ;;  %10224 = vmatmul.msk.bf16.vlgmr.msrb.gmra.mxu3 %vm161_vm1, %v14826_v17 }
  0x76   :  { %763 = vmatpush.bf16.msrb.mxu0 %v612_v56  ;;  %973 = vmatpush.bf16.msrb.mxu3 %v922_v15  ;;  %v10292_v15 = vld [vmem:[#allocation6 + $0x13c] sm:$0x30] }
  0x77   :  { %v10295_v16 = vor.u32 %v13589_v14, %v10292_v15  ;;  %v13585_v14 = vld [vmem:[#allocation6 + $0x100] sm:$0xf0]  ;;  %v13583_v15 = vld [vmem:[#allocation6 + $0xf4] sm:$0xf] }
  0x79   :  { %v928_v18 = vsel %vm301_vm0, %v10295_v16, 0 }
  0x7a   :  { %764 = vmatpush.bf16.msrb.mxu0 %v10191_v22  ;;  %974 = vmatpush.bf16.msrb.mxu3 %v10259_v26  ;;  %v816_v22 = vld [vmem:[#allocation2 + $0x1c] sm:$0xff]  ;;  %v10264_v26 = vld [vmem:[#allocation6 + $0x104] sm:$0xf0] }
  0x7b   :  { %v10267_v30 = vor.u32 %v13582_v23, %v10264_v26 }
  0x84   :  { %10157 = vmatmul.msk.bf16.gmra.mxu0 %vm161_vm1, %v14787_v53  ;;  %10162 = vmatmul.msk.bf16.gmra.mxu1 %vm161_vm1, %v14804_v7 }
  0x85   :  { %10164 = vmatmul.msk.bf16.vlgmr.msra.gmra.mxu2 %vm161_vm1, %v14774_v41  ;;  %10225 = vmatmul.msk.bf16.gmra.mxu3 %vm161_vm1, %v14837_v27  ;;  %v13561_v41 = vld [vmem:[#allocation6 + $0x44] sm:$0xf] }
  0x86   :  { %v10211_v44 = vor.u32 %v13561_v41, %v10208_v42  ;;  %v10255_v41 = vor.u32 %v13584_v37, %v10254_v36  ;;  %v14995_v37 = vpack.c.bf16 %v816_v22, %v815_v19  ;;  %v10272_v19 = vld [vmem:[#allocation6 + $0x10c] sm:$0xf0] }
  0x88   :  { %v606_v45 = vsel %vm301_vm0, %v10211_v44, 0 }
  0x89   :  { %707 = vmatpush.bf16.msrb.mxu2 %v606_v45 }
  0x8d   :  { %708 = vmatpush.bf16.msrb.mxu2 %v10183_v49  ;;  %v813_v49 = vld [vmem:[#allocation2 + $0x4] sm:$0xff] }
  0x8e   :  { %v14967_v62 = vpack.c.bf16 %v814_v51, %v813_v49 }
  0x91   :  { %945 = vmatpush.bf16.msra.mxu2 %v919_v31 }
  0x94   :  { %10158 = vmatmul.msk.bf16.gmra.mxu0 %vm161_vm1, %v14804_v7  ;;  %10163 = vmatmul.msk.bf16.gmra.mxu1 %vm161_vm1, %v14776_v43 }
  0x95   :  { %10165 = vmatmul.msk.bf16.gmra.mxu2 %vm161_vm1, %v14787_v53  ;;  %10226 = vmatmul.msk.bf16.gmra.mxu3 %vm161_vm1, %v14848_v40 }
  0x96   :  { %946 = vmatpush.bf16.msra.mxu2 %v10255_v41 }
  0xa4   :  { %10159 = vmatmul.msk.bf16.gmra.mxu0 %vm161_vm1, %v14776_v43  ;;  %10232 = vmatmul.msk.bf16.vlgmr.msra.gmra.mxu1 %vm161_vm1, %v14826_v17 }
  0xa5   :  { %10166 = vmatmul.msk.bf16.gmra.mxu2 %vm161_vm1, %v14804_v7  ;;  %10227 = vmatmul.msk.bf16.gmra.mxu3 %vm161_vm1, %v14859_v50 }
  0xb1   :  { %v14869_v53 = vpop.f32.mrf.mxu0  ;;  %v14871_v54 = vpop.f32.mrf.mxu1 }
  0xb4   :  { %10228 = vmatmul.msk.bf16.vlgmr.msra.gmra.mxu0 %vm161_vm1, %v14826_v17  ;;  %10233 = vmatmul.msk.bf16.gmra.mxu1 %vm161_vm1, %v14837_v27 }
  0xb5   :  { %10167 = vmatmul.msk.bf16.gmra.mxu2 %vm161_vm1, %v14776_v43  ;;  %10240 = vmatmul.msk.bf16.vlgmr.msra.gmra.mxu3 %vm161_vm1, %v14826_v17  ;;  %v13559_v43 = vld [vmem:[#allocation6 + $0x30] sm:$0xf0] }
  0xb6   :  { %v10195_v5 = vor.u32 %v13559_v43, %v10194_v1  ;;  %v10291_v1 = vor.u32 %v13592_v0, %v10290_v63 }
  0xb8   :  { %v14882_v57 = vpop.f32.mrf.mxu2  ;;  %v14884_v58 = vpop.f32.mrf.mxu3  ;;  %792 = vmatpush.bf16.msrb.mxu1 %v10195_v5  ;;  %v925_v43 = vsel %vm301_vm0, %v10291_v1, 0  ;;  %v817_v1 = vld [vmem:[#allocation2 + $0x24] sm:$0xff] }
  0xb9   :  { %v14886_v59 = vpop.f32.mrf.mxu0  ;;  %v14888_v60 = vpop.f32.mrf.mxu1  ;;  %1001 = vmatpush.bf16.msra.mxu0 %v925_v43  ;;  %v818_v43 = vld [vmem:[#allocation2 + $0x2c] sm:$0xff] }
  0xba   :  { %16816 = vst [vmem:[#allocation27_spill] sm:$0xff] %v14888_v60 }
  0xbc   :  { %1029 = vmatpush.bf16.msra.mxu1 %v928_v18 }
  0xc0   :  { %v377_v2 = vpop.f32.mrf.mxu2  ;;  %v14891_v3 = vpop.f32.mrf.mxu3  ;;  %1030 = vmatpush.bf16.msra.mxu1 %v10267_v30  ;;  %v10298_v30 = vld [vmem:[#allocation6 + $0x128] sm:$0xf] }
  0xc1   :  { %v14893_v6 = vpop.f32.mrf.mxu0  ;;  %v14895_v7 = vpop.f32.mrf.mxu1 }
  0xc4   :  { %10229 = vmatmul.msk.bf16.gmra.mxu0 %vm161_vm1, %v14837_v27  ;;  %10234 = vmatmul.msk.bf16.gmra.mxu1 %vm161_vm1, %v14848_v40 }
  0xc5   :  { %10236 = vmatmul.msk.bf16.vlgmr.msrb.gmra.mxu2 %vm161_vm1, %v14826_v17  ;;  %10241 = vmatmul.msk.bf16.gmra.mxu3 %vm161_vm1, %v14837_v27 }
  0xc8   :  { %v14905_v8 = vpop.f32.mrf.mxu2  ;;  %v14907_v9 = vpop.f32.mrf.mxu3 }
  0xc9   :  { %v14909_v10 = vpop.f32.mrf.mxu0  ;;  %v14911_v11 = vpop.f32.mrf.mxu1 }
  0xca   :  { %16817 = vst [vmem:[#allocation28_spill] sm:$0xff] %v14911_v11 }
  0xd0   :  { %v14914_v20 = vpop.f32.mrf.mxu2  ;;  %v14916_v21 = vpop.f32.mrf.mxu3 }
  0xd1   :  { %16818 = vst [vmem:[#allocation29_spill] sm:$0xff] %v14914_v20  ;;  %v14918_v24 = vpop.f32.mrf.mxu0  ;;  %v14920_v25 = vpop.f32.mrf.mxu1 }
  0xd4   :  { %10230 = vmatmul.msk.bf16.gmra.mxu0 %vm161_vm1, %v14848_v40  ;;  %10235 = vmatmul.msk.bf16.gmra.mxu1 %vm161_vm1, %v14859_v50 }
  0xd5   :  { %10237 = vmatmul.msk.bf16.gmra.mxu2 %vm161_vm1, %v14837_v27  ;;  %10242 = vmatmul.msk.bf16.gmra.mxu3 %vm161_vm1, %v14848_v40 }
  0xd8   :  { %v14931_v32 = vpop.f32.mrf.mxu2  ;;  %v14933_v33 = vpop.f32.mrf.mxu3 }
  0xd9   :  { %v14935_v34 = vpop.f32.mrf.mxu0  ;;  %v14937_v35 = vpop.f32.mrf.mxu1 }
  0xda   :  { %16819 = vst [vmem:[#allocation30_spill] sm:$0xff] %v14937_v35  ;;  %v10278_v35 = vld [vmem:[#allocation6 + $0xf8] sm:$0xf] }
  0xe0   :  { %v14939_v38 = vpop.f32.mrf.mxu2  ;;  %v14941_v39 = vpop.f32.mrf.mxu3 }
  0xe1   :  { %16820 = vst [vmem:[#allocation31_spill] sm:$0xff] %v14939_v38  ;;  %v14943_v42 = vpop.f32.mrf.mxu0  ;;  %v14945_v44 = vpop.f32.mrf.mxu1 }
  0xe4   :  { %10231 = vmatmul.msk.bf16.gmra.mxu0 %vm161_vm1, %v14859_v50  ;;  %10248 = vmatmul.msk.bf16.vlgmr.msrb.gmra.mxu1 %vm161_vm1, %v14826_v17 }
  0xe5   :  { %10238 = vmatmul.msk.bf16.gmra.mxu2 %vm161_vm1, %v14848_v40  ;;  %10243 = vmatmul.msk.bf16.gmra.mxu3 %vm161_vm1, %v14859_v50 }
  0xe8   :  { %v14955_v45 = vpop.f32.mrf.mxu2  ;;  %v14957_v46 = vpop.f32.mrf.mxu3 }
  0xe9   :  { %v349_v47 = vpop.f32.mrf.mxu0  ;;  %v14959_v48 = vpop.f32.mrf.mxu1 }
  0xf0   :  { %v14961_v52 = vpop.f32.mrf.mxu2  ;;  %v433_v55 = vpop.f32.mrf.mxu3 }
  0xf1   :  { %16821 = vst [vmem:[#allocation32_spill] sm:$0xff] %v14961_v52  ;;  %v14963_v56 = vpop.f32.mrf.mxu0  ;;  %v14965_v61 = vpop.f32.mrf.mxu1  ;;  %v10300_v55 = vld [vmem:[#allocation6 + $0x144] sm:$0x30] }
  0xf4   :  { %10244 = vmatmul.msk.bf16.vlgmr.msrb.gmra.mxu0 %vm161_vm1, %v14826_v17  ;;  %10249 = vmatmul.msk.bf16.gmra.mxu1 %vm161_vm1, %v14837_v27 }
  0xf5   :  { %10239 = vmatmul.msk.bf16.gmra.mxu2 %vm161_vm1, %v14859_v50  ;;  %10312 = vmatmul.msk.bf16.vlgmr.msrb.gmra.mxu3 %vm161_vm1, %v14967_v62 }
  0xf8   :  { %v14978_v2 = vpop.f32.mrf.mxu2  ;;  %v626_v5 = vpop.f32.mrf.mxu3 }
  0xf9   :  { %v14981_v12 = vadd.f32 %v626_v5, %v14869_v53  ;;  %v14983_v13 = vpop.f32.mrf.mxu0  ;;  %v14985_v17 = vpop.f32.mrf.mxu1  ;;  %v10262_v5 = vld [vmem:[#allocation6 + $0xe8] sm:$0xf] }
 0x100   :  { %v405_v28 = vpop.f32.mrf.mxu2  ;;  %v628_v29 = vpop.f32.mrf.mxu3 }
 0x101   :  { %v14989_v53 = vadd.f32 %v628_v29, %v14886_v59  ;;  %v14991_v31 = vpop.f32.mrf.mxu0  ;;  %v14993_v36 = vpop.f32.mrf.mxu1  ;;  %v15024_v28 = vpack.c.bf16 %v818_v43, %v817_v1  ;;  %v10275_v29 = vor.u32 %v13583_v15, %v10272_v19  ;;  %v819_v43 = vld [vmem:[#allocation2 + $0x34] sm:$0xff] }
 0x103   :  { %16822 = vst [vmem:[#allocation33_spill] sm:$0xff] %v14989_v53 }
 0x104   :  { %10245 = vmatmul.msk.bf16.gmra.mxu0 %vm161_vm1, %v14837_v27  ;;  %10250 = vmatmul.msk.bf16.gmra.mxu1 %vm161_vm1, %v14848_v40  ;;  %v13590_v27 = vld [vmem:[#allocation6 + $0x12c] sm:$0xf] }
 0x105   :  { %10308 = vmatmul.msk.bf16.vlgmr.msra.gmra.mxu2 %vm161_vm1, %v14967_v62  ;;  %10313 = vmatmul.msk.bf16.gmra.mxu3 %vm161_vm1, %v14995_v37  ;;  %v10303_v63 = vor.u32 %v13590_v27, %v10300_v55 }
 0x107   :  { %v934_v0 = vsel %vm301_vm0, %v10303_v63, 0 }
 0x108   :  { %v15005_v59 = vpop.f32.mrf.mxu2  ;;  %v631_v41 = vpop.f32.mrf.mxu3  ;;  %1085 = vmatpush.bf16.msra.mxu3 %v934_v0 }
 0x109   :  { %v15008_v47 = vadd.f32 %v631_v41, %v14893_v6  ;;  %v15010_v49 = vpop.f32.mrf.mxu0  ;;  %v15012_v51 = vpop.f32.mrf.mxu1  ;;  %v10263_v6 = vor.u32 %v13585_v14, %v10262_v5  ;;  %v13593_v41 = vld [vmem:[#allocation6 + $0x140] sm:$0x30]  ;;  %v10270_v5 = vld [vmem:[#allocation6 + $0xf0] sm:$0xf]  ;;  %v13586_v14 = vld [vmem:[#allocation6 + $0x108] sm:$0xf0] }
 0x10a   :  { %16823 = vst [vmem:[#allocation34_spill] sm:$0xff] %v15012_v51  ;;  %v10299_v27 = vor.u32 %v13593_v41, %v10298_v30  ;;  %v15051_v41 = vpack.c.bf16 %v819_v43, %v819_v43 }
 0x10b   :  { %1002 = vmatpush.bf16.msra.mxu0 %v10263_v6  ;;  %v10271_v6 = vor.u32 %v13586_v14, %v10270_v5  ;;  %v10306_v14 = vld [vmem:[#allocation6 + $0x130] sm:$0xf] }
 0x10c   :  { %1086 = vmatpush.bf16.msra.mxu3 %v10275_v29 }
 0x110   :  { %v15015_v16 = vpop.f32.mrf.mxu2  ;;  %v633_v18 = vpop.f32.mrf.mxu3 }
 0x111   :  { %16824 = vst [vmem:[#allocation35_spill] sm:$0xff] %v15015_v16  ;;  %v15018_v22 = vadd.f32 %v633_v18, %v14909_v10  ;;  %v15020_v23 = vpop.f32.mrf.mxu0  ;;  %v15022_v26 = vpop.f32.mrf.mxu1  ;;  %v931_v10 = vsel %vm301_vm0, %v10299_v27, 0 }
 0x112   :  { %1057 = vmatpush.bf16.msrb.mxu2 %v931_v10 }
 0x113   :  { %16825 = vst [vmem:[#allocation36_spill] sm:$0xff] %v15018_v22 }
 0x114   :  { %10246 = vmatmul.msk.bf16.gmra.mxu0 %vm161_vm1, %v14848_v40  ;;  %10251 = vmatmul.msk.bf16.gmra.mxu1 %vm161_vm1, %v14859_v50 }
 0x115   :  { %10309 = vmatmul.msk.bf16.gmra.mxu2 %vm161_vm1, %v14995_v37  ;;  %10314 = vmatmul.msk.bf16.gmra.mxu3 %vm161_vm1, %v15024_v28 }
 0x116   :  { %1058 = vmatpush.bf16.msrb.mxu2 %v10271_v6 }
 0x118   :  { %v15035_v55 = vpop.f32.mrf.mxu2  ;;  %v636_v63 = vpop.f32.mrf.mxu3 }
 0x119   :  { %16826 = vst [vmem:[#allocation37_spill] sm:$0xff] %v15035_v55  ;;  %v15038_v0 = vadd.f32 %v636_v63, %v14918_v24  ;;  %v15040_v1 = vpop.f32.mrf.mxu0  ;;  %v489_v40 = vpop.f32.mrf.mxu1 }
 0x120   :  { %v15042_v15 = vpop.f32.mrf.mxu2  ;;  %v638_v18 = vpop.f32.mrf.mxu3 }
 0x121   :  { %16827 = vst [vmem:[#allocation38_spill] sm:$0xff] %v15042_v15  ;;  %v15045_v19 = vadd.f32 %v638_v18, %v14935_v34  ;;  %v15047_v29 = vpop.f32.mrf.mxu0  ;;  %v15049_v30 = vpop.f32.mrf.mxu1  ;;  %v13594_v18 = vld [vmem:[#allocation6 + $0x148] sm:$0x30] }
 0x122   :  { %v10307_v6 = vor.u32 %v13594_v18, %v10306_v14 }
 0x123   :  { %16828 = vst [vmem:[#allocation39_spill] sm:$0xff] %v15045_v19 }
 0x124   :  { %10247 = vmatmul.msk.bf16.gmra.mxu0 %vm161_vm1, %v14859_v50  ;;  %10320 = vmatmul.msk.bf16.vlgmr.msra.gmra.mxu1 %vm161_vm1, %v14967_v62 }
 0x125   :  { %10310 = vmatmul.msk.bf16.gmra.mxu2 %vm161_vm1, %v15024_v28  ;;  %10315 = vmatmul.msk.bf16.gmra.mxu3 %vm161_vm1, %v15051_v41 }
 0x128   :  { %v15061_v24 = vpop.f32.mrf.mxu2  ;;  %v641_v34 = vpop.f32.mrf.mxu3 }
 0x129   :  { %16829 = vst [vmem:[#allocation40_spill] sm:$0xff] %v15061_v24  ;;  %v15064_v27 = vadd.f32 %v641_v34, %v14943_v42  ;;  %v461_v10 = vpop.f32.mrf.mxu0  ;;  %v15066_v63 = vpop.f32.mrf.mxu1  ;;  %v937_v42 = vsel %vm301_vm0, %v10307_v6, 0 }
 0x12a   :  { %16830 = vst [vmem:[#allocation41_spill] sm:$0xff] %v15066_v63  ;;  %1113 = vmatpush.bf16.msrb.mxu0 %v937_v42  ;;  %v13587_v63 = vld [vmem:[#allocation6 + $0x110] sm:$0xf0] }
 0x12b   :  { %v10279_v22 = vor.u32 %v13587_v63, %v10278_v35 }
 0x12e   :  { %1114 = vmatpush.bf16.msrb.mxu0 %v10279_v22 }
 0x130   :  { %v15068_v40 = vpop.f32.mrf.mxu2  ;;  %v643_v50 = vpop.f32.mrf.mxu3 }
 0x131   :  { %16831 = vst [vmem:[#allocation42_spill] sm:$0xff] %v15068_v40  ;;  %v15070_v43 = vpop.f32.mrf.mxu0  ;;  %v15072_v5 = vpop.f32.mrf.mxu1 }
 0x134   :  { %10316 = vmatmul.msk.bf16.vlgmr.msra.gmra.mxu0 %vm161_vm1, %v14967_v62  ;;  %10321 = vmatmul.msk.bf16.gmra.mxu1 %vm161_vm1, %v14995_v37 }
 0x135   :  { %10311 = vmatmul.msk.bf16.gmra.mxu2 %vm161_vm1, %v15051_v41  ;;  %10328 = vmatmul.msk.bf16.vlgmr.msra.gmra.mxu3 %vm161_vm1, %v14967_v62 }
 0x138   :  { %v15083_v34 = vpop.f32.mrf.mxu2  ;;  %v738_v10 = vpop.f32.mrf.mxu3 }
 0x139   :  { %16832 = vst [vmem:[#allocation43_spill] sm:$0xff] %v15083_v34  ;;  %v15086_v50 = vadd.f32 %v738_v10, %v14963_v56  ;;  %v15088_v14 = vpop.f32.mrf.mxu0  ;;  %v15090_v18 = vpop.f32.mrf.mxu1 }
 0x13a   :  { %16833 = vst [vmem:[#allocation44_spill] sm:$0xff] %v15088_v14 }
 0x13b   :  { %16834 = vst [vmem:[#allocation45_spill] sm:$0xff] %v15090_v18 }
 0x140   :  { %v517_v4 = vpop.f32.mrf.mxu2  ;;  %v15092_v52 = vpop.f32.mrf.mxu3 }
 0x141   :  { %v659_v6 = vpop.f32.mrf.mxu0  ;;  %v15094_v38 = vpop.f32.mrf.mxu1 }
 0x144   :  { %10317 = vmatmul.msk.bf16.gmra.mxu0 %vm161_vm1, %v14995_v37  ;;  %10322 = vmatmul.msk.bf16.gmra.mxu1 %vm161_vm1, %v15024_v28 }
 0x145   :  { %10324 = vmatmul.msk.bf16.vlgmr.msrb.gmra.mxu2 %vm161_vm1, %v14967_v62  ;;  %10329 = vmatmul.msk.bf16.gmra.mxu3 %vm161_vm1, %v14995_v37 }
 0x148   :  { %v15104_v56 = vpop.f32.mrf.mxu2  ;;  %v743_v4 = vpop.f32.mrf.mxu3 }
 0x149   :  { %v15107_v42 = vadd.f32 %v743_v4, %v14991_v31  ;;  %v15109_v10 = vpop.f32.mrf.mxu0  ;;  %v15111_v18 = vpop.f32.mrf.mxu1 }
 0x14a   :  { %16835 = vst [vmem:[#allocation46_spill] sm:$0xff] %v15109_v10 }
 0x14b   :  { %16836 = vst [vmem:[#allocation47_spill] sm:$0xff] %v15111_v18 }
 0x150   :  { %v15113_v20 = vpop.f32.mrf.mxu2  ;;  %v15115_v11 = vpop.f32.mrf.mxu3 }
 0x151   :  { %v664_v19 = vpop.f32.mrf.mxu0  ;;  %v15117_v53 = vpop.f32.mrf.mxu1 }
 0x154   :  { %10318 = vmatmul.msk.bf16.gmra.mxu0 %vm161_vm1, %v15024_v28  ;;  %10323 = vmatmul.msk.bf16.gmra.mxu1 %vm161_vm1, %v15051_v41 }
 0x155   :  { %10325 = vmatmul.msk.bf16.gmra.mxu2 %vm161_vm1, %v14995_v37  ;;  %10330 = vmatmul.msk.bf16.gmra.mxu3 %vm161_vm1, %v15024_v28 }
 0x158   :  { %v15127_v31 = vpop.f32.mrf.mxu2  ;;  %v748_v4 = vpop.f32.mrf.mxu3 }
 0x159   :  { %v15130_v35 = vadd.f32 %v748_v4, %v15020_v23  ;;  %v15132_v63 = vpop.f32.mrf.mxu0  ;;  %v699_v22 = vpop.f32.mrf.mxu1 }
 0x15a   :  { %16837 = vst [vmem:[#allocation48_spill] sm:$0xff] %v15132_v63 }
 0x160   :  { %v15134_v18 = vpop.f32.mrf.mxu2  ;;  %v15136_v10 = vpop.f32.mrf.mxu3 }
 0x161   :  { %v669_v14 = vpop.f32.mrf.mxu0  ;;  %v15138_v60 = vpop.f32.mrf.mxu1 }
 0x162   :  { %16838 = vst [vmem:[#allocation49_spill] sm:$0xff] %v15138_v60 }
 0x164   :  { %10319 = vmatmul.msk.bf16.gmra.mxu0 %vm161_vm1, %v15051_v41 }
 0x165   :  { %10326 = vmatmul.msk.bf16.gmra.mxu2 %vm161_vm1, %v15024_v28  ;;  %10331 = vmatmul.msk.bf16.gmra.mxu3 %vm161_vm1, %v15051_v41 }
 0x168   :  { %v15146_v23 = vpop.f32.mrf.mxu2  ;;  %v753_v4 = vpop.f32.mrf.mxu3 }
 0x169   :  { %v15149_v22 = vadd.f32 %v753_v4, %v15047_v29  ;;  %v671_v63 = vpop.f32.mrf.mxu0  ;;  %v15151_v34 = vpop.f32.mrf.mxu1  ;;  %v655_v29 = vadd.f32 %v15070_v43, %v14871_v54  ;;  %v660_v54 = vadd.f32 %v659_v6, %v14895_v7  ;;  %v665_v7 = vadd.f32 %v664_v19, %v14920_v25 }
 0x16a   :  { %16840 = vst [vmem:[#allocation51_spill] sm:$0xff] %v15151_v34 }
 0x16b   :  { %16839 = vst [vmem:[#allocation50_spill] sm:$0xff] %v15149_v22 }
 0x170   :  { %v15153_v40 = vpop.f32.mrf.mxu2  ;;  %v755_v24 = vpop.f32.mrf.mxu3 }
 0x171   :  { %v15155_v15 = vpop.f32.mrf.mxu0  ;;  %v15157_v55 = vpop.f32.mrf.mxu1 }
 0x172   :  { %16841 = vst [vmem:[#allocation52_spill] sm:$0xff] %v15157_v55 }
 0x174   :  { %10332 = vmatmul.msk.bf16.vlgmr.msrb.gmra.mxu0 %vm161_vm1, %v14967_v62 }
 0x175   :  { %10327 = vmatmul.msk.bf16.gmra.mxu2 %vm161_vm1, %v15051_v41 }
 0x178   :  { %v15165_v4 = vpop.f32.mrf.mxu2  ;;  %v976_v63 = vpop.f32.mrf.mxu3 }
 0x179   :  { %v15167_v22 = vadd.f32 %v976_v63, %v655_v29  ;;  %v15169_v34 = vpop.f32.mrf.mxu0  ;;  %v15171_v24 = vpop.f32.mrf.mxu1 }
 0x17a   :  { %16843 = vst [vmem:[#allocation54_spill] sm:$0xff] %v15171_v24 }
 0x17b   :  { %16842 = vst [vmem:[#allocation53_spill] sm:$0xff] %v15167_v22 }
 0x180   :  { %v727_v16 = vpop.f32.mrf.mxu2  ;;  %v15173_v55 = vpop.f32.mrf.mxu3 }
 0x181   :  { %16844 = vst [vmem:[#allocation55_spill] sm:$0xff] %v15173_v55  ;;  %v15175_v51 = vpop.f32.mrf.mxu0  ;;  %v15177_v62 = vpop.f32.mrf.mxu1 }
 0x182   :  { %16845 = vst [vmem:[#allocation56_spill] sm:$0xff] %v15177_v62 }
 0x184   :  { %10333 = vmatmul.msk.bf16.gmra.mxu0 %vm161_vm1, %v14995_v37 }
 0x188   :  { %v948_v43 = vpop.f32.mrf.mxu2  ;;  %v981_v60 = vpop.f32.mrf.mxu3 }
 0x189   :  { %v15183_v29 = vadd.f32 %v948_v43, %v14981_v12  ;;  %v15185_v63 = vadd.f32 %v981_v60, %v660_v54  ;;  %v15187_v22 = vpop.f32.mrf.mxu0  ;;  %v15189_v16 = vpop.f32.mrf.mxu1 }
 0x18b   :  { %16846 = vst [vmem:[#allocation57_spill] sm:$0xff] %v15183_v29 }
 0x18c   :  { %16847 = vst [vmem:[#allocation58_spill] sm:$0xff] %v15185_v63 }
 0x190   :  { %v15191_v55 = vpop.f32.mrf.mxu2  ;;  %v15193_v24 = vpop.f32.mrf.mxu3 }
 0x191   :  { %16848 = vst [vmem:[#allocation59_spill] sm:$0xff] %v15191_v55  ;;  %v15195_v62 = vpop.f32.mrf.mxu0  ;;  %v15197_v37 = vpop.f32.mrf.mxu1  ;;  %v711_v55 = vadd.f32 %v15104_v56, %v14884_v58  ;;  %v670_v58 = vadd.f32 %v669_v14, %v14882_v57  ;;  %v713_v56 = vadd.f32 %v15113_v20, %v14891_v3  ;;  %v683_v3 = vadd.f32 %v15049_v30, %v14905_v8 }
 0x192   :  { %16849 = vst [vmem:[#allocation60_spill] sm:$0xff] %v15193_v24  ;;  %v15209_v24 = vld [vmem:[#allocation9] sm:$0xff]  ;;  %v716_v20 = vadd.f32 %v15127_v31, %v14907_v9  ;;  %v767_v9 = vadd.f32 %v15155_v15, %v14945_v44  ;;  %v718_v31 = vadd.f32 %v15134_v18, %v14916_v21 }
 0x193   :  { %v15218_v25 = vperm.slane %v15209_v24, 3  ;;  %v15261_v30 = vperm.slane %v15209_v24, 5 }
 0x194   :  { %10334 = vmatmul.msk.bf16.gmra.mxu0 %vm161_vm1, %v15024_v28 }
 0x198   :  { %v953_v12 = vpop.f32.mrf.mxu2  ;;  %v986_v60 = vpop.f32.mrf.mxu3 }
 0x199   :  { %v15203_v6 = vadd.f32 %v953_v12, %v15008_v47  ;;  %v15205_v54 = vadd.f32 %v986_v60, %v665_v7  ;;  %v15207_v43 = vpop.f32.mrf.mxu0  ;;  %v811_v63 = vpop.f32.mrf.mxu1 }
 0x19b   :  { %16850 = vst [vmem:[#allocation61_spill] sm:$0xff] %v15205_v54 }
 0x1a0   :  { %v15213_v29 = vpop.f32.mrf.mxu2  ;;  %v15215_v28 = vpop.f32.mrf.mxu3 }
 0x1a1   :  { %16851 = vst [vmem:[#allocation62_spill] sm:$0xff] %v15213_v29  ;;  %v15220_v19 = vpop.f32.mrf.mxu0  ;;  %v1032_v47 = vpop.f32.mrf.mxu1 }
 0x1a2   :  { %16852 = vst [vmem:[#allocation63_spill] sm:$0xff] %v15215_v28  ;;  %v1138_v7 = vadd.f32 %v1032_v47, %v711_v55 }
 0x1a4   :  { %10335 = vmatmul.msk.bf16.gmra.mxu0 %vm161_vm1, %v15051_v41  ;;  %v15225_v63 = vadd.f32 %v15218_v25, %v1138_v7 }
 0x1a6   :  { %v1252_v12 = vmax.f32 %v15225_v63, 0.0 }
 0x1a8   :  { %v958_v60 = vpop.f32.mrf.mxu2  ;;  %v991_v54 = vpop.f32.mrf.mxu3  ;;  %1326 = vrot.lane.b32.xlu0 %v1252_v12, %s14657_s16 }
 0x1a9   :  { %v15235_v55 = vadd.f32 %v958_v60, %v15038_v0  ;;  %v15237_v41 = vadd.f32 %v991_v54, %v670_v58  ;;  %v783_v47 = vpop.f32.mrf.mxu0  ;;  %v1034_v7 = vpop.f32.mrf.mxu1 }
 0x1aa   :  { %v1145_v28 = vadd.f32 %v1034_v7, %v713_v56 }
 0x1ac   :  { %v15240_v29 = vadd.f32 %v15218_v25, %v1145_v28 }
 0x1ae   :  { %v1259_v57 = vmax.f32 %v15240_v29, 0.0  ;;  %v13829_v29 = vld [vmem:[#allocation11 + $0x750] sm:$0xf0] }
 0x1b0   :  { %v15247_v14 = vpop.f32.mrf.mxu2  ;;  %v993_v0 = vpop.f32.mrf.mxu3  ;;  %1334 = vrot.lane.b32.xlu1 %v1259_v57, %s14657_s16 }
 0x1b1   :  { %v1004_v54 = vpop.f32.mrf.mxu0  ;;  %v1037_v58 = vpop.f32.mrf.mxu1 }
 0x1b2   :  { %v15252_v56 = vadd.f32 %v1004_v54, %v683_v3  ;;  %v1152_v28 = vadd.f32 %v1037_v58, %v716_v20 }
 0x1b4   :  { %v15255_v60 = vadd.f32 %v15218_v25, %v1152_v28  ;;  %v769_v28 = vadd.f32 %v15169_v34, %v14959_v48 }
 0x1b6   :  { %v1266_v8 = vmax.f32 %v15255_v60, 0.0 }
 0x1b8   :  { %v963_v47 = vpop.f32.mrf.mxu2  ;;  %v1088_v7 = vpop.f32.mrf.mxu3  ;;  %1342 = vrot.lane.b32.xlu2 %v1266_v8, %s14657_s16 }
 0x1b9   :  { %v15269_v3 = vadd.f32 %v963_v47, %v15064_v27  ;;  %v1140_v20 = vadd.f32 %v1088_v7, %v767_v9  ;;  %v15271_v0 = vpop.f32.mrf.mxu0  ;;  %v1039_v54 = vpop.f32.mrf.mxu1  ;;  %v688_v27 = vadd.f32 %v15072_v5, %v14931_v32  ;;  %v721_v9 = vadd.f32 %v15146_v23, %v14933_v33 }
 0x1ba   :  { %v1159_v44 = vadd.f32 %v1039_v54, %v718_v31  ;;  %v15297_v23 = vperm.slane %v15209_v24, 4 }
 0x1bb   :  { %v1205_v15 = vadd.f32 %v15261_v30, %v1140_v20 }
 0x1bc   :  { %v15275_v58 = vadd.f32 %v15218_v25, %v1159_v44 }
 0x1bd   :  { %v1254_v18 = vmax.f32 %v1205_v15, 0.0  ;;  %v723_v15 = vadd.f32 %v15153_v40, %v14941_v39 }
 0x1be   :  { %v1273_v21 = vmax.f32 %v15275_v58, 0.0 }
 0x1c0   :  { %v965_v47 = vpop.f32.mrf.mxu2  ;;  %v1090_v7 = vpop.f32.mrf.mxu3  ;;  %1350 = vrot.lane.b32.xlu0 %v1273_v21, %s14657_s16  ;;  %1330 = vrot.lane.b32.xlu2 %v1254_v18, %s14657_s16 }
 0x1c1   :  { %v1147_v31 = vadd.f32 %v1090_v7, %v769_v28  ;;  %v1009_v20 = vpop.f32.mrf.mxu0  ;;  %v1042_v54 = vpop.f32.mrf.mxu1 }
 0x1c2   :  { %v15288_v44 = vadd.f32 %v1009_v20, %v688_v27  ;;  %v1166_v48 = vadd.f32 %v1042_v54, %v721_v9 }
 0x1c3   :  { %v1212_v34 = vadd.f32 %v15261_v30, %v1147_v31  ;;  %v772_v31 = vadd.f32 %v15175_v51, %v14965_v61  ;;  %v693_v61 = vadd.f32 %v15094_v38, %v14955_v45 }
 0x1c4   :  { %v15292_v32 = vadd.f32 %v15218_v25, %v1166_v48 }
 0x1c5   :  { %v1261_v33 = vmax.f32 %v1212_v34, 0.0  ;;  %v741_v34 = vadd.f32 %v15092_v52, %v14983_v13 }
 0x1c6   :  { %v1280_v5 = vmax.f32 %v15292_v32, 0.0 }
 0x1c7   :  { %1338 = vrot.lane.b32.xlu1 %v1261_v33, %s14657_s16 }
 0x1c8   :  { %v1060_v18 = vpop.f32.mrf.mxu2  ;;  %v1093_v28 = vpop.f32.mrf.mxu3  ;;  %1358 = vrot.lane.b32.xlu2 %v1280_v5, %s14657_s16 }
 0x1c9   :  { %v1139_v27 = vadd.f32 %v1060_v18, %v15086_v50  ;;  %v15305_v9 = vpop.f32.mrf.mxu0  ;;  %v1044_v47 = vpop.f32.mrf.mxu1  ;;  %v1154_v39 = vadd.f32 %v1093_v28, %v772_v31  ;;  %v774_v50 = vadd.f32 %v15187_v22, %v14985_v17  ;;  %v726_v17 = vadd.f32 %v15165_v4, %v14957_v46 }
 0x1ca   :  { %v1173_v7 = vadd.f32 %v1044_v47, %v723_v15 }
 0x1cb   :  { %v1204_v20 = vadd.f32 %v15297_v23, %v1139_v27  ;;  %v1219_v52 = vadd.f32 %v15261_v30, %v1154_v39 }
 0x1cc   :  { %v15311_v54 = vadd.f32 %v15218_v25, %v1173_v7 }
 0x1cd   :  { %v1253_v40 = vmax.f32 %v1204_v20, 0.0  ;;  %v1268_v7 = vmax.f32 %v1219_v52, 0.0  ;;  %v777_v20 = vadd.f32 %v15195_v62, %v14993_v36  ;;  %v15354_v52 = vperm.slane %v15209_v24, 2 }
 0x1ce   :  { %v1287_v48 = vmax.f32 %v15311_v54, 0.0  ;;  %v10982_v54 = vld [vmem:[#allocation11 + $0xb28] sm:$0xf] }
 0x1cf   :  { %1328 = vrot.lane.b32.xlu0 %v1253_v40, %s14657_s16 }
 0x1d0   :  { %v1062_v51 = vpop.f32.mrf.mxu2  ;;  %v1095_v33 = vpop.f32.mrf.mxu3  ;;  %1366 = vrot.lane.b32.xlu1 %v1287_v48, %s14657_s16 }
 0x1d1   :  { %v1146_v15 = vadd.f32 %v1062_v51, %v741_v34  ;;  %v1161_v18 = vadd.f32 %v1095_v33, %v774_v50  ;;  %v1014_v28 = vpop.f32.mrf.mxu0  ;;  %v1047_v27 = vpop.f32.mrf.mxu1 }
 0x1d2   :  { %v15325_v13 = vadd.f32 %v1014_v28, %v693_v61  ;;  %v1180_v45 = vadd.f32 %v1047_v27, %v726_v17 }
 0x1d3   :  { %v1226_v22 = vadd.f32 %v15261_v30, %v1161_v18  ;;  %v1211_v38 = vadd.f32 %v15297_v23, %v1146_v15  ;;  %v746_v15 = vadd.f32 %v15115_v11, %v15010_v49 }
 0x1d4   :  { %v15340_v50 = vadd.f32 %v15218_v25, %v1180_v45 }
 0x1d5   :  { %v1275_v47 = vmax.f32 %v1226_v22, 0.0  ;;  %v1260_v31 = vmax.f32 %v1211_v38, 0.0  ;;  %v782_v38 = vadd.f32 %v15220_v19, %v15022_v26  ;;  %v16853_v26 = vld [vmem:[#allocation49_spill] sm:$0xff] }
 0x1d6   :  { %v1294_v33 = vmax.f32 %v15340_v50, 0.0  ;;  %v795_v19 = vadd.f32 %v16853_v26, %v15005_v59  ;;  %v16856_v59 = vld [vmem:[#allocation51_spill] sm:$0xff] }
 0x1d7   :  { %1354 = vrot.lane.b32.xlu2 %v1275_v47, %s14657_s16  ;;  %1346 = vrot.lane.b32.xlu0 %v1268_v7, %s14657_s16 }
 0x1d8   :  { %v1065_v39 = vpop.f32.mrf.mxu2  ;;  %v1098_v40 = vpop.f32.mrf.mxu3  ;;  %1336 = vrot.lane.b32.xlu1 %v1260_v31, %s14657_s16 }
 0x1d9   :  { %v1153_v46 = vadd.f32 %v1065_v39, %v15107_v42  ;;  %v1168_v4 = vadd.f32 %v1098_v40, %v777_v20  ;;  %v15337_v34 = vpop.f32.mrf.mxu0  ;;  %v1049_v61 = vpop.f32.mrf.mxu1  ;;  %v698_v42 = vadd.f32 %v15117_v53, %v14978_v2  ;;  %v751_v40 = vadd.f32 %v15136_v10, %v15040_v1 }
 0x1db   :  { %v1218_v51 = vadd.f32 %v15297_v23, %v1153_v46  ;;  %v1233_v36 = vadd.f32 %v15261_v30, %v1168_v4  ;;  %v1192_v4 = vperm.slane %v15209_v24, 6 }
 0x1dd   :  { %v1267_v62 = vmax.f32 %v1218_v51, 0.0 }
 0x1df   :  { %1344 = vrot.lane.b32.xlu2 %v1267_v62, %s14657_s16  ;;  %1374 = vrot.lane.b32.xlu0 %v1294_v33, %s14657_s16 }
 0x1e0   :  { %v1067_v25 = vpop.f32.mrf.mxu2  ;;  %v1100_v18 = vpop.f32.mrf.mxu3 }
 0x1e1   :  { %v1160_v28 = vadd.f32 %v1067_v25, %v746_v15  ;;  %v1019_v27 = vpop.f32.mrf.mxu0 }
 0x1e2   :  { %v1179_v17 = vadd.f32 %v1019_v27, %v698_v42  ;;  %v16854_v42 = vld [vmem:[#allocation34_spill] sm:$0xff] }
 0x1e3   :  { %v1225_v22 = vadd.f32 %v15297_v23, %v1160_v28  ;;  %v779_v25 = vadd.f32 %v15207_v43, %v16854_v42 }
 0x1e4   :  { %v15358_v11 = vadd.f32 %v15354_v52, %v1179_v17  ;;  %v16855_v17 = vld [vmem:[#allocation35_spill] sm:$0xff] }
 0x1e5   :  { %v1274_v49 = vmax.f32 %v1225_v22, 0.0  ;;  %v1175_v1 = vadd.f32 %v1100_v18, %v779_v25  ;;  %v797_v22 = vadd.f32 %v16856_v59, %v16855_v17  ;;  %v16863_v17 = vld [vmem:[#allocation56_spill] sm:$0xff] }
 0x1e7   :  { %1352 = vrot.lane.b32.xlu1 %v1274_v49, %s14657_s16 }
 0x1e8   :  { %v1070_v2 = vpop.f32.mrf.mxu2  ;;  %v1103_v53 = vpop.f32.mrf.mxu3 }
 0x1e9   :  { %v1167_v45 = vadd.f32 %v1070_v2, %v15130_v35  ;;  %v1182_v47 = vadd.f32 %v1103_v53, %v782_v38  ;;  %v1021_v7 = vpop.f32.mrf.mxu0  ;;  %v16857_v38 = vld [vmem:[#allocation50_spill] sm:$0xff] }
 0x1eb   :  { %v1232_v31 = vadd.f32 %v15297_v23, %v1167_v45  ;;  %v15366_v20 = vadd.f32 %v15261_v30, %v1182_v47  ;;  %v1240_v47 = vadd.f32 %v15261_v30, %v1175_v1  ;;  %v16860_v30 = vld [vmem:[#allocation38_spill] sm:$0xff] }
 0x1ed   :  { %v1281_v39 = vmax.f32 %v1232_v31, 0.0 }
 0x1ef   :  { %1360 = vrot.lane.b32.xlu0 %v1281_v39, %s14657_s16  ;;  %v1289_v39 = vmax.f32 %v1240_v47, 0.0 }
 0x1f0   :  { %v1072_v46 = vpop.f32.mrf.mxu2  ;;  %v1105_v35 = vpop.f32.mrf.mxu3 }
 0x1f1   :  { %v1174_v61 = vadd.f32 %v1072_v46, %v751_v40  ;;  %v1116_v51 = vpop.f32.mrf.mxu0  ;;  %v16859_v46 = vld [vmem:[#allocation52_spill] sm:$0xff] }
 0x1f2   :  { %v1141_v62 = vadd.f32 %v1116_v51, %v795_v19  ;;  %v16858_v19 = vld [vmem:[#allocation37_spill] sm:$0xff]  ;;  %v1282_v51 = vmax.f32 %v1233_v36, 0.0 }
 0x1f3   :  { %v1239_v15 = vadd.f32 %v15297_v23, %v1174_v61  ;;  %v800_v35 = vadd.f32 %v16859_v46, %v16858_v19 }
 0x1f4   :  { %v1206_v28 = vadd.f32 %v1192_v4, %v1141_v62 }
 0x1f5   :  { %v1288_v27 = vmax.f32 %v1239_v15, 0.0 }
 0x1f6   :  { %v1255_v10 = vmax.f32 %v1206_v28, 0.0 }
 0x1f7   :  { %1368 = vrot.lane.b32.xlu2 %v1288_v27, %s14657_s16 }
 0x1f8   :  { %v1075_v49 = vpop.f32.mrf.mxu2  ;;  %1332 = vrot.lane.b32.xlu0 %v1255_v10, %s14657_s16  ;;  %v16862_v10 = vld [vmem:[#allocation40_spill] sm:$0xff] }
 0x1f9   :  { %v1181_v2 = vadd.f32 %v1075_v49, %v16857_v38  ;;  %v1118_v53 = vpop.f32.mrf.mxu0  ;;  %v805_v59 = vadd.f32 %v16863_v17, %v16862_v10  ;;  %v16866_v10 = vld [vmem:[#allocation53_spill] sm:$0xff] }
 0x1fa   :  { %v1148_v45 = vadd.f32 %v1118_v53, %v797_v22  ;;  %v16864_v53 = vld [vmem:[#allocation42_spill] sm:$0xff] }
 0x1fb   :  { %v1246_v43 = vadd.f32 %v15297_v23, %v1181_v2  ;;  %v16861_v23 = vld [vmem:[#allocation54_spill] sm:$0xff] }
 0x1fc   :  { %v1213_v7 = vadd.f32 %v1192_v4, %v1148_v45  ;;  %v802_v62 = vadd.f32 %v16861_v23, %v16860_v30  ;;  %v807_v45 = vadd.f32 %v15189_v16, %v16864_v53 }
 0x1fd   :  { %v1295_v31 = vmax.f32 %v1246_v43, 0.0 }
 0x1fe   :  { %v1262_v18 = vmax.f32 %v1213_v7, 0.0 }
 0x1ff   :  { %1376 = vrot.lane.b32.xlu1 %v1295_v31, %s14657_s16  ;;  %v1296_v31 = vmax.f32 %v15366_v20, 0.0 }
 0x200   :  { %1340 = vrot.lane.b32.xlu2 %v1262_v18, %s14657_s16  ;;  %1370 = vrot.lane.b32.xlu0 %v1289_v39, %s14657_s16  ;;  %v1077_v40 = vpop.f32.mrf.mxu2 }
 0x201   :  { %v1121_v26 = vpop.f32.mrf.mxu0  ;;  %v16865_v40 = vld [vmem:[#allocation43_spill] sm:$0xff] }
 0x202   :  { %v1155_v61 = vadd.f32 %v1121_v26, %v800_v35  ;;  %v810_v26 = vadd.f32 %v15197_v37, %v16865_v40 }
 0x204   :  { %v1220_v42 = vadd.f32 %v1192_v4, %v1155_v61 }
 0x206   :  { %v1269_v27 = vmax.f32 %v1220_v42, 0.0 }
 0x207   :  { %1362 = vrot.lane.b32.xlu1 %v1282_v51, %s14657_s16 }
 0x209   :  { %v1123_v15 = vpop.f32.mrf.mxu0 }
 0x20a   :  { %v1162_v25 = vadd.f32 %v1123_v15, %v802_v62  ;;  %v15412_v62 = vperm.slane %v15209_v24, 0  ;;  %v15417_v15 = vperm.slane %v15209_v24, 1 }
 0x20c   :  { %v1227_v28 = vadd.f32 %v1192_v4, %v1162_v25  ;;  %v1214_v37 = vadd.f32 %v15412_v62, %v15203_v6  ;;  %v1201_v17 = vadd.f32 %v15417_v15, %v16866_v10  ;;  %v16868_v6 = vld [vmem:[#allocation27_spill] sm:$0xff] }
 0x20e   :  { %v1276_v1 = vmax.f32 %v1227_v28, 0.0 }
 0x20f   :  { %1348 = vrot.lane.b32.xlu1 %v1269_v27, %s14657_s16 }
 0x210   :  { %1356 = vrot.lane.b32.xlu0 %v1276_v1, %s14657_s16 }
 0x211   :  { %v1126_v22 = vpop.f32.mrf.mxu0 }
 0x212   :  { %v1169_v36 = vadd.f32 %v1126_v22, %v805_v59  ;;  %v1343_v38 = vpop.permute.xlu2 %1342  ;;  %v16867_v59 = vld [vmem:[#allocation57_spill] sm:$0xff] }
 0x213   :  { %v1200_v22 = vadd.f32 %v15412_v62, %v16867_v59 }
 0x214   :  { %v1234_v49 = vadd.f32 %v1192_v4, %v1169_v36  ;;  %v16869_v36 = vld [vmem:[#allocation44_spill] sm:$0xff] }
 0x215   :  { %v657_v24 = vadd.f32 %v16869_v36, %v16868_v6  ;;  %v16874_v6 = vld [vmem:[#allocation39_spill] sm:$0xff] }
 0x216   :  { %v1283_v2 = vmax.f32 %v1234_v49, 0.0  ;;  %v1250_v49 = vmax.f32 %v1201_v17, 0.0  ;;  %v1170_v36 = vadd.f32 %v15247_v14, %v16874_v6 }
 0x218   :  { %1364 = vrot.lane.b32.xlu2 %v1283_v2, %s14657_s16  ;;  %v1249_v2 = vmax.f32 %v1200_v22, 0.0 }
 0x219   :  { %v1128_v47 = vpop.f32.mrf.mxu0 }
 0x21a   :  { %v1176_v43 = vadd.f32 %v1128_v47, %v807_v45  ;;  %v15400_v39 = vpop.permute.xlu2 %1330  ;;  %v1327_v20 = vpop.permute.xlu0 %1326  ;;  %v16870_v45 = vld [vmem:[#allocation55_spill] sm:$0xff] }
 0x21b   :  { %v1143_v47 = vadd.f32 %v16870_v45, %v657_v24 }
 0x21c   :  { %v1241_v7 = vadd.f32 %v1192_v4, %v1176_v43  ;;  %v16871_v43 = vld [vmem:[#allocation33_spill] sm:$0xff] }
 0x21e   :  { %v1290_v18 = vmax.f32 %v1241_v7, 0.0  ;;  %v16872_v7 = vld [vmem:[#allocation59_spill] sm:$0xff] }
 0x220   :  { %1378 = vrot.lane.b32.xlu2 %v1296_v31, %s14657_s16  ;;  %1372 = vrot.lane.b32.xlu1 %v1290_v18, %s14657_s16  ;;  %v1142_v31 = vadd.f32 %v16872_v7, %v16871_v43 }
 0x221   :  { %v1131_v19 = vpop.f32.mrf.mxu0 }
 0x222   :  { %v1183_v46 = vadd.f32 %v1131_v19, %v810_v26  ;;  %v15407_v61 = vpop.permute.xlu2 %1358  ;;  %v1335_v23 = vpop.permute.xlu1 %1334 }
 0x224   :  { %v1248_v16 = vadd.f32 %v1192_v4, %v1183_v46  ;;  %v1263_v4 = vmax.f32 %v1214_v37, 0.0 }
 0x226   :  { %v1297_v35 = vmax.f32 %v1248_v16, 0.0  ;;  %v16873_v16 = vld [vmem:[#allocation58_spill] sm:$0xff] }
 0x228   :  { %1380 = vrot.lane.b32.xlu0 %v1297_v35, %s14657_s16  ;;  %v1215_v35 = vadd.f32 %v15417_v15, %v16873_v16  ;;  %v1235_v16 = vadd.f32 %v15412_v62, %v1170_v36 }
 0x229   :  { %v1133_v51 = vpop.f32.mrf.mxu0 }
 0x22a   :  { %v1264_v22 = vmax.f32 %v1215_v35, 0.0 }
 0x231   :  { %v15409_v30 = vpop.permute.xlu2 %1354 }
 0x232   :  { %v15419_v42 = vpop.permute.xlu0 %1350 }
 0x239   :  { %v1345_v25 = vpop.permute.xlu2 %1344  ;;  %v15421_v28 = vpop.permute.xlu1 %1338 }
 0x23a   :  { %v1389_v27 = vsel %vm1382_vm3, %v1343_v38, %v1345_v25 }
 0x23b   :  { %v1440_v1 = vmax.f32 %v1263_v4, %v1389_v27  ;;  %v1208_v4 = vadd.f32 %v15417_v15, %v1143_v47  ;;  %v1207_v27 = vadd.f32 %v15412_v62, %v1142_v31 }
 0x23d   :  { %1468 = vst [vmem:[#allocation3 + $0x40] sm:$0xff] %v1440_v1 }
 0x241   :  { %v1329_v53 = vpop.permute.xlu0 %1328 }
 0x242   :  { %v1383_v38 = vsel %vm1382_vm3, %v1327_v20, %v1329_v53  ;;  %v1384_v18 = vsel %vm1382_vm3, %v1329_v53, %v15400_v39  ;;  %v1367_v40 = vpop.permute.xlu1 %1366  ;;  %v1256_v53 = vmax.f32 %v1207_v27, 0.0 }
 0x243   :  { %v1432_v26 = vmax.f32 %v1249_v2, %v1383_v38  ;;  %v1433_v19 = vmax.f32 %v1250_v49, %v1384_v18  ;;  %v1257_v2 = vmax.f32 %v1208_v4, 0.0  ;;  %v16875_v38 = vld [vmem:[#allocation36_spill] sm:$0xff]  ;;  %v16876_v18 = vld [vmem:[#allocation62_spill] sm:$0xff] }
 0x244   :  { %v1652_v46 = vld [vmem:[#allocation3 + $0x40] sm:$0xc]  ;;  %v1692_v37 = vld [vmem:[#allocation3 + $0x40] sm:$0xc0]  ;;  %v1648_v1 = vld [vmem:[#allocation3 + $0x40] sm:$0x3]  ;;  %v1156_v14 = vadd.f32 %v16876_v18, %v16875_v38 }
 0x245   :  { %v1660_v51 = vrot.slane %v1652_v46, 2  ;;  %1460 = vst [vmem:[#allocation3] sm:$0xff] %v1432_v26  ;;  %v1700_v10 = vrot.slane %v1692_v37, 2  ;;  %v1688_v17 = vld [vmem:[#allocation3 + $0x40] sm:$0x30] }
 0x246   :  { %1461 = vst [vmem:[#allocation3 + $0x8] sm:$0xff] %v1433_v19 }
 0x247   :  { %v1668_v20 = vmax.f32 %v1648_v1, %v1660_v51  ;;  %v1708_v59 = vmax.f32 %v1688_v17, %v1700_v10  ;;  %v16878_v17 = vld [vmem:[#allocation46_spill] sm:$0xff] }
 0x249   :  { %v1676_v24 = vrot.slane %v1668_v20, 6  ;;  %v15442_v49 = vpop.permute.xlu0 %1346  ;;  %1712 = vst [vmem:[#allocation4 + $0x20] sm:$0x30] %v1708_v59  ;;  %v16877_v20 = vld [vmem:[#allocation28_spill] sm:$0xff] }
 0x24a   :  { %v1390_v45 = vsel %vm1382_vm3, %v1345_v25, %v15442_v49  ;;  %v1337_v47 = vpop.permute.xlu1 %1336  ;;  %v662_v59 = vadd.f32 %v16878_v17, %v16877_v20 }
 0x24b   :  { %1684 = vst [vmem:[#allocation4 + $0x20] sm:$0xc] %v1676_v24  ;;  %v1441_v43 = vmax.f32 %v1264_v22, %v1390_v45  ;;  %v1386_v7 = vsel %vm1382_vm3, %v1335_v23, %v1337_v47  ;;  %v1387_v31 = vsel %vm1382_vm3, %v1337_v47, %v15421_v28  ;;  %v1221_v22 = vadd.f32 %v15412_v62, %v1156_v14  ;;  %v16881_v14 = vld [vmem:[#allocation29_spill] sm:$0xff] }
 0x24c   :  { %v1502_v26 = vld [vmem:[#allocation3] sm:$0xc]  ;;  %v1436_v19 = vmax.f32 %v1256_v53, %v1386_v7  ;;  %v1437_v46 = vmax.f32 %v1257_v2, %v1387_v31  ;;  %v1498_v25 = vld [vmem:[#allocation3] sm:$0x3]  ;;  %v1543_v4 = vld [vmem:[#allocation3] sm:$0xc0] }
 0x24d   :  { %v1503_v35 = vld [vmem:[#allocation3 + $0x8] sm:$0xc]  ;;  %v1510_v51 = vrot.slane %v1502_v26, 2  ;;  %1469 = vst [vmem:[#allocation3 + $0x48] sm:$0xff] %v1441_v43  ;;  %v1499_v27 = vld [vmem:[#allocation3 + $0x8] sm:$0x3] }
 0x24e   :  { %v1511_v37 = vrot.slane %v1503_v35, 2  ;;  %1464 = vst [vmem:[#allocation3 + $0x20] sm:$0xff] %v1436_v19  ;;  %v1544_v1 = vld [vmem:[#allocation3 + $0x8] sm:$0xc0]  ;;  %v1551_v10 = vrot.slane %v1543_v4, 2  ;;  %v1284_v2 = vmax.f32 %v1235_v16, 0.0 }
 0x24f   :  { %v1518_v23 = vmax.f32 %v1498_v25, %v1510_v51  ;;  %1465 = vst [vmem:[#allocation3 + $0x28] sm:$0xff] %v1437_v46  ;;  %v1539_v24 = vld [vmem:[#allocation3] sm:$0x30]  ;;  %v1552_v36 = vrot.slane %v1544_v1, 2  ;;  %v1540_v45 = vld [vmem:[#allocation3 + $0x8] sm:$0x30] }
 0x250   :  { %v1519_v6 = vmax.f32 %v1499_v27, %v1511_v37  ;;  %v1559_v47 = vmax.f32 %v1539_v24, %v1551_v10  ;;  %v16879_v7 = vld [vmem:[#allocation60_spill] sm:$0xff]  ;;  %v16880_v19 = vmov 0.0   ;;  %v16882_v46 = vld [vmem:[#allocation41_spill] sm:$0xff]  ;;  %v1270_v25 = vmax.f32 %v1221_v22, 0.0 }
 0x251   :  { %v1526_v53 = vrot.slane %v1518_v23, 6  ;;  %v15455_v43 = vpop.permute.xlu2 %1368  ;;  %v1157_v31 = vadd.f32 %v16879_v7, %v662_v59  ;;  %v1560_v18 = vmax.f32 %v1540_v45, %v1552_v36  ;;  %1497 = vst.msk [vmem:[#allocation4 + $0x78] sm:$0xc0] %vm1496_vm4, %v16880_v19  ;;  %v685_v35 = vadd.f32 %v16882_v46, %v16881_v14  ;;  %v15467_v7 = vpop.permute.xlu0 %1374 }
 0x252   :  { %v1527_v38 = vrot.slane %v1519_v6, 6  ;;  %v1398_v26 = vsel %vm1382_vm3, %v1367_v40, %v15455_v43  ;;  %1563 = vst [vmem:[#allocation4] sm:$0x30] %v1559_v47 }
 0x253   :  { %1534 = vst [vmem:[#allocation4] sm:$0xc] %v1526_v53  ;;  %v1452_v16 = vmax.f32 %v1284_v2, %v1398_v26  ;;  %v1144_v37 = vadd.f32 %v15271_v0, %v685_v35  ;;  %v1222_v23 = vadd.f32 %v15417_v15, %v1157_v31 }
 0x254   :  { %1535 = vst [vmem:[#allocation4 + $0x8] sm:$0xc] %v1527_v38  ;;  %v1653_v51 = vld [vmem:[#allocation3 + $0x48] sm:$0xc]  ;;  %v1649_v4 = vld [vmem:[#allocation3 + $0x48] sm:$0x3] }
 0x255   :  { %v1661_v27 = vrot.slane %v1653_v51, 2  ;;  %1564 = vst [vmem:[#allocation4 + $0x8] sm:$0x30] %v1560_v18  ;;  %v1689_v40 = vld [vmem:[#allocation3 + $0x48] sm:$0x30]  ;;  %v1209_v22 = vadd.f32 %v15354_v52, %v1144_v37  ;;  %v1271_v38 = vmax.f32 %v1222_v23, 0.0  ;;  %v1228_v23 = vadd.f32 %v15412_v62, %v15235_v55 }
 0x256   :  { %v1693_v1 = vld [vmem:[#allocation3 + $0x48] sm:$0xc0]  ;;  %v1568_v17 = vld [vmem:[#allocation3 + $0x20] sm:$0x3]  ;;  %v1572_v59 = vld [vmem:[#allocation3 + $0x20] sm:$0xc] }
 0x257   :  { %v1669_v10 = vmax.f32 %v1649_v4, %v1661_v27  ;;  %v1701_v20 = vrot.slane %v1693_v1, 2  ;;  %1480 = vst [vmem:[#allocation3 + $0xa0] sm:$0xff] %v1452_v16  ;;  %v1569_v6 = vld [vmem:[#allocation3 + $0x28] sm:$0x3]  ;;  %v1573_v24 = vld [vmem:[#allocation3 + $0x28] sm:$0xc] }
 0x258   :  { %v1580_v36 = vrot.slane %v1572_v59, 2  ;;  %v1581_v53 = vrot.slane %v1573_v24, 2  ;;  %v1608_v45 = vld [vmem:[#allocation3 + $0x20] sm:$0x30]  ;;  %v1612_v47 = vld [vmem:[#allocation3 + $0x20] sm:$0xc0] }
 0x259   :  { %v1677_v0 = vrot.slane %v1669_v10, 6  ;;  %v1709_v2 = vmax.f32 %v1689_v40, %v1701_v20  ;;  %v1353_v31 = vpop.permute.xlu1 %1352  ;;  %v1609_v26 = vld [vmem:[#allocation3 + $0x28] sm:$0x30]  ;;  %v1613_v14 = vld [vmem:[#allocation3 + $0x28] sm:$0xc0]  ;;  %v1620_v46 = vrot.slane %v1612_v47, 2 }
 0x25a   :  { %v1588_v18 = vmax.f32 %v1568_v17, %v1580_v36  ;;  %v1392_v35 = vsel %vm1382_vm3, %v15419_v42, %v1353_v31  ;;  %v1341_v16 = vpop.permute.xlu2 %1340  ;;  %1492 = vst.msk [vmem:[#allocation4 + $0x18] sm:$0x3] %vm1491_vm5, %v16880_v19  ;;  %v1589_v51 = vmax.f32 %v1569_v6, %v1581_v53  ;;  %v1621_v37 = vrot.slane %v1613_v14, 2  ;;  %v10534_v40 = vld [vmem:[#allocation11 + $0x7a8] sm:$0xf]  ;;  %v16884_v53 = vld [vmem:[#allocation48_spill] sm:$0xff] }
 0x25b   :  { %1685 = vst [vmem:[#allocation4 + $0x28] sm:$0xc] %v1677_v0  ;;  %v1393_v4 = vsel %vm1382_vm3, %v1353_v31, %v15409_v30  ;;  %v1444_v27 = vmax.f32 %v1270_v25, %v1392_v35  ;;  %v1628_v10 = vmax.f32 %v1608_v45, %v1620_v46  ;;  %v1388_v42 = vsel %vm1382_vm3, %v15421_v28, %v1341_v16  ;;  %v13843_v20 = vld [vmem:[#allocation11 + $0x7c0] sm:$0xf0]  ;;  %v10506_v25 = vld [vmem:[#allocation11 + $0x770] sm:$0xf] }
 0x25c   :  { %1713 = vst [vmem:[#allocation4 + $0x28] sm:$0x30] %v1709_v2  ;;  %v1596_v1 = vrot.slane %v1588_v18, 2  ;;  %v1258_v17 = vmax.f32 %v1209_v22, 0.0  ;;  %v1597_v19 = vrot.slane %v1589_v51, 2  ;;  %v1629_v59 = vmax.f32 %v1609_v26, %v1621_v37  ;;  %v16883_v0 = vld [vmem:[#allocation30_spill] sm:$0xff] }
 0x25d   :  { %1472 = vst [vmem:[#allocation3 + $0x60] sm:$0xff] %v1444_v27  ;;  %v1636_v6 = vrot.slane %v1628_v10, 4  ;;  %v1445_v24 = vmax.f32 %v1271_v38, %v1393_v4  ;;  %v10535_v36 = vor.u32 %v13843_v20, %v10534_v40  ;;  %v667_v47 = vadd.f32 %v16884_v53, %v16883_v0  ;;  %v16885_v26 = vld [vmem:[#allocation63_spill] sm:$0xff] }
 0x25e   :  { %1604 = vst [vmem:[#allocation4] sm:$0xc0] %v1596_v1  ;;  %v1637_v55 = vrot.slane %v1629_v59, 4  ;;  %v1868_v2 = vld [vmem:[#allocation3 + $0xa0] sm:$0xc]  ;;  %v1438_v45 = vmax.f32 %v1258_v17, %v1388_v42  ;;  %v1277_v31 = vmax.f32 %v1228_v23, 0.0  ;;  %v1439_v22 = vmax.f32 %v1259_v57, %v1341_v16 }
 0x25f   :  { %1605 = vst [vmem:[#allocation4 + $0x8] sm:$0xc0] %v1597_v19  ;;  %v1864_v28 = vld [vmem:[#allocation3 + $0xa0] sm:$0x3]  ;;  %v1876_v18 = vrot.slane %v1868_v2, 2  ;;  %3542 = vmatpush.bf16.msrb.mxu1 %v10535_v36  ;;  %v1171_v14 = vadd.f32 %v16885_v26, %v667_v47  ;;  %v1202_v2 = vadd.f32 %v15354_v52, %v15252_v56 }
 0x260   :  { %1644 = vst [vmem:[#allocation4 + $0x20] sm:$0x3] %v1636_v6  ;;  %v1904_v38 = vld [vmem:[#allocation3 + $0xa0] sm:$0x30]  ;;  %v1908_v46 = vld [vmem:[#allocation3 + $0xa0] sm:$0xc0] }
 0x261   :  { %1645 = vst [vmem:[#allocation4 + $0x28] sm:$0x3] %v1637_v55  ;;  %v15484_v35 = vpop.permute.xlu0 %1360  ;;  %v13836_v51 = vld [vmem:[#allocation11 + $0x788] sm:$0xf0]  ;;  %v1884_v37 = vmax.f32 %v1864_v28, %v1876_v18  ;;  %v1916_v4 = vrot.slane %v1908_v46, 2  ;;  %v16886_v6 = vld [vmem:[#allocation61_spill] sm:$0xff] }
 0x262   :  { %1473 = vst [vmem:[#allocation3 + $0x68] sm:$0xff] %v1445_v24  ;;  %v1395_v27 = vsel %vm1382_vm3, %v15407_v61, %v15484_v35  ;;  %v10507_v40 = vor.u32 %v13836_v51, %v10506_v25  ;;  %v10478_v23 = vld [vmem:[#allocation11 + $0x738] sm:$0xf]  ;;  %v10758_v16 = vld [vmem:[#allocation11 + $0x968] sm:$0xf]  ;;  %v15492_v24 = vadd.f32 %v15417_v15, %v16886_v6  ;;  %v15495_v61 = vadd.f32 %v15417_v15, %v1171_v14 }
 0x263   :  { %1466 = vst [vmem:[#allocation3 + $0x30] sm:$0xff] %v1438_v45  ;;  %v1448_v57 = vmax.f32 %v1277_v31, %v1395_v27  ;;  %v13899_v1 = vld [vmem:[#allocation11 + $0x980] sm:$0xf0]  ;;  %v1892_v10 = vrot.slane %v1884_v37, 2  ;;  %v1924_v42 = vmax.f32 %v1904_v38, %v1916_v4  ;;  %v10479_v19 = vor.u32 %v13829_v29, %v10478_v23  ;;  %v10450_v55 = vld [vmem:[#allocation11 + $0x700] sm:$0xf] }
 0x264   :  { %v1716_v20 = vld [vmem:[#allocation3 + $0x60] sm:$0x3]  ;;  %v1720_v17 = vld [vmem:[#allocation3 + $0x60] sm:$0xc]  ;;  %1467 = vst.msk [vmem:[#allocation3 + $0x38] sm:$0xff] %vm1382_vm3, %v1439_v22  ;;  %3543 = vmatpush.bf16.msrb.mxu1 %v10507_v40  ;;  %v10759_v59 = vor.u32 %v13899_v1, %v10758_v16  ;;  %v1278_v38 = vmax.f32 %v15492_v24, 0.0 }
 0x265   :  { %v1728_v36 = vrot.slane %v1720_v17, 2  ;;  %v1756_v25 = vld [vmem:[#allocation3 + $0x60] sm:$0x30]  ;;  %v1760_v0 = vld [vmem:[#allocation3 + $0x60] sm:$0xc0]  ;;  %1476 = vst [vmem:[#allocation3 + $0x80] sm:$0xff] %v1448_v57 }
 0x266   :  { %1900 = vst [vmem:[#allocation4 + $0x40] sm:$0xc0] %v1892_v10  ;;  %v1932_v53 = vrot.slane %v1924_v42, 4  ;;  %v1768_v47 = vrot.slane %v1760_v0, 2  ;;  %3561 = vmatpush.bf16.msra.mxu2 %v10759_v59  ;;  %v13822_v31 = vld [vmem:[#allocation11 + $0x718] sm:$0xf0]  ;;  %v15507_v42 = vadd.f32 %v15417_v15, %v15237_v41 }
 0x267   :  { %v1736_v45 = vmax.f32 %v1716_v20, %v1728_v36  ;;  %v10730_v28 = vld [vmem:[#allocation11 + $0x930] sm:$0xf]  ;;  %v13892_v18 = vld [vmem:[#allocation11 + $0x948] sm:$0xf0]  ;;  %v10451_v26 = vor.u32 %v13822_v31, %v10450_v55  ;;  %v1285_v46 = vmax.f32 %v15495_v61, 0.0  ;;  %v1251_v29 = vmax.f32 %v1202_v2, 0.0 }
 0x268   :  { %1940 = vst [vmem:[#allocation4 + $0x60] sm:$0x3] %v1932_v53  ;;  %v1776_v22 = vmax.f32 %v1756_v25, %v1768_v47  ;;  %3544 = vmatpush.bf16.msrb.mxu1 %v10479_v19  ;;  %v10731_v14 = vor.u32 %v13892_v18, %v10730_v28  ;;  %v1242_v31 = vadd.f32 %v15412_v62, %v15269_v3  ;;  %v10422_v62 = vld [vmem:[#allocation11 + $0x6c8] sm:$0xf]  ;;  %v13878_v61 = vld [vmem:[#allocation11 + $0x8d8] sm:$0xf0] }
 0x269   :  { %v1721_v51 = vld [vmem:[#allocation3 + $0x68] sm:$0xc]  ;;  %v1744_v37 = vrot.slane %v1736_v45, 2  ;;  %v1717_v4 = vld [vmem:[#allocation3 + $0x68] sm:$0x3]  ;;  %v1292_v45 = vmax.f32 %v15507_v42, 0.0 }
 0x26a   :  { %v1729_v27 = vrot.slane %v1721_v51, 2  ;;  %v1761_v40 = vld [vmem:[#allocation3 + $0x68] sm:$0xc0]  ;;  %v1784_v23 = vrot.slane %v1776_v22, 4  ;;  %v1333_v56 = vpop.permute.xlu0 %1332  ;;  %3562 = vmatpush.bf16.msra.mxu2 %v10731_v14  ;;  %v1757_v57 = vld [vmem:[#allocation3 + $0x68] sm:$0x30] }
 0x26b   :  { %1752 = vst [vmem:[#allocation4 + $0x20] sm:$0xc0] %v1744_v37  ;;  %v1769_v16 = vrot.slane %v1761_v40, 2  ;;  %v1385_v1 = vsel %vm1382_vm3, %v15400_v39, %v1333_v56  ;;  %v1435_v10 = vmax.f32 %v1252_v12, %v1333_v56  ;;  %v1570_v17 = vld [vmem:[#allocation3 + $0x30] sm:$0x3] }
 0x26c   :  { %v1737_v20 = vmax.f32 %v1717_v4, %v1729_v27  ;;  %1792 = vst [vmem:[#allocation4 + $0x40] sm:$0x3] %v1784_v23  ;;  %v1574_v19 = vld [vmem:[#allocation3 + $0x30] sm:$0xc]  ;;  %3545 = vmatpush.bf16.msrb.mxu1 %v10451_v26  ;;  %v1571_v6 = vld [vmem:[#allocation3 + $0x38] sm:$0x3]  ;;  %v1434_v12 = vmax.f32 %v1251_v29, %v1385_v1  ;;  %v15515_v26 = vadd.f32 %v15354_v52, %v15325_v13 }
 0x26d   :  { %v1777_v59 = vmax.f32 %v1757_v57, %v1769_v16  ;;  %v1575_v36 = vld [vmem:[#allocation3 + $0x38] sm:$0xc]  ;;  %v1582_v25 = vrot.slane %v1574_v19, 2  ;;  %1463 = vst.msk [vmem:[#allocation3 + $0x18] sm:$0xff] %vm1382_vm3, %v1435_v10  ;;  %v1610_v53 = vld [vmem:[#allocation3 + $0x30] sm:$0x30] }
 0x26e   :  { %v1745_v0 = vrot.slane %v1737_v20, 2  ;;  %v1583_v39 = vrot.slane %v1575_v36, 2  ;;  %v1614_v63 = vld [vmem:[#allocation3 + $0x30] sm:$0xc0]  ;;  %v1611_v41 = vld [vmem:[#allocation3 + $0x38] sm:$0x30] }
 0x26f   :  { %v1785_v47 = vrot.slane %v1777_v59, 4  ;;  %v1590_v55 = vmax.f32 %v1570_v17, %v1582_v25  ;;  %v1615_v15 = vld [vmem:[#allocation3 + $0x38] sm:$0xc0]  ;;  %v1622_v2 = vrot.slane %v1614_v63, 2  ;;  %v1800_v22 = vld [vmem:[#allocation3 + $0x80] sm:$0xc] }
 0x270   :  { %1753 = vst [vmem:[#allocation4 + $0x28] sm:$0xc0] %v1745_v0  ;;  %v1591_v28 = vmax.f32 %v1571_v6, %v1583_v39  ;;  %v1623_v18 = vrot.slane %v1615_v15, 2  ;;  %v1796_v37 = vld [vmem:[#allocation3 + $0x80] sm:$0x3]  ;;  %v1808_v4 = vrot.slane %v1800_v22, 2 }
 0x271   :  { %1793 = vst [vmem:[#allocation4 + $0x48] sm:$0x3] %v1785_v47  ;;  %v1598_v14 = vrot.slane %v1590_v55, 2  ;;  %v1630_v51 = vmax.f32 %v1610_v53, %v1622_v2  ;;  %v15517_v27 = vpop.permute.xlu1 %1376  ;;  %v1840_v56 = vld [vmem:[#allocation3 + $0x80] sm:$0xc0]  ;;  %v1291_v10 = vmax.f32 %v1242_v31, 0.0 }
 0x272   :  { %v1599_v40 = vrot.slane %v1591_v28, 2  ;;  %v1631_v23 = vmax.f32 %v1611_v41, %v1623_v18  ;;  %1462 = vst [vmem:[#allocation3 + $0x10] sm:$0xff] %v1434_v12  ;;  %v1365_v3 = vpop.permute.xlu2 %1364  ;;  %v1816_v57 = vmax.f32 %v1796_v37, %v1808_v4  ;;  %v1848_v16 = vrot.slane %v1840_v56, 2  ;;  %v13815_v1 = vld [vmem:[#allocation11 + $0x6e0] sm:$0xf0]  ;;  %v15523_v19 = vpop.permute.xlu0 %1370 }
 0x273   :  { %1606 = vst [vmem:[#allocation4 + $0x10] sm:$0xc0] %v1598_v14  ;;  %v1638_v29 = vrot.slane %v1630_v51, 4  ;;  %v1401_v13 = vsel %vm1382_vm3, %v15467_v7, %v15517_v27  ;;  %v1836_v17 = vld [vmem:[#allocation3 + $0x80] sm:$0x30]  ;;  %v10423_v59 = vor.u32 %v13815_v1, %v10422_v62  ;;  %v1279_v6 = vmax.f32 %v15515_v26, 0.0 }
 0x274   :  { %1607 = vst.msk [vmem:[#allocation4 + $0x18] sm:$0xc0] %vm1496_vm4, %v1599_v40  ;;  %v1639_v20 = vrot.slane %v1631_v23, 4  ;;  %v1824_v36 = vrot.slane %v1816_v57, 6  ;;  %v1856_v25 = vmax.f32 %v1836_v17, %v1848_v16  ;;  %v1505_v0 = vld [vmem:[#allocation3 + $0x18] sm:$0xc]  ;;  %v1456_v53 = vmax.f32 %v1291_v10, %v1401_v13 }
 0x275   :  { %1646 = vst [vmem:[#allocation4 + $0x30] sm:$0x3] %v1638_v29  ;;  %v1501_v39 = vld [vmem:[#allocation3 + $0x18] sm:$0x3]  ;;  %v1513_v7 = vrot.slane %v1505_v0, 2  ;;  %3546 = vmatpush.bf16.msrb.mxu1 %v10423_v59  ;;  %v1451_v12 = vmax.f32 %v1280_v5, %v1365_v3  ;;  %v1399_v47 = vsel %vm1382_vm3, %v15455_v43, %v15523_v19  ;;  %v16887_v59 = vld [vmem:[#allocation31_spill] sm:$0xff] }
 0x276   :  { %1647 = vst.msk [vmem:[#allocation4 + $0x38] sm:$0x3] %vm1491_vm5, %v1639_v20  ;;  %v1546_v63 = vld [vmem:[#allocation3 + $0x18] sm:$0xc0]  ;;  %v10702_v55 = vld [vmem:[#allocation11 + $0x8f8] sm:$0xf]  ;;  %v1453_v43 = vmax.f32 %v1285_v46, %v1399_v47  ;;  %v1216_v46 = vadd.f32 %v15354_v52, %v15288_v44 }
 0x277   :  { %1832 = vst [vmem:[#allocation4 + $0x40] sm:$0xc] %v1824_v36  ;;  %v1521_v41 = vmax.f32 %v1501_v39, %v1513_v7  ;;  %v1554_v15 = vrot.slane %v1546_v63, 2  ;;  %v13885_v2 = vld [vmem:[#allocation11 + $0x910] sm:$0xf0]  ;;  %v16888_v36 = vld [vmem:[#allocation45_spill] sm:$0xff] }
 0x278   :  { %1860 = vst [vmem:[#allocation4 + $0x40] sm:$0x30] %v1856_v25  ;;  %v1542_v18 = vld [vmem:[#allocation3 + $0x18] sm:$0x30]  ;;  %v10703_v26 = vor.u32 %v13885_v2, %v10702_v55  ;;  %v10394_v56 = vld [vmem:[#allocation11 + $0x690] sm:$0xf]  ;;  %v690_v25 = vadd.f32 %v16888_v36, %v16887_v59 }
 0x279   :  { %v1500_v31 = vld [vmem:[#allocation3 + $0x10] sm:$0x3]  ;;  %v1504_v28 = vld [vmem:[#allocation3 + $0x10] sm:$0xc]  ;;  %v1363_v22 = vpop.permute.xlu1 %1362  ;;  %v1529_v51 = vrot.slane %v1521_v41, 6  ;;  %v1562_v5 = vmax.f32 %v1542_v18, %v1554_v15  ;;  %1484 = vst [vmem:[#allocation3 + $0xc0] sm:$0xff] %v1456_v53 }
 0x27a   :  { %v1512_v14 = vrot.slane %v1504_v28, 2  ;;  %v1541_v37 = vld [vmem:[#allocation3 + $0x10] sm:$0x30]  ;;  %v1545_v32 = vld [vmem:[#allocation3 + $0x10] sm:$0xc0]  ;;  %v15534_v4 = vpop.permute.xlu2 %1378  ;;  %1479 = vst.msk [vmem:[#allocation3 + $0x98] sm:$0xff] %vm1382_vm3, %v1451_v12  ;;  %v1396_v23 = vsel %vm1382_vm3, %v15484_v35, %v1363_v22  ;;  %3563 = vmatpush.bf16.msra.mxu2 %v10703_v26  ;;  %v1397_v57 = vsel %vm1382_vm3, %v1363_v22, %v1365_v3  ;;  %v1158_v47 = vadd.f32 %v15305_v9, %v690_v25 }
 0x27b   :  { %v1553_v40 = vrot.slane %v1545_v32, 2  ;;  %v13808_v62 = vld [vmem:[#allocation11 + $0x6a8] sm:$0xf0]  ;;  %1538 = vst.msk [vmem:[#allocation4 + $0x18] sm:$0xc] %vm1537_vm6, %v1529_v51  ;;  %v1402_v35 = vsel %vm1382_vm3, %v15517_v27, %v15534_v4  ;;  %v1449_v0 = vmax.f32 %v1278_v38, %v1396_v23  ;;  %v1450_v53 = vmax.f32 %v1279_v6, %v1397_v57  ;;  %v16889_v28 = vld [vmem:[#allocation32_spill] sm:$0xff] }
 0x27c   :  { %v1520_v29 = vmax.f32 %v1500_v31, %v1512_v14  ;;  %v10395_v16 = vor.u32 %v13808_v62, %v10394_v56  ;;  %v10674_v13 = vld [vmem:[#allocation11 + $0x8c0] sm:$0xf]  ;;  %1567 = vst.msk [vmem:[#allocation4 + $0x18] sm:$0x30] %vm1566_vm7, %v1562_v5  ;;  %v10366_v20 = vld [vmem:[#allocation11 + $0x658] sm:$0xf]  ;;  %v1457_v55 = vmax.f32 %v1292_v45, %v1402_v35 }
 0x27d   :  { %v1561_v1 = vmax.f32 %v1541_v37, %v1553_v40  ;;  %v10675_v10 = vor.u32 %v13878_v61, %v10674_v13  ;;  %v13801_v17 = vld [vmem:[#allocation11 + $0x670] sm:$0xf0]  ;;  %1481 = vst [vmem:[#allocation3 + $0xa8] sm:$0xff] %v1453_v43  ;;  %v10646_v39 = vld [vmem:[#allocation11 + $0x888] sm:$0xf]  ;;  %v1265_v24 = vmax.f32 %v1216_v46, 0.0  ;;  %v1223_v43 = vadd.f32 %v15354_v52, %v1158_v47 }
 0x27e   :  { %v1528_v3 = vrot.slane %v1520_v29, 6  ;;  %3547 = vmatpush.bf16.msrb.mxu1 %v10395_v16  ;;  %v10367_v44 = vor.u32 %v13801_v17, %v10366_v20  ;;  %v13871_v7 = vld [vmem:[#allocation11 + $0x8a0] sm:$0xf0]  ;;  %v10338_v27 = vld [vmem:[#allocation11 + $0x620] sm:$0xf]  ;;  %v16890_v18 = vld [vmem:[#allocation47_spill] sm:$0xff] }
 0x27f   :  { %1565 = vst [vmem:[#allocation4 + $0x10] sm:$0x30] %v1561_v1  ;;  %3564 = vmatpush.bf16.msra.mxu2 %v10675_v10  ;;  %v10647_v63 = vor.u32 %v13871_v7, %v10646_v39  ;;  %v13794_v12 = vld [vmem:[#allocation11 + $0x638] sm:$0xf0]  ;;  %v10618_v41 = vld [vmem:[#allocation11 + $0x850] sm:$0xf]  ;;  %v695_v22 = vadd.f32 %v16890_v18, %v16889_v28 }
 0x280   :  { %1536 = vst [vmem:[#allocation4 + $0x10] sm:$0xc] %v1528_v3  ;;  %v13864_v15 = vld [vmem:[#allocation11 + $0x868] sm:$0xf0]  ;;  %v1944_v38 = vld [vmem:[#allocation3 + $0xc0] sm:$0x3]  ;;  %v10339_v51 = vor.u32 %v13794_v12, %v10338_v27 }
 0x281   :  { %v1948_v2 = vld [vmem:[#allocation3 + $0xc0] sm:$0xc]  ;;  %v1349_v31 = vpop.permute.xlu1 %1348  ;;  %v1984_v26 = vld [vmem:[#allocation3 + $0xc0] sm:$0x30]  ;;  %v1988_v14 = vld [vmem:[#allocation3 + $0xc0] sm:$0xc0]  ;;  %v10619_v5 = vor.u32 %v13864_v15, %v10618_v41  ;;  %v1172_v40 = vadd.f32 %v15337_v34, %v695_v22 }
 0x282   :  { %v1956_v6 = vrot.slane %v1948_v2, 2  ;;  %1477 = vst [vmem:[#allocation3 + $0x88] sm:$0xff] %v1449_v0  ;;  %v1391_v9 = vsel %vm1382_vm3, %v15442_v49, %v1349_v31  ;;  %3548 = vmatpush.bf16.msrb.mxu1 %v10367_v44  ;;  %v1996_v42 = vrot.slane %v1988_v14, 2  ;;  %v1799_v45 = vld [vmem:[#allocation3 + $0x98] sm:$0x3]  ;;  %v1357_v57 = vpop.permute.xlu0 %1356  ;;  %v1443_v59 = vmax.f32 %v1266_v8, %v1349_v31 }
 0x283   :  { %v1803_v37 = vld [vmem:[#allocation3 + $0x98] sm:$0xc]  ;;  %1478 = vst [vmem:[#allocation3 + $0x90] sm:$0xff] %v1450_v53  ;;  %v1442_v32 = vmax.f32 %v1265_v24, %v1391_v9  ;;  %3565 = vmatpush.bf16.msra.mxu2 %v10647_v63  ;;  %v1839_v62 = vld [vmem:[#allocation3 + $0x98] sm:$0x30]  ;;  %v1394_v36 = vsel %vm1382_vm3, %v15409_v30, %v1357_v57  ;;  %v1272_v3 = vmax.f32 %v1223_v43, 0.0  ;;  %v1237_v0 = vadd.f32 %v15354_v52, %v1172_v40 }
 0x284   :  { %v1964_v23 = vmax.f32 %v1944_v38, %v1956_v6  ;;  %v1811_v56 = vrot.slane %v1803_v37, 2  ;;  %v1843_v29 = vld [vmem:[#allocation3 + $0x98] sm:$0xc0]  ;;  %1485 = vst [vmem:[#allocation3 + $0xc8] sm:$0xff] %v1457_v55  ;;  %v2004_v49 = vmax.f32 %v1984_v26, %v1996_v42  ;;  %v1865_v13 = vld [vmem:[#allocation3 + $0xa8] sm:$0x3]  ;;  %v1447_v31 = vmax.f32 %v1273_v21, %v1357_v57 }
 0x285   :  { %v1851_v16 = vrot.slane %v1843_v29, 2  ;;  %v1869_v61 = vld [vmem:[#allocation3 + $0xa8] sm:$0xc]  ;;  %1470 = vst [vmem:[#allocation3 + $0x50] sm:$0xff] %v1442_v32  ;;  %v1905_v10 = vld [vmem:[#allocation3 + $0xa8] sm:$0x30]  ;;  %v1446_v12 = vmax.f32 %v1272_v3, %v1394_v36 }
 0x286   :  { %v1972_v46 = vrot.slane %v1964_v23, 6  ;;  %v1819_v1 = vmax.f32 %v1799_v45, %v1811_v56  ;;  %v1877_v35 = vrot.slane %v1869_v61, 2  ;;  %v1909_v20 = vld [vmem:[#allocation3 + $0xa8] sm:$0xc0]  ;;  %3549 = vmatpush.bf16.msrb.mxu1 %v10339_v51  ;;  %2008 = vst [vmem:[#allocation4 + $0x60] sm:$0x30] %v2004_v49 }
 0x287   :  { %v1859_v17 = vmax.f32 %v1839_v62, %v1851_v16  ;;  %v1917_v34 = vrot.slane %v1909_v20, 2  ;;  %3566 = vmatpush.bf16.msra.mxu2 %v10619_v5  ;;  %v10590_v25 = vld [vmem:[#allocation11 + $0x818] sm:$0xf]  ;;  %v13857_v7 = vld [vmem:[#allocation11 + $0x830] sm:$0xf0]  ;;  %1471 = vst.msk [vmem:[#allocation3 + $0x58] sm:$0xff] %vm1382_vm3, %v1443_v59 }
 0x288   :  { %1980 = vst [vmem:[#allocation4 + $0x60] sm:$0xc] %v1972_v46  ;;  %v1827_v44 = vrot.slane %v1819_v1, 6  ;;  %v1885_v39 = vmax.f32 %v1865_v13, %v1877_v35  ;;  %v10591_v27 = vor.u32 %v13857_v7, %v10590_v25  ;;  %v1286_v52 = vmax.f32 %v1237_v0, 0.0  ;;  %v2016_v25 = vld [vmem:[#allocation4 + $0x20] sm:$0xff] }
 0x289   :  { %1863 = vst.msk [vmem:[#allocation4 + $0x58] sm:$0x30] %vm1566_vm7, %v1859_v17  ;;  %v1925_v53 = vmax.f32 %v1905_v10, %v1917_v34  ;;  %v1801_v63 = vld [vmem:[#allocation3 + $0x88] sm:$0xc]  ;;  %v1797_v47 = vld [vmem:[#allocation3 + $0x88] sm:$0x3] }
 0x28a   :  { %1835 = vst.msk [vmem:[#allocation4 + $0x58] sm:$0xc] %vm1537_vm6, %v1827_v44  ;;  %v1893_v60 = vrot.slane %v1885_v39, 2  ;;  %v1809_v8 = vrot.slane %v1801_v63, 2  ;;  %v1802_v55 = vld [vmem:[#allocation3 + $0x90] sm:$0xc] }
 0x28b   :  { %v1933_v30 = vrot.slane %v1925_v53, 4  ;;  %3567 = vmatpush.bf16.msra.mxu2 %v10591_v27  ;;  %v1798_v41 = vld [vmem:[#allocation3 + $0x90] sm:$0x3]  ;;  %v1810_v15 = vrot.slane %v1802_v55, 2  ;;  %v1841_v38 = vld [vmem:[#allocation3 + $0x88] sm:$0xc0] }
 0x28c   :  { %1901 = vst [vmem:[#allocation4 + $0x48] sm:$0xc0] %v1893_v60  ;;  %v1817_v24 = vmax.f32 %v1797_v47, %v1809_v8  ;;  %v1842_v2 = vld [vmem:[#allocation3 + $0x90] sm:$0xc0]  ;;  %v1837_v22 = vld [vmem:[#allocation3 + $0x88] sm:$0x30] }
 0x28d   :  { %1941 = vst [vmem:[#allocation4 + $0x68] sm:$0x3] %v1933_v30  ;;  %v1818_v28 = vmax.f32 %v1798_v41, %v1810_v15  ;;  %v1849_v6 = vrot.slane %v1841_v38, 2  ;;  %v1850_v26 = vrot.slane %v1842_v2, 2  ;;  %v1838_v14 = vld [vmem:[#allocation3 + $0x90] sm:$0x30] }
 0x28e   :  { %v1825_v18 = vrot.slane %v1817_v24, 6  ;;  %1474 = vst [vmem:[#allocation3 + $0x70] sm:$0xff] %v1446_v12  ;;  %v1949_v9 = vld [vmem:[#allocation3 + $0xc8] sm:$0xc]  ;;  %v1989_v51 = vld [vmem:[#allocation3 + $0xc8] sm:$0xc0] }
 0x28f   :  { %v1826_v42 = vrot.slane %v1818_v28, 6  ;;  %v1857_v45 = vmax.f32 %v1837_v22, %v1849_v6  ;;  %v1858_v37 = vmax.f32 %v1838_v14, %v1850_v26  ;;  %v1945_v32 = vld [vmem:[#allocation3 + $0xc8] sm:$0x3]  ;;  %v1957_v5 = vrot.slane %v1949_v9, 2  ;;  %v1985_v43 = vld [vmem:[#allocation3 + $0xc8] sm:$0x30] }
 0x290   :  { %1833 = vst [vmem:[#allocation4 + $0x48] sm:$0xc] %v1825_v18  ;;  %v1997_v40 = vrot.slane %v1989_v51, 2  ;;  %v1654_v23 = vld [vmem:[#allocation3 + $0x50] sm:$0xc]  ;;  %v1293_v35 = vmax.f32 %v15358_v11, 0.0 }
 0x291   :  { %1475 = vst.msk [vmem:[#allocation3 + $0x78] sm:$0xff] %vm1382_vm3, %v1447_v31  ;;  %v1965_v58 = vmax.f32 %v1945_v32, %v1957_v5  ;;  %v1650_v21 = vld [vmem:[#allocation3 + $0x50] sm:$0x3]  ;;  %v1655_v56 = vld [vmem:[#allocation3 + $0x58] sm:$0xc]  ;;  %v1662_v49 = vrot.slane %v1654_v23, 2 }
 0x292   :  { %1834 = vst [vmem:[#allocation4 + $0x50] sm:$0xc] %v1826_v42  ;;  %v1373_v62 = vpop.permute.xlu1 %1372  ;;  %v2005_v29 = vmax.f32 %v1985_v43, %v1997_v40  ;;  %v1651_v57 = vld [vmem:[#allocation3 + $0x58] sm:$0x3]  ;;  %v1663_v16 = vrot.slane %v1655_v56, 2  ;;  %v2020_v30 = vld [vmem:[#allocation4 + $0x40] sm:$0xff] }
 0x293   :  { %1861 = vst [vmem:[#allocation4 + $0x48] sm:$0x30] %v1857_v45  ;;  %v1400_v13 = vsel %vm1382_vm3, %v15523_v19, %v1373_v62  ;;  %v1973_v61 = vrot.slane %v1965_v58, 6  ;;  %v1694_v46 = vld [vmem:[#allocation3 + $0x50] sm:$0xc0]  ;;  %v1670_v10 = vmax.f32 %v1650_v21, %v1662_v49  ;;  %v1455_v47 = vmax.f32 %v1287_v48, %v1373_v62  ;;  %v2017_v58 = vld [vmem:[#allocation4 + $0x28] sm:$0xff] }
 0x294   :  { %1862 = vst [vmem:[#allocation4 + $0x50] sm:$0x30] %v1858_v37  ;;  %v1454_v1 = vmax.f32 %v1286_v52, %v1400_v13  ;;  %v1671_v20 = vmax.f32 %v1651_v57, %v1663_v16  ;;  %v1695_v17 = vld [vmem:[#allocation3 + $0x58] sm:$0xc0]  ;;  %v1702_v34 = vrot.slane %v1694_v46, 2 }
 0x295   :  { %2009 = vst [vmem:[#allocation4 + $0x68] sm:$0x30] %v2005_v29  ;;  %v1690_v59 = vld [vmem:[#allocation3 + $0x50] sm:$0x30]  ;;  %v1703_v36 = vrot.slane %v1695_v17, 2  ;;  %v1678_v3 = vrot.slane %v1670_v10, 6 }
 0x296   :  { %1981 = vst [vmem:[#allocation4 + $0x68] sm:$0xc] %v1973_v61  ;;  %v1679_v0 = vrot.slane %v1671_v20, 6  ;;  %v1691_v44 = vld [vmem:[#allocation3 + $0x58] sm:$0x30]  ;;  %v1710_v39 = vmax.f32 %v1690_v59, %v1702_v34 }
 0x297   :  { %v1722_v19 = vld [vmem:[#allocation3 + $0x70] sm:$0xc]  ;;  %v2260_v7 = vld [vmem:[#allocation4] sm:$0xfc]  ;;  %v1711_v53 = vmax.f32 %v1691_v44, %v1703_v36  ;;  %v1718_v63 = vld [vmem:[#allocation3 + $0x70] sm:$0x3] }
 0x298   :  { %v1723_v27 = vld [vmem:[#allocation3 + $0x78] sm:$0xc]  ;;  %v1730_v60 = vrot.slane %v1722_v19, 2  ;;  %1482 = vst [vmem:[#allocation3 + $0xb0] sm:$0xff] %v1454_v1  ;;  %v1719_v8 = vld [vmem:[#allocation3 + $0x78] sm:$0x3]  ;;  %v2268_v38 = vpack.c.bf16 %v2016_v25, %v2260_v7 }
 0x299   :  { %1686 = vst [vmem:[#allocation4 + $0x30] sm:$0xc] %v1678_v3  ;;  %v1731_v12 = vrot.slane %v1723_v27, 2  ;;  %v1758_v52 = vld [vmem:[#allocation3 + $0x70] sm:$0x30] }
 0x29a   :  { %1687 = vst.msk [vmem:[#allocation4 + $0x38] sm:$0xc] %vm1537_vm6, %v1679_v0  ;;  %v1738_v55 = vmax.f32 %v1718_v63, %v1730_v60  ;;  %v1759_v41 = vld [vmem:[#allocation3 + $0x78] sm:$0x30]  ;;  %v1762_v15 = vld [vmem:[#allocation3 + $0x70] sm:$0xc0]  ;;  %v1381_v48 = vpop.permute.xlu0 %1380 }
 0x29b   :  { %v1763_v24 = vld [vmem:[#allocation3 + $0x78] sm:$0xc0]  ;;  %1714 = vst [vmem:[#allocation4 + $0x30] sm:$0x30] %v1710_v39  ;;  %v1739_v2 = vmax.f32 %v1719_v8, %v1731_v12  ;;  %v1770_v31 = vrot.slane %v1762_v15, 2  ;;  %v2510_v45 = vrot.slane %v2268_v38, 1  ;;  %v1403_v21 = vsel %vm1382_vm3, %v15534_v4, %v1381_v48 }
 0x29c   :  { %v1771_v28 = vrot.slane %v1763_v24, 2  ;;  %v2264_v18 = vld [vmem:[#allocation4 + $0x60] sm:$0x3f]  ;;  %1715 = vst.msk [vmem:[#allocation4 + $0x38] sm:$0x30] %vm1566_vm7, %v1711_v53  ;;  %v1746_v22 = vrot.slane %v1738_v55, 2  ;;  %v1458_v20 = vmax.f32 %v1293_v35, %v1403_v21  ;;  %v1459_v8 = vmax.f32 %v1294_v33, %v1381_v48 }
 0x29d   :  { %v2272_v6 = vpack.c.bf16 %v2264_v18, %v2020_v30  ;;  %v1747_v26 = vrot.slane %v1739_v2, 2  ;;  %v1778_v14 = vmax.f32 %v1758_v52, %v1770_v31  ;;  %1483 = vst.msk [vmem:[#allocation3 + $0xb8] sm:$0xff] %vm1382_vm3, %v1455_v47  ;;  %v13955_v51 = vld [vmem:[#allocation11 + $0xb40] sm:$0xf0]  ;;  %v10562_v42 = vld [vmem:[#allocation11 + $0x7e0] sm:$0xf] }
 0x29e   :  { %v1779_v9 = vmax.f32 %v1759_v41, %v1771_v28  ;;  %1754 = vst [vmem:[#allocation4 + $0x30] sm:$0xc0] %v1746_v22  ;;  %v10983_v32 = vor.u32 %v13955_v51, %v10982_v54  ;;  %v13850_v5 = vld [vmem:[#allocation11 + $0x7f8] sm:$0xf0]  ;;  %v2021_v16 = vld [vmem:[#allocation4 + $0x48] sm:$0xff] }
 0x29f   :  { %v15579_v37 = vrot.slane %v2272_v6, 1  ;;  %1755 = vst.msk [vmem:[#allocation4 + $0x38] sm:$0xc0] %vm1496_vm4, %v1747_v26  ;;  %v1786_v43 = vrot.slane %v1778_v14, 4  ;;  %v10563_v23 = vor.u32 %v13850_v5, %v10562_v42  ;;  %v1866_v62 = vld [vmem:[#allocation3 + $0xb0] sm:$0x3] }
 0x2a0   :  { %v1787_v40 = vrot.slane %v1779_v9, 4  ;;  %v1870_v29 = vld [vmem:[#allocation3 + $0xb0] sm:$0xc]  ;;  %v1906_v57 = vld [vmem:[#allocation3 + $0xb0] sm:$0x30]  ;;  %3580 = vmatpush.bf16.msrb.mxu3 %v10983_v32  ;;  %1486 = vst [vmem:[#allocation3 + $0xd0] sm:$0xff] %v1458_v20 }
 0x2a1   :  { %v15586_v56 = vsel %vm2509_vm8, %v2510_v45, %v15579_v37  ;;  %v1910_v49 = vld [vmem:[#allocation3 + $0xb0] sm:$0xc0]  ;;  %1794 = vst [vmem:[#allocation4 + $0x50] sm:$0x3] %v1786_v43  ;;  %v1878_v13 = vrot.slane %v1870_v29, 2  ;;  %3568 = vmatpush.bf16.msra.mxu2 %v10563_v23 }
 0x2a2   :  { %3550 = vmatmul.bf16.vlgmr.msrb.gmra.mxu1 %v15586_v56  ;;  %v1918_v61 = vrot.slane %v1910_v49, 2  ;;  %v2261_v46 = vld [vmem:[#allocation4 + $0x8] sm:$0xfc]  ;;  %1795 = vst.msk [vmem:[#allocation4 + $0x58] sm:$0x3] %vm1491_vm5, %v1787_v40 }
 0x2a3   :  { %v2265_v4 = vld [vmem:[#allocation4 + $0x68] sm:$0x3f]  ;;  %v2269_v1 = vpack.c.bf16 %v2017_v58, %v2261_v46  ;;  %v13840_v10 = vld [vmem:[#allocation11 + $0x7ac] sm:$0xf]  ;;  %v1886_v17 = vmax.f32 %v1866_v62, %v1878_v13  ;;  %v10536_v36 = vld [vmem:[#allocation11 + $0x7c4] sm:$0xf0] }
 0x2a4   :  { %v1926_v34 = vmax.f32 %v1906_v57, %v1918_v61  ;;  %v2273_v59 = vpack.c.bf16 %v2265_v4, %v2021_v16  ;;  %v13952_v25 = vld [vmem:[#allocation11 + $0xb2c] sm:$0xf]  ;;  %v10984_v3 = vld [vmem:[#allocation11 + $0xb44] sm:$0xf0]  ;;  %v1867_v0 = vld [vmem:[#allocation3 + $0xb8] sm:$0x3]  ;;  %v10539_v39 = vor.u32 %v13840_v10, %v10536_v36 }
 0x2a5   :  { %v1871_v44 = vld [vmem:[#allocation3 + $0xb8] sm:$0xc]  ;;  %v10987_v19 = vor.u32 %v13952_v25, %v10984_v3  ;;  %v1894_v53 = vrot.slane %v1886_v17, 2  ;;  %v1907_v63 = vld [vmem:[#allocation3 + $0xb8] sm:$0x30]  ;;  %v2513_v35 = vrot.slane %v2269_v1, 1 }
 0x2a6   :  { %v1879_v7 = vrot.slane %v1871_v44, 2  ;;  %v1911_v27 = vld [vmem:[#allocation3 + $0xb8] sm:$0xc0]  ;;  %v1934_v60 = vrot.slane %v1926_v34, 4  ;;  %v15594_v12 = vrot.slane %v2273_v59, 1  ;;  %3618 = vmatpush.bf16.msrb.mxu2 %v10539_v39  ;;  %1487 = vst.msk [vmem:[#allocation3 + $0xd8] sm:$0xff] %vm1382_vm3, %v1459_v8 }
 0x2a7   :  { %v1919_v11 = vrot.slane %v1911_v27, 2  ;;  %3656 = vmatpush.bf16.msra.mxu0 %v10987_v19  ;;  %v10954_v30 = vld [vmem:[#allocation11 + $0xaf0] sm:$0xf]  ;;  %1902 = vst [vmem:[#allocation4 + $0x50] sm:$0xc0] %v1894_v53 }
 0x2a8   :  { %v1887_v47 = vmax.f32 %v1867_v0, %v1879_v7  ;;  %v13948_v55 = vld [vmem:[#allocation11 + $0xb08] sm:$0xf0]  ;;  %v13833_v52 = vld [vmem:[#allocation11 + $0x774] sm:$0xf]  ;;  %1942 = vst [vmem:[#allocation4 + $0x70] sm:$0x3] %v1934_v60  ;;  %v15598_v15 = vsel %vm2509_vm8, %v2513_v35, %v15594_v12 }
 0x2a9   :  { %v1927_v41 = vmax.f32 %v1907_v63, %v1919_v11  ;;  %v10955_v50 = vor.u32 %v13948_v55, %v10954_v30  ;;  %v10508_v33 = vld [vmem:[#allocation11 + $0x78c] sm:$0xf0]  ;;  %v13945_v24 = vld [vmem:[#allocation11 + $0xaf4] sm:$0xf]  ;;  %3569 = vmatmul.bf16.vlgmr.msra.gmra.mxu2 %v15598_v15  ;;  %v10926_v28 = vld [vmem:[#allocation11 + $0xab8] sm:$0xf] }
 0x2aa   :  { %v1895_v38 = vrot.slane %v1887_v47, 2  ;;  %v10511_v2 = vor.u32 %v13833_v52, %v10508_v33  ;;  %v10956_v31 = vld [vmem:[#allocation11 + $0xb0c] sm:$0xf0]  ;;  %v13941_v6 = vld [vmem:[#allocation11 + $0xad0] sm:$0xf0] }
 0x2ab   :  { %v1935_v18 = vrot.slane %v1927_v41, 4  ;;  %3581 = vmatpush.bf16.msrb.mxu3 %v10955_v50  ;;  %v10959_v22 = vor.u32 %v13945_v24, %v10956_v31  ;;  %v13826_v54 = vld [vmem:[#allocation11 + $0x73c] sm:$0xf]  ;;  %v10927_v48 = vor.u32 %v13941_v6, %v10926_v28  ;;  %v10480_v26 = vld [vmem:[#allocation11 + $0x754] sm:$0xf0] }
 0x2ac   :  { %1903 = vst.msk [vmem:[#allocation4 + $0x58] sm:$0xc0] %vm1496_vm4, %v1895_v38  ;;  %3619 = vmatpush.bf16.msrb.mxu2 %v10511_v2  ;;  %v13938_v14 = vld [vmem:[#allocation11 + $0xabc] sm:$0xf]  ;;  %v10483_v9 = vor.u32 %v13826_v54, %v10480_v26  ;;  %v10928_v51 = vld [vmem:[#allocation11 + $0xad4] sm:$0xf0] }
 0x2ad   :  { %1943 = vst.msk [vmem:[#allocation4 + $0x78] sm:$0x3] %vm1491_vm5, %v1935_v18  ;;  %3657 = vmatpush.bf16.msra.mxu0 %v10959_v22  ;;  %v10898_v42 = vld [vmem:[#allocation11 + $0xa80] sm:$0xf]  ;;  %v1946_v45 = vld [vmem:[#allocation3 + $0xd0] sm:$0x3]  ;;  %v10931_v5 = vor.u32 %v13938_v14, %v10928_v51 }
 0x2ae   :  { %v1950_v32 = vld [vmem:[#allocation3 + $0xd0] sm:$0xc]  ;;  %v1990_v40 = vld [vmem:[#allocation3 + $0xd0] sm:$0xc0]  ;;  %v13819_v62 = vld [vmem:[#allocation11 + $0x704] sm:$0xf] }
 0x2af   :  { %v1958_v43 = vrot.slane %v1950_v32, 2  ;;  %3582 = vmatpush.bf16.msrb.mxu3 %v10927_v48  ;;  %v13934_v23 = vld [vmem:[#allocation11 + $0xa98] sm:$0xf0]  ;;  %v1998_v58 = vrot.slane %v1990_v40, 2  ;;  %v10452_v29 = vld [vmem:[#allocation11 + $0x71c] sm:$0xf0] }
 0x2b0   :  { %3620 = vmatpush.bf16.msrb.mxu2 %v10483_v9  ;;  %v10899_v21 = vor.u32 %v13934_v23, %v10898_v42  ;;  %v1947_v57 = vld [vmem:[#allocation3 + $0xd8] sm:$0x3]  ;;  %v1951_v49 = vld [vmem:[#allocation3 + $0xd8] sm:$0xc]  ;;  %v1986_v13 = vld [vmem:[#allocation3 + $0xd0] sm:$0x30]  ;;  %v10455_v61 = vor.u32 %v13819_v62, %v10452_v29 }
 0x2b1   :  { %v1966_v16 = vmax.f32 %v1946_v45, %v1958_v43  ;;  %3658 = vmatpush.bf16.msra.mxu0 %v10931_v5  ;;  %v1959_v46 = vrot.slane %v1951_v49, 2  ;;  %v1987_v4 = vld [vmem:[#allocation3 + $0xd8] sm:$0x30]  ;;  %v1991_v1 = vld [vmem:[#allocation3 + $0xd8] sm:$0xc0]  ;;  %v2006_v10 = vmax.f32 %v1986_v13, %v1998_v58  ;;  %v2018_v32 = vld [vmem:[#allocation4 + $0x30] sm:$0xff] }
 0x2b2   :  { %3555 = vmatmul.bf16.gmra.mxu1 %v15579_v37  ;;  %v13931_v20 = vld [vmem:[#allocation11 + $0xa84] sm:$0xf]  ;;  %v1999_v34 = vrot.slane %v1991_v1, 2  ;;  %v10900_v59 = vld [vmem:[#allocation11 + $0xa9c] sm:$0xf0] }
 0x2b3   :  { %v1974_v17 = vrot.slane %v1966_v16, 6  ;;  %3583 = vmatpush.bf16.msrb.mxu3 %v10899_v21  ;;  %v11094_v36 = vld [vmem:[#allocation11 + $0xc08] sm:$0xf]  ;;  %v1967_v25 = vmax.f32 %v1947_v57, %v1959_v46  ;;  %2010 = vst [vmem:[#allocation4 + $0x70] sm:$0x30] %v2006_v10  ;;  %v10903_v3 = vor.u32 %v13931_v20, %v10900_v59  ;;  %v2019_v45 = vld [vmem:[#allocation4 + $0x38] sm:$0xff] }
 0x2b4   :  { %3621 = vmatpush.bf16.msrb.mxu2 %v10455_v61  ;;  %v13983_v0 = vld [vmem:[#allocation11 + $0xc20] sm:$0xf0]  ;;  %v10870_v44 = vld [vmem:[#allocation11 + $0xa48] sm:$0xf]  ;;  %v2007_v39 = vmax.f32 %v1987_v4, %v1999_v34  ;;  %v13812_v53 = vld [vmem:[#allocation11 + $0x6cc] sm:$0xf] }
 0x2b5   :  { %1982 = vst [vmem:[#allocation4 + $0x70] sm:$0xc] %v1974_v17  ;;  %v11095_v19 = vor.u32 %v13983_v0, %v11094_v36  ;;  %v13927_v7 = vld [vmem:[#allocation11 + $0xa60] sm:$0xf0]  ;;  %v1975_v63 = vrot.slane %v1967_v25, 6  ;;  %3659 = vmatpush.bf16.msra.mxu0 %v10903_v3  ;;  %v2022_v46 = vld [vmem:[#allocation4 + $0x50] sm:$0xff] }
 0x2b6   :  { %v10871_v27 = vor.u32 %v13927_v7, %v10870_v44  ;;  %v10424_v60 = vld [vmem:[#allocation11 + $0x6e4] sm:$0xf0]  ;;  %v13924_v8 = vld [vmem:[#allocation11 + $0xa4c] sm:$0xf]  ;;  %2011 = vst.msk [vmem:[#allocation4 + $0x78] sm:$0x30] %vm1566_vm7, %v2007_v39 }
 0x2b7   :  { %3603 = vmatpush.bf16.msra.mxu1 %v11095_v19  ;;  %v10427_v11 = vor.u32 %v13812_v53, %v10424_v60  ;;  %v10872_v35 = vld [vmem:[#allocation11 + $0xa64] sm:$0xf0]  ;;  %v11066_v30 = vld [vmem:[#allocation11 + $0xbd0] sm:$0xf]  ;;  %1983 = vst.msk [vmem:[#allocation4 + $0x78] sm:$0xc] %vm1537_vm6, %v1975_v63 }
 0x2b8   :  { %3584 = vmatpush.bf16.msrb.mxu3 %v10871_v27  ;;  %v10875_v47 = vor.u32 %v13924_v8, %v10872_v35  ;;  %v13976_v55 = vld [vmem:[#allocation11 + $0xbe8] sm:$0xf0]  ;;  %v10842_v52 = vld [vmem:[#allocation11 + $0xa10] sm:$0xf]  ;;  %v13805_v33 = vld [vmem:[#allocation11 + $0x694] sm:$0xf] }
 0x2b9   :  { %3622 = vmatpush.bf16.msrb.mxu2 %v10427_v11  ;;  %v11067_v41 = vor.u32 %v13976_v55, %v11066_v30  ;;  %v13920_v50 = vld [vmem:[#allocation11 + $0xa28] sm:$0xf0]  ;;  %v10396_v24 = vld [vmem:[#allocation11 + $0x6ac] sm:$0xf0]  ;;  %v13917_v31 = vld [vmem:[#allocation11 + $0xa14] sm:$0xf] }
 0x2ba   :  { %3574 = vmatmul.bf16.gmra.mxu2 %v15594_v12  ;;  %3660 = vmatpush.bf16.msra.mxu0 %v10875_v47  ;;  %v10843_v38 = vor.u32 %v13920_v50, %v10842_v52  ;;  %v10399_v2 = vor.u32 %v13805_v33, %v10396_v24  ;;  %v10844_v28 = vld [vmem:[#allocation11 + $0xa2c] sm:$0xf0]  ;;  %v11038_v18 = vld [vmem:[#allocation11 + $0xb98] sm:$0xf]  ;;  %v13969_v6 = vld [vmem:[#allocation11 + $0xbb0] sm:$0xf0] }
 0x2bb   :  { %3604 = vmatpush.bf16.msra.mxu1 %v11067_v41  ;;  %v10847_v22 = vor.u32 %v13917_v31, %v10844_v28  ;;  %v10814_v54 = vld [vmem:[#allocation11 + $0x9d8] sm:$0xf]  ;;  %v13913_v48 = vld [vmem:[#allocation11 + $0x9f0] sm:$0xf0]  ;;  %v11039_v26 = vor.u32 %v13969_v6, %v11038_v18  ;;  %v13798_v9 = vld [vmem:[#allocation11 + $0x65c] sm:$0xf] }
 0x2bc   :  { %3585 = vmatpush.bf16.msrb.mxu3 %v10843_v38  ;;  %v10815_v14 = vor.u32 %v13913_v48, %v10814_v54  ;;  %v10368_v51 = vld [vmem:[#allocation11 + $0x674] sm:$0xf0]  ;;  %v13910_v42 = vld [vmem:[#allocation11 + $0x9dc] sm:$0xf]  ;;  %v11010_v40 = vld [vmem:[#allocation11 + $0xb60] sm:$0xf] }
 0x2bd   :  { %3623 = vmatpush.bf16.msrb.mxu2 %v10399_v2  ;;  %v10371_v5 = vor.u32 %v13798_v9, %v10368_v51  ;;  %v10816_v43 = vld [vmem:[#allocation11 + $0x9f4] sm:$0xf0]  ;;  %v13962_v23 = vld [vmem:[#allocation11 + $0xb78] sm:$0xf0]  ;;  %v10786_v21 = vld [vmem:[#allocation11 + $0x9a0] sm:$0xf] }
 0x2be   :  { %3661 = vmatpush.bf16.msra.mxu0 %v10847_v22  ;;  %v10819_v58 = vor.u32 %v13910_v42, %v10816_v43  ;;  %v13906_v62 = vld [vmem:[#allocation11 + $0x9b8] sm:$0xf0]  ;;  %v13791_v29 = vld [vmem:[#allocation11 + $0x624] sm:$0xf]  ;;  %v11011_v49 = vor.u32 %v13962_v23, %v11010_v40  ;;  %v10340_v16 = vld [vmem:[#allocation11 + $0x63c] sm:$0xf0] }
 0x2bf   :  { %v2023_v57 = vld [vmem:[#allocation4 + $0x58] sm:$0xff]  ;;  %3605 = vmatpush.bf16.msra.mxu1 %v11039_v26  ;;  %v10787_v4 = vor.u32 %v13906_v62, %v10786_v21  ;;  %v2262_v20 = vld [vmem:[#allocation4 + $0x10] sm:$0xfc]  ;;  %v10343_v17 = vor.u32 %v13791_v29, %v10340_v16  ;;  %v13896_v3 = vld [vmem:[#allocation11 + $0x96c] sm:$0xf] }
 0x2c0   :  { %v13903_v13 = vld [vmem:[#allocation11 + $0x9a4] sm:$0xf]  ;;  %v10788_v61 = vld [vmem:[#allocation11 + $0x9bc] sm:$0xf0]  ;;  %3586 = vmatpush.bf16.msrb.mxu3 %v10815_v14  ;;  %v2266_v36 = vld [vmem:[#allocation4 + $0x70] sm:$0x3f]  ;;  %v2270_v25 = vpack.c.bf16 %v2018_v32, %v2262_v20 }
 0x2c1   :  { %v2263_v1 = vld [vmem:[#allocation4 + $0x18] sm:$0xfc]  ;;  %3624 = vmatpush.bf16.msrb.mxu2 %v10371_v5  ;;  %v10760_v0 = vld [vmem:[#allocation11 + $0x984] sm:$0xf0]  ;;  %v10791_v44 = vor.u32 %v13903_v13, %v10788_v61  ;;  %v2274_v39 = vpack.c.bf16 %v2266_v36, %v2022_v46  ;;  %v10542_v7 = vld [vmem:[#allocation11 + $0x7b0] sm:$0xf] }
 0x2c2   :  { %v2267_v10 = vld [vmem:[#allocation4 + $0x78] sm:$0x3f]  ;;  %v2271_v34 = vpack.c.bf16 %v2019_v45, %v2263_v1  ;;  %3662 = vmatpush.bf16.msra.mxu0 %v10819_v58  ;;  %v10763_v19 = vor.u32 %v13896_v3, %v10760_v0  ;;  %v13844_v53 = vld [vmem:[#allocation11 + $0x7c8] sm:$0xf0]  ;;  %v10990_v63 = vld [vmem:[#allocation11 + $0xb30] sm:$0xf] }
 0x2c3   :  { %v2275_v59 = vpack.c.bf16 %v2267_v10, %v2023_v57  ;;  %3606 = vmatpush.bf16.msra.mxu1 %v11011_v49  ;;  %v10543_v8 = vor.u32 %v13844_v53, %v10542_v7  ;;  %v13956_v11 = vld [vmem:[#allocation11 + $0xb48] sm:$0xf0]  ;;  %v2516_v35 = vrot.slane %v2270_v25, 1  ;;  %v15610_v30 = vrot.slane %v2274_v39, 1  ;;  %v13889_v55 = vld [vmem:[#allocation11 + $0x934] sm:$0xf] }
 0x2c4   :  { %v2519_v27 = vrot.slane %v2271_v34, 1  ;;  %3587 = vmatpush.bf16.msrb.mxu3 %v10787_v4  ;;  %v10991_v47 = vor.u32 %v13956_v11, %v10990_v63  ;;  %v10732_v52 = vld [vmem:[#allocation11 + $0x94c] sm:$0xf0]  ;;  %v10514_v33 = vld [vmem:[#allocation11 + $0x778] sm:$0xf] }
 0x2c5   :  { %v15608_v60 = vrot.slane %v2275_v59, 1  ;;  %3625 = vmatpush.bf16.msrb.mxu2 %v10343_v17  ;;  %v10735_v50 = vor.u32 %v13889_v55, %v10732_v52  ;;  %v13837_v24 = vld [vmem:[#allocation11 + $0x790] sm:$0xf0]  ;;  %v10962_v38 = vld [vmem:[#allocation11 + $0xaf8] sm:$0xf]  ;;  %v15620_v2 = vsel %vm2509_vm8, %v2516_v35, %v15610_v30 }
 0x2c6   :  { %3663 = vmatpush.bf16.msra.mxu0 %v10791_v44  ;;  %v13949_v31 = vld [vmem:[#allocation11 + $0xb10] sm:$0xf0]  ;;  %v13882_v28 = vld [vmem:[#allocation11 + $0x8fc] sm:$0xf]  ;;  %v10704_v18 = vld [vmem:[#allocation11 + $0x914] sm:$0xf0]  ;;  %v10515_v22 = vor.u32 %v13837_v24, %v10514_v33 }
 0x2c7   :  { %v15614_v41 = vsel %vm2509_vm8, %v2519_v27, %v15608_v60  ;;  %3588 = vmatmul.bf16.vlgmr.msrb.gmra.mxu3 %v15620_v2  ;;  %v10963_v6 = vor.u32 %v13949_v31, %v10962_v38  ;;  %v10486_v54 = vld [vmem:[#allocation11 + $0x740] sm:$0xf]  ;;  %v13830_v48 = vld [vmem:[#allocation11 + $0x758] sm:$0xf0]  ;;  %v10707_v26 = vor.u32 %v13882_v28, %v10704_v18  ;;  %v13875_v51 = vld [vmem:[#allocation11 + $0x8c4] sm:$0xf] }
 0x2c8   :  { %3637 = vmatpush.bf16.msra.mxu3 %v10763_v19  ;;  %11120 = vmatmul.msk.bf16.vlgmr.msra.gmra.mxu1 %vm1382_vm3, %v15614_v41  ;;  %v10934_v14 = vld [vmem:[#allocation11 + $0xac0] sm:$0xf]  ;;  %v13942_v9 = vld [vmem:[#allocation11 + $0xad8] sm:$0xf0]  ;;  %v13980_v45 = vld [vmem:[#allocation11 + $0xc0c] sm:$0xf]  ;;  %v10487_v5 = vor.u32 %v13830_v48, %v10486_v54 }
 0x2c9   :  { %3694 = vmatpush.bf16.msra.mxu2 %v10543_v8  ;;  %3664 = vmatmul.bf16.vlgmr.msra.gmra.mxu0 %v15620_v2  ;;  %v10676_v42 = vld [vmem:[#allocation11 + $0x8dc] sm:$0xf0]  ;;  %v11096_v32 = vld [vmem:[#allocation11 + $0xc24] sm:$0xf0]  ;;  %v10935_v40 = vor.u32 %v13942_v9, %v10934_v14  ;;  %v13823_v58 = vld [vmem:[#allocation11 + $0x720] sm:$0xf0] }
 0x2ca   :  { %3732 = vmatpush.bf16.msrb.mxu0 %v10991_v47  ;;  %3626 = vmatmul.bf16.vlgmr.msrb.gmra.mxu2 %v15586_v56  ;;  %v11099_v43 = vor.u32 %v13980_v45, %v11096_v32  ;;  %v10458_v23 = vld [vmem:[#allocation11 + $0x708] sm:$0xf]  ;;  %v10679_v62 = vor.u32 %v13875_v51, %v10676_v42  ;;  %v13935_v29 = vld [vmem:[#allocation11 + $0xaa0] sm:$0xf0]  ;;  %v13973_v57 = vld [vmem:[#allocation11 + $0xbd4] sm:$0xf] }
 0x2cb   :  { %v10906_v21 = vld [vmem:[#allocation11 + $0xa88] sm:$0xf]  ;;  %v11068_v49 = vld [vmem:[#allocation11 + $0xbec] sm:$0xf0]  ;;  %v13868_v16 = vld [vmem:[#allocation11 + $0x88c] sm:$0xf]  ;;  %v10459_v46 = vor.u32 %v13823_v58, %v10458_v23 }
 0x2cc   :  { %3638 = vmatpush.bf16.msra.mxu3 %v10735_v50  ;;  %3679 = vmatpush.bf16.msrb.mxu1 %v11099_v43  ;;  %v10648_v13 = vld [vmem:[#allocation11 + $0x8a4] sm:$0xf0]  ;;  %v11071_v61 = vor.u32 %v13973_v57, %v11068_v49  ;;  %v13966_v4 = vld [vmem:[#allocation11 + $0xb9c] sm:$0xf]  ;;  %v10907_v1 = vor.u32 %v13935_v29, %v10906_v21  ;;  %v10430_v10 = vld [vmem:[#allocation11 + $0x6d0] sm:$0xf] }
 0x2cd   :  { %3695 = vmatpush.bf16.msra.mxu2 %v10515_v22  ;;  %v13816_v20 = vld [vmem:[#allocation11 + $0x6e8] sm:$0xf0]  ;;  %v11040_v17 = vld [vmem:[#allocation11 + $0xbb4] sm:$0xf0]  ;;  %v10651_v34 = vor.u32 %v13868_v16, %v10648_v13  ;;  %v10878_v59 = vld [vmem:[#allocation11 + $0xa50] sm:$0xf] }
 0x2ce   :  { %3733 = vmatpush.bf16.msrb.mxu0 %v10963_v6  ;;  %v13928_v36 = vld [vmem:[#allocation11 + $0xa68] sm:$0xf0]  ;;  %v11043_v25 = vor.u32 %v13966_v4, %v11040_v17  ;;  %v13861_v3 = vld [vmem:[#allocation11 + $0x854] sm:$0xf]  ;;  %v10620_v0 = vld [vmem:[#allocation11 + $0x86c] sm:$0xf0]  ;;  %v10431_v44 = vor.u32 %v13816_v20, %v10430_v10 }
 0x2cf   :  { %v13959_v39 = vld [vmem:[#allocation11 + $0xb64] sm:$0xf]  ;;  %v11012_v19 = vld [vmem:[#allocation11 + $0xb7c] sm:$0xf0]  ;;  %v10879_v7 = vor.u32 %v13928_v36, %v10878_v59  ;;  %v10402_v53 = vld [vmem:[#allocation11 + $0x698] sm:$0xf]  ;;  %v10623_v27 = vor.u32 %v13861_v3, %v10620_v0 }
 0x2d0   :  { %3639 = vmatpush.bf16.msra.mxu3 %v10707_v26  ;;  %3680 = vmatpush.bf16.msrb.mxu1 %v11071_v61  ;;  %v13809_v63 = vld [vmem:[#allocation11 + $0x6b0] sm:$0xf0]  ;;  %v10850_v8 = vld [vmem:[#allocation11 + $0xa18] sm:$0xf]  ;;  %v13854_v35 = vld [vmem:[#allocation11 + $0x81c] sm:$0xf]  ;;  %v11015_v55 = vor.u32 %v13959_v39, %v11012_v19 }
 0x2d1   :  { %3696 = vmatpush.bf16.msra.mxu2 %v10487_v5  ;;  %v13921_v11 = vld [vmem:[#allocation11 + $0xa30] sm:$0xf0]  ;;  %v10592_v47 = vld [vmem:[#allocation11 + $0x834] sm:$0xf0]  ;;  %v10403_v52 = vor.u32 %v13809_v63, %v10402_v53  ;;  %v10374_v33 = vld [vmem:[#allocation11 + $0x660] sm:$0xf] }
 0x2d2   :  { %3734 = vmatpush.bf16.msrb.mxu0 %v10935_v40  ;;  %v10851_v50 = vor.u32 %v13921_v11, %v10850_v8  ;;  %v13802_v24 = vld [vmem:[#allocation11 + $0x678] sm:$0xf0]  ;;  %v10595_v38 = vor.u32 %v13854_v35, %v10592_v47  ;;  %v10822_v31 = vld [vmem:[#allocation11 + $0x9e0] sm:$0xf]  ;;  %v13847_v18 = vld [vmem:[#allocation11 + $0x7e4] sm:$0xf] }
 0x2d3   :  { %v13914_v28 = vld [vmem:[#allocation11 + $0x9f8] sm:$0xf0]  ;;  %v10564_v22 = vld [vmem:[#allocation11 + $0x7fc] sm:$0xf0]  ;;  %v10346_v6 = vld [vmem:[#allocation11 + $0x628] sm:$0xf]  ;;  %v10375_v54 = vor.u32 %v13802_v24, %v10374_v33 }
 0x2d4   :  { %3640 = vmatpush.bf16.msra.mxu3 %v10679_v62  ;;  %3681 = vmatpush.bf16.msrb.mxu1 %v11043_v25  ;;  %v13795_v48 = vld [vmem:[#allocation11 + $0x640] sm:$0xf0]  ;;  %v10766_v26 = vld [vmem:[#allocation11 + $0x970] sm:$0xf]  ;;  %v13900_v14 = vld [vmem:[#allocation11 + $0x988] sm:$0xf0]  ;;  %v10823_v9 = vor.u32 %v13914_v28, %v10822_v31  ;;  %v10567_v32 = vor.u32 %v13847_v18, %v10564_v22 }
 0x2d5   :  { %3697 = vmatpush.bf16.msra.mxu2 %v10459_v46  ;;  %v10794_v51 = vld [vmem:[#allocation11 + $0x9a8] sm:$0xf]  ;;  %v13907_v42 = vld [vmem:[#allocation11 + $0x9c0] sm:$0xf0]  ;;  %v13841_v45 = vld [vmem:[#allocation11 + $0x7b4] sm:$0xf]  ;;  %v10767_v23 = vor.u32 %v13900_v14, %v10766_v26  ;;  %v10347_v29 = vor.u32 %v13795_v48, %v10346_v6 }
 0x2d6   :  { %3735 = vmatpush.bf16.msrb.mxu0 %v10907_v1  ;;  %v10544_v5 = vld [vmem:[#allocation11 + $0x7cc] sm:$0xf0]  ;;  %v13984_v40 = vld [vmem:[#allocation11 + $0xc28] sm:$0xf0]  ;;  %v13953_v58 = vld [vmem:[#allocation11 + $0xb34] sm:$0xf]  ;;  %v10795_v13 = vor.u32 %v13907_v42, %v10794_v51 }
 0x2d7   :  { %3593 = vmatmul.bf16.gmra.mxu3 %v15610_v30  ;;  %v11102_v43 = vld [vmem:[#allocation11 + $0xc10] sm:$0xf]  ;;  %v10738_v57 = vld [vmem:[#allocation11 + $0x938] sm:$0xf]  ;;  %v13893_v49 = vld [vmem:[#allocation11 + $0x950] sm:$0xf0]  ;;  %v10547_v61 = vor.u32 %v13841_v45, %v10544_v5 }
 0x2d8   :  { %3641 = vmatpush.bf16.msra.mxu3 %v10651_v34  ;;  %11121 = vmatmul.msk.bf16.gmra.mxu1 %vm1382_vm3, %v15608_v60  ;;  %v10992_v21 = vld [vmem:[#allocation11 + $0xb4c] sm:$0xf0]  ;;  %v11103_v62 = vor.u32 %v13984_v40, %v11102_v43  ;;  %v11074_v16 = vld [vmem:[#allocation11 + $0xbd8] sm:$0xf]  ;;  %v13977_v46 = vld [vmem:[#allocation11 + $0xbf0] sm:$0xf0]  ;;  %v10739_v17 = vor.u32 %v13893_v49, %v10738_v57 }
 0x2d9   :  { %3698 = vmatpush.bf16.msra.mxu2 %v10431_v44  ;;  %3669 = vmatmul.bf16.gmra.mxu0 %v15610_v30  ;;  %v10995_v4 = vor.u32 %v13953_v58, %v10992_v21  ;;  %v13834_v1 = vld [vmem:[#allocation11 + $0x77c] sm:$0xf]  ;;  %v10516_v10 = vld [vmem:[#allocation11 + $0x794] sm:$0xf0]  ;;  %v11075_v20 = vor.u32 %v13977_v46, %v11074_v16  ;;  %v11046_v34 = vld [vmem:[#allocation11 + $0xba0] sm:$0xf] }
 0x2da   :  { %3736 = vmatpush.bf16.msrb.mxu0 %v10879_v7  ;;  %3631 = vmatmul.bf16.gmra.mxu2 %v15579_v37  ;;  %v13970_v59 = vld [vmem:[#allocation11 + $0xbb8] sm:$0xf0]  ;;  %v10964_v25 = vld [vmem:[#allocation11 + $0xb14] sm:$0xf0]  ;;  %v10519_v3 = vor.u32 %v13834_v1, %v10516_v10  ;;  %v10710_v0 = vld [vmem:[#allocation11 + $0x900] sm:$0xf] }
 0x2db   :  { %3682 = vmatpush.bf16.msrb.mxu1 %v11015_v55  ;;  %v13946_v36 = vld [vmem:[#allocation11 + $0xafc] sm:$0xf]  ;;  %v13827_v39 = vld [vmem:[#allocation11 + $0x744] sm:$0xf]  ;;  %v10488_v19 = vld [vmem:[#allocation11 + $0x75c] sm:$0xf0]  ;;  %v11047_v7 = vor.u32 %v13970_v59, %v11046_v34 }
 0x2dc   :  { %3642 = vmatpush.bf16.msra.mxu3 %v10623_v27  ;;  %v13886_v44 = vld [vmem:[#allocation11 + $0x918] sm:$0xf0]  ;;  %v10967_v53 = vor.u32 %v13946_v36, %v10964_v25  ;;  %v11018_v63 = vld [vmem:[#allocation11 + $0xb68] sm:$0xf]  ;;  %v13963_v27 = vld [vmem:[#allocation11 + $0xb80] sm:$0xf0]  ;;  %v10491_v47 = vor.u32 %v13827_v39, %v10488_v19 }
 0x2dd   :  { %3699 = vmatpush.bf16.msra.mxu2 %v10403_v52  ;;  %v10711_v8 = vor.u32 %v13886_v44, %v10710_v0  ;;  %v13939_v11 = vld [vmem:[#allocation11 + $0xac4] sm:$0xf]  ;;  %v10936_v35 = vld [vmem:[#allocation11 + $0xadc] sm:$0xf0]  ;;  %v10682_v55 = vld [vmem:[#allocation11 + $0x8c8] sm:$0xf]  ;;  %v11019_v24 = vor.u32 %v13963_v27, %v11018_v63 }
 0x2de   :  { %3737 = vmatpush.bf16.msrb.mxu0 %v10851_v50  ;;  %v13879_v52 = vld [vmem:[#allocation11 + $0x8e0] sm:$0xf0]  ;;  %v13820_v50 = vld [vmem:[#allocation11 + $0x70c] sm:$0xf]  ;;  %v10460_v33 = vld [vmem:[#allocation11 + $0x724] sm:$0xf0] }
 0x2df   :  { %3755 = vmatpush.bf16.msra.mxu1 %v11103_v62  ;;  %v10683_v31 = vor.u32 %v13879_v52, %v10682_v55  ;;  %v13932_v28 = vld [vmem:[#allocation11 + $0xa8c] sm:$0xf]  ;;  %v10908_v18 = vld [vmem:[#allocation11 + $0xaa4] sm:$0xf0]  ;;  %v10463_v22 = vor.u32 %v13820_v50, %v10460_v33  ;;  %v10654_v6 = vld [vmem:[#allocation11 + $0x890] sm:$0xf] }
 0x2e0   :  { %3643 = vmatpush.bf16.msra.mxu3 %v10595_v38  ;;  %v10939_v38 = vor.u32 %v13939_v11, %v10936_v35  ;;  %v13813_v48 = vld [vmem:[#allocation11 + $0x6d4] sm:$0xf]  ;;  %v10432_v26 = vld [vmem:[#allocation11 + $0x6ec] sm:$0xf0]  ;;  %v10911_v14 = vor.u32 %v13932_v28, %v10908_v18  ;;  %v13806_v43 = vld [vmem:[#allocation11 + $0x69c] sm:$0xf] }
 0x2e1   :  { %3700 = vmatpush.bf16.msra.mxu2 %v10375_v54  ;;  %v13872_v54 = vld [vmem:[#allocation11 + $0x8a8] sm:$0xf0]  ;;  %v13925_v51 = vld [vmem:[#allocation11 + $0xa54] sm:$0xf]  ;;  %v10880_v42 = vld [vmem:[#allocation11 + $0xa6c] sm:$0xf0]  ;;  %v10435_v45 = vor.u32 %v13813_v48, %v10432_v26 }
 0x2e2   :  { %3738 = vmatpush.bf16.msrb.mxu0 %v10823_v9  ;;  %v10655_v9 = vor.u32 %v13872_v54, %v10654_v6  ;;  %v13865_v5 = vld [vmem:[#allocation11 + $0x870] sm:$0xf0]  ;;  %v10404_v40 = vld [vmem:[#allocation11 + $0x6b4] sm:$0xf0]  ;;  %v13918_v58 = vld [vmem:[#allocation11 + $0xa1c] sm:$0xf] }
 0x2e3   :  { %3756 = vmatpush.bf16.msra.mxu1 %v11075_v20  ;;  %v10852_v21 = vld [vmem:[#allocation11 + $0xa34] sm:$0xf0]  ;;  %v10598_v57 = vld [vmem:[#allocation11 + $0x820] sm:$0xf]  ;;  %v13858_v49 = vld [vmem:[#allocation11 + $0x838] sm:$0xf0] }
 0x2e4   :  { %3644 = vmatpush.bf16.msra.mxu3 %v10567_v32  ;;  %v10626_v32 = vld [vmem:[#allocation11 + $0x858] sm:$0xf]  ;;  %v13799_v16 = vld [vmem:[#allocation11 + $0x664] sm:$0xf]  ;;  %v10570_v1 = vld [vmem:[#allocation11 + $0x7e8] sm:$0xf]  ;;  %v10599_v10 = vor.u32 %v13858_v49, %v10598_v57 }
 0x2e5   :  { %3701 = vmatpush.bf16.msra.mxu2 %v10347_v29  ;;  %v10627_v62 = vor.u32 %v13865_v5, %v10626_v32  ;;  %v10407_v29 = vor.u32 %v13806_v43, %v10404_v40  ;;  %v13911_v46 = vld [vmem:[#allocation11 + $0x9e4] sm:$0xf]  ;;  %v13792_v34 = vld [vmem:[#allocation11 + $0x62c] sm:$0xf]  ;;  %v10348_v59 = vld [vmem:[#allocation11 + $0x644] sm:$0xf0] }
 0x2e6   :  { %3739 = vmatpush.bf16.msrb.mxu0 %v10795_v13  ;;  %v10376_v13 = vld [vmem:[#allocation11 + $0x67c] sm:$0xf0]  ;;  %v13897_v36 = vld [vmem:[#allocation11 + $0x974] sm:$0xf]  ;;  %v10768_v25 = vld [vmem:[#allocation11 + $0x98c] sm:$0xf0] }
 0x2e7   :  { %3645 = vmatmul.bf16.vlgmr.msra.gmra.mxu3 %v15598_v15  ;;  %3757 = vmatpush.bf16.msra.mxu1 %v11047_v7  ;;  %v10379_v20 = vor.u32 %v13799_v16, %v10376_v13  ;;  %v13845_v44 = vld [vmem:[#allocation11 + $0x7d0] sm:$0xf0]  ;;  %v11104_v19 = vld [vmem:[#allocation11 + $0xc2c] sm:$0xf0]  ;;  %v13904_v7 = vld [vmem:[#allocation11 + $0x9ac] sm:$0xf] }
 0x2e8   :  { %3713 = vmatpush.bf16.msrb.mxu3 %v10767_v23  ;;  %11122 = vmatmul.msk.bf16.vlgmr.msrb.gmra.mxu1 %vm1382_vm3, %v15614_v41  ;;  %v10883_v23 = vor.u32 %v13925_v51, %v10880_v42  ;;  %v13981_v39 = vld [vmem:[#allocation11 + $0xc14] sm:$0xf]  ;;  %v10998_v11 = vld [vmem:[#allocation11 + $0xb38] sm:$0xf]  ;;  %v13890_v52 = vld [vmem:[#allocation11 + $0x93c] sm:$0xf] }
 0x2e9   :  { %3770 = vmatpush.bf16.msrb.mxu2 %v10547_v61  ;;  %3740 = vmatmul.bf16.vlgmr.msrb.gmra.mxu0 %v15620_v2  ;;  %v10855_v61 = vor.u32 %v13918_v58, %v10852_v21  ;;  %v11107_v63 = vor.u32 %v13981_v39, %v11104_v19  ;;  %v13957_v35 = vld [vmem:[#allocation11 + $0xb50] sm:$0xf0]  ;;  %v10740_v33 = vld [vmem:[#allocation11 + $0x954] sm:$0xf0]  ;;  %v13974_v28 = vld [vmem:[#allocation11 + $0xbdc] sm:$0xf] }
 0x2ea   :  { %3808 = vmatpush.bf16.msra.mxu0 %v10995_v4  ;;  %3702 = vmatmul.bf16.vlgmr.msra.gmra.mxu2 %v15586_v56  ;;  %v10824_v4 = vld [vmem:[#allocation11 + $0x9fc] sm:$0xf0]  ;;  %v11076_v18 = vld [vmem:[#allocation11 + $0xbf4] sm:$0xf0]  ;;  %v13950_v6 = vld [vmem:[#allocation11 + $0xb18] sm:$0xf0]  ;;  %v10743_v48 = vor.u32 %v13890_v52, %v10740_v33 }
 0x2eb   :  { %3758 = vmatpush.bf16.msra.mxu1 %v11019_v24  ;;  %v10827_v0 = vor.u32 %v13911_v46, %v10824_v4  ;;  %v10522_v24 = vld [vmem:[#allocation11 + $0x780] sm:$0xf]  ;;  %v11079_v54 = vor.u32 %v13974_v28, %v11076_v18  ;;  %v10494_v32 = vld [vmem:[#allocation11 + $0x748] sm:$0xf]  ;;  %v13831_v5 = vld [vmem:[#allocation11 + $0x760] sm:$0xf0] }
 0x2ec   :  { %3714 = vmatpush.bf16.msrb.mxu3 %v10739_v17  ;;  %v13851_v17 = vld [vmem:[#allocation11 + $0x800] sm:$0xf0]  ;;  %v10712_v51 = vld [vmem:[#allocation11 + $0x91c] sm:$0xf0]  ;;  %v10942_v43 = vld [vmem:[#allocation11 + $0xac8] sm:$0xf] }
 0x2ed   :  { %3771 = vmatpush.bf16.msrb.mxu2 %v10519_v3  ;;  %v10550_v3 = vld [vmem:[#allocation11 + $0x7b8] sm:$0xf]  ;;  %v10571_v27 = vor.u32 %v13851_v17, %v10570_v1  ;;  %v11048_v42 = vld [vmem:[#allocation11 + $0xbbc] sm:$0xf0]  ;;  %v13943_v40 = vld [vmem:[#allocation11 + $0xae0] sm:$0xf0] }
 0x2ee   :  { %3809 = vmatpush.bf16.msra.mxu0 %v10967_v53  ;;  %v10796_v53 = vld [vmem:[#allocation11 + $0x9c4] sm:$0xf0]  ;;  %v10551_v55 = vor.u32 %v13845_v44, %v10550_v3  ;;  %v13876_v21 = vld [vmem:[#allocation11 + $0x8cc] sm:$0xf]  ;;  %v10943_v57 = vor.u32 %v13943_v40, %v10942_v43  ;;  %v10466_v49 = vld [vmem:[#allocation11 + $0x710] sm:$0xf] }
 0x2ef   :  { %3831 = vmatpush.bf16.msrb.mxu1 %v11107_v63  ;;  %v10799_v50 = vor.u32 %v13904_v7, %v10796_v53  ;;  %v13960_v16 = vld [vmem:[#allocation11 + $0xb6c] sm:$0xf]  ;;  %v11020_v13 = vld [vmem:[#allocation11 + $0xb84] sm:$0xf0]  ;;  %v10914_v46 = vld [vmem:[#allocation11 + $0xa90] sm:$0xf] }
 0x2f0   :  { %3715 = vmatpush.bf16.msrb.mxu3 %v10711_v8  ;;  %v10351_v8 = vor.u32 %v13792_v34, %v10348_v59  ;;  %v13936_v4 = vld [vmem:[#allocation11 + $0xaa8] sm:$0xf0]  ;;  %v11023_v1 = vor.u32 %v13960_v16, %v11020_v13  ;;  %v10656_v17 = vld [vmem:[#allocation11 + $0x8ac] sm:$0xf0]  ;;  %v10886_v3 = vld [vmem:[#allocation11 + $0xa58] sm:$0xf] }
 0x2f1   :  { %3772 = vmatpush.bf16.msrb.mxu2 %v10491_v47  ;;  %v10771_v47 = vor.u32 %v13897_v36, %v10768_v25  ;;  %v10915_v59 = vor.u32 %v13936_v4, %v10914_v46  ;;  %v10438_v36 = vld [vmem:[#allocation11 + $0x6d8] sm:$0xf]  ;;  %v13817_v25 = vld [vmem:[#allocation11 + $0x6f0] sm:$0xf0]  ;;  %v13862_v39 = vld [vmem:[#allocation11 + $0x85c] sm:$0xf] }
 0x2f2   :  { %3810 = vmatpush.bf16.msra.mxu0 %v10939_v38  ;;  %v13838_v38 = vld [vmem:[#allocation11 + $0x798] sm:$0xf0]  ;;  %v10628_v19 = vld [vmem:[#allocation11 + $0x874] sm:$0xf0]  ;;  %v10439_v7 = vor.u32 %v13817_v25, %v10438_v36  ;;  %v10410_v63 = vld [vmem:[#allocation11 + $0x6a0] sm:$0xf] }
 0x2f3   :  { %v10523_v26 = vor.u32 %v13838_v38, %v10522_v24  ;;  %3832 = vmatpush.bf16.msrb.mxu1 %v11079_v54  ;;  %v10382_v33 = vld [vmem:[#allocation11 + $0x668] sm:$0xf]  ;;  %v13803_v24 = vld [vmem:[#allocation11 + $0x680] sm:$0xf0]  ;;  %v13848_v18 = vld [vmem:[#allocation11 + $0x7ec] sm:$0xf] }
 0x2f4   :  { %3716 = vmatpush.bf16.msrb.mxu3 %v10683_v31  ;;  %v10999_v31 = vor.u32 %v13957_v35, %v10998_v11  ;;  %v10858_v11 = vld [vmem:[#allocation11 + $0xa20] sm:$0xf]  ;;  %v13922_v35 = vld [vmem:[#allocation11 + $0xa38] sm:$0xf0]  ;;  %v13915_v28 = vld [vmem:[#allocation11 + $0xa00] sm:$0xf0] }
 0x2f5   :  { %3773 = vmatpush.bf16.msrb.mxu2 %v10463_v22  ;;  %v10970_v22 = vld [vmem:[#allocation11 + $0xb00] sm:$0xf]  ;;  %v10354_v54 = vld [vmem:[#allocation11 + $0x630] sm:$0xf]  ;;  %v13954_v43 = vld [vmem:[#allocation11 + $0xb3c] sm:$0xf] }
 0x2f6   :  { %3811 = vmatpush.bf16.msra.mxu0 %v10911_v14  ;;  %v13967_v14 = vld [vmem:[#allocation11 + $0xba4] sm:$0xf]  ;;  %v10524_v4 = vld [vmem:[#allocation11 + $0x79c] sm:$0xf0]  ;;  %v10718_v36 = vld [vmem:[#allocation11 + $0x908] sm:$0xf] }
 0x2f7   :  { %3650 = vmatmul.bf16.gmra.mxu3 %v15594_v12  ;;  %v13835_v46 = vld [vmem:[#allocation11 + $0x784] sm:$0xf] }
 0x2f8   :  { %3717 = vmatpush.bf16.msrb.mxu3 %v10655_v9  ;;  %11123 = vmatmul.msk.bf16.gmra.mxu1 %vm1382_vm3, %v15608_v60  ;;  %v13883_v9 = vld [vmem:[#allocation11 + $0x904] sm:$0xf] }
 0x2f9   :  { %3774 = vmatpush.bf16.msrb.mxu2 %v10435_v45  ;;  %3745 = vmatmul.bf16.gmra.mxu0 %v15610_v30  ;;  %v10971_v45 = vor.u32 %v13950_v6, %v10970_v22  ;;  %v10715_v58 = vor.u32 %v13883_v9, %v10712_v51  ;;  %v10572_v22 = vld [vmem:[#allocation11 + $0x804] sm:$0xf0]  ;;  %v10383_v6 = vor.u32 %v13803_v24, %v10382_v33  ;;  %v13796_v9 = vld [vmem:[#allocation11 + $0x648] sm:$0xf0]  ;;  %v10802_v51 = vld [vmem:[#allocation11 + $0x9b0] sm:$0xf] }
 0x2fa   :  { %3812 = vmatpush.bf16.msra.mxu0 %v10883_v23  ;;  %3707 = vmatmul.bf16.gmra.mxu2 %v15579_v37  ;;  %v11051_v23 = vor.u32 %v13967_v14, %v11048_v42  ;;  %v13908_v42 = vld [vmem:[#allocation11 + $0x9c8] sm:$0xf0]  ;;  %v13887_v25 = vld [vmem:[#allocation11 + $0x920] sm:$0xf0]  ;;  %v11026_v24 = vld [vmem:[#allocation11 + $0xb70] sm:$0xf] }
 0x2fb   :  { %v10803_v16 = vor.u32 %v13908_v42, %v10802_v51 }
 0x2fc   :  { %3718 = vmatpush.bf16.msrb.mxu3 %v10627_v62  ;;  %v10684_v62 = vld [vmem:[#allocation11 + $0x8e4] sm:$0xf0]  ;;  %3833 = vmatpush.bf16.msrb.mxu1 %v11051_v23  ;;  %v11000_v23 = vld [vmem:[#allocation11 + $0xb54] sm:$0xf0] }
 0x2fd   :  { %3775 = vmatpush.bf16.msrb.mxu2 %v10407_v29  ;;  %v10495_v29 = vor.u32 %v13831_v5, %v10494_v32  ;;  %v13842_v32 = vld [vmem:[#allocation11 + $0x7bc] sm:$0xf]  ;;  %v10552_v5 = vld [vmem:[#allocation11 + $0x7d4] sm:$0xf0] }
 0x2fe   :  { %3813 = vmatpush.bf16.msra.mxu0 %v10855_v61  ;;  %v13824_v61 = vld [vmem:[#allocation11 + $0x728] sm:$0xf0]  ;;  %v10555_v13 = vor.u32 %v13842_v32, %v10552_v5  ;;  %v10888_v32 = vld [vmem:[#allocation11 + $0xa74] sm:$0xf0] }
 0x2ff   :  { %v10467_v34 = vor.u32 %v13824_v61, %v10466_v49  ;;  %v11003_v61 = vor.u32 %v13954_v43, %v11000_v23  ;;  %v10634_v43 = vld [vmem:[#allocation11 + $0x860] sm:$0xf] }
 0x300   :  { %3719 = vmatpush.bf16.msrb.mxu3 %v10599_v10  ;;  %v10687_v10 = vor.u32 %v13876_v21, %v10684_v62  ;;  %3834 = vmatpush.bf16.msrb.mxu1 %v11023_v1  ;;  %v13985_v21 = vld [vmem:[#allocation11 + $0xc30] sm:$0xf0]  ;;  %v10355_v62 = vor.u32 %v13796_v9, %v10354_v54  ;;  %v13947_v1 = vld [vmem:[#allocation11 + $0xb04] sm:$0xf]  ;;  %v10440_v9 = vld [vmem:[#allocation11 + $0x6f4] sm:$0xf0] }
 0x301   :  { %3776 = vmatpush.bf16.msrb.mxu2 %v10379_v20  ;;  %v13869_v20 = vld [vmem:[#allocation11 + $0x894] sm:$0xf] }
 0x302   :  { %3814 = vmatpush.bf16.msra.mxu0 %v10827_v0  ;;  %v13929_v0 = vld [vmem:[#allocation11 + $0xa70] sm:$0xf0]  ;;  %v10659_v44 = vor.u32 %v13869_v20, %v10656_v17  ;;  %v10972_v20 = vld [vmem:[#allocation11 + $0xb1c] sm:$0xf0] }
 0x303   :  { %v10887_v53 = vor.u32 %v13929_v0, %v10886_v3  ;;  %v11082_v17 = vld [vmem:[#allocation11 + $0xbe0] sm:$0xf]  ;;  %v10527_v0 = vor.u32 %v13835_v46, %v10524_v4  ;;  %v13859_v4 = vld [vmem:[#allocation11 + $0x840] sm:$0xf0] }
 0x304   :  { %3720 = vmatpush.bf16.msrb.mxu3 %v10571_v27  ;;  %v13810_v27 = vld [vmem:[#allocation11 + $0x6b8] sm:$0xf0] }
 0x305   :  { %3777 = vmatpush.bf16.msrb.mxu2 %v10351_v8  ;;  %v10631_v8 = vor.u32 %v13862_v39, %v10628_v19  ;;  %v10411_v52 = vor.u32 %v13810_v27, %v10410_v63  ;;  %v10975_v39 = vor.u32 %v13947_v1, %v10972_v20  ;;  %v13828_v19 = vld [vmem:[#allocation11 + $0x74c] sm:$0xf]  ;;  %v10719_v63 = vor.u32 %v13887_v25, %v10718_v36  ;;  %v10578_v25 = vld [vmem:[#allocation11 + $0x7f0] sm:$0xf] }
 0x306   :  { %3815 = vmatpush.bf16.msra.mxu0 %v10799_v50  ;;  %v10859_v50 = vor.u32 %v13922_v35, %v10858_v11  ;;  %v10944_v11 = vld [vmem:[#allocation11 + $0xae4] sm:$0xf0]  ;;  %v13800_v1 = vld [vmem:[#allocation11 + $0x66c] sm:$0xf] }
 0x307   :  { %3721 = vmatmul.bf16.vlgmr.msrb.gmra.mxu3 %v15598_v15 }
 0x308   :  { %3789 = vmatpush.bf16.msra.mxu3 %v10771_v47  ;;  %11124 = vmatmul.msk.bf16.vlgmr.msra.gmra.mxu1 %vm1382_vm3, %v15614_v41  ;;  %v13855_v47 = vld [vmem:[#allocation11 + $0x824] sm:$0xf] }
 0x309   :  { %3846 = vmatpush.bf16.msra.mxu2 %v10551_v55  ;;  %3816 = vmatmul.bf16.vlgmr.msra.gmra.mxu0 %v15620_v2  ;;  %v10600_v55 = vld [vmem:[#allocation11 + $0x83c] sm:$0xf0] }
 0x30a   :  { %3884 = vmatpush.bf16.msrb.mxu0 %v10999_v31  ;;  %3778 = vmatmul.bf16.vlgmr.msrb.gmra.mxu2 %v15586_v56  ;;  %v10603_v38 = vor.u32 %v13855_v47, %v10600_v55  ;;  %v10830_v31 = vld [vmem:[#allocation11 + $0x9e8] sm:$0xf]  ;;  %v10690_v47 = vld [vmem:[#allocation11 + $0x8d0] sm:$0xf]  ;;  %v13880_v55 = vld [vmem:[#allocation11 + $0x8e8] sm:$0xf0] }
 0x30b   :  { %v10831_v14 = vor.u32 %v13915_v28, %v10830_v31  ;;  %v10691_v28 = vor.u32 %v13880_v55, %v10690_v47 }
 0x30c   :  { %3790 = vmatpush.bf16.msra.mxu3 %v10743_v48  ;;  %v10774_v48 = vld [vmem:[#allocation11 + $0x978] sm:$0xf] }
 0x30d   :  { %3847 = vmatpush.bf16.msra.mxu2 %v10523_v26  ;;  %v13901_v26 = vld [vmem:[#allocation11 + $0x990] sm:$0xf0] }
 0x30e   :  { %3885 = vmatpush.bf16.msrb.mxu0 %v10971_v45  ;;  %v10575_v45 = vor.u32 %v13848_v18, %v10572_v22  ;;  %v10775_v40 = vor.u32 %v13901_v26, %v10774_v48  ;;  %v13933_v18 = vld [vmem:[#allocation11 + $0xa94] sm:$0xf]  ;;  %v10916_v22 = vld [vmem:[#allocation11 + $0xaac] sm:$0xf0]  ;;  %v10662_v48 = vld [vmem:[#allocation11 + $0x898] sm:$0xf] }
 0x30f   :  { %v13873_v26 = vld [vmem:[#allocation11 + $0x8b0] sm:$0xf0]  ;;  %v10919_v51 = vor.u32 %v13933_v18, %v10916_v22  ;;  %v13839_v22 = vld [vmem:[#allocation11 + $0x7a0] sm:$0xf0] }
 0x310   :  { %3791 = vmatpush.bf16.msra.mxu3 %v10715_v58  ;;  %v11110_v58 = vld [vmem:[#allocation11 + $0xc18] sm:$0xf]  ;;  %v10663_v42 = vor.u32 %v13873_v26, %v10662_v48 }
 0x311   :  { %3848 = vmatpush.bf16.msra.mxu2 %v10495_v29  ;;  %v10746_v29 = vld [vmem:[#allocation11 + $0x940] sm:$0xf]  ;;  %v11111_v49 = vor.u32 %v13985_v21, %v11110_v58  ;;  %v13807_v58 = vld [vmem:[#allocation11 + $0x6a4] sm:$0xf] }
 0x312   :  { %3886 = vmatpush.bf16.msrb.mxu0 %v10943_v57  ;;  %v13894_v57 = vld [vmem:[#allocation11 + $0x958] sm:$0xf0]  ;;  %v10412_v21 = vld [vmem:[#allocation11 + $0x6bc] sm:$0xf0] }
 0x313   :  { %3907 = vmatpush.bf16.msra.mxu1 %v11111_v49  ;;  %v13919_v49 = vld [vmem:[#allocation11 + $0xa24] sm:$0xf] }
 0x314   :  { %3792 = vmatpush.bf16.msra.mxu3 %v10687_v10  ;;  %v10747_v10 = vor.u32 %v13894_v57, %v10746_v29 }
 0x315   :  { %3849 = vmatpush.bf16.msra.mxu2 %v10467_v34  ;;  %v13978_v34 = vld [vmem:[#allocation11 + $0xbf8] sm:$0xf0] }
 0x316   :  { %3887 = vmatpush.bf16.msrb.mxu0 %v10915_v59  ;;  %v11083_v3 = vor.u32 %v13978_v34, %v11082_v17  ;;  %v13912_v17 = vld [vmem:[#allocation11 + $0x9ec] sm:$0xf]  ;;  %v10832_v34 = vld [vmem:[#allocation11 + $0xa04] sm:$0xf0] }
 0x317   :  { %3726 = vmatmul.bf16.gmra.mxu3 %v15594_v12 }
 0x318   :  { %3793 = vmatpush.bf16.msra.mxu3 %v10659_v44  ;;  %11125 = vmatmul.msk.bf16.gmra.mxu1 %vm1382_vm3, %v15608_v60  ;;  %v11054_v44 = vld [vmem:[#allocation11 + $0xba8] sm:$0xf] }
 0x319   :  { %3850 = vmatpush.bf16.msra.mxu2 %v10439_v7  ;;  %3821 = vmatmul.bf16.gmra.mxu0 %v15610_v30  ;;  %v10496_v7 = vld [vmem:[#allocation11 + $0x764] sm:$0xf0] }
 0x31a   :  { %3888 = vmatpush.bf16.msrb.mxu0 %v10887_v53  ;;  %3783 = vmatmul.bf16.gmra.mxu2 %v15579_v37  ;;  %v13971_v53 = vld [vmem:[#allocation11 + $0xbc0] sm:$0xf0]  ;;  %v10499_v35 = vor.u32 %v13828_v19, %v10496_v7  ;;  %v13898_v19 = vld [vmem:[#allocation11 + $0x97c] sm:$0xf] }
 0x31b   :  { %3908 = vmatpush.bf16.msra.mxu1 %v11083_v3  ;;  %v11055_v27 = vor.u32 %v13971_v53, %v11054_v44  ;;  %v13852_v3 = vld [vmem:[#allocation11 + $0x808] sm:$0xf0]  ;;  %v13793_v44 = vld [vmem:[#allocation11 + $0x634] sm:$0xf]  ;;  %v10835_v53 = vor.u32 %v13912_v17, %v10832_v34  ;;  %v10692_v17 = vld [vmem:[#allocation11 + $0x8ec] sm:$0xf0] }
 0x31c   :  { %3794 = vmatpush.bf16.msra.mxu3 %v10631_v8  ;;  %v13940_v8 = vld [vmem:[#allocation11 + $0xacc] sm:$0xf]  ;;  %v10579_v47 = vor.u32 %v13852_v3, %v10578_v25  ;;  %v10922_v25 = vld [vmem:[#allocation11 + $0xa98] sm:$0xf]  ;;  %v13937_v3 = vld [vmem:[#allocation11 + $0xab0] sm:$0xf0] }
 0x31d   :  { %3851 = vmatpush.bf16.msra.mxu2 %v10411_v52  ;;  %v13821_v52 = vld [vmem:[#allocation11 + $0x714] sm:$0xf]  ;;  %v10947_v33 = vor.u32 %v13940_v8, %v10944_v11  ;;  %v13846_v8 = vld [vmem:[#allocation11 + $0x7d8] sm:$0xf0] }
 0x31e   :  { %3889 = vmatpush.bf16.msrb.mxu0 %v10859_v50  ;;  %v10468_v50 = vld [vmem:[#allocation11 + $0x72c] sm:$0xf0]  ;;  %v13905_v11 = vld [vmem:[#allocation11 + $0x9b4] sm:$0xf] }
 0x31f   :  { %v3551_v59 = vpop.f32.mrf.mxu1  ;;  %3909 = vmatpush.bf16.msra.mxu1 %v11055_v27  ;;  %v10471_v54 = vor.u32 %v13821_v52, %v10468_v50  ;;  %v10558_v27 = vld [vmem:[#allocation11 + $0x7c0] sm:$0xf]  ;;  %v13958_v50 = vld [vmem:[#allocation11 + $0xb58] sm:$0xf0] }
 0x320   :  { %3795 = vmatpush.bf16.msra.mxu3 %v10603_v38  ;;  %v13964_v38 = vld [vmem:[#allocation11 + $0xb88] sm:$0xf0]  ;;  %v11006_v52 = vld [vmem:[#allocation11 + $0xb40] sm:$0xf] }
 0x321   :  { %3852 = vmatpush.bf16.msra.mxu2 %v10383_v6  ;;  %v11027_v6 = vor.u32 %v13964_v38, %v11026_v24  ;;  %v10559_v24 = vor.u32 %v13846_v8, %v10558_v27  ;;  %v13891_v38 = vld [vmem:[#allocation11 + $0x944] sm:$0xf]  ;;  %v11007_v26 = vor.u32 %v13958_v50, %v11006_v52  ;;  %v13870_v8 = vld [vmem:[#allocation11 + $0x89c] sm:$0xf]  ;;  %v10894_v50 = vld [vmem:[#allocation11 + $0xa60] sm:$0xf] }
 0x322   :  { %3890 = vmatpush.bf16.msrb.mxu0 %v10831_v14  ;;  %v13814_v14 = vld [vmem:[#allocation11 + $0x6dc] sm:$0xf] }
 0x323   :  { %3910 = vmatpush.bf16.msra.mxu1 %v11027_v6  ;;  %v10443_v5 = vor.u32 %v13814_v14, %v10440_v9  ;;  %v13982_v6 = vld [vmem:[#allocation11 + $0xc1c] sm:$0xf]  ;;  %v10978_v9 = vld [vmem:[#allocation11 + $0xb08] sm:$0xf] }
 0x324   :  { %3796 = vmatpush.bf16.msra.mxu3 %v10575_v45  ;;  %v13926_v45 = vld [vmem:[#allocation11 + $0xa5c] sm:$0xf] }
 0x325   :  { %3853 = vmatpush.bf16.msra.mxu2 %v10355_v62  ;;  %v10891_v29 = vor.u32 %v13926_v45, %v10888_v32  ;;  %v13818_v52 = vld [vmem:[#allocation11 + $0x6f8] sm:$0xf0] }
 0x326   :  { %3891 = vmatpush.bf16.msrb.mxu0 %v10803_v16  ;;  %v10860_v16 = vld [vmem:[#allocation11 + $0xa3c] sm:$0xf0] }
 0x327   :  { %v3553_v31 = vpop.f32.mrf.mxu1  ;;  %3797 = vmatmul.bf16.vlgmr.msra.gmra.mxu3 %v15598_v15  ;;  %v10863_v20 = vor.u32 %v13919_v49, %v10860_v16  ;;  %v10950_v16 = vld [vmem:[#allocation11 + $0xad0] sm:$0xf] }
 0x328   :  { %3865 = vmatpush.bf16.msrb.mxu3 %v10775_v40  ;;  %11126 = vmatmul.msk.bf16.vlgmr.msrb.gmra.mxu1 %vm1382_vm3, %v15614_v41  ;;  %v13866_v40 = vld [vmem:[#allocation11 + $0x878] sm:$0xf0] }
 0x329   :  { %3922 = vmatpush.bf16.msrb.mxu2 %v10555_v13  ;;  %3892 = vmatmul.bf16.vlgmr.msrb.gmra.mxu0 %v15620_v2  ;;  %v10635_v57 = vor.u32 %v13866_v40, %v10634_v43  ;;  %v10415_v13 = vor.u32 %v13807_v58, %v10412_v21  ;;  %v13975_v43 = vld [vmem:[#allocation11 + $0xbe4] sm:$0xf]  ;;  %v11084_v40 = vld [vmem:[#allocation11 + $0xbfc] sm:$0xf0]  ;;  %v10720_v58 = vld [vmem:[#allocation11 + $0x924] sm:$0xf0] }
 0x32a   :  { %3960 = vmatpush.bf16.msra.mxu0 %v11003_v61  ;;  %3854 = vmatmul.bf16.vlgmr.msra.gmra.mxu2 %v15586_v56  ;;  %v10606_v61 = vld [vmem:[#allocation11 + $0x828] sm:$0xf]  ;;  %v10502_v21 = vld [vmem:[#allocation11 + $0x750] sm:$0xf] }
 0x32c   :  { %3866 = vmatpush.bf16.msrb.mxu3 %v10747_v10  ;;  %v3570_v23 = vpop.f32.mrf.mxu2  ;;  %v10384_v10 = vld [vmem:[#allocation11 + $0x684] sm:$0xf0] }
 0x32d   :  { %3923 = vmatpush.bf16.msrb.mxu2 %v10527_v0  ;;  %v15655_v62 = vadd.f32 %v3570_v23, %v3551_v59  ;;  %v10607_v59 = vor.u32 %v13859_v4, %v10606_v61  ;;  %v10387_v36 = vor.u32 %v13800_v1, %v10384_v10  ;;  %v13968_v1 = vld [vmem:[#allocation11 + $0xbac] sm:$0xf]  ;;  %v11056_v10 = vld [vmem:[#allocation11 + $0xbc4] sm:$0xf0] }
 0x32e   :  { %3961 = vmatpush.bf16.msra.mxu0 %v10975_v39  ;;  %v10356_v39 = vld [vmem:[#allocation11 + $0x64c] sm:$0xf0] }
 0x32f   :  { %v3556_v46 = vpop.f32.mrf.mxu1  ;;  %v10359_v55 = vor.u32 %v13793_v44, %v10356_v39 }
 0x330   :  { %3867 = vmatpush.bf16.msrb.mxu3 %v10719_v63  ;;  %v10776_v63 = vld [vmem:[#allocation11 + $0x994] sm:$0xf0] }
 0x331   :  { %3924 = vmatpush.bf16.msrb.mxu2 %v10499_v35  ;;  %v10804_v35 = vld [vmem:[#allocation11 + $0x9cc] sm:$0xf0] }
 0x332   :  { %3962 = vmatpush.bf16.msra.mxu0 %v10947_v33  ;;  %v10779_v33 = vor.u32 %v13898_v19, %v10776_v63  ;;  %v10807_v18 = vor.u32 %v13905_v11, %v10804_v35  ;;  %v13961_v19 = vld [vmem:[#allocation11 + $0xb74] sm:$0xf]  ;;  %v10664_v11 = vld [vmem:[#allocation11 + $0x8b4] sm:$0xf0] }
 0x334   :  { %3868 = vmatpush.bf16.msrb.mxu3 %v10691_v28  ;;  %v3572_v0 = vpop.f32.mrf.mxu2  ;;  %v10530_v28 = vld [vmem:[#allocation11 + $0x788] sm:$0xf] }
 0x335   :  { %3925 = vmatpush.bf16.msrb.mxu2 %v10471_v54  ;;  %v15657_v7 = vadd.f32 %v3572_v0, %v3553_v31  ;;  %v10748_v31 = vld [vmem:[#allocation11 + $0x95c] sm:$0xf0]  ;;  %v11112_v54 = vld [vmem:[#allocation11 + $0xc34] sm:$0xf0]  ;;  %v10531_v32 = vor.u32 %v13839_v22, %v10530_v28  ;;  %v11059_v0 = vor.u32 %v13968_v1, %v11056_v10  ;;  %v13863_v28 = vld [vmem:[#allocation11 + $0x864] sm:$0xf] }
 0x336   :  { %3963 = vmatpush.bf16.msra.mxu0 %v10919_v51  ;;  %v11115_v14 = vor.u32 %v13982_v6, %v11112_v54  ;;  %v13951_v51 = vld [vmem:[#allocation11 + $0xb20] sm:$0xf0]  ;;  %v10751_v45 = vor.u32 %v13891_v38, %v10748_v31  ;;  %v10667_v38 = vor.u32 %v13870_v8, %v10664_v11  ;;  %v11780_v8 = vld [vmem:[#allocation11 + $0x508] sm:$0xf] }
 0x337   :  { %3802 = vmatmul.bf16.gmra.mxu3 %v15594_v12  ;;  %v3558_v48 = vpop.f32.mrf.mxu1  ;;  %v10979_v49 = vor.u32 %v13951_v51, %v10978_v9  ;;  %v10866_v9 = vld [vmem:[#allocation11 + $0xa28] sm:$0xf]  ;;  %v13923_v51 = vld [vmem:[#allocation11 + $0xa40] sm:$0xf0] }
 0x338   :  { %3869 = vmatpush.bf16.msrb.mxu3 %v10663_v42  ;;  %11127 = vmatmul.msk.bf16.gmra.mxu1 %vm1382_vm3, %v15608_v60  ;;  %v13759_v11 = vld [vmem:[#allocation11 + $0x520] sm:$0xf0] }
 0x339   :  { %3926 = vmatpush.bf16.msrb.mxu2 %v10443_v5  ;;  %3897 = vmatmul.bf16.gmra.mxu0 %v15610_v30  ;;  %v13884_v5 = vld [vmem:[#allocation11 + $0x90c] sm:$0xf] }
 0x33a   :  { %3964 = vmatpush.bf16.msra.mxu0 %v10891_v29  ;;  %3859 = vmatmul.bf16.gmra.mxu2 %v15579_v37  ;;  %v13832_v29 = vld [vmem:[#allocation11 + $0x768] sm:$0xf0]  ;;  %v10723_v61 = vor.u32 %v13884_v5, %v10720_v58  ;;  %v10390_v58 = vld [vmem:[#allocation11 + $0x670] sm:$0xf] }
 0x33b   :  { %3983 = vmatpush.bf16.msrb.mxu1 %v11115_v14  ;;  %v10503_v4 = vor.u32 %v13832_v29, %v10502_v21  ;;  %v13811_v14 = vld [vmem:[#allocation11 + $0x6c0] sm:$0xf0]  ;;  %v13856_v5 = vld [vmem:[#allocation11 + $0x82c] sm:$0xf] }
 0x33c   :  { %3870 = vmatpush.bf16.msrb.mxu3 %v10635_v57  ;;  %v11087_v57 = vor.u32 %v13975_v43, %v11084_v40  ;;  %v10867_v40 = vor.u32 %v13923_v51, %v10866_v9  ;;  %v13804_v21 = vld [vmem:[#allocation11 + $0x688] sm:$0xf0]  ;;  %v10726_v51 = vld [vmem:[#allocation11 + $0x910] sm:$0xf] }
 0x33d   :  { %3927 = vmatpush.bf16.msrb.mxu2 %v10415_v13  ;;  %v3575_v42 = vpop.f32.mrf.mxu2  ;;  %v13944_v13 = vld [vmem:[#allocation11 + $0xae8] sm:$0xf0]  ;;  %v10391_v10 = vor.u32 %v13804_v21, %v10390_v58  ;;  %v13633_v21 = vld [vmem:[#allocation11 + $0x130] sm:$0xf0] }
 0x33e   :  { %3965 = vmatpush.bf16.msra.mxu0 %v10863_v20  ;;  %v15664_v23 = vadd.f32 %v3575_v42, %v3556_v46  ;;  %v13877_v20 = vld [vmem:[#allocation11 + $0x8d4] sm:$0xf]  ;;  %v10951_v34 = vor.u32 %v13944_v13, %v10950_v16 }
 0x33f   :  { %3984 = vmatpush.bf16.msrb.mxu1 %v11087_v57  ;;  %v10695_v39 = vor.u32 %v13877_v20, %v10692_v17  ;;  %v10838_v57 = vld [vmem:[#allocation11 + $0x9f0] sm:$0xf]  ;;  %v13849_v13 = vld [vmem:[#allocation11 + $0x7f4] sm:$0xf]  ;;  %v10782_v20 = vld [vmem:[#allocation11 + $0x980] sm:$0xf] }
 0x340   :  { %3871 = vmatpush.bf16.msrb.mxu3 %v10607_v59  ;;  %v10474_v59 = vld [vmem:[#allocation11 + $0x718] sm:$0xf]  ;;  %v13902_v17 = vld [vmem:[#allocation11 + $0x998] sm:$0xf0] }
 0x341   :  { %3928 = vmatpush.bf16.msrb.mxu2 %v10387_v36  ;;  %v13825_v36 = vld [vmem:[#allocation11 + $0x730] sm:$0xf0] }
 0x342   :  { %3966 = vmatpush.bf16.msra.mxu0 %v10835_v53  ;;  %v11028_v53 = vld [vmem:[#allocation11 + $0xb8c] sm:$0xf0]  ;;  %v10475_v35 = vor.u32 %v13825_v36, %v10474_v59  ;;  %v10362_v59 = vld [vmem:[#allocation11 + $0x638] sm:$0xf]  ;;  %v13797_v36 = vld [vmem:[#allocation11 + $0x650] sm:$0xf0] }
 0x343   :  { %3985 = vmatpush.bf16.msrb.mxu1 %v11059_v0 }
 0x344   :  { %3872 = vmatpush.bf16.msrb.mxu3 %v10579_v47  ;;  %v10923_v47 = vor.u32 %v13937_v3, %v10922_v25  ;;  %v10810_v25 = vld [vmem:[#allocation11 + $0x9b8] sm:$0xf] }
 0x345   :  { %3929 = vmatpush.bf16.msrb.mxu2 %v10359_v55  ;;  %v15666_v46 = vpop.f32.mrf.mxu1  ;;  %v3577_v44 = vpop.f32.mrf.mxu2  ;;  %v10446_v55 = vld [vmem:[#allocation11 + $0x6e0] sm:$0xf] }
 0x346   :  { %3967 = vmatpush.bf16.msra.mxu0 %v10807_v18  ;;  %v15668_v63 = vadd.f32 %v3577_v44, %v3558_v48  ;;  %v15670_v27 = vpop.f32.mrf.mxu0  ;;  %v10636_v18 = vld [vmem:[#allocation11 + $0x87c] sm:$0xf0]  ;;  %v10447_v54 = vor.u32 %v13818_v52, %v10446_v55  ;;  %v13909_v44 = vld [vmem:[#allocation11 + $0x9d0] sm:$0xf0]  ;;  %v13895_v55 = vld [vmem:[#allocation11 + $0x960] sm:$0xf0] }
 0x347   :  { %3873 = vmatmul.bf16.vlgmr.msrb.gmra.mxu3 %v15598_v15  ;;  %v10811_v52 = vor.u32 %v13909_v44, %v10810_v25  ;;  %v11248_v25 = vld [vmem:[#allocation11 + $0xe0] sm:$0xf] }
 0x348   :  { %3941 = vmatpush.bf16.msra.mxu3 %v10779_v33  ;;  %11128 = vmatmul.msk.bf16.vlgmr.msra.gmra.mxu1 %vm1382_vm3, %v15614_v41  ;;  %v13930_v33 = vld [vmem:[#allocation11 + $0xa78] sm:$0xf0] }
 0x349   :  { %3998 = vmatpush.bf16.msra.mxu2 %v10559_v24  ;;  %v11031_v24 = vor.u32 %v13961_v19, %v11028_v53  ;;  %3968 = vmatmul.bf16.vlgmr.msra.gmra.mxu0 %v15620_v2  ;;  %v10895_v48 = vor.u32 %v13930_v33, %v10894_v50  ;;  %v13647_v19 = vld [vmem:[#allocation11 + $0x1a0] sm:$0xf0]  ;;  %v10783_v53 = vor.u32 %v13902_v17, %v10782_v20  ;;  %v13881_v20 = vld [vmem:[#allocation11 + $0x8f0] sm:$0xf0] }
 0x34a   :  { %4036 = vmatpush.bf16.msrb.mxu0 %v11007_v26  ;;  %3930 = vmatmul.bf16.vlgmr.msrb.gmra.mxu2 %v15586_v56  ;;  %v3589_v31 = vpop.f32.mrf.mxu3  ;;  %v10418_v26 = vld [vmem:[#allocation11 + $0x6a8] sm:$0xf]  ;;  %v11781_v33 = vor.u32 %v13759_v11, %v11780_v8  ;;  %v11696_v11 = vld [vmem:[#allocation11 + $0x460] sm:$0xf] }
 0x34b   :  { %v15678_v22 = vadd.f32 %v3589_v31, %v15655_v62  ;;  %3986 = vmatpush.bf16.msrb.mxu1 %v11031_v24  ;;  %v10608_v62 = vld [vmem:[#allocation11 + $0x844] sm:$0xf0]  ;;  %v10419_v43 = vor.u32 %v13811_v14, %v10418_v26  ;;  %v11304_v24 = vld [vmem:[#allocation11 + $0x150] sm:$0xf]  ;;  %v13986_v26 = vld [vmem:[#allocation11 + $0xc38] sm:$0xf0] }
 0x34c   :  { %3942 = vmatpush.bf16.msra.mxu3 %v10751_v45  ;;  %v10639_v45 = vor.u32 %v13863_v28, %v10636_v18  ;;  %v10611_v29 = vor.u32 %v13856_v5, %v10608_v62  ;;  %v11752_v31 = vld [vmem:[#allocation11 + $0x4d0] sm:$0xf] }
 0x34d   :  { %3999 = vmatpush.bf16.msra.mxu2 %v10531_v32  ;;  %v15680_v6 = vpop.f32.mrf.mxu1  ;;  %v15682_v42 = vpop.f32.mrf.mxu2 }
 0x34e   :  { %4037 = vmatpush.bf16.msrb.mxu0 %v10979_v49  ;;  %v15684_v32 = vpop.f32.mrf.mxu0  ;;  %v13916_v49 = vld [vmem:[#allocation11 + $0xa08] sm:$0xf0] }
 0x350   :  { %3943 = vmatpush.bf16.msra.mxu3 %v10723_v61  ;;  %v10580_v61 = vld [vmem:[#allocation11 + $0x80c] sm:$0xf0] }
 0x351   :  { %4000 = vmatpush.bf16.msra.mxu2 %v10503_v4  ;;  %v10583_v0 = vor.u32 %v13849_v13, %v10580_v61  ;;  %v13745_v13 = vld [vmem:[#allocation11 + $0x4b0] sm:$0xf0] }
 0x352   :  { %4038 = vmatpush.bf16.msrb.mxu0 %v10951_v34  ;;  %v3591_v16 = vpop.f32.mrf.mxu3  ;;  %v10839_v34 = vor.u32 %v13916_v49, %v10838_v57  ;;  %v13979_v57 = vld [vmem:[#allocation11 + $0xc00] sm:$0xf0] }
 0x353   :  { %v15687_v4 = vadd.f32 %v3591_v16, %v15657_v7  ;;  %v11724_v16 = vld [vmem:[#allocation11 + $0x498] sm:$0xf] }
 0x354   :  { %3944 = vmatpush.bf16.msra.mxu3 %v10695_v39  ;;  %v11332_v39 = vld [vmem:[#allocation11 + $0x188] sm:$0xf] }
 0x355   :  { %4001 = vmatpush.bf16.msra.mxu2 %v10475_v35  ;;  %v15689_v1 = vpop.f32.mrf.mxu1  ;;  %v15691_v3 = vpop.f32.mrf.mxu2  ;;  %v10363_v35 = vor.u32 %v13797_v36, %v10362_v59  ;;  %v11333_v50 = vor.u32 %v13647_v19, %v11332_v39  ;;  %v13972_v59 = vld [vmem:[#allocation11 + $0xbc8] sm:$0xf0]  ;;  %v11725_v36 = vor.u32 %v13745_v13, %v11724_v16  ;;  %v11640_v16 = vld [vmem:[#allocation11 + $0x3f0] sm:$0xf] }
 0x356   :  { %4039 = vmatpush.bf16.msrb.mxu0 %v10923_v47  ;;  %v15693_v7 = vpop.f32.mrf.mxu0  ;;  %v10754_v47 = vld [vmem:[#allocation11 + $0x948] sm:$0xf]  ;;  %v13724_v13 = vld [vmem:[#allocation11 + $0x408] sm:$0xf0] }
 0x357   :  { %3878 = vmatmul.bf16.gmra.mxu3 %v15594_v12  ;;  %v10755_v18 = vor.u32 %v13895_v55, %v10754_v47  ;;  %v10670_v55 = vld [vmem:[#allocation11 + $0x8a0] sm:$0xf] }
 0x358   :  { %3945 = vmatpush.bf16.msra.mxu3 %v10667_v38  ;;  %11129 = vmatmul.msk.bf16.gmra.mxu1 %vm1382_vm3, %v15608_v60  ;;  %v13640_v38 = vld [vmem:[#allocation11 + $0x168] sm:$0xf0] }
 0x359   :  { %4002 = vmatpush.bf16.msra.mxu2 %v10447_v54  ;;  %3973 = vmatmul.bf16.gmra.mxu0 %v15610_v30  ;;  %v13752_v54 = vld [vmem:[#allocation11 + $0x4e8] sm:$0xf0]  ;;  %v11305_v62 = vor.u32 %v13640_v38, %v11304_v24  ;;  %v13619_v24 = vld [vmem:[#allocation11 + $0xc0] sm:$0xf0]  ;;  %v11034_v38 = vld [vmem:[#allocation11 + $0xb78] sm:$0xf] }
 0x35a   :  { %4040 = vmatpush.bf16.msrb.mxu0 %v10895_v48  ;;  %3935 = vmatmul.bf16.gmra.mxu2 %v15579_v37  ;;  %v3594_v28 = vpop.f32.mrf.mxu3  ;;  %v11118_v48 = vld [vmem:[#allocation11 + $0xc20] sm:$0xf]  ;;  %v11753_v58 = vor.u32 %v13752_v54, %v11752_v31  ;;  %v13965_v31 = vld [vmem:[#allocation11 + $0xb90] sm:$0xf0] }
 0x35b   :  { %v15701_v14 = vadd.f32 %v3594_v28, %v15664_v23  ;;  %v11119_v5 = vor.u32 %v13986_v26, %v11118_v48  ;;  %v11668_v48 = vld [vmem:[#allocation11 + $0x428] sm:$0xf]  ;;  %v13731_v26 = vld [vmem:[#allocation11 + $0x440] sm:$0xf0] }
 0x35c   :  { %3946 = vmatpush.bf16.msra.mxu3 %v10639_v45  ;;  %v13888_v45 = vld [vmem:[#allocation11 + $0x928] sm:$0xf0] }
 0x35d   :  { %4003 = vmatpush.bf16.msra.mxu2 %v10419_v43  ;;  %v15703_v9 = vpop.f32.mrf.mxu1  ;;  %v11276_v43 = vld [vmem:[#allocation11 + $0x118] sm:$0xf]  ;;  %4059 = vmatpush.bf16.msra.mxu1 %v11119_v5  ;;  %v10727_v49 = vor.u32 %v13888_v45, %v10726_v51  ;;  %v10642_v45 = vld [vmem:[#allocation11 + $0x868] sm:$0xf]  ;;  %v13867_v5 = vld [vmem:[#allocation11 + $0x880] sm:$0xf0] }
 0x35e   :  { %4041 = vmatpush.bf16.msrb.mxu0 %v10867_v40  ;;  %v15705_v40 = vpop.f32.mrf.mxu2  ;;  %v15707_v23 = vpop.f32.mrf.mxu0  ;;  %v11277_v17 = vor.u32 %v13633_v21, %v11276_v43  ;;  %v13612_v43 = vld [vmem:[#allocation11 + $0x88] sm:$0xf0]  ;;  %v11669_v21 = vor.u32 %v13731_v26, %v11668_v48  ;;  %v11334_v48 = vld [vmem:[#allocation11 + $0x1a4] sm:$0xf0] }
 0x35f   :  { %v13756_v26 = vld [vmem:[#allocation11 + $0x50c] sm:$0xf] }
 0x360   :  { %3947 = vmatpush.bf16.msra.mxu3 %v10611_v29  ;;  %v11090_v29 = vld [vmem:[#allocation11 + $0xbe8] sm:$0xf] }
 0x361   :  { %4004 = vmatpush.bf16.msra.mxu2 %v10391_v10  ;;  %v11091_v61 = vor.u32 %v13979_v57, %v11090_v29  ;;  %v10698_v10 = vld [vmem:[#allocation11 + $0x8d8] sm:$0xf] }
 0x362   :  { %4042 = vmatpush.bf16.msrb.mxu0 %v10839_v34  ;;  %v11062_v34 = vld [vmem:[#allocation11 + $0xbb0] sm:$0xf]  ;;  %v3596_v39 = vpop.f32.mrf.mxu3  ;;  %v10699_v19 = vor.u32 %v13881_v20, %v10698_v10 }
 0x363   :  { %4060 = vmatpush.bf16.msra.mxu1 %v11091_v61  ;;  %v11063_v44 = vor.u32 %v13972_v59, %v11062_v34  ;;  %v10614_v10 = vld [vmem:[#allocation11 + $0x830] sm:$0xf]  ;;  %v13605_v34 = vld [vmem:[#allocation11 + $0x50] sm:$0xf0] }
 0x364   :  { %3948 = vmatpush.bf16.msra.mxu3 %v10583_v0  ;;  %v13626_v0 = vld [vmem:[#allocation11 + $0xf8] sm:$0xf0] }
 0x365   :  { %4005 = vmatpush.bf16.msra.mxu2 %v10363_v35  ;;  %v15712_v8 = vpop.f32.mrf.mxu1  ;;  %v13738_v35 = vld [vmem:[#allocation11 + $0x478] sm:$0xf0]  ;;  %v11249_v47 = vor.u32 %v13626_v0, %v11248_v25  ;;  %v11612_v25 = vld [vmem:[#allocation11 + $0x3b8] sm:$0xf]  ;;  %v13717_v0 = vld [vmem:[#allocation11 + $0x3d0] sm:$0xf0] }
 0x366   :  { %4043 = vmatpush.bf16.msrb.mxu0 %v10811_v52  ;;  %v13874_v52 = vld [vmem:[#allocation11 + $0x8b8] sm:$0xf0]  ;;  %v15716_v28 = vpop.f32.mrf.mxu0 }
 0x367   :  { %4061 = vmatpush.bf16.msra.mxu1 %v11063_v44  ;;  %3949 = vmatmul.bf16.vlgmr.msra.gmra.mxu3 %v15598_v15  ;;  %v10671_v54 = vor.u32 %v13874_v52, %v10670_v55  ;;  %v11556_v55 = vld [vmem:[#allocation11 + $0x348] sm:$0xf]  ;;  %v13703_v52 = vld [vmem:[#allocation11 + $0x360] sm:$0xf0] }
 0x368   :  { %4017 = vmatpush.bf16.msrb.mxu3 %v10783_v53  ;;  %v15710_v53 = vadd.f32 %v3596_v39, %v15668_v63  ;;  %11130 = vmatmul.msk.bf16.vlgmr.msrb.gmra.mxu1 %vm1382_vm3, %v15614_v41  ;;  %v11697_v63 = vor.u32 %v13738_v35, %v11696_v11  ;;  %v10586_v39 = vld [vmem:[#allocation11 + $0x7f8] sm:$0xf]  ;;  %v11136_v11 = vld [vmem:[#allocation11] sm:$0xf]  ;;  %v13598_v35 = vld [vmem:[#allocation11 + $0x18] sm:$0xf0] }
 0x369   :  { %5088 = vmatpush.bf16.msrb.mxu2 %v11333_v50  ;;  %v11220_v50 = vld [vmem:[#allocation11 + $0xa8] sm:$0xf]  ;;  %4044 = vmatmul.bf16.vlgmr.msrb.gmra.mxu0 %v15620_v2  ;;  %v13860_v2 = vld [vmem:[#allocation11 + $0x848] sm:$0xf0] }
 0x36a   :  { %5126 = vmatpush.bf16.msra.mxu0 %v11781_v33  ;;  %v15714_v33 = vpop.f32.mrf.mxu2  ;;  %v11221_v51 = vor.u32 %v13619_v24, %v11220_v50  ;;  %4006 = vmatmul.bf16.vlgmr.msra.gmra.mxu2 %v15586_v56  ;;  %v11164_v56 = vld [vmem:[#allocation11 + $0x38] sm:$0xf] }
 0x36b   :  { %v11165_v44 = vor.u32 %v13605_v34, %v11164_v56 }
 0x36c   :  { %4018 = vmatpush.bf16.msrb.mxu3 %v10755_v18  ;;  %v11035_v18 = vor.u32 %v13965_v31, %v11034_v38  ;;  %v11584_v38 = vld [vmem:[#allocation11 + $0x380] sm:$0xf]  ;;  %v13710_v31 = vld [vmem:[#allocation11 + $0x398] sm:$0xf0] }
 0x36d   :  { %5089 = vmatpush.bf16.msrb.mxu2 %v11305_v62  ;;  %v11192_v62 = vld [vmem:[#allocation11 + $0x70] sm:$0xf]  ;;  %v15724_v57 = vpop.f32.mrf.mxu1 }
 0x36e   :  { %5127 = vmatpush.bf16.msra.mxu0 %v11753_v58  ;;  %4062 = vmatpush.bf16.msra.mxu1 %v11035_v18  ;;  %v3646_v58 = vpop.f32.mrf.mxu3  ;;  %v11193_v61 = vor.u32 %v13612_v43, %v11192_v62  ;;  %v15731_v59 = vpop.f32.mrf.mxu0  ;;  %v11557_v62 = vor.u32 %v13703_v52, %v11556_v55  ;;  %v11864_v52 = vld [vmem:[#allocation11 + $0x5b0] sm:$0xf] }
 0x36f   :  { %v3647_v29 = vadd.f32 %v3646_v58, %v15682_v42  ;;  %v11641_v42 = vor.u32 %v13724_v13, %v11640_v16  ;;  %v11528_v58 = vld [vmem:[#allocation11 + $0x310] sm:$0xf]  ;;  %v13637_v16 = vld [vmem:[#allocation11 + $0x154] sm:$0xf] }
 0x370   :  { %4019 = vmatpush.bf16.msrb.mxu3 %v10727_v49  ;;  %v10643_v49 = vor.u32 %v13867_v5, %v10642_v45  ;;  %v11306_v13 = vld [vmem:[#allocation11 + $0x16c] sm:$0xf0] }
 0x371   :  { %5090 = vmatpush.bf16.msrb.mxu2 %v11277_v17  ;;  %v15727_v20 = vadd.f32 %v15670_v27, %v3647_v29  ;;  %v11309_v34 = vor.u32 %v13637_v16, %v11306_v13 }
 0x372   :  { %5128 = vmatpush.bf16.msra.mxu0 %v11725_v36  ;;  %v15729_v17 = vpop.f32.mrf.mxu2  ;;  %v10615_v36 = vor.u32 %v13860_v2, %v10614_v10  ;;  %v11500_v2 = vld [vmem:[#allocation11 + $0x2d8] sm:$0xf] }
 0x374   :  { %4020 = vmatpush.bf16.msrb.mxu3 %v10699_v19  ;;  %v13853_v19 = vld [vmem:[#allocation11 + $0x810] sm:$0xf0] }
 0x375   :  { %5091 = vmatpush.bf16.msrb.mxu2 %v11249_v47  ;;  %v11613_v47 = vor.u32 %v13717_v0, %v11612_v25  ;;  %v15734_v24 = vpop.f32.mrf.mxu1  ;;  %v10587_v18 = vor.u32 %v13853_v19, %v10586_v39  ;;  %v13787_v25 = vld [vmem:[#allocation11 + $0x600] sm:$0xf0]  ;;  %v13630_v19 = vld [vmem:[#allocation11 + $0x11c] sm:$0xf] }
 0x376   :  { %5129 = vmatpush.bf16.msra.mxu0 %v11697_v63  ;;  %v3648_v27 = vpop.f32.mrf.mxu3  ;;  %v13644_v63 = vld [vmem:[#allocation11 + $0x18c] sm:$0xf]  ;;  %v15741_v43 = vpop.f32.mrf.mxu0 }
 0x377   :  { %v3649_v50 = vadd.f32 %v3648_v27, %v15691_v3  ;;  %v11585_v3 = vor.u32 %v13710_v31, %v11584_v38  ;;  %3954 = vmatmul.bf16.gmra.mxu3 %v15594_v12  ;;  %v11337_v29 = vor.u32 %v13644_v63, %v11334_v48  ;;  %v11726_v27 = vld [vmem:[#allocation11 + $0x4b4] sm:$0xf0]  ;;  %v11472_v31 = vld [vmem:[#allocation11 + $0x2a0] sm:$0xf]  ;;  %v13682_v63 = vld [vmem:[#allocation11 + $0x2b8] sm:$0xf0] }
 0x378   :  { %4021 = vmatpush.bf16.msrb.mxu3 %v10671_v54  ;;  %v11137_v54 = vor.u32 %v13598_v35, %v11136_v11  ;;  %11131 = vmatmul.msk.bf16.gmra.mxu1 %vm1382_vm3, %v15608_v60  ;;  %v11278_v11 = vld [vmem:[#allocation11 + $0x134] sm:$0xf0]  ;;  %v13742_v35 = vld [vmem:[#allocation11 + $0x49c] sm:$0xf]  ;;  %v13623_v48 = vld [vmem:[#allocation11 + $0xe4] sm:$0xf] }
 0x379   :  { %5092 = vmatpush.bf16.msrb.mxu2 %v11221_v51  ;;  %v11782_v51 = vld [vmem:[#allocation11 + $0x524] sm:$0xf0]  ;;  %v15737_v45 = vadd.f32 %v15684_v32, %v3649_v50  ;;  %v13749_v32 = vld [vmem:[#allocation11 + $0x4d4] sm:$0xf]  ;;  %4049 = vmatmul.bf16.gmra.mxu0 %v15610_v30  ;;  %v15758_v50 = vadd.f32 %v15666_v46, %v15678_v22 }
 0x37a   :  { %5130 = vmatpush.bf16.msra.mxu0 %v11669_v21  ;;  %v15739_v5 = vpop.f32.mrf.mxu2  ;;  %v13696_v21 = vld [vmem:[#allocation11 + $0x328] sm:$0xf0]  ;;  %4011 = vmatmul.bf16.gmra.mxu2 %v15579_v37 }
 0x37b   :  { %v11529_v10 = vor.u32 %v13696_v21, %v11528_v58  ;;  %v13735_v58 = vld [vmem:[#allocation11 + $0x464] sm:$0xf]  ;;  %v11698_v21 = vld [vmem:[#allocation11 + $0x47c] sm:$0xf0] }
 0x37c   :  { %4022 = vmatpush.bf16.msrb.mxu3 %v10643_v49  ;;  %v11785_v49 = vor.u32 %v13756_v26, %v11782_v51  ;;  %v11250_v26 = vld [vmem:[#allocation11 + $0xfc] sm:$0xf0]  ;;  %v11836_v51 = vld [vmem:[#allocation11 + $0x578] sm:$0xf] }
 0x37d   :  { %5093 = vmatpush.bf16.msrb.mxu2 %v11193_v61  ;;  %v11754_v61 = vld [vmem:[#allocation11 + $0x4ec] sm:$0xf0] }
 0x37e   :  { %5131 = vmatpush.bf16.msra.mxu0 %v11641_v42  ;;  %v3651_v56 = vpop.f32.mrf.mxu3  ;;  %v13689_v42 = vld [vmem:[#allocation11 + $0x2f0] sm:$0xf0]  ;;  %v11757_v39 = vor.u32 %v13749_v32, %v11754_v61  ;;  %v15760_v38 = vpop.f32.mrf.mxu0  ;;  %v11253_v32 = vor.u32 %v13623_v48, %v11250_v26  ;;  %v11701_v61 = vor.u32 %v13735_v58, %v11698_v21  ;;  %v11388_v26 = vld [vmem:[#allocation11 + $0x1f8] sm:$0xf]  ;;  %v13602_v21 = vld [vmem:[#allocation11 + $0x3c] sm:$0xf] }
 0x37f   :  { %v3652_v0 = vadd.f32 %v3651_v56, %v15705_v40  ;;  %v11501_v55 = vor.u32 %v13689_v42, %v11500_v2  ;;  %v13780_v40 = vld [vmem:[#allocation11 + $0x5c8] sm:$0xf0]  ;;  %v11222_v2 = vld [vmem:[#allocation11 + $0xc4] sm:$0xf0] }
 0x380   :  { %4023 = vmatpush.bf16.msrb.mxu3 %v10615_v36  ;;  %v11892_v36 = vld [vmem:[#allocation11 + $0x5e8] sm:$0xf]  ;;  %v13728_v56 = vld [vmem:[#allocation11 + $0x42c] sm:$0xf] }
 0x381   :  { %5094 = vmatpush.bf16.msrb.mxu2 %v11165_v44  ;;  %v15749_v44 = vpop.f32.mrf.mxu1  ;;  %v11893_v30 = vor.u32 %v13787_v25, %v11892_v36  ;;  %v15752_v37 = vadd.f32 %v15693_v7, %v3652_v0  ;;  %v11281_v7 = vor.u32 %v13630_v19, %v11278_v11  ;;  %v11670_v25 = vld [vmem:[#allocation11 + $0x444] sm:$0xf0]  ;;  %v11808_v0 = vld [vmem:[#allocation11 + $0x540] sm:$0xf]  ;;  %v2014_v19 = vld [vmem:[#allocation4 + $0x10] sm:$0xff] }
 0x382   :  { %5132 = vmatpush.bf16.msra.mxu0 %v11613_v47  ;;  %v15754_v47 = vpop.f32.mrf.mxu2  ;;  %v13668_v11 = vld [vmem:[#allocation11 + $0x248] sm:$0xf0] }
 0x383   :  { %5149 = vmatpush.bf16.msrb.mxu1 %v11893_v30 }
 0x384   :  { %4024 = vmatpush.bf16.msrb.mxu3 %v10587_v18  ;;  %v11865_v18 = vor.u32 %v13780_v40, %v11864_v52 }
 0x385   :  { %5095 = vmatpush.bf16.msrb.mxu2 %v11137_v54  ;;  %v11729_v54 = vor.u32 %v13742_v35, %v11726_v27  ;;  %v2012_v27 = vld [vmem:[#allocation4] sm:$0xff] }
 0x386   :  { %5133 = vmatpush.bf16.msra.mxu0 %v11585_v3  ;;  %v11473_v3 = vor.u32 %v13682_v63, %v11472_v31  ;;  %v3653_v22 = vpop.f32.mrf.mxu3  ;;  %v15774_v30 = vpop.f32.mrf.mxu0  ;;  %v14406_v31 = vld [vmem:[#allocation4 + $0x20] sm:$0xff]  ;;  %v13609_v63 = vld [vmem:[#allocation11 + $0x74] sm:$0xf] }
 0x387   :  { %5150 = vmatpush.bf16.msrb.mxu1 %v11865_v18  ;;  %v3654_v16 = vadd.f32 %v3653_v22, %v15714_v33  ;;  %v13766_v33 = vld [vmem:[#allocation11 + $0x558] sm:$0xf0]  ;;  %4025 = vmatmul.bf16.vlgmr.msrb.gmra.mxu3 %v15598_v15  ;;  %v11194_v18 = vld [vmem:[#allocation11 + $0x8c] sm:$0xf0]  ;;  %v13661_v15 = vld [vmem:[#allocation11 + $0x210] sm:$0xf0] }
 0x388   :  { %5107 = vmatpush.bf16.msra.mxu3 %v11557_v62  ;;  %v13773_v62 = vld [vmem:[#allocation11 + $0x590] sm:$0xf0]  ;;  %11132 = vmatmul.msk.bf16.vlgmr.msra.gmra.mxu1 %vm1382_vm3, %v15614_v41  ;;  %v11809_v35 = vor.u32 %v13766_v33, %v11808_v0  ;;  %v13595_v0 = vld [vmem:[#allocation11 + $0x4] sm:$0xf]  ;;  %v11138_v33 = vld [vmem:[#allocation11 + $0x1c] sm:$0xf0] }
 0x389   :  { %5164 = vmatpush.bf16.msra.mxu2 %v11337_v29  ;;  %v11837_v46 = vor.u32 %v13773_v62, %v11836_v51  ;;  %v11444_v29 = vld [vmem:[#allocation11 + $0x268] sm:$0xf]  ;;  %v15763_v13 = vpop.f32.mrf.mxu1 }
 0x38a   :  { %5202 = vmatpush.bf16.msrb.mxu0 %v11785_v49  ;;  %v13675_v49 = vld [vmem:[#allocation11 + $0x280] sm:$0xf0]  ;;  %v15768_v42 = vpop.f32.mrf.mxu2 }
 0x38b   :  { %v11445_v36 = vor.u32 %v13675_v49, %v11444_v29  ;;  %5151 = vmatpush.bf16.msrb.mxu1 %v11837_v46  ;;  %v11166_v46 = vld [vmem:[#allocation11 + $0x54] sm:$0xf0]  ;;  %v11389_v49 = vor.u32 %v13661_v15, %v11388_v26 }
 0x38c   :  { %5108 = vmatpush.bf16.msra.mxu3 %v11529_v10  ;;  %v13616_v10 = vld [vmem:[#allocation11 + $0xac] sm:$0xf] }
 0x38d   :  { %5165 = vmatpush.bf16.msra.mxu2 %v11309_v34  ;;  %v15766_v34 = vadd.f32 %v15707_v23, %v3654_v16  ;;  %v11416_v23 = vld [vmem:[#allocation11 + $0x230] sm:$0xf]  ;;  %v11225_v40 = vor.u32 %v13616_v10, %v11222_v2  ;;  %v13714_v16 = vld [vmem:[#allocation11 + $0x3bc] sm:$0xf]  ;;  %v11360_v10 = vld [vmem:[#allocation11 + $0x1c0] sm:$0xf] }
 0x38e   :  { %5203 = vmatpush.bf16.msrb.mxu0 %v11757_v39  ;;  %v15772_v39 = vadd.f32 %v15680_v6, %v15687_v4  ;;  %v15781_v6 = vpack.c.bf16 %v14406_v31, %v2012_v27  ;;  %v11673_v4 = vor.u32 %v13728_v56, %v11670_v25  ;;  %v11417_v41 = vor.u32 %v13668_v11, %v11416_v23  ;;  %v3722_v48 = vpop.f32.mrf.mxu3  ;;  %v13654_v2 = vld [vmem:[#allocation11 + $0x1d8] sm:$0xf0]  ;;  %v11558_v25 = vld [vmem:[#allocation11 + $0x364] sm:$0xf0]  ;;  %v11586_v11 = vld [vmem:[#allocation11 + $0x39c] sm:$0xf0] }
 0x38f   :  { %5152 = vmatpush.bf16.msrb.mxu1 %v11809_v35  ;;  %v3723_v51 = vadd.f32 %v3722_v48, %v15729_v17  ;;  %v15795_v17 = vadd.f32 %v15689_v1, %v15701_v14  ;;  %v11169_v56 = vor.u32 %v13602_v21, %v11166_v46  ;;  %v11361_v23 = vor.u32 %v13654_v2, %v11360_v10  ;;  %v11340_v35 = vld [vmem:[#allocation11 + $0x190] sm:$0xf]  ;;  %v13648_v27 = vld [vmem:[#allocation11 + $0x1a8] sm:$0xf0]  ;;  %v13753_v10 = vld [vmem:[#allocation11 + $0x4f0] sm:$0xf0] }
 0x390   :  { %5109 = vmatpush.bf16.msra.mxu3 %v11501_v55  ;;  %v14405_v55 = vld [vmem:[#allocation4 + $0x30] sm:$0xff]  ;;  %5096 = vmatmul.bf16.vlgmr.msrb.gmra.mxu2 %v15781_v6  ;;  %v11141_v31 = vor.u32 %v13595_v0, %v11138_v33  ;;  %v11530_v48 = vld [vmem:[#allocation11 + $0x32c] sm:$0xf0]  ;;  %v14408_v2 = vld [vmem:[#allocation4 + $0x40] sm:$0xff] }
 0x391   :  { %5166 = vmatpush.bf16.msra.mxu2 %v11281_v7  ;;  %v15778_v52 = vpack.c.bf16 %v14405_v55, %v2014_v19  ;;  %v13721_v7 = vld [vmem:[#allocation11 + $0x3f4] sm:$0xf]  ;;  %v15786_v62 = vpop.f32.mrf.mxu1  ;;  %v15789_v22 = vadd.f32 %v15716_v28, %v3723_v51  ;;  %v13707_v19 = vld [vmem:[#allocation11 + $0x384] sm:$0xf]  ;;  %v2024_v51 = vld [vmem:[#allocation4 + $0x60] sm:$0xf] }
 0x392   :  { %5204 = vmatpush.bf16.msrb.mxu0 %v11729_v54  ;;  %v11642_v54 = vld [vmem:[#allocation11 + $0x40c] sm:$0xf0]  ;;  %v15791_v29 = vpop.f32.mrf.mxu2  ;;  %v13784_v0 = vld [vmem:[#allocation11 + $0x5ec] sm:$0xf]  ;;  %v11894_v33 = vld [vmem:[#allocation11 + $0x604] sm:$0xf0] }
 0x393   :  { %5134 = vmatmul.bf16.vlgmr.msra.gmra.mxu0 %v15778_v52  ;;  %v11645_v58 = vor.u32 %v13721_v7, %v11642_v54  ;;  %v11341_v7 = vor.u32 %v13648_v27, %v11340_v35  ;;  %v13693_v54 = vld [vmem:[#allocation11 + $0x314] sm:$0xf]  ;;  %v11732_v35 = vld [vmem:[#allocation11 + $0x4a0] sm:$0xf]  ;;  %v13746_v27 = vld [vmem:[#allocation11 + $0x4b8] sm:$0xf0] }
 0x394   :  { %5110 = vmatpush.bf16.msra.mxu3 %v11473_v3  ;;  %v11197_v3 = vor.u32 %v13609_v63, %v11194_v18  ;;  %v13760_v63 = vld [vmem:[#allocation11 + $0x528] sm:$0xf0]  ;;  %v2026_v18 = vld [vmem:[#allocation4 + $0x70] sm:$0xf] }
 0x395   :  { %5167 = vmatpush.bf16.msra.mxu2 %v11253_v32  ;;  %v11614_v32 = vld [vmem:[#allocation11 + $0x3d4] sm:$0xf0] }
 0x396   :  { %5205 = vmatpush.bf16.msrb.mxu0 %v11701_v61  ;;  %v15797_v61 = vpop.f32.mrf.mxu0  ;;  %v11617_v28 = vor.u32 %v13714_v16, %v11614_v32  ;;  %v3724_v1 = vpop.f32.mrf.mxu3  ;;  %v11533_v16 = vor.u32 %v13693_v54, %v11530_v48  ;;  %v11760_v32 = vld [vmem:[#allocation11 + $0x4d8] sm:$0xf]  ;;  %v11733_v48 = vor.u32 %v13746_v27, %v11732_v35 }
 0x397   :  { %v3725_v55 = vadd.f32 %v3724_v1, %v15739_v5  ;;  %v11312_v5 = vld [vmem:[#allocation11 + $0x158] sm:$0xf]  ;;  %4030 = vmatmul.bf16.gmra.mxu3 %v15594_v12  ;;  %v11897_v1 = vor.u32 %v13784_v0, %v11894_v33 }
 0x398   :  { %5111 = vmatpush.bf16.msra.mxu3 %v11445_v36  ;;  %v13700_v36 = vld [vmem:[#allocation11 + $0x34c] sm:$0xf]  ;;  %11133 = vmatmul.msk.bf16.gmra.mxu1 %vm1382_vm3, %v15608_v60  ;;  %v11284_v60 = vld [vmem:[#allocation11 + $0x120] sm:$0xf] }
 0x399   :  { %5168 = vmatpush.bf16.msra.mxu2 %v11225_v40  ;;  %v11561_v14 = vor.u32 %v13700_v36, %v11558_v25  ;;  %v15800_v40 = vpop.f32.mrf.mxu1  ;;  %v15803_v26 = vadd.f32 %v15731_v59, %v3725_v55  ;;  %v14407_v59 = vld [vmem:[#allocation4 + $0x50] sm:$0xff]  ;;  %v13679_v55 = vld [vmem:[#allocation11 + $0x2a4] sm:$0xf]  ;;  %5225 = vmatpush.bf16.msra.mxu1 %v11897_v1  ;;  %v13665_v1 = vld [vmem:[#allocation11 + $0x234] sm:$0xf] }
 0x39a   :  { %5206 = vmatpush.bf16.msrb.mxu0 %v11673_v4  ;;  %v11788_v4 = vld [vmem:[#allocation11 + $0x510] sm:$0xf]  ;;  %v15805_v15 = vpop.f32.mrf.mxu2  ;;  %v11502_v36 = vld [vmem:[#allocation11 + $0x2f4] sm:$0xf0]  ;;  %v13634_v25 = vld [vmem:[#allocation11 + $0x138] sm:$0xf0] }
 0x39b   :  { %v11789_v46 = vor.u32 %v13760_v63, %v11788_v4  ;;  %v11256_v4 = vld [vmem:[#allocation11 + $0xe8] sm:$0xf] }
 0x39c   :  { %5112 = vmatpush.bf16.msra.mxu3 %v11417_v41  ;;  %v11589_v41 = vor.u32 %v13707_v19, %v11586_v11 }
 0x39d   :  { %5169 = vmatpush.bf16.msra.mxu2 %v11197_v3  ;;  %v13641_v3 = vld [vmem:[#allocation11 + $0x170] sm:$0xf0] }
 0x39e   :  { %5207 = vmatpush.bf16.msrb.mxu0 %v11645_v58  ;;  %v15809_v58 = vadd.f32 %v15703_v9, %v15710_v53  ;;  %v15811_v21 = vpop.f32.mrf.mxu0  ;;  %v11313_v9 = vor.u32 %v13641_v3, %v11312_v5  ;;  %v13686_v53 = vld [vmem:[#allocation11 + $0x2dc] sm:$0xf]  ;;  %v3727_v12 = vpop.f32.mrf.mxu3  ;;  %v11704_v3 = vld [vmem:[#allocation11 + $0x468] sm:$0xf] }
 0x39f   :  { %v3728_v19 = vadd.f32 %v3727_v12, %v15754_v47  ;;  %v11505_v11 = vor.u32 %v13686_v53, %v11502_v36  ;;  %v13777_v47 = vld [vmem:[#allocation11 + $0x5b4] sm:$0xf]  ;;  %v13620_v53 = vld [vmem:[#allocation11 + $0xc8] sm:$0xf0] }
 0x3a0   :  { %5113 = vmatpush.bf16.msra.mxu3 %v11389_v49  ;;  %v15816_v49 = vpack.c.bf16 %v2026_v18, %v14407_v59  ;;  %v15834_v59 = vadd.f32 %v15712_v8, %v15727_v20  ;;  %v11676_v8 = vld [vmem:[#allocation11 + $0x430] sm:$0xf]  ;;  %v13732_v20 = vld [vmem:[#allocation11 + $0x448] sm:$0xf0] }
 0x3a1   :  { %5170 = vmatpush.bf16.msra.mxu2 %v11169_v56  ;;  %v15818_v56 = vpack.c.bf16 %v2024_v51, %v14408_v2  ;;  %v15826_v63 = vadd.f32 %v15741_v43, %v3728_v19  ;;  %v11446_v2 = vld [vmem:[#allocation11 + $0x284] sm:$0xf0]  ;;  %v14409_v19 = vld [vmem:[#allocation4 + $0x38] sm:$0xff] }
 0x3a2   :  { %5208 = vmatpush.bf16.msrb.mxu0 %v11617_v28  ;;  %v11761_v28 = vor.u32 %v13753_v10, %v11760_v32  ;;  %v15828_v18 = vpop.f32.mrf.mxu2  ;;  %v13770_v32 = vld [vmem:[#allocation11 + $0x57c] sm:$0xf]  ;;  %v11838_v10 = vld [vmem:[#allocation11 + $0x594] sm:$0xf0] }
 0x3a3   :  { %5139 = vmatmul.bf16.gmra.mxu0 %v15816_v49  ;;  %5101 = vmatmul.bf16.gmra.mxu2 %v15818_v56  ;;  %v11841_v36 = vor.u32 %v13770_v32, %v11838_v10  ;;  %v13658_v10 = vld [vmem:[#allocation11 + $0x1fc] sm:$0xf] }
 0x3a4   :  { %5114 = vmatpush.bf16.msra.mxu3 %v11361_v23  ;;  %v15823_v23 = vpop.f32.mrf.mxu1 }
 0x3a5   :  { %5171 = vmatpush.bf16.msra.mxu2 %v11141_v31  ;;  %v11474_v31 = vld [vmem:[#allocation11 + $0x2bc] sm:$0xf0] }
 0x3a6   :  { %5209 = vmatpush.bf16.msrb.mxu0 %v11589_v41  ;;  %v13627_v41 = vld [vmem:[#allocation11 + $0x100] sm:$0xf0]  ;;  %v15830_v54 = vpop.f32.mrf.mxu0  ;;  %v11477_v5 = vor.u32 %v13679_v55, %v11474_v31  ;;  %v11200_v55 = vld [vmem:[#allocation11 + $0x78] sm:$0xf]  ;;  %v14410_v31 = vld [vmem:[#allocation4 + $0x28] sm:$0xff] }
 0x3a7   :  { %v11257_v43 = vor.u32 %v13627_v41, %v11256_v4 }
 0x3a8   :  { %5183 = vmatpush.bf16.msrb.mxu3 %v11561_v14  ;;  %v11285_v14 = vor.u32 %v13634_v25, %v11284_v60  ;;  %v2013_v60 = vld [vmem:[#allocation4 + $0x8] sm:$0xff]  ;;  %v3729_v25 = vpop.f32.mrf.mxu3 }
 0x3a9   :  { %5240 = vmatpush.bf16.msrb.mxu2 %v11341_v7  ;;  %v11866_v7 = vld [vmem:[#allocation11 + $0x5cc] sm:$0xf0]  ;;  %v3730_v0 = vadd.f32 %v3729_v25, %v15768_v42  ;;  %v15841_v4 = vpack.c.bf16 %v14410_v31, %v2013_v60  ;;  %v13704_v31 = vld [vmem:[#allocation11 + $0x368] sm:$0xf0] }
 0x3aa   :  { %5278 = vmatpush.bf16.msra.mxu0 %v11789_v46  ;;  %v11869_v51 = vor.u32 %v13777_v47, %v11866_v7  ;;  %v13739_v46 = vld [vmem:[#allocation11 + $0x480] sm:$0xf0]  ;;  %v15846_v42 = vpop.f32.mrf.mxu2  ;;  %v13613_v47 = vld [vmem:[#allocation11 + $0x90] sm:$0xf0] }
 0x3ab   :  { %v11705_v12 = vor.u32 %v13739_v46, %v11704_v3  ;;  %v15844_v41 = vadd.f32 %v15760_v38, %v3730_v0  ;;  %v13763_v7 = vld [vmem:[#allocation11 + $0x544] sm:$0xf]  ;;  %5115 = vmatmul.bf16.vlgmr.msra.gmra.mxu3 %v15841_v4  ;;  %v11648_v46 = vld [vmem:[#allocation11 + $0x3f8] sm:$0xf]  ;;  %v15855_v38 = vadd.f32 %v15724_v57, %v15737_v45  ;;  %v11201_v32 = vor.u32 %v13613_v47, %v11200_v55  ;;  %v11620_v45 = vld [vmem:[#allocation11 + $0x3c0] sm:$0xf] }
 0x3ac   :  { %5184 = vmatpush.bf16.msrb.mxu3 %v11533_v16  ;;  %v13672_v16 = vld [vmem:[#allocation11 + $0x26c] sm:$0xf]  ;;  %5226 = vmatpush.bf16.msra.mxu1 %v11869_v51  ;;  %v15837_v33 = vpop.f32.mrf.mxu1  ;;  %v13645_v47 = vld [vmem:[#allocation11 + $0x194] sm:$0xf] }
 0x3ad   :  { %5241 = vmatpush.bf16.msrb.mxu2 %v11313_v9  ;;  %v11228_v9 = vld [vmem:[#allocation11 + $0xb0] sm:$0xf]  ;;  %v11449_v35 = vor.u32 %v13672_v16, %v11446_v2  ;;  %v11390_v2 = vld [vmem:[#allocation11 + $0x214] sm:$0xf0] }
 0x3ae   :  { %5279 = vmatpush.bf16.msra.mxu0 %v11761_v28  ;;  %v2015_v28 = vld [vmem:[#allocation4 + $0x18] sm:$0xff]  ;;  %v11229_v27 = vor.u32 %v13620_v53, %v11228_v9  ;;  %v15848_v51 = vpop.f32.mrf.mxu0  ;;  %v13606_v53 = vld [vmem:[#allocation11 + $0x58] sm:$0xf0] }
 0x3af   :  { %v11172_v9 = vld [vmem:[#allocation11 + $0x40] sm:$0xf] }
 0x3b0   :  { %5185 = vmatpush.bf16.msrb.mxu3 %v11505_v11  ;;  %v15839_v11 = vpack.c.bf16 %v14409_v19, %v2015_v28  ;;  %5227 = vmatpush.bf16.msra.mxu1 %v11841_v36  ;;  %v3798_v36 = vpop.f32.mrf.mxu3  ;;  %v11393_v28 = vor.u32 %v13658_v10, %v11390_v2  ;;  %v11173_v0 = vor.u32 %v13606_v53, %v11172_v9  ;;  %v2025_v53 = vld [vmem:[#allocation4 + $0x68] sm:$0xf] }
 0x3b1   :  { %5242 = vmatpush.bf16.msrb.mxu2 %v11285_v14  ;;  %v11418_v14 = vld [vmem:[#allocation11 + $0x24c] sm:$0xf0]  ;;  %v3799_v25 = vadd.f32 %v3798_v36, %v15791_v29 }
 0x3b2   :  { %5280 = vmatpush.bf16.msra.mxu0 %v11733_v48  ;;  %v11810_v48 = vld [vmem:[#allocation11 + $0x55c] sm:$0xf0]  ;;  %11918 = vmatmul.msk.bf16.vlgmr.msrb.gmra.mxu1 %vm1382_vm3, %v15839_v11  ;;  %v11421_v16 = vor.u32 %v13665_v1, %v11418_v14  ;;  %v13599_v1 = vld [vmem:[#allocation11 + $0x20] sm:$0xf0]  ;;  %v11564_v14 = vld [vmem:[#allocation11 + $0x350] sm:$0xf] }
 0x3b3   :  { %v11813_v3 = vor.u32 %v13763_v7, %v11810_v48  ;;  %5210 = vmatmul.bf16.vlgmr.msrb.gmra.mxu0 %v15778_v52  ;;  %5172 = vmatmul.bf16.vlgmr.msra.gmra.mxu2 %v15781_v6  ;;  %v15863_v19 = vadd.f32 %v15774_v30, %v3799_v25  ;;  %v11342_v7 = vld [vmem:[#allocation11 + $0x1ac] sm:$0xf0]  ;;  %v11592_v48 = vld [vmem:[#allocation11 + $0x388] sm:$0xf]  ;;  %v11565_v10 = vor.u32 %v13704_v31, %v11564_v14  ;;  %v13697_v25 = vld [vmem:[#allocation11 + $0x330] sm:$0xf0] }
 0x3b4   :  { %5186 = vmatpush.bf16.msrb.mxu3 %v11477_v5  ;;  %v11677_v5 = vor.u32 %v13732_v20, %v11676_v8  ;;  %v15860_v57 = vpop.f32.mrf.mxu1  ;;  %v13651_v8 = vld [vmem:[#allocation11 + $0x1c4] sm:$0xf]  ;;  %v11362_v20 = vld [vmem:[#allocation11 + $0x1dc] sm:$0xf0]  ;;  %v11345_v2 = vor.u32 %v13645_v47, %v11342_v7 }
 0x3b5   :  { %5243 = vmatpush.bf16.msrb.mxu2 %v11257_v43  ;;  %v13725_v43 = vld [vmem:[#allocation11 + $0x410] sm:$0xf0]  ;;  %5228 = vmatpush.bf16.msra.mxu1 %v11813_v3  ;;  %v15871_v3 = vadd.f32 %v15734_v24, %v15752_v37  ;;  %v11365_v30 = vor.u32 %v13651_v8, %v11362_v20  ;;  %v13638_v37 = vld [vmem:[#allocation11 + $0x15c] sm:$0xf]  ;;  %v11314_v8 = vld [vmem:[#allocation11 + $0x174] sm:$0xf0] }
 0x3b6   :  { %5281 = vmatpush.bf16.msra.mxu0 %v11705_v12  ;;  %v11649_v60 = vor.u32 %v13725_v43, %v11648_v46  ;;  %v13718_v12 = vld [vmem:[#allocation11 + $0x3d8] sm:$0xf0]  ;;  %v15867_v55 = vpop.f32.mrf.mxu0  ;;  %v13757_v43 = vld [vmem:[#allocation11 + $0x514] sm:$0xf]  ;;  %v11508_v7 = vld [vmem:[#allocation11 + $0x2e0] sm:$0xf] }
 0x3b7   :  { %v11621_v29 = vor.u32 %v13718_v12, %v11620_v45  ;;  %v13750_v20 = vld [vmem:[#allocation11 + $0x4dc] sm:$0xf] }
 0x3b8   :  { %5187 = vmatpush.bf16.msrb.mxu3 %v11449_v35  ;;  %v15865_v35 = vpop.f32.mrf.mxu2  ;;  %v3800_v9 = vpop.f32.mrf.mxu3 }
 0x3b9   :  { %5244 = vmatpush.bf16.msrb.mxu2 %v11229_v27  ;;  %v11144_v27 = vld [vmem:[#allocation11 + $0x8] sm:$0xf]  ;;  %v3801_v45 = vadd.f32 %v3800_v9, %v15805_v15 }
 0x3ba   :  { %5282 = vmatpush.bf16.msra.mxu0 %v11677_v5  ;;  %v13711_v5 = vld [vmem:[#allocation11 + $0x3a0] sm:$0xf0]  ;;  %v11145_v46 = vor.u32 %v13599_v1, %v11144_v27  ;;  %v11762_v27 = vld [vmem:[#allocation11 + $0x4f4] sm:$0xf0] }
 0x3bb   :  { %v11593_v36 = vor.u32 %v13711_v5, %v11592_v48  ;;  %v15879_v1 = vadd.f32 %v15797_v61, %v3801_v45  ;;  %v13690_v48 = vld [vmem:[#allocation11 + $0x2f8] sm:$0xf0]  ;;  %v11317_v61 = vor.u32 %v13638_v37, %v11314_v8  ;;  %v11765_v5 = vor.u32 %v13750_v20, %v11762_v27  ;;  %v13736_v8 = vld [vmem:[#allocation11 + $0x46c] sm:$0xf]  ;;  %v11706_v20 = vld [vmem:[#allocation11 + $0x484] sm:$0xf0] }
 0x3bc   :  { %5188 = vmatpush.bf16.msrb.mxu3 %v11421_v16  ;;  %v11790_v16 = vld [vmem:[#allocation11 + $0x52c] sm:$0xf0]  ;;  %v15874_v12 = vpop.f32.mrf.mxu1 }
 0x3bd   :  { %5245 = vmatpush.bf16.msrb.mxu2 %v11201_v32  ;;  %v2027_v32 = vld [vmem:[#allocation4 + $0x78] sm:$0xf]  ;;  %v11793_v24 = vor.u32 %v13757_v43, %v11790_v16  ;;  %v15892_v43 = vadd.f32 %v15749_v44, %v15766_v34  ;;  %v13743_v16 = vld [vmem:[#allocation11 + $0x4a4] sm:$0xf]  ;;  %v13624_v34 = vld [vmem:[#allocation11 + $0xec] sm:$0xf] }
 0x3be   :  { %5283 = vmatpush.bf16.msra.mxu0 %v11649_v60  ;;  %v11536_v60 = vld [vmem:[#allocation11 + $0x318] sm:$0xf]  ;;  %v15885_v47 = vpop.f32.mrf.mxu0 }
 0x3bf   :  { %v11537_v15 = vor.u32 %v13697_v25, %v11536_v60  ;;  %v11900_v60 = vld [vmem:[#allocation11 + $0x5f0] sm:$0xf]  ;;  %v13788_v25 = vld [vmem:[#allocation11 + $0x608] sm:$0xf0] }
 0x3c0   :  { %5189 = vmatpush.bf16.msrb.mxu3 %v11393_v28  ;;  %v14411_v28 = vld [vmem:[#allocation4 + $0x58] sm:$0xff]  ;;  %v15881_v14 = vpop.f32.mrf.mxu2  ;;  %v3803_v9 = vpop.f32.mrf.mxu3  ;;  %v11901_v37 = vor.u32 %v13788_v25, %v11900_v60  ;;  %v13729_v60 = vld [vmem:[#allocation11 + $0x434] sm:$0xf]  ;;  %v11678_v25 = vld [vmem:[#allocation11 + $0x44c] sm:$0xf0] }
 0x3c1   :  { %5246 = vmatpush.bf16.msrb.mxu2 %v11173_v0  ;;  %v15876_v0 = vpack.c.bf16 %v2027_v32, %v14411_v28  ;;  %v11734_v32 = vld [vmem:[#allocation11 + $0x4bc] sm:$0xf0]  ;;  %v3804_v45 = vadd.f32 %v3803_v9, %v15828_v18  ;;  %v11258_v28 = vld [vmem:[#allocation11 + $0x104] sm:$0xf0]  ;;  %v13781_v18 = vld [vmem:[#allocation11 + $0x5d0] sm:$0xf0] }
 0x3c2   :  { %5284 = vmatpush.bf16.msra.mxu0 %v11621_v29  ;;  %v14412_v29 = vld [vmem:[#allocation4 + $0x48] sm:$0xff]  ;;  %v11737_v44 = vor.u32 %v13743_v16, %v11734_v32  ;;  %5301 = vmatpush.bf16.msrb.mxu1 %v11901_v37  ;;  %v11709_v16 = vor.u32 %v13736_v8, %v11706_v20  ;;  %v11202_v8 = vld [vmem:[#allocation11 + $0x94] sm:$0xf0]  ;;  %v13722_v20 = vld [vmem:[#allocation11 + $0x3fc] sm:$0xf] }
 0x3c3   :  { %v15883_v31 = vpack.c.bf16 %v2025_v53, %v14412_v29  ;;  %11919 = vmatmul.msk.bf16.gmra.mxu1 %vm1382_vm3, %v15876_v0  ;;  %5215 = vmatmul.bf16.gmra.mxu0 %v15816_v49  ;;  %v15900_v27 = vadd.f32 %v15811_v21, %v3804_v45  ;;  %v13617_v32 = vld [vmem:[#allocation11 + $0xb4] sm:$0xf]  ;;  %v15908_v21 = vadd.f32 %v15763_v13, %v15789_v22  ;;  %v11230_v9 = vld [vmem:[#allocation11 + $0xcc] sm:$0xf0] }
 0x3c4   :  { %5190 = vmatpush.bf16.msrb.mxu3 %v11365_v30  ;;  %v13631_v30 = vld [vmem:[#allocation11 + $0x124] sm:$0xf]  ;;  %5177 = vmatmul.bf16.gmra.mxu2 %v15818_v56  ;;  %v11233_v13 = vor.u32 %v13617_v32, %v11230_v9  ;;  %v11681_v22 = vor.u32 %v13729_v60, %v11678_v25  ;;  %v15925_v9 = vadd.f32 %v15786_v62, %v15803_v26  ;;  %v11174_v60 = vld [vmem:[#allocation11 + $0x5c] sm:$0xf0] }
 0x3c5   :  { %5247 = vmatpush.bf16.msrb.mxu2 %v11145_v46  ;;  %5120 = vmatmul.bf16.gmra.mxu3 %v15883_v31  ;;  %v11286_v46 = vld [vmem:[#allocation11 + $0x13c] sm:$0xf0] }
 0x3c6   :  { %5285 = vmatpush.bf16.msra.mxu0 %v11593_v36  ;;  %v11289_v53 = vor.u32 %v13631_v30, %v11286_v46  ;;  %v13683_v36 = vld [vmem:[#allocation11 + $0x2c0] sm:$0xf0]  ;;  %v11261_v46 = vor.u32 %v13624_v34, %v11258_v28  ;;  %v13610_v28 = vld [vmem:[#allocation11 + $0x7c] sm:$0xf] }
 0x3c8   :  { %5259 = vmatpush.bf16.msra.mxu3 %v11565_v10  ;;  %v11509_v10 = vor.u32 %v13690_v48, %v11508_v7  ;;  %v15902_v29 = vpop.f32.mrf.mxu2  ;;  %v11872_v7 = vld [vmem:[#allocation11 + $0x5b8] sm:$0xf]  ;;  %v15904_v48 = vpop.f32.mrf.mxu0 }
 0x3c9   :  { %5316 = vmatpush.bf16.msra.mxu2 %v11345_v2  ;;  %v11480_v2 = vld [vmem:[#allocation11 + $0x2a8] sm:$0xf]  ;;  %v11873_v30 = vor.u32 %v13781_v18, %v11872_v7  ;;  %v3805_v37 = vpop.f32.mrf.mxu3  ;;  %v11424_v7 = vld [vmem:[#allocation11 + $0x238] sm:$0xf] }
 0x3ca   :  { %5354 = vmatpush.bf16.msrb.mxu0 %v11793_v24  ;;  %v15897_v24 = vpop.f32.mrf.mxu1 }
 0x3cb   :  { %5302 = vmatpush.bf16.msrb.mxu1 %v11873_v30  ;;  %v11816_v30 = vld [vmem:[#allocation11 + $0x548] sm:$0xf] }
 0x3cc   :  { %5260 = vmatpush.bf16.msra.mxu3 %v11537_v15  ;;  %v11481_v15 = vor.u32 %v13683_v36, %v11480_v2  ;;  %v13774_v2 = vld [vmem:[#allocation11 + $0x598] sm:$0xf0] }
 0x3cd   :  { %5317 = vmatpush.bf16.msra.mxu2 %v11317_v61  ;;  %v11452_v61 = vld [vmem:[#allocation11 + $0x270] sm:$0xf] }
 0x3ce   :  { %5355 = vmatpush.bf16.msrb.mxu0 %v11765_v5  ;;  %v13676_v5 = vld [vmem:[#allocation11 + $0x288] sm:$0xf0] }
 0x3cf   :  { %v11453_v36 = vor.u32 %v13676_v5, %v11452_v61  ;;  %v11650_v5 = vld [vmem:[#allocation11 + $0x414] sm:$0xf0] }
 0x3d0   :  { %5261 = vmatpush.bf16.msra.mxu3 %v11509_v10  ;;  %v11844_v10 = vld [vmem:[#allocation11 + $0x580] sm:$0xf]  ;;  %v15916_v18 = vpop.f32.mrf.mxu2 }
 0x3d1   :  { %5318 = vmatpush.bf16.msra.mxu2 %v11289_v53  ;;  %v11845_v45 = vor.u32 %v13774_v2, %v11844_v10  ;;  %v13669_v53 = vld [vmem:[#allocation11 + $0x250] sm:$0xf0]  ;;  %v15918_v10 = vpop.f32.mrf.mxu0  ;;  %v11653_v2 = vor.u32 %v13722_v20, %v11650_v5  ;;  %v13596_v20 = vld [vmem:[#allocation11 + $0xc] sm:$0xf] }
 0x3d2   :  { %5356 = vmatpush.bf16.msrb.mxu0 %v11737_v44  ;;  %v3806_v44 = vadd.f32 %v3805_v37, %v15846_v42  ;;  %v15911_v34 = vpop.f32.mrf.mxu1  ;;  %v11425_v61 = vor.u32 %v13669_v53, %v11424_v7  ;;  %v13767_v42 = vld [vmem:[#allocation11 + $0x560] sm:$0xf0]  ;;  %v11622_v37 = vld [vmem:[#allocation11 + $0x3dc] sm:$0xf0]  ;;  %v3874_v7 = vpop.f32.mrf.mxu3  ;;  %v11368_v53 = vld [vmem:[#allocation11 + $0x1c8] sm:$0xf] }
 0x3d3   :  { %16891 = vst [vmem:[#allocation49_spill] sm:$0xff] %v15911_v34  ;;  %5303 = vmatpush.bf16.msrb.mxu1 %v11845_v45  ;;  %v11817_v32 = vor.u32 %v13767_v42, %v11816_v30  ;;  %5286 = vmatmul.bf16.vlgmr.msra.gmra.mxu0 %v15778_v52  ;;  %v13715_v45 = vld [vmem:[#allocation11 + $0x3c4] sm:$0xf]  ;;  %v13708_v5 = vld [vmem:[#allocation11 + $0x38c] sm:$0xf] }
 0x3d4   :  { %5262 = vmatpush.bf16.msra.mxu3 %v11481_v15  ;;  %v15914_v15 = vadd.f32 %v15830_v54, %v3806_v44  ;;  %11920 = vmatmul.msk.bf16.vlgmr.msra.gmra.mxu1 %vm1382_vm3, %v15839_v11  ;;  %v11205_v54 = vor.u32 %v13610_v28, %v11202_v8  ;;  %v13655_v44 = vld [vmem:[#allocation11 + $0x1e0] sm:$0xf0]  ;;  %v11566_v28 = vld [vmem:[#allocation11 + $0x36c] sm:$0xf0]  ;;  %v11625_v8 = vor.u32 %v13715_v45, %v11622_v37  ;;  %v13694_v45 = vld [vmem:[#allocation11 + $0x31c] sm:$0xf] }
 0x3d5   :  { %5319 = vmatpush.bf16.msra.mxu2 %v11261_v46  ;;  %v11396_v46 = vld [vmem:[#allocation11 + $0x200] sm:$0xf]  ;;  %5191 = vmatmul.bf16.vlgmr.msrb.gmra.mxu3 %v15841_v4  ;;  %v11538_v37 = vld [vmem:[#allocation11 + $0x334] sm:$0xf0] }
 0x3d6   :  { %5357 = vmatpush.bf16.msrb.mxu0 %v11709_v16  ;;  %v13662_v16 = vld [vmem:[#allocation11 + $0x218] sm:$0xf0]  ;;  %5248 = vmatmul.bf16.vlgmr.msrb.gmra.mxu2 %v15781_v6 }
 0x3d7   :  { %v11397_v25 = vor.u32 %v13662_v16, %v11396_v46  ;;  %5304 = vmatpush.bf16.msrb.mxu1 %v11817_v32  ;;  %v11369_v46 = vor.u32 %v13655_v44, %v11368_v53  ;;  %v11594_v16 = vld [vmem:[#allocation11 + $0x3a4] sm:$0xf0]  ;;  %v13649_v32 = vld [vmem:[#allocation11 + $0x1b0] sm:$0xf0]  ;;  %v11320_v44 = vld [vmem:[#allocation11 + $0x160] sm:$0xf] }
 0x3d8   :  { %5263 = vmatpush.bf16.msra.mxu3 %v11453_v36  ;;  %v13603_v36 = vld [vmem:[#allocation11 + $0x44] sm:$0xf]  ;;  %v15935_v42 = vpop.f32.mrf.mxu2 }
 0x3d9   :  { %5320 = vmatpush.bf16.msra.mxu2 %v11233_v13  ;;  %v3875_v13 = vadd.f32 %v3874_v7, %v15865_v35  ;;  %v11177_v26 = vor.u32 %v13603_v36, %v11174_v60  ;;  %v11348_v35 = vld [vmem:[#allocation11 + $0x198] sm:$0xf]  ;;  %v15937_v7 = vpop.f32.mrf.mxu0  ;;  %v13761_v60 = vld [vmem:[#allocation11 + $0x530] sm:$0xf0] }
 0x3da   :  { %5358 = vmatpush.bf16.msrb.mxu0 %v11681_v22  ;;  %v15930_v62 = vpop.f32.mrf.mxu1  ;;  %v13701_v22 = vld [vmem:[#allocation11 + $0x354] sm:$0xf]  ;;  %v11796_v36 = vld [vmem:[#allocation11 + $0x518] sm:$0xf]  ;;  %v3876_v34 = vpop.f32.mrf.mxu3 }
 0x3db   :  { %16892 = vst [vmem:[#allocation34_spill] sm:$0xff] %v15930_v62  ;;  %v15933_v30 = vadd.f32 %v15848_v51, %v3875_v13  ;;  %v15941_v51 = vadd.f32 %v15800_v40, %v15826_v63  ;;  %v11597_v13 = vor.u32 %v13708_v5, %v11594_v16  ;;  %v11797_v53 = vor.u32 %v13761_v60, %v11796_v36  ;;  %v13642_v62 = vld [vmem:[#allocation11 + $0x178] sm:$0xf0]  ;;  %v13687_v63 = vld [vmem:[#allocation11 + $0x2e4] sm:$0xf] }
 0x3dc   :  { %5264 = vmatpush.bf16.msra.mxu3 %v11425_v61  ;;  %v11146_v61 = vld [vmem:[#allocation11 + $0x24] sm:$0xf0]  ;;  %v11321_v40 = vor.u32 %v13642_v62, %v11320_v44  ;;  %v13680_v60 = vld [vmem:[#allocation11 + $0x2ac] sm:$0xf]  ;;  %v11902_v44 = vld [vmem:[#allocation11 + $0x60c] sm:$0xf0] }
 0x3dd   :  { %5321 = vmatpush.bf16.msra.mxu2 %v11205_v54  ;;  %v11569_v54 = vor.u32 %v13701_v22, %v11566_v28  ;;  %v11541_v22 = vor.u32 %v13694_v45, %v11538_v37  ;;  %v3877_v28 = vadd.f32 %v3876_v34, %v15881_v14  ;;  %v11292_v16 = vld [vmem:[#allocation11 + $0x128] sm:$0xf]  ;;  %v11264_v45 = vld [vmem:[#allocation11 + $0xf0] sm:$0xf]  ;;  %v13628_v37 = vld [vmem:[#allocation11 + $0x108] sm:$0xf0] }
 0x3de   :  { %5359 = vmatpush.bf16.msrb.mxu0 %v11653_v2  ;;  %v11149_v2 = vor.u32 %v13596_v20, %v11146_v61  ;;  %v11768_v20 = vld [vmem:[#allocation11 + $0x4e0] sm:$0xf]  ;;  %v13754_v61 = vld [vmem:[#allocation11 + $0x4f8] sm:$0xf0]  ;;  %v11740_v62 = vld [vmem:[#allocation11 + $0x4a8] sm:$0xf] }
 0x3df   :  { %v15947_v5 = vadd.f32 %v15867_v55, %v3877_v28  ;;  %v11769_v14 = vor.u32 %v13754_v61, %v11768_v20  ;;  %v15958_v55 = vadd.f32 %v15823_v23, %v15844_v41  ;;  %v11712_v41 = vld [vmem:[#allocation11 + $0x470] sm:$0xf]  ;;  %v13740_v20 = vld [vmem:[#allocation11 + $0x488] sm:$0xf0] }
 0x3e0   :  { %5265 = vmatpush.bf16.msra.mxu3 %v11397_v25  ;;  %v11349_v25 = vor.u32 %v13649_v32, %v11348_v35  ;;  %v13635_v35 = vld [vmem:[#allocation11 + $0x140] sm:$0xf0] }
 0x3e1   :  { %5322 = vmatpush.bf16.msra.mxu2 %v11177_v26  ;;  %16894 = vst [vmem:[#allocation51_spill] sm:$0xff] %v15947_v5  ;;  %v15951_v32 = vpop.f32.mrf.mxu0  ;;  %v11293_v36 = vor.u32 %v13635_v35, %v11292_v16  ;;  %v11236_v16 = vld [vmem:[#allocation11 + $0xb8] sm:$0xf] }
 0x3e2   :  { %5360 = vmatpush.bf16.msrb.mxu0 %v11625_v8  ;;  %v15944_v26 = vpop.f32.mrf.mxu1  ;;  %v11510_v8 = vld [vmem:[#allocation11 + $0x2fc] sm:$0xf0] }
 0x3e3   :  { %16893 = vst [vmem:[#allocation35_spill] sm:$0xff] %v15944_v26  ;;  %v11513_v34 = vor.u32 %v13687_v63, %v11510_v8  ;;  %5291 = vmatmul.bf16.gmra.mxu0 %v15816_v49  ;;  %v13673_v63 = vld [vmem:[#allocation11 + $0x274] sm:$0xf]  ;;  %v11454_v8 = vld [vmem:[#allocation11 + $0x28c] sm:$0xf0] }
 0x3e4   :  { %5266 = vmatpush.bf16.msra.mxu3 %v11369_v46  ;;  %v15949_v46 = vpop.f32.mrf.mxu2  ;;  %11921 = vmatmul.msk.bf16.gmra.mxu1 %vm1382_vm3, %v15876_v0 }
 0x3e5   :  { %5323 = vmatpush.bf16.msra.mxu2 %v11149_v2  ;;  %5196 = vmatmul.bf16.gmra.mxu3 %v15883_v31  ;;  %v11482_v2 = vld [vmem:[#allocation11 + $0x2c4] sm:$0xf0] }
 0x3e6   :  { %5361 = vmatpush.bf16.msrb.mxu0 %v11597_v13  ;;  %5253 = vmatmul.bf16.gmra.mxu2 %v15818_v56  ;;  %v3879_v13 = vpop.f32.mrf.mxu3  ;;  %v11485_v23 = vor.u32 %v13680_v60, %v11482_v2  ;;  %v11684_v2 = vld [vmem:[#allocation11 + $0x438] sm:$0xf] }
 0x3e8   :  { %5335 = vmatpush.bf16.msrb.mxu3 %v11569_v54  ;;  %v13747_v54 = vld [vmem:[#allocation11 + $0x4c0] sm:$0xf0] }
 0x3e9   :  { %5392 = vmatpush.bf16.msrb.mxu2 %v11349_v25  ;;  %v11741_v25 = vor.u32 %v13747_v54, %v11740_v62  ;;  %v13621_v62 = vld [vmem:[#allocation11 + $0xd0] sm:$0xf0]  ;;  %v11874_v54 = vld [vmem:[#allocation11 + $0x5d4] sm:$0xf0] }
 0x3ea   :  { %5430 = vmatpush.bf16.msra.mxu0 %v11797_v53  ;;  %v13785_v53 = vld [vmem:[#allocation11 + $0x5f4] sm:$0xf]  ;;  %v15963_v28 = vpop.f32.mrf.mxu1 }
 0x3eb   :  { %16895 = vst [vmem:[#allocation50_spill] sm:$0xff] %v15963_v28  ;;  %v11905_v61 = vor.u32 %v13785_v53, %v11902_v44  ;;  %v13666_v53 = vld [vmem:[#allocation11 + $0x23c] sm:$0xf]  ;;  %v11846_v44 = vld [vmem:[#allocation11 + $0x59c] sm:$0xf0] }
 0x3ec   :  { %5336 = vmatpush.bf16.msrb.mxu3 %v11541_v22  ;;  %v3880_v22 = vadd.f32 %v3879_v13, %v15902_v29  ;;  %v13778_v29 = vld [vmem:[#allocation11 + $0x5bc] sm:$0xf]  ;;  %v15970_v13 = vpop.f32.mrf.mxu0 }
 0x3ed   :  { %5393 = vmatpush.bf16.msrb.mxu2 %v11321_v40  ;;  %v11265_v40 = vor.u32 %v13628_v37, %v11264_v45  ;;  %5377 = vmatpush.bf16.msra.mxu1 %v11905_v61  ;;  %v11877_v60 = vor.u32 %v13778_v29, %v11874_v54  ;;  %v13733_v45 = vld [vmem:[#allocation11 + $0x450] sm:$0xf0]  ;;  %v11237_v37 = vor.u32 %v13621_v62, %v11236_v16  ;;  %v11208_v61 = vld [vmem:[#allocation11 + $0x80] sm:$0xf]  ;;  %v13614_v28 = vld [vmem:[#allocation11 + $0x98] sm:$0xf0] }
 0x3ee   :  { %5431 = vmatpush.bf16.msra.mxu0 %v11769_v14  ;;  %v15966_v35 = vadd.f32 %v15885_v47, %v3880_v22  ;;  %v15968_v14 = vpop.f32.mrf.mxu2  ;;  %v13771_v47 = vld [vmem:[#allocation11 + $0x584] sm:$0xf]  ;;  %v11426_v22 = vld [vmem:[#allocation11 + $0x254] sm:$0xf0]  ;;  %v11685_v5 = vor.u32 %v13733_v45, %v11684_v2  ;;  %v11398_v16 = vld [vmem:[#allocation11 + $0x21c] sm:$0xf0] }
 0x3ef   :  { %v11849_v26 = vor.u32 %v13771_v47, %v11846_v44  ;;  %v11180_v62 = vld [vmem:[#allocation11 + $0x48] sm:$0xf]  ;;  %v13719_v45 = vld [vmem:[#allocation11 + $0x3e0] sm:$0xf0]  ;;  %v11152_v47 = vld [vmem:[#allocation11 + $0x10] sm:$0xf] }
 0x3f0   :  { %5337 = vmatpush.bf16.msrb.mxu3 %v11513_v34  ;;  %16896 = vst [vmem:[#allocation37_spill] sm:$0xff] %v15966_v35  ;;  %v11713_v34 = vor.u32 %v13740_v20, %v11712_v41  ;;  %v3881_v35 = vpop.f32.mrf.mxu3  ;;  %v13726_v20 = vld [vmem:[#allocation11 + $0x418] sm:$0xf0]  ;;  %v11628_v2 = vld [vmem:[#allocation11 + $0x3c8] sm:$0xf] }
 0x3f1   :  { %5394 = vmatpush.bf16.msrb.mxu2 %v11293_v36  ;;  %v11457_v36 = vor.u32 %v13673_v63, %v11454_v8  ;;  %5378 = vmatpush.bf16.msra.mxu1 %v11877_v60  ;;  %v11209_v63 = vor.u32 %v13614_v28, %v11208_v61  ;;  %v13659_v8 = vld [vmem:[#allocation11 + $0x204] sm:$0xf]  ;;  %v13764_v60 = vld [vmem:[#allocation11 + $0x54c] sm:$0xf]  ;;  %v11572_v61 = vld [vmem:[#allocation11 + $0x358] sm:$0xf] }
 0x3f2   :  { %5432 = vmatpush.bf16.msra.mxu0 %v11741_v25  ;;  %v3882_v25 = vadd.f32 %v3881_v35, %v15916_v18  ;;  %v15973_v41 = vpop.f32.mrf.mxu1  ;;  %v11818_v18 = vld [vmem:[#allocation11 + $0x564] sm:$0xf0]  ;;  %v13600_v44 = vld [vmem:[#allocation11 + $0x28] sm:$0xf0] }
 0x3f3   :  { %16897 = vst [vmem:[#allocation52_spill] sm:$0xff] %v15973_v41  ;;  %v11821_v28 = vor.u32 %v13764_v60, %v11818_v18  ;;  %5362 = vmatmul.bf16.vlgmr.msrb.gmra.mxu0 %v15778_v52  ;;  %v13758_v60 = vld [vmem:[#allocation11 + $0x51c] sm:$0xf]  ;;  %v11798_v18 = vld [vmem:[#allocation11 + $0x534] sm:$0xf0] }
 0x3f4   :  { %5338 = vmatpush.bf16.msrb.mxu3 %v11485_v23  ;;  %v11656_v23 = vld [vmem:[#allocation11 + $0x400] sm:$0xf]  ;;  %v15976_v29 = vadd.f32 %v15904_v48, %v3882_v25  ;;  %v15980_v35 = vpop.f32.mrf.mxu0  ;;  %11922 = vmatmul.msk.bf16.vlgmr.msrb.gmra.mxu1 %vm1382_vm3, %v15839_v11  ;;  %v11401_v48 = vor.u32 %v13659_v8, %v11398_v16  ;;  %v13705_v25 = vld [vmem:[#allocation11 + $0x370] sm:$0xf0]  ;;  %v13712_v8 = vld [vmem:[#allocation11 + $0x3a8] sm:$0xf0] }
 0x3f5   :  { %5395 = vmatpush.bf16.msrb.mxu2 %v11265_v40  ;;  %v11429_v40 = vor.u32 %v13666_v53, %v11426_v22  ;;  %5379 = vmatpush.bf16.msra.mxu1 %v11849_v26  ;;  %v13652_v26 = vld [vmem:[#allocation11 + $0x1cc] sm:$0xf]  ;;  %v11370_v53 = vld [vmem:[#allocation11 + $0x1e4] sm:$0xf0]  ;;  %v11629_v22 = vor.u32 %v13719_v45, %v11628_v2  ;;  %v11350_v16 = vld [vmem:[#allocation11 + $0x1b4] sm:$0xf0]  ;;  %v11573_v2 = vor.u32 %v13705_v25, %v11572_v61 }
 0x3f6   :  { %5433 = vmatpush.bf16.msra.mxu0 %v11713_v34  ;;  %16898 = vst [vmem:[#allocation38_spill] sm:$0xff] %v15976_v29  ;;  %v15978_v54 = vpop.f32.mrf.mxu2  ;;  %v13607_v34 = vld [vmem:[#allocation11 + $0x60] sm:$0xf0]  ;;  %5267 = vmatmul.bf16.vlgmr.msra.gmra.mxu3 %v15841_v4  ;;  %v11516_v61 = vld [vmem:[#allocation11 + $0x2e8] sm:$0xf] }
 0x3f7   :  { %5324 = vmatmul.bf16.vlgmr.msra.gmra.mxu2 %v15781_v6  ;;  %v13639_v29 = vld [vmem:[#allocation11 + $0x164] sm:$0xf] }
 0x3f8   :  { %5339 = vmatpush.bf16.msrb.mxu3 %v11457_v36  ;;  %v11657_v36 = vor.u32 %v13726_v20, %v11656_v23  ;;  %v13646_v23 = vld [vmem:[#allocation11 + $0x19c] sm:$0xf]  ;;  %v13691_v25 = vld [vmem:[#allocation11 + $0x300] sm:$0xf0] }
 0x3f9   :  { %5396 = vmatpush.bf16.msrb.mxu2 %v11237_v37  ;;  %v11181_v37 = vor.u32 %v13607_v34, %v11180_v62  ;;  %5380 = vmatpush.bf16.msra.mxu1 %v11821_v28  ;;  %v11373_v62 = vor.u32 %v13652_v26, %v11370_v53  ;;  %v11153_v34 = vor.u32 %v13600_v44, %v11152_v47  ;;  %v13751_v26 = vld [vmem:[#allocation11 + $0x4e4] sm:$0xf]  ;;  %v11770_v53 = vld [vmem:[#allocation11 + $0x4fc] sm:$0xf0] }
 0x3fa   :  { %5434 = vmatpush.bf16.msra.mxu0 %v11685_v5  ;;  %v3950_v5 = vpop.f32.mrf.mxu3  ;;  %v11353_v45 = vor.u32 %v13646_v23, %v11350_v16  ;;  %v13744_v16 = vld [vmem:[#allocation11 + $0x4ac] sm:$0xf] }
 0x3fb   :  { %v3951_v20 = vadd.f32 %v3950_v5, %v15935_v42  ;;  %v11544_v5 = vld [vmem:[#allocation11 + $0x320] sm:$0xf] }
 0x3fc   :  { %5340 = vmatpush.bf16.msrb.mxu3 %v11429_v40  ;;  %v15988_v40 = vpop.f32.mrf.mxu1  ;;  %v15995_v41 = vpop.f32.mrf.mxu0 }
 0x3fd   :  { %5397 = vmatpush.bf16.msrb.mxu2 %v11209_v63  ;;  %16899 = vst [vmem:[#allocation54_spill] sm:$0xff] %v15988_v40  ;;  %v11600_v63 = vld [vmem:[#allocation11 + $0x390] sm:$0xf]  ;;  %v15991_v28 = vadd.f32 %v15918_v10, %v3951_v20  ;;  %v13698_v40 = vld [vmem:[#allocation11 + $0x338] sm:$0xf0]  ;;  %v11773_v20 = vor.u32 %v13751_v26, %v11770_v53 }
 0x3fe   :  { %5435 = vmatpush.bf16.msra.mxu0 %v11657_v36  ;;  %v15993_v36 = vpop.f32.mrf.mxu2  ;;  %v11601_v42 = vor.u32 %v13712_v8, %v11600_v63  ;;  %v11545_v10 = vor.u32 %v13698_v40, %v11544_v5  ;;  %v13632_v63 = vld [vmem:[#allocation11 + $0x12c] sm:$0xf]  ;;  %v11294_v8 = vld [vmem:[#allocation11 + $0x144] sm:$0xf0]  ;;  %v13737_v5 = vld [vmem:[#allocation11 + $0x474] sm:$0xf] }
 0x400   :  { %5341 = vmatpush.bf16.msrb.mxu3 %v11401_v48  ;;  %v11801_v48 = vor.u32 %v13758_v60, %v11798_v18  ;;  %v13684_v18 = vld [vmem:[#allocation11 + $0x2c8] sm:$0xf0] }
 0x401   :  { %5398 = vmatpush.bf16.msrb.mxu2 %v11181_v37  ;;  %v11322_v37 = vld [vmem:[#allocation11 + $0x17c] sm:$0xf0] }
 0x402   :  { %5436 = vmatpush.bf16.msra.mxu0 %v11629_v22  ;;  %v11325_v47 = vor.u32 %v13639_v29, %v11322_v37  ;;  %v3952_v44 = vpop.f32.mrf.mxu3  ;;  %v11517_v29 = vor.u32 %v13691_v25, %v11516_v61 }
 0x403   :  { %v3953_v22 = vadd.f32 %v3952_v44, %v15949_v46  ;;  %v11488_v46 = vld [vmem:[#allocation11 + $0x2b0] sm:$0xf]  ;;  %5367 = vmatmul.bf16.gmra.mxu0 %v15816_v49  ;;  %v11460_v44 = vld [vmem:[#allocation11 + $0x278] sm:$0xf] }
 0x404   :  { %5342 = vmatpush.bf16.msrb.mxu3 %v11373_v62  ;;  %v15998_v23 = vpop.f32.mrf.mxu1  ;;  %v11742_v62 = vld [vmem:[#allocation11 + $0x4c4] sm:$0xf0]  ;;  %v16005_v40 = vpop.f32.mrf.mxu0  ;;  %11923 = vmatmul.msk.bf16.gmra.mxu1 %vm1382_vm3, %v15876_v0  ;;  %v11489_v37 = vor.u32 %v13684_v18, %v11488_v46 }
 0x405   :  { %5399 = vmatpush.bf16.msrb.mxu2 %v11153_v34  ;;  %16900 = vst [vmem:[#allocation40_spill] sm:$0xff] %v15998_v23  ;;  %v16001_v34 = vadd.f32 %v15937_v7, %v3953_v22  ;;  %v11266_v7 = vld [vmem:[#allocation11 + $0x10c] sm:$0xf0] }
 0x406   :  { %5437 = vmatpush.bf16.msra.mxu0 %v11601_v42  ;;  %v16003_v60 = vpop.f32.mrf.mxu2  ;;  %5272 = vmatmul.bf16.gmra.mxu3 %v15883_v31  ;;  %v13625_v42 = vld [vmem:[#allocation11 + $0xf4] sm:$0xf] }
 0x407   :  { %16901 = vst [vmem:[#allocation56_spill] sm:$0xff] %v16001_v34  ;;  %5329 = vmatmul.bf16.gmra.mxu2 %v15818_v56  ;;  %v11269_v53 = vor.u32 %v13625_v42, %v11266_v7  ;;  %v11880_v7 = vld [vmem:[#allocation11 + $0x5c0] sm:$0xf]  ;;  %v13663_v34 = vld [vmem:[#allocation11 + $0x220] sm:$0xf0] }
 0x408   :  { %5411 = vmatpush.bf16.msra.mxu3 %v11573_v2  ;;  %v11297_v2 = vor.u32 %v13632_v63, %v11294_v8  ;;  %v13677_v63 = vld [vmem:[#allocation11 + $0x290] sm:$0xf0]  ;;  %v13618_v8 = vld [vmem:[#allocation11 + $0xbc] sm:$0xf] }
 0x409   :  { %5468 = vmatpush.bf16.msra.mxu2 %v11353_v45  ;;  %v11745_v45 = vor.u32 %v13744_v16, %v11742_v62  ;;  %v11238_v16 = vld [vmem:[#allocation11 + $0xd4] sm:$0xf0]  ;;  %v13730_v62 = vld [vmem:[#allocation11 + $0x43c] sm:$0xf]  ;;  %v11461_v42 = vor.u32 %v13677_v63, %v11460_v44  ;;  %v13775_v44 = vld [vmem:[#allocation11 + $0x5a0] sm:$0xf0] }
 0x40a   :  { %5506 = vmatpush.bf16.msrb.mxu0 %v11801_v48  ;;  %v11714_v48 = vld [vmem:[#allocation11 + $0x48c] sm:$0xf0]  ;;  %v3955_v26 = vpop.f32.mrf.mxu3 }
 0x40b   :  { %v3956_v61 = vadd.f32 %v3955_v26, %v15968_v14  ;;  %v11717_v22 = vor.u32 %v13737_v5, %v11714_v48  ;;  %v11241_v5 = vor.u32 %v13618_v8, %v11238_v16 }
 0x40c   :  { %5412 = vmatpush.bf16.msra.mxu3 %v11545_v10  ;;  %v11908_v10 = vld [vmem:[#allocation11 + $0x5f8] sm:$0xf]  ;;  %v16013_v25 = vpop.f32.mrf.mxu1  ;;  %v16020_v14 = vpop.f32.mrf.mxu0 }
 0x40d   :  { %5469 = vmatpush.bf16.msra.mxu2 %v11325_v47  ;;  %v13789_v47 = vld [vmem:[#allocation11 + $0x610] sm:$0xf0]  ;;  %16902 = vst [vmem:[#allocation42_spill] sm:$0xff] %v16013_v25  ;;  %v16016_v46 = vadd.f32 %v15951_v32, %v3956_v61  ;;  %v11210_v25 = vld [vmem:[#allocation11 + $0x9c] sm:$0xf0] }
 0x40e   :  { %5507 = vmatpush.bf16.msrb.mxu0 %v11773_v20  ;;  %v11909_v20 = vor.u32 %v13789_v47, %v11908_v10  ;;  %v16018_v18 = vpop.f32.mrf.mxu2  ;;  %v13670_v10 = vld [vmem:[#allocation11 + $0x258] sm:$0xf0]  ;;  %v13611_v47 = vld [vmem:[#allocation11 + $0x84] sm:$0xf]  ;;  %v11852_v32 = vld [vmem:[#allocation11 + $0x588] sm:$0xf] }
 0x40f   :  { %16903 = vst [vmem:[#allocation43_spill] sm:$0xff] %v16016_v46  ;;  %v11853_v23 = vor.u32 %v13775_v44, %v11852_v32  ;;  %v11404_v46 = vld [vmem:[#allocation11 + $0x208] sm:$0xf]  ;;  %v11213_v8 = vor.u32 %v13611_v47, %v11210_v25  ;;  %v13768_v25 = vld [vmem:[#allocation11 + $0x568] sm:$0xf0] }
 0x410   :  { %5413 = vmatpush.bf16.msra.mxu3 %v11517_v29  ;;  %v11686_v29 = vld [vmem:[#allocation11 + $0x454] sm:$0xf0]  ;;  %5453 = vmatpush.bf16.msrb.mxu1 %v11909_v20  ;;  %v11658_v20 = vld [vmem:[#allocation11 + $0x41c] sm:$0xf0]  ;;  %v13656_v47 = vld [vmem:[#allocation11 + $0x1e8] sm:$0xf0] }
 0x411   :  { %5470 = vmatpush.bf16.msra.mxu2 %v11297_v2  ;;  %v13782_v2 = vld [vmem:[#allocation11 + $0x5d8] sm:$0xf0]  ;;  %v11689_v48 = vor.u32 %v13730_v62, %v11686_v29  ;;  %v13604_v62 = vld [vmem:[#allocation11 + $0x4c] sm:$0xf]  ;;  %v11182_v29 = vld [vmem:[#allocation11 + $0x64] sm:$0xf0] }
 0x412   :  { %5508 = vmatpush.bf16.msrb.mxu0 %v11745_v45  ;;  %v11432_v45 = vld [vmem:[#allocation11 + $0x240] sm:$0xf]  ;;  %v11881_v26 = vor.u32 %v13782_v2, %v11880_v7  ;;  %v3957_v63 = vpop.f32.mrf.mxu3  ;;  %v11405_v2 = vor.u32 %v13663_v34, %v11404_v46  ;;  %v11154_v34 = vld [vmem:[#allocation11 + $0x2c] sm:$0xf0]  ;;  %v13702_v44 = vld [vmem:[#allocation11 + $0x35c] sm:$0xf] }
 0x413   :  { %v11433_v61 = vor.u32 %v13670_v10, %v11432_v45  ;;  %v13716_v45 = vld [vmem:[#allocation11 + $0x3cc] sm:$0xf]  ;;  %5438 = vmatmul.bf16.vlgmr.msra.gmra.mxu0 %v15778_v52 }
 0x414   :  { %5414 = vmatpush.bf16.msra.mxu3 %v11489_v37  ;;  %5454 = vmatpush.bf16.msrb.mxu1 %v11881_v26  ;;  %v13723_v37 = vld [vmem:[#allocation11 + $0x404] sm:$0xf]  ;;  %v11630_v26 = vld [vmem:[#allocation11 + $0x3e4] sm:$0xf0]  ;;  %v16030_v10 = vpop.f32.mrf.mxu0 }
 0x415   :  { %5471 = vmatpush.bf16.msra.mxu2 %v11269_v53  ;;  %v3958_v53 = vadd.f32 %v3957_v63, %v15978_v54  ;;  %v11661_v16 = vor.u32 %v13723_v37, %v11658_v20  ;;  %11924 = vmatmul.msk.bf16.vlgmr.msra.gmra.mxu1 %vm1382_vm3, %v15839_v11  ;;  %v11824_v54 = vld [vmem:[#allocation11 + $0x550] sm:$0xf]  ;;  %v11633_v32 = vor.u32 %v13716_v45, %v11630_v26  ;;  %v11574_v63 = vld [vmem:[#allocation11 + $0x374] sm:$0xf0]  ;;  %v13650_v45 = vld [vmem:[#allocation11 + $0x1b8] sm:$0xf0] }
 0x416   :  { %5509 = vmatpush.bf16.msrb.mxu0 %v11717_v22  ;;  %v16023_v22 = vpop.f32.mrf.mxu1  ;;  %v16028_v7 = vpop.f32.mrf.mxu2  ;;  %5343 = vmatmul.bf16.vlgmr.msrb.gmra.mxu3 %v15841_v4  ;;  %v11602_v37 = vld [vmem:[#allocation11 + $0x3ac] sm:$0xf0]  ;;  %v11804_v26 = vld [vmem:[#allocation11 + $0x520] sm:$0xf] }
 0x417   :  { %16904 = vst [vmem:[#allocation53_spill] sm:$0xff] %v16023_v22  ;;  %5400 = vmatmul.bf16.vlgmr.msrb.gmra.mxu2 %v15781_v6 }
 0x418   :  { %5415 = vmatpush.bf16.msra.mxu3 %v11461_v42  ;;  %v16026_v42 = vadd.f32 %v15970_v13, %v3958_v53  ;;  %5455 = vmatpush.bf16.msrb.mxu1 %v11853_v23  ;;  %v11185_v13 = vor.u32 %v13604_v62, %v11182_v29  ;;  %v13597_v23 = vld [vmem:[#allocation11 + $0x14] sm:$0xf]  ;;  %v11356_v53 = vld [vmem:[#allocation11 + $0x1a0] sm:$0xf]  ;;  %v11577_v29 = vor.u32 %v13702_v44, %v11574_v63  ;;  %v13688_v44 = vld [vmem:[#allocation11 + $0x2ec] sm:$0xf] }
 0x419   :  { %5472 = vmatpush.bf16.msra.mxu2 %v11241_v5  ;;  %v11376_v5 = vld [vmem:[#allocation11 + $0x1d0] sm:$0xf]  ;;  %v11518_v63 = vld [vmem:[#allocation11 + $0x304] sm:$0xf0] }
 0x41a   :  { %5510 = vmatpush.bf16.msrb.mxu0 %v11689_v48  ;;  %v11825_v48 = vor.u32 %v13768_v25, %v11824_v54  ;;  %v11377_v46 = vor.u32 %v13656_v47, %v11376_v5  ;;  %v4026_v20 = vpop.f32.mrf.mxu3  ;;  %v11357_v25 = vor.u32 %v13650_v45, %v11356_v53 }
 0x41c   :  { %5416 = vmatpush.bf16.msra.mxu3 %v11433_v61  ;;  %v13709_v61 = vld [vmem:[#allocation11 + $0x394] sm:$0xf]  ;;  %5456 = vmatpush.bf16.msrb.mxu1 %v11825_v48 }
 0x41d   :  { %5473 = vmatpush.bf16.msra.mxu2 %v11213_v8  ;;  %v4027_v8 = vadd.f32 %v4026_v20, %v15993_v36  ;;  %v11605_v54 = vor.u32 %v13709_v61, %v11602_v37  ;;  %v16046_v36 = vpop.f32.mrf.mxu0  ;;  %v13643_v61 = vld [vmem:[#allocation11 + $0x180] sm:$0xf0]  ;;  %v11776_v37 = vld [vmem:[#allocation11 + $0x4e8] sm:$0xf] }
 0x41e   :  { %5511 = vmatpush.bf16.msrb.mxu0 %v11661_v16  ;;  %v16038_v62 = vpop.f32.mrf.mxu1  ;;  %v11157_v16 = vor.u32 %v13597_v23, %v11154_v34  ;;  %v5097_v48 = vpop.f32.mrf.mxu2  ;;  %v11546_v23 = vld [vmem:[#allocation11 + $0x33c] sm:$0xf0]  ;;  %v11328_v34 = vld [vmem:[#allocation11 + $0x168] sm:$0xf] }
 0x41f   :  { %v16041_v5 = vadd.f32 %v15980_v35, %v4027_v8  ;;  %v16044_v22 = vadd.f32 %v5097_v48, %v15758_v50  ;;  %v13755_v35 = vld [vmem:[#allocation11 + $0x500] sm:$0xf0]  ;;  %v11329_v20 = vor.u32 %v13643_v61, %v11328_v34  ;;  %v11300_v50 = vld [vmem:[#allocation11 + $0x130] sm:$0xf]  ;;  %v11521_v8 = vor.u32 %v13688_v44, %v11518_v63  ;;  %v13629_v61 = vld [vmem:[#allocation11 + $0x110] sm:$0xf0] }
 0x420   :  { %5417 = vmatpush.bf16.msra.mxu3 %v11405_v2  ;;  %v13762_v2 = vld [vmem:[#allocation11 + $0x538] sm:$0xf0]  ;;  %v11490_v34 = vld [vmem:[#allocation11 + $0x2cc] sm:$0xf0]  ;;  %v11910_v63 = vld [vmem:[#allocation11 + $0x614] sm:$0xf0] }
 0x421   :  { %5474 = vmatpush.bf16.msra.mxu2 %v11185_v13  ;;  %v11805_v47 = vor.u32 %v13762_v2, %v11804_v26  ;;  %v13695_v13 = vld [vmem:[#allocation11 + $0x324] sm:$0xf]  ;;  %v11748_v26 = vld [vmem:[#allocation11 + $0x4b0] sm:$0xf]  ;;  %v13748_v2 = vld [vmem:[#allocation11 + $0x4c8] sm:$0xf0] }
 0x422   :  { %5512 = vmatpush.bf16.msrb.mxu0 %v11633_v32  ;;  %v11549_v32 = vor.u32 %v13695_v13, %v11546_v23  ;;  %v4028_v53 = vpop.f32.mrf.mxu3  ;;  %v13681_v23 = vld [vmem:[#allocation11 + $0x2b4] sm:$0xf]  ;;  %v13786_v44 = vld [vmem:[#allocation11 + $0x5fc] sm:$0xf] }
 0x423   :  { %5443 = vmatmul.bf16.gmra.mxu0 %v15816_v49 }
 0x424   :  { %5418 = vmatpush.bf16.msra.mxu3 %v11377_v46  ;;  %v11777_v46 = vor.u32 %v13755_v35, %v11776_v37  ;;  %v11720_v37 = vld [vmem:[#allocation11 + $0x478] sm:$0xf]  ;;  %v13741_v35 = vld [vmem:[#allocation11 + $0x490] sm:$0xf0] }
 0x425   :  { %5475 = vmatpush.bf16.msra.mxu2 %v11157_v16  ;;  %v4029_v16 = vadd.f32 %v4028_v53, %v16003_v60  ;;  %v16057_v13 = vpop.f32.mrf.mxu0  ;;  %11925 = vmatmul.msk.bf16.gmra.mxu1 %vm1382_vm3, %v15876_v0  ;;  %v11749_v60 = vor.u32 %v13748_v2, %v11748_v26  ;;  %v11244_v26 = vld [vmem:[#allocation11 + $0xc0] sm:$0xf]  ;;  %v13622_v2 = vld [vmem:[#allocation11 + $0xd8] sm:$0xf0] }
 0x426   :  { %5513 = vmatpush.bf16.msrb.mxu0 %v11605_v54  ;;  %v16049_v45 = vpop.f32.mrf.mxu1  ;;  %v5099_v48 = vpop.f32.mrf.mxu2  ;;  %5348 = vmatmul.bf16.gmra.mxu3 %v15883_v31 }
 0x427   :  { %5405 = vmatmul.bf16.gmra.mxu2 %v15818_v56 }
 0x428   :  { %5487 = vmatpush.bf16.msrb.mxu3 %v11577_v29  ;;  %v13636_v29 = vld [vmem:[#allocation11 + $0x148] sm:$0xf0] }
 0x429   :  { %5544 = vmatpush.bf16.msrb.mxu2 %v11357_v25  ;;  %v11301_v54 = vor.u32 %v13636_v29, %v11300_v50  ;;  %v16052_v25 = vadd.f32 %v15995_v41, %v4029_v16  ;;  %v11493_v41 = vor.u32 %v13681_v23, %v11490_v34  ;;  %v13674_v50 = vld [vmem:[#allocation11 + $0x27c] sm:$0xf]  ;;  %v11913_v29 = vor.u32 %v13786_v44, %v11910_v63  ;;  %v11462_v16 = vld [vmem:[#allocation11 + $0x294] sm:$0xf0]  ;;  %v11692_v23 = vld [vmem:[#allocation11 + $0x440] sm:$0xf] }
 0x42a   :  { %5582 = vmatpush.bf16.msra.mxu0 %v11805_v47  ;;  %v16055_v47 = vadd.f32 %v5099_v48, %v15772_v39  ;;  %v11245_v48 = vor.u32 %v13622_v2, %v11244_v26  ;;  %v13734_v34 = vld [vmem:[#allocation11 + $0x458] sm:$0xf0]  ;;  %v11434_v44 = vld [vmem:[#allocation11 + $0x25c] sm:$0xf0]  ;;  %v11216_v63 = vld [vmem:[#allocation11 + $0x88] sm:$0xf] }
 0x42b   :  { %5529 = vmatpush.bf16.msra.mxu1 %v11913_v29  ;;  %v13727_v29 = vld [vmem:[#allocation11 + $0x420] sm:$0xf0]  ;;  %v13772_v26 = vld [vmem:[#allocation11 + $0x58c] sm:$0xf] }
 0x42c   :  { %5488 = vmatpush.bf16.msrb.mxu3 %v11549_v32  ;;  %v11272_v32 = vld [vmem:[#allocation11 + $0xf8] sm:$0xf] }
 0x42d   :  { %5545 = vmatpush.bf16.msrb.mxu2 %v11329_v20  ;;  %v11273_v39 = vor.u32 %v13629_v61, %v11272_v32  ;;  %v4031_v20 = vpop.f32.mrf.mxu3 }
 0x42e   :  { %5583 = vmatpush.bf16.msra.mxu0 %v11777_v46  ;;  %v11721_v46 = vor.u32 %v13741_v35, %v11720_v37  ;;  %v4032_v53 = vadd.f32 %v4031_v20, %v16018_v18  ;;  %v5102_v32 = vpop.f32.mrf.mxu2  ;;  %v16073_v18 = vpop.f32.mrf.mxu0  ;;  %v13779_v37 = vld [vmem:[#allocation11 + $0x5c4] sm:$0xf]  ;;  %v11882_v35 = vld [vmem:[#allocation11 + $0x5dc] sm:$0xf0] }
 0x42f   :  { %v16071_v61 = vadd.f32 %v5102_v32, %v15795_v17  ;;  %v11885_v20 = vor.u32 %v13779_v37, %v11882_v35  ;;  %v11188_v37 = vld [vmem:[#allocation11 + $0x50] sm:$0xf]  ;;  %v13608_v35 = vld [vmem:[#allocation11 + $0x68] sm:$0xf0] }
 0x430   :  { %5489 = vmatpush.bf16.msrb.mxu3 %v11521_v8  ;;  %v16065_v8 = vpop.f32.mrf.mxu1 }
 0x431   :  { %5546 = vmatpush.bf16.msrb.mxu2 %v11301_v54  ;;  %16905 = vst [vmem:[#allocation57_spill] sm:$0xff] %v16065_v8  ;;  %v11465_v54 = vor.u32 %v13674_v50, %v11462_v16  ;;  %v13615_v50 = vld [vmem:[#allocation11 + $0xa0] sm:$0xf0]  ;;  %v11664_v16 = vld [vmem:[#allocation11 + $0x408] sm:$0xf]  ;;  %5530 = vmatpush.bf16.msra.mxu1 %v11885_v20 }
 0x432   :  { %5584 = vmatpush.bf16.msra.mxu0 %v11749_v60  ;;  %v16068_v60 = vadd.f32 %v16005_v40, %v4032_v53  ;;  %v11217_v53 = vor.u32 %v13615_v50, %v11216_v63  ;;  %v11665_v2 = vor.u32 %v13727_v29, %v11664_v16  ;;  %v11636_v8 = vld [vmem:[#allocation11 + $0x3d0] sm:$0xf]  ;;  %v13720_v63 = vld [vmem:[#allocation11 + $0x3e8] sm:$0xf0]  ;;  %v13653_v29 = vld [vmem:[#allocation11 + $0x1d4] sm:$0xf] }
 0x433   :  { %5514 = vmatmul.bf16.vlgmr.msrb.gmra.mxu0 %v15778_v52 }
 0x434   :  { %5490 = vmatpush.bf16.msrb.mxu3 %v11493_v41  ;;  %v11693_v41 = vor.u32 %v13734_v34, %v11692_v23  ;;  %v13660_v23 = vld [vmem:[#allocation11 + $0x20c] sm:$0xf] }
 0x435   :  { %5547 = vmatpush.bf16.msrb.mxu2 %v11273_v39  ;;  %v13667_v39 = vld [vmem:[#allocation11 + $0x244] sm:$0xf]  ;;  %v4033_v17 = vpop.f32.mrf.mxu3  ;;  %11926 = vmatmul.msk.bf16.vlgmr.msrb.gmra.mxu1 %vm1382_vm3, %v15839_v11 }
 0x436   :  { %5585 = vmatpush.bf16.msra.mxu0 %v11721_v46  ;;  %v11437_v40 = vor.u32 %v13667_v39, %v11434_v44  ;;  %v11854_v46 = vld [vmem:[#allocation11 + $0x5a4] sm:$0xf0]  ;;  %v4034_v34 = vadd.f32 %v4033_v17, %v16028_v7  ;;  %v11189_v44 = vor.u32 %v13608_v35, %v11188_v37  ;;  %v16082_v16 = vpop.f32.mrf.mxu0  ;;  %v11637_v7 = vor.u32 %v13720_v63, %v11636_v8  ;;  %v11160_v17 = vld [vmem:[#allocation11 + $0x18] sm:$0xf]  ;;  %v13706_v37 = vld [vmem:[#allocation11 + $0x378] sm:$0xf0] }
 0x437   :  { %5419 = vmatmul.bf16.vlgmr.msra.gmra.mxu3 %v15841_v4  ;;  %5476 = vmatmul.bf16.vlgmr.msra.gmra.mxu2 %v15781_v6  ;;  %v12130_v35 = vld [vmem:[#allocation11 + $0xdc8] sm:$0xf] }
 0x438   :  { %5491 = vmatpush.bf16.msrb.mxu3 %v11465_v54  ;;  %v11406_v54 = vld [vmem:[#allocation11 + $0x224] sm:$0xf0]  ;;  %v5154_v32 = vpop.f32.mrf.mxu1  ;;  %v16077_v50 = vadd.f32 %v16020_v14, %v4034_v34  ;;  %v13713_v34 = vld [vmem:[#allocation11 + $0x3b0] sm:$0xf0] }
 0x439   :  { %5548 = vmatpush.bf16.msrb.mxu2 %v11245_v48  ;;  %v11857_v48 = vor.u32 %v13772_v26, %v11854_v46  ;;  %v11409_v39 = vor.u32 %v13660_v23, %v11406_v54  ;;  %v11378_v26 = vld [vmem:[#allocation11 + $0x1ec] sm:$0xf0]  ;;  %v11608_v54 = vld [vmem:[#allocation11 + $0x398] sm:$0xf] }
 0x43a   :  { %5586 = vmatpush.bf16.msra.mxu0 %v11693_v41  ;;  %v5104_v41 = vpop.f32.mrf.mxu2  ;;  %v11381_v46 = vor.u32 %v13653_v29, %v11378_v26 }
 0x43b   :  { %v16080_v20 = vadd.f32 %v5104_v41, %v15809_v58  ;;  %5531 = vmatpush.bf16.msra.mxu1 %v11857_v48  ;;  %v13601_v58 = vld [vmem:[#allocation11 + $0x30] sm:$0xf0]  ;;  %v11580_v48 = vld [vmem:[#allocation11 + $0x360] sm:$0xf]  ;;  %v14039_v41 = vld [vmem:[#allocation11 + $0xde0] sm:$0xf0] }
 0x43c   :  { %5492 = vmatpush.bf16.msrb.mxu3 %v11437_v40  ;;  %v13765_v40 = vld [vmem:[#allocation11 + $0x554] sm:$0xf]  ;;  %v11161_v23 = vor.u32 %v13601_v58, %v11160_v17  ;;  %v11581_v63 = vor.u32 %v13706_v37, %v11580_v48  ;;  %v12131_v29 = vor.u32 %v14039_v41, %v12130_v35  ;;  %v12550_v48 = vld [vmem:[#allocation11 + $0x1110] sm:$0xf]  ;;  %v14144_v37 = vld [vmem:[#allocation11 + $0x1128] sm:$0xf0] }
 0x43d   :  { %5549 = vmatpush.bf16.msrb.mxu2 %v11217_v53  ;;  %v11826_v53 = vld [vmem:[#allocation11 + $0x56c] sm:$0xf0]  ;;  %v5116_v8 = vpop.f32.mrf.mxu3  ;;  %v12551_v35 = vor.u32 %v14144_v37, %v12550_v48  ;;  %v13685_v48 = vld [vmem:[#allocation11 + $0x2d0] sm:$0xf0]  ;;  %v12046_v37 = vld [vmem:[#allocation11 + $0xd20] sm:$0xf] }
 0x43e   :  { %5587 = vmatpush.bf16.msra.mxu0 %v11665_v2  ;;  %v11829_v14 = vor.u32 %v13765_v40, %v11826_v53  ;;  %v11609_v2 = vor.u32 %v13713_v34, %v11608_v54  ;;  %v12578_v40 = vld [vmem:[#allocation11 + $0x1148] sm:$0xf]  ;;  %v14151_v53 = vld [vmem:[#allocation11 + $0x1160] sm:$0xf0]  ;;  %v16094_v54 = vpop.f32.mrf.mxu0 }
 0x43f   :  { %v12579_v26 = vor.u32 %v14151_v53, %v12578_v40  ;;  %v13699_v34 = vld [vmem:[#allocation11 + $0x340] sm:$0xf0]  ;;  %v12522_v53 = vld [vmem:[#allocation11 + $0x10d8] sm:$0xf] }
 0x440   :  { %5493 = vmatpush.bf16.msrb.mxu3 %v11409_v39  ;;  %v5117_v39 = vadd.f32 %v5116_v8, %v16044_v22  ;;  %5532 = vmatpush.bf16.msra.mxu1 %v11829_v14  ;;  %v11552_v14 = vld [vmem:[#allocation11 + $0x328] sm:$0xf]  ;;  %v14032_v8 = vld [vmem:[#allocation11 + $0xda8] sm:$0xf0] }
 0x441   :  { %5550 = vmatpush.bf16.msrb.mxu2 %v11189_v44  ;;  %v5156_v44 = vpop.f32.mrf.mxu1 }
 0x442   :  { %5588 = vmatpush.bf16.msra.mxu0 %v11637_v7  ;;  %v5136_v17 = vadd.f32 %v16030_v10, %v5117_v39  ;;  %v5173_v58 = vpop.f32.mrf.mxu2  ;;  %v11524_v39 = vld [vmem:[#allocation11 + $0x2f0] sm:$0xf] }
 0x443   :  { %v16092_v7 = vadd.f32 %v5173_v58, %v15834_v59  ;;  %v12074_v59 = vld [vmem:[#allocation11 + $0xd58] sm:$0xf]  ;;  %5519 = vmatmul.bf16.gmra.mxu0 %v15816_v49 }
 0x444   :  { %5494 = vmatpush.bf16.msrb.mxu3 %v11381_v46  ;;  %v16096_v22 = vadd.f32 %v5154_v32, %v5136_v17  ;;  %v12102_v46 = vld [vmem:[#allocation11 + $0xd90] sm:$0xf]  ;;  %v14137_v32 = vld [vmem:[#allocation11 + $0x10f0] sm:$0xf0] }
 0x445   :  { %5551 = vmatpush.bf16.msrb.mxu2 %v11161_v23  ;;  %v11553_v23 = vor.u32 %v13699_v34, %v11552_v14  ;;  %v12103_v10 = vor.u32 %v14032_v8, %v12102_v46  ;;  %v5118_v41 = vpop.f32.mrf.mxu3  ;;  %v12523_v58 = vor.u32 %v14137_v32, %v12522_v53  ;;  %11927 = vmatmul.msk.bf16.gmra.mxu1 %vm1382_vm3, %v15876_v0 }
 0x446   :  { %5589 = vmatpush.bf16.msra.mxu0 %v11609_v2  ;;  %v14025_v2 = vld [vmem:[#allocation11 + $0xd70] sm:$0xf0]  ;;  %v16103_v8 = vpop.f32.mrf.mxu0 }
 0x447   :  { %v12075_v17 = vor.u32 %v14025_v2, %v12074_v59  ;;  %5424 = vmatmul.bf16.gmra.mxu3 %v15883_v31  ;;  %5481 = vmatmul.bf16.gmra.mxu2 %v15818_v56 }
 0x448   :  { %5563 = vmatpush.bf16.msra.mxu3 %v11581_v63  ;;  %v13692_v63 = vld [vmem:[#allocation11 + $0x308] sm:$0xf0] }
 0x449   :  { %6902 = vmatpush.bf16.msra.mxu2 %v12131_v29  ;;  %v11525_v40 = vor.u32 %v13692_v63, %v11524_v39  ;;  %v5119_v29 = vadd.f32 %v5118_v41, %v16055_v47  ;;  %v11496_v47 = vld [vmem:[#allocation11 + $0x2b8] sm:$0xf]  ;;  %v13790_v41 = vld [vmem:[#allocation11 + $0x618] sm:$0xf0] }
 0x44a   :  { %6940 = vmatpush.bf16.msrb.mxu0 %v12579_v26  ;;  %v5159_v26 = vpop.f32.mrf.mxu1  ;;  %v5175_v34 = vpop.f32.mrf.mxu2 }
 0x44b   :  { %v5138_v14 = vadd.f32 %v16046_v36, %v5119_v29  ;;  %v16101_v46 = vadd.f32 %v5175_v34, %v15855_v38  ;;  %v11497_v36 = vor.u32 %v13685_v48, %v11496_v47  ;;  %v14130_v38 = vld [vmem:[#allocation11 + $0x10b8] sm:$0xf0]  ;;  %v12466_v47 = vld [vmem:[#allocation11 + $0x1068] sm:$0xf]  ;;  %v14123_v48 = vld [vmem:[#allocation11 + $0x1080] sm:$0xf0] }
 0x44c   :  { %5564 = vmatpush.bf16.msra.mxu3 %v11553_v23  ;;  %v13678_v29 = vld [vmem:[#allocation11 + $0x298] sm:$0xf0] }
 0x44d   :  { %6903 = vmatpush.bf16.msra.mxu2 %v12103_v10  ;;  %v16107_v23 = vadd.f32 %v5156_v44, %v5138_v14  ;;  %v14018_v10 = vld [vmem:[#allocation11 + $0xd38] sm:$0xf0]  ;;  %v5121_v59 = vpop.f32.mrf.mxu3  ;;  %v11916_v44 = vld [vmem:[#allocation11 + $0x600] sm:$0xf] }
 0x44e   :  { %6941 = vmatpush.bf16.msrb.mxu0 %v12551_v35  ;;  %v12494_v35 = vld [vmem:[#allocation11 + $0x10a0] sm:$0xf]  ;;  %v12047_v39 = vor.u32 %v14018_v10, %v12046_v37  ;;  %v5122_v2 = vadd.f32 %v5121_v59, %v16071_v61  ;;  %v11917_v32 = vor.u32 %v13790_v41, %v11916_v44  ;;  %v16117_v61 = vpop.f32.mrf.mxu0  ;;  %v11440_v59 = vld [vmem:[#allocation11 + $0x248] sm:$0xf]  ;;  %v13671_v41 = vld [vmem:[#allocation11 + $0x260] sm:$0xf0] }
 0x44f   :  { %v12495_v63 = vor.u32 %v14130_v38, %v12494_v35 }
 0x450   :  { %5565 = vmatpush.bf16.msra.mxu3 %v11525_v40  ;;  %v11468_v40 = vld [vmem:[#allocation11 + $0x280] sm:$0xf]  ;;  %v5141_v37 = vadd.f32 %v16057_v13, %v5122_v2  ;;  %5605 = vmatpush.bf16.msrb.mxu1 %v11917_v32  ;;  %v14004_v13 = vld [vmem:[#allocation11 + $0xcc8] sm:$0xf0]  ;;  %v11441_v2 = vor.u32 %v13671_v41, %v11440_v59 }
 0x451   :  { %6904 = vmatpush.bf16.msra.mxu2 %v12075_v17  ;;  %v12018_v17 = vld [vmem:[#allocation11 + $0xce8] sm:$0xf]  ;;  %v11469_v14 = vor.u32 %v13678_v29, %v11468_v40  ;;  %v11990_v40 = vld [vmem:[#allocation11 + $0xcb0] sm:$0xf] }
 0x452   :  { %6942 = vmatpush.bf16.msrb.mxu0 %v12523_v58  ;;  %v5161_v53 = vpop.f32.mrf.mxu1  ;;  %v14011_v58 = vld [vmem:[#allocation11 + $0xd00] sm:$0xf0]  ;;  %v5178_v10 = vpop.f32.mrf.mxu2  ;;  %v16119_v38 = vadd.f32 %v5159_v26, %v5141_v37  ;;  %v11991_v32 = vor.u32 %v14004_v13, %v11990_v40  ;;  %v12438_v29 = vld [vmem:[#allocation11 + $0x1030] sm:$0xf]  ;;  %v14109_v40 = vld [vmem:[#allocation11 + $0x1010] sm:$0xf0] }
 0x453   :  { %v12019_v34 = vor.u32 %v14011_v58, %v12018_v17  ;;  %v16115_v35 = vadd.f32 %v5178_v10, %v15871_v3  ;;  %v14116_v17 = vld [vmem:[#allocation11 + $0x1048] sm:$0xf0]  ;;  %v11860_v3 = vld [vmem:[#allocation11 + $0x590] sm:$0xf]  ;;  %5590 = vmatmul.bf16.vlgmr.msra.gmra.mxu0 %v15778_v52  ;;  %v12580_v52 = vld [vmem:[#allocation11 + $0x1164] sm:$0xf0] }
 0x454   :  { %5566 = vmatpush.bf16.msra.mxu3 %v11497_v36  ;;  %v12467_v36 = vor.u32 %v14123_v48, %v12466_v47  ;;  %v12439_v47 = vor.u32 %v14116_v17, %v12438_v29  ;;  %v11412_v26 = vld [vmem:[#allocation11 + $0x210] sm:$0xf]  ;;  %v13664_v48 = vld [vmem:[#allocation11 + $0x228] sm:$0xf0] }
 0x455   :  { %6905 = vmatpush.bf16.msra.mxu2 %v12047_v39  ;;  %v11888_v39 = vld [vmem:[#allocation11 + $0x5c8] sm:$0xf]  ;;  %v5123_v58 = vpop.f32.mrf.mxu3  ;;  %v11413_v59 = vor.u32 %v13664_v48, %v11412_v26  ;;  %11928 = vmatmul.msk.bf16.vlgmr.msra.gmra.mxu1 %vm1382_vm3, %v15839_v11 }
 0x456   :  { %6943 = vmatpush.bf16.msrb.mxu0 %v12495_v63  ;;  %v13783_v63 = vld [vmem:[#allocation11 + $0x5e0] sm:$0xf0]  ;;  %v16126_v17 = vpop.f32.mrf.mxu0 }
 0x457   :  { %v11889_v44 = vor.u32 %v13783_v63, %v11888_v39  ;;  %v13997_v39 = vld [vmem:[#allocation11 + $0xc90] sm:$0xf0]  ;;  %v12410_v63 = vld [vmem:[#allocation11 + $0xff8] sm:$0xf]  ;;  %5495 = vmatmul.bf16.vlgmr.msrb.gmra.mxu3 %v15841_v4  ;;  %5552 = vmatmul.bf16.vlgmr.msrb.gmra.mxu2 %v15781_v6 }
 0x458   :  { %5567 = vmatpush.bf16.msra.mxu3 %v11469_v14  ;;  %v13776_v14 = vld [vmem:[#allocation11 + $0x5a8] sm:$0xf0] }
 0x459   :  { %6906 = vmatpush.bf16.msra.mxu2 %v12019_v34  ;;  %5606 = vmatpush.bf16.msrb.mxu1 %v11889_v44  ;;  %v5124_v34 = vadd.f32 %v5123_v58, %v16080_v20  ;;  %v11861_v10 = vor.u32 %v13776_v14, %v11860_v3  ;;  %v12411_v20 = vor.u32 %v14109_v40, %v12410_v63  ;;  %v13769_v3 = vld [vmem:[#allocation11 + $0x570] sm:$0xf0]  ;;  %v11384_v58 = vld [vmem:[#allocation11 + $0x1d8] sm:$0xf]  ;;  %v13990_v14 = vld [vmem:[#allocation11 + $0xc58] sm:$0xf0] }
 0x45a   :  { %6944 = vmatpush.bf16.msrb.mxu0 %v12467_v36  ;;  %v5230_v37 = vpop.f32.mrf.mxu1  ;;  %v11962_v36 = vld [vmem:[#allocation11 + $0xc78] sm:$0xf]  ;;  %v5180_v44 = vpop.f32.mrf.mxu2  ;;  %v14095_v63 = vld [vmem:[#allocation11 + $0xfa0] sm:$0xf0]  ;;  %v14036_v40 = vld [vmem:[#allocation11 + $0xdcc] sm:$0xf] }
 0x45b   :  { %v11963_v41 = vor.u32 %v13997_v39, %v11962_v36  ;;  %v5143_v13 = vadd.f32 %v16073_v18, %v5124_v34  ;;  %v16124_v29 = vadd.f32 %v5180_v44, %v15892_v43  ;;  %v11934_v43 = vld [vmem:[#allocation11 + $0xc40] sm:$0xf]  ;;  %v14102_v36 = vld [vmem:[#allocation11 + $0xfd8] sm:$0xf0]  ;;  %v12354_v39 = vld [vmem:[#allocation11 + $0xf88] sm:$0xf] }
 0x45c   :  { %5568 = vmatpush.bf16.msra.mxu3 %v11441_v2  ;;  %v11935_v48 = vor.u32 %v13990_v14, %v11934_v43  ;;  %v12382_v34 = vld [vmem:[#allocation11 + $0xfc0] sm:$0xf]  ;;  %v12132_v44 = vld [vmem:[#allocation11 + $0xde4] sm:$0xf0]  ;;  %v14088_v14 = vld [vmem:[#allocation11 + $0xf68] sm:$0xf0] }
 0x45d   :  { %6907 = vmatpush.bf16.msra.mxu2 %v11991_v32  ;;  %v16130_v2 = vadd.f32 %v5161_v53, %v5143_v13  ;;  %5607 = vmatpush.bf16.msrb.mxu1 %v11861_v10  ;;  %v11832_v32 = vld [vmem:[#allocation11 + $0x558] sm:$0xf]  ;;  %v5192_v53 = vpop.f32.mrf.mxu3  ;;  %v12383_v10 = vor.u32 %v14102_v36, %v12382_v34  ;;  %v12355_v13 = vor.u32 %v14095_v63, %v12354_v39  ;;  %v12104_v34 = vld [vmem:[#allocation11 + $0xdac] sm:$0xf0]  ;;  %v14141_v36 = vld [vmem:[#allocation11 + $0x1114] sm:$0xf] }
 0x45e   :  { %6945 = vmatpush.bf16.msrb.mxu0 %v12439_v47  ;;  %v11833_v18 = vor.u32 %v13769_v3, %v11832_v32  ;;  %v13657_v47 = vld [vmem:[#allocation11 + $0x1f0] sm:$0xf0]  ;;  %v14148_v32 = vld [vmem:[#allocation11 + $0x114c] sm:$0xf]  ;;  %v12135_v3 = vor.u32 %v14036_v40, %v12132_v44  ;;  %v16140_v43 = vpop.f32.mrf.mxu0  ;;  %v12298_v63 = vld [vmem:[#allocation11 + $0xf18] sm:$0xf] }
 0x45f   :  { %16906 = vst [vmem:[#allocation27_spill] sm:$0xff] %v16130_v2  ;;  %v11385_v26 = vor.u32 %v13657_v47, %v11384_v58  ;;  %v12583_v58 = vor.u32 %v14148_v32, %v12580_v52  ;;  %v14081_v40 = vld [vmem:[#allocation11 + $0xf30] sm:$0xf0]  ;;  %v14134_v44 = vld [vmem:[#allocation11 + $0x10dc] sm:$0xf] }
 0x460   :  { %5569 = vmatpush.bf16.msra.mxu3 %v11413_v59  ;;  %v5193_v59 = vadd.f32 %v5192_v53, %v16092_v7  ;;  %v12552_v53 = vld [vmem:[#allocation11 + $0x112c] sm:$0xf0] }
 0x461   :  { %6908 = vmatpush.bf16.msra.mxu2 %v11963_v41  ;;  %5608 = vmatpush.bf16.msrb.mxu1 %v11833_v18  ;;  %v12326_v18 = vld [vmem:[#allocation11 + $0xf50] sm:$0xf]  ;;  %v12555_v39 = vor.u32 %v14141_v36, %v12552_v53  ;;  %v12048_v36 = vld [vmem:[#allocation11 + $0xd3c] sm:$0xf0]  ;;  %v14127_v53 = vld [vmem:[#allocation11 + $0x10a4] sm:$0xf] }
 0x462   :  { %6946 = vmatpush.bf16.msrb.mxu0 %v12411_v20  ;;  %v5232_v41 = vpop.f32.mrf.mxu1  ;;  %v5212_v6 = vadd.f32 %v16082_v16, %v5193_v59  ;;  %v5249_v47 = vpop.f32.mrf.mxu2 }
 0x463   :  { %v16138_v20 = vadd.f32 %v5249_v47, %v15908_v21  ;;  %v14022_v21 = vld [vmem:[#allocation11 + $0xd5c] sm:$0xf]  ;;  %5595 = vmatmul.bf16.gmra.mxu0 %v15816_v49 }
 0x464   :  { %5570 = vmatpush.bf16.msra.mxu3 %v11385_v26  ;;  %v16142_v7 = vadd.f32 %v5230_v37, %v5212_v6  ;;  %v14029_v26 = vld [vmem:[#allocation11 + $0xd94] sm:$0xf]  ;;  %v12524_v37 = vld [vmem:[#allocation11 + $0x10f4] sm:$0xf0] }
 0x465   :  { %6909 = vmatpush.bf16.msra.mxu2 %v11935_v48  ;;  %v12327_v48 = vor.u32 %v14088_v14, %v12326_v18  ;;  %v12107_v16 = vor.u32 %v14029_v26, %v12104_v34  ;;  %v5194_v59 = vpop.f32.mrf.mxu3  ;;  %11929 = vmatmul.msk.bf16.gmra.mxu1 %vm1382_vm3, %v15876_v0  ;;  %v14015_v34 = vld [vmem:[#allocation11 + $0xd24] sm:$0xf] }
 0x466   :  { %6947 = vmatpush.bf16.msrb.mxu0 %v12383_v10  ;;  %v12076_v10 = vld [vmem:[#allocation11 + $0xd74] sm:$0xf0]  ;;  %v5195_v32 = vadd.f32 %v5194_v59, %v16101_v46  ;;  %v16149_v14 = vpop.f32.mrf.mxu0  ;;  %v12270_v46 = vld [vmem:[#allocation11 + $0xee0] sm:$0xf] }
 0x467   :  { %5500 = vmatmul.bf16.gmra.mxu3 %v15883_v31  ;;  %5557 = vmatmul.bf16.gmra.mxu2 %v15818_v56 }
 0x468   :  { %6921 = vmatpush.bf16.msrb.mxu3 %v12355_v13  ;;  %v12299_v13 = vor.u32 %v14081_v40, %v12298_v63  ;;  %v5214_v6 = vadd.f32 %v16094_v54, %v5195_v32  ;;  %v14179_v40 = vld [vmem:[#allocation11 + $0x1240] sm:$0xf0]  ;;  %v12020_v32 = vld [vmem:[#allocation11 + $0xd04] sm:$0xf0] }
 0x469   :  { %6978 = vmatpush.bf16.msrb.mxu2 %v12135_v3  ;;  %v12079_v3 = vor.u32 %v14022_v21, %v12076_v10  ;;  %v12242_v21 = vld [vmem:[#allocation11 + $0xea8] sm:$0xf] }
 0x46a   :  { %7016 = vmatpush.bf16.msra.mxu0 %v12583_v58  ;;  %v5235_v52 = vpop.f32.mrf.mxu1  ;;  %v12527_v58 = vor.u32 %v14134_v44, %v12524_v37  ;;  %v5251_v47 = vpop.f32.mrf.mxu2  ;;  %v16153_v26 = vadd.f32 %v5232_v41, %v5214_v6  ;;  %v12690_v41 = vld [vmem:[#allocation11 + $0x1228] sm:$0xf]  ;;  %v14067_v44 = vld [vmem:[#allocation11 + $0xec0] sm:$0xf0]  ;;  %v14008_v37 = vld [vmem:[#allocation11 + $0xcec] sm:$0xf] }
 0x46b   :  { %v16147_v18 = vadd.f32 %v5251_v47, %v15925_v9  ;;  %v12496_v9 = vld [vmem:[#allocation11 + $0x10bc] sm:$0xf0]  ;;  %v12691_v10 = vor.u32 %v14179_v40, %v12690_v41  ;;  %v12243_v49 = vor.u32 %v14067_v44, %v12242_v21  ;;  %v12468_v6 = vld [vmem:[#allocation11 + $0x1084] sm:$0xf0]  ;;  %v14060_v21 = vld [vmem:[#allocation11 + $0xe88] sm:$0xf0] }
 0x46c   :  { %6922 = vmatpush.bf16.msrb.mxu3 %v12327_v48  ;;  %16907 = vst [vmem:[#allocation44_spill] sm:$0xff] %v16153_v26  ;;  %v14074_v48 = vld [vmem:[#allocation11 + $0xef8] sm:$0xf0] }
 0x46d   :  { %6979 = vmatpush.bf16.msrb.mxu2 %v12107_v16  ;;  %v12271_v54 = vor.u32 %v14074_v48, %v12270_v46  ;;  %v12051_v16 = vor.u32 %v14015_v34, %v12048_v36  ;;  %v5197_v63 = vpop.f32.mrf.mxu3  ;;  %v5626_v46 = vld [vmem:[#allocation4 + $0x70] sm:$0xff]  ;;  %6963 = vmatpush.bf16.msra.mxu1 %v12691_v10  ;;  %v14414_v10 = vld [vmem:[#allocation4 + $0x40] sm:$0xff] }
 0x46e   :  { %7017 = vmatpush.bf16.msra.mxu0 %v12555_v39  ;;  %v12499_v39 = vor.u32 %v14127_v53, %v12496_v9  ;;  %v5198_v59 = vadd.f32 %v5197_v63, %v16115_v35  ;;  %v16165_v34 = vpop.f32.mrf.mxu0  ;;  %v5620_v53 = vld [vmem:[#allocation4] sm:$0xf0]  ;;  %v5622_v9 = vld [vmem:[#allocation4 + $0x10] sm:$0xf0]  ;;  %v12214_v63 = vld [vmem:[#allocation11 + $0xe70] sm:$0xf] }
 0x470   :  { %6923 = vmatpush.bf16.msrb.mxu3 %v12299_v13  ;;  %v5217_v56 = vadd.f32 %v16103_v8, %v5198_v59  ;;  %v14413_v8 = vld [vmem:[#allocation4 + $0x50] sm:$0xff]  ;;  %v14001_v59 = vld [vmem:[#allocation11 + $0xcb4] sm:$0xf] }
 0x471   :  { %6980 = vmatpush.bf16.msrb.mxu2 %v12079_v3  ;;  %v12023_v3 = vor.u32 %v14008_v37, %v12020_v32  ;;  %v5634_v41 = vpack.c.bf16 %v5626_v46, %v14413_v8  ;;  %v12215_v37 = vor.u32 %v14060_v21, %v12214_v63  ;;  %v14165_v46 = vld [vmem:[#allocation11 + $0x11d0] sm:$0xf0]  ;;  %v13994_v63 = vld [vmem:[#allocation11 + $0xc7c] sm:$0xf]  ;;  %v11964_v21 = vld [vmem:[#allocation11 + $0xc94] sm:$0xf0] }
 0x472   :  { %7018 = vmatpush.bf16.msra.mxu0 %v12527_v58  ;;  %v16159_v13 = vpop.f32.mrf.mxu1  ;;  %v14120_v58 = vld [vmem:[#allocation11 + $0x106c] sm:$0xf]  ;;  %v5254_v47 = vpop.f32.mrf.mxu2  ;;  %v16167_v36 = vadd.f32 %v5235_v52, %v5217_v56  ;;  %v12440_v52 = vld [vmem:[#allocation11 + $0x104c] sm:$0xf0] }
 0x473   :  { %v12471_v48 = vor.u32 %v14120_v58, %v12468_v6  ;;  %v16163_v35 = vadd.f32 %v5254_v47, %v15941_v51  ;;  %v11992_v51 = vld [vmem:[#allocation11 + $0xccc] sm:$0xf0]  ;;  %v12634_v58 = vld [vmem:[#allocation11 + $0x11b8] sm:$0xf]  ;;  %v14415_v56 = vld [vmem:[#allocation4 + $0x20] sm:$0xff] }
 0x474   :  { %6924 = vmatpush.bf16.msrb.mxu3 %v12271_v54  ;;  %v5624_v54 = vld [vmem:[#allocation4 + $0x60] sm:$0xff]  ;;  %v11995_v32 = vor.u32 %v14001_v59, %v11992_v51  ;;  %v14416_v47 = vld [vmem:[#allocation4 + $0x30] sm:$0xff]  ;;  %v16172_v51 = vrot.slane %v5634_v41, 2 }
 0x475   :  { %6981 = vmatpush.bf16.msrb.mxu2 %v12051_v16  ;;  %v12662_v16 = vld [vmem:[#allocation11 + $0x11f0] sm:$0xf]  ;;  %v5632_v44 = vpack.c.bf16 %v5624_v54, %v14414_v10  ;;  %v5199_v6 = vpop.f32.mrf.mxu3  ;;  %v5630_v26 = vpack.c.bf16 %v14416_v47, %v5622_v9  ;;  %v12635_v54 = vor.u32 %v14165_v46, %v12634_v58  ;;  %v14106_v59 = vld [vmem:[#allocation11 + $0xffc] sm:$0xf]  ;;  %v11967_v9 = vor.u32 %v13994_v63, %v11964_v21  ;;  %v14099_v46 = vld [vmem:[#allocation11 + $0xfc4] sm:$0xf] }
 0x476   :  { %7019 = vmatpush.bf16.msra.mxu0 %v12499_v39  ;;  %v14172_v39 = vld [vmem:[#allocation11 + $0x1208] sm:$0xf0]  ;;  %11930 = vmatmul.msk.bf16.vlgmr.msrb.gmra.mxu1 %vm1382_vm3, %v15839_v11  ;;  %v14046_v11 = vld [vmem:[#allocation11 + $0xe18] sm:$0xf0]  ;;  %v12356_v63 = vld [vmem:[#allocation11 + $0xfa4] sm:$0xf0] }
 0x477   :  { %v12663_v40 = vor.u32 %v14172_v39, %v12662_v16  ;;  %v14053_v16 = vld [vmem:[#allocation11 + $0xe50] sm:$0xf0]  ;;  %v5200_v39 = vadd.f32 %v5199_v6, %v16124_v29  ;;  %v5876_v41 = vrot.slane %v5630_v26, 2  ;;  %5571 = vmatmul.bf16.vlgmr.msra.gmra.mxu3 %v15841_v4  ;;  %v12158_v6 = vld [vmem:[#allocation11 + $0xe00] sm:$0xf] }
 0x478   :  { %6925 = vmatpush.bf16.msrb.mxu3 %v12243_v49  ;;  %v14113_v49 = vld [vmem:[#allocation11 + $0x1034] sm:$0xf]  ;;  %v11936_v26 = vld [vmem:[#allocation11 + $0xc5c] sm:$0xf0]  ;;  %v12159_v4 = vor.u32 %v14046_v11, %v12158_v6  ;;  %v12138_v21 = vld [vmem:[#allocation11 + $0xdd0] sm:$0xf] }
 0x479   :  { %6982 = vmatpush.bf16.msrb.mxu2 %v12023_v3  ;;  %v5628_v3 = vpack.c.bf16 %v14415_v56, %v5620_v53  ;;  %6964 = vmatpush.bf16.msra.mxu1 %v12663_v40  ;;  %v12443_v2 = vor.u32 %v14113_v49, %v12440_v52  ;;  %v12412_v40 = vld [vmem:[#allocation11 + $0x1014] sm:$0xf0]  ;;  %v5219_v10 = vadd.f32 %v16117_v61, %v5200_v39  ;;  %v16175_v52 = vrot.slane %v5632_v44, 2  ;;  %v12606_v61 = vld [vmem:[#allocation11 + $0x1180] sm:$0xf] }
 0x47a   :  { %7020 = vmatpush.bf16.msra.mxu0 %v12471_v48  ;;  %v12186_v48 = vld [vmem:[#allocation11 + $0xe38] sm:$0xf]  ;;  %v16170_v8 = vpop.f32.mrf.mxu1  ;;  %v5256_v49 = vpop.f32.mrf.mxu2  ;;  %v12415_v58 = vor.u32 %v14106_v59, %v12412_v40  ;;  %v14158_v44 = vld [vmem:[#allocation11 + $0x1198] sm:$0xf0]  ;;  %v14040_v40 = vld [vmem:[#allocation11 + $0xde8] sm:$0xf0] }
 0x47b   :  { %v12187_v53 = vor.u32 %v14053_v16, %v12186_v48  ;;  %v16178_v29 = vadd.f32 %v5256_v49, %v15958_v55  ;;  %v16190_v55 = vsel %vm301_vm0, %v5876_v41, %v16172_v51  ;;  %v12607_v56 = vor.u32 %v14158_v44, %v12606_v61  ;;  %v12384_v48 = vld [vmem:[#allocation11 + $0xfdc] sm:$0xf0]  ;;  %v14152_v49 = vld [vmem:[#allocation11 + $0x1168] sm:$0xf0]  ;;  %v14085_v11 = vld [vmem:[#allocation11 + $0xf54] sm:$0xf] }
 0x47c   :  { %6926 = vmatpush.bf16.msrb.mxu3 %v12215_v37  ;;  %v16180_v37 = vpop.f32.mrf.mxu0  ;;  %6948 = vmatmul.bf16.vlgmr.msrb.gmra.mxu0 %v16190_v55  ;;  %v12387_v39 = vor.u32 %v14099_v46, %v12384_v48  ;;  %v12139_v41 = vor.u32 %v14040_v40, %v12138_v21  ;;  %v14078_v48 = vld [vmem:[#allocation11 + $0xf1c] sm:$0xf] }
 0x47d   :  { %6983 = vmatpush.bf16.msrb.mxu2 %v11995_v32  ;;  %v5870_v32 = vrot.slane %v5628_v3, 2  ;;  %6965 = vmatpush.bf16.msra.mxu1 %v12635_v54  ;;  %v13987_v3 = vld [vmem:[#allocation11 + $0xc44] sm:$0xf]  ;;  %v5268_v16 = vpop.f32.mrf.mxu3  ;;  %v14092_v54 = vld [vmem:[#allocation11 + $0xf8c] sm:$0xf] }
 0x47e   :  { %7021 = vmatpush.bf16.msra.mxu0 %v12443_v2  ;;  %v16185_v2 = vadd.f32 %v16159_v13, %v5219_v10  ;;  %v11939_v47 = vor.u32 %v13987_v3, %v11936_v26  ;;  %v5269_v59 = vadd.f32 %v5268_v16, %v16138_v20  ;;  %v12586_v10 = vld [vmem:[#allocation11 + $0x1150] sm:$0xf]  ;;  %v14033_v26 = vld [vmem:[#allocation11 + $0xdb0] sm:$0xf0]  ;;  %v12300_v16 = vld [vmem:[#allocation11 + $0xf34] sm:$0xf0] }
 0x47f   :  { %v16194_v13 = vsel %vm301_vm0, %v5870_v32, %v16175_v52  ;;  %v3837_v32 = vadd.f32 %v15837_v33, %v15863_v19  ;;  %v12587_v61 = vor.u32 %v14152_v49, %v12586_v10  ;;  %v12328_v33 = vld [vmem:[#allocation11 + $0xf6c] sm:$0xf0]  ;;  %v12110_v19 = vld [vmem:[#allocation11 + $0xd98] sm:$0xf]  ;;  %v14026_v21 = vld [vmem:[#allocation11 + $0xd78] sm:$0xf0]  ;;  %v3839_v49 = vadd.f32 %v15860_v57, %v15879_v1 }
 0x480   :  { %16908 = vst [vmem:[#allocation55_spill] sm:$0xff] %v16185_v2  ;;  %6927 = vmatpush.bf16.msrb.mxu3 %v12187_v53  ;;  %6910 = vmatmul.bf16.vlgmr.msra.gmra.mxu2 %v16194_v13  ;;  %v12331_v3 = vor.u32 %v14085_v11, %v12328_v33  ;;  %v5625_v11 = vld [vmem:[#allocation4 + $0x68] sm:$0xff]  ;;  %v14071_v57 = vld [vmem:[#allocation11 + $0xee4] sm:$0xf]  ;;  %v12272_v1 = vld [vmem:[#allocation11 + $0xefc] sm:$0xf0] }
 0x481   :  { %6984 = vmatpush.bf16.msrb.mxu2 %v11967_v9  ;;  %6966 = vmatpush.bf16.msra.mxu1 %v12607_v56  ;;  %v12359_v9 = vor.u32 %v14092_v54, %v12356_v63  ;;  %v12082_v54 = vld [vmem:[#allocation11 + $0xd60] sm:$0xf] }
 0x482   :  { %7022 = vmatpush.bf16.msra.mxu0 %v12415_v58  ;;  %v5308_v53 = vpop.f32.mrf.mxu1  ;;  %v5288_v58 = vadd.f32 %v16126_v17, %v5269_v59  ;;  %v5325_v44 = vpop.f32.mrf.mxu2  ;;  %v12111_v17 = vor.u32 %v14033_v26, %v12110_v19  ;;  %v12530_v59 = vld [vmem:[#allocation11 + $0x10e0] sm:$0xf]  ;;  %v12083_v10 = vor.u32 %v14026_v21, %v12082_v54  ;;  %v12054_v19 = vld [vmem:[#allocation11 + $0xd28] sm:$0xf]  ;;  %v14419_v54 = vld [vmem:[#allocation4 + $0x48] sm:$0xff] }
 0x483   :  { %v16202_v6 = vadd.f32 %v5325_v44, %v3837_v32  ;;  %v12502_v26 = vld [vmem:[#allocation11 + $0x10a8] sm:$0xf] }
 0x484   :  { %6928 = vmatpush.bf16.msrb.mxu3 %v12159_v4  ;;  %v16204_v20 = vpop.f32.mrf.mxu0  ;;  %v16207_v56 = vadd.f32 %v16170_v8, %v5288_v58  ;;  %v12558_v4 = vld [vmem:[#allocation11 + $0x1118] sm:$0xf]  ;;  %v14138_v8 = vld [vmem:[#allocation11 + $0x10f8] sm:$0xf0]  ;;  %v12692_v21 = vld [vmem:[#allocation11 + $0x1244] sm:$0xf0] }
 0x485   :  { %6985 = vmatpush.bf16.msrb.mxu2 %v11939_v47  ;;  %v14145_v47 = vld [vmem:[#allocation11 + $0x1130] sm:$0xf0]  ;;  %v5270_v63 = vpop.f32.mrf.mxu3  ;;  %v12531_v32 = vor.u32 %v14138_v8, %v12530_v59  ;;  %v14064_v59 = vld [vmem:[#allocation11 + $0xeac] sm:$0xf] }
 0x486   :  { %7023 = vmatpush.bf16.msra.mxu0 %v12387_v39  ;;  %v12559_v46 = vor.u32 %v14145_v47, %v12558_v4  ;;  %v12303_v39 = vor.u32 %v14078_v48, %v12300_v16  ;;  %11931 = vmatmul.msk.bf16.gmra.mxu1 %vm1382_vm3, %v15876_v0  ;;  %v14131_v4 = vld [vmem:[#allocation11 + $0x10c0] sm:$0xf0] }
 0x487   :  { %5576 = vmatmul.bf16.gmra.mxu3 %v15883_v31  ;;  %v5623_v47 = vld [vmem:[#allocation4 + $0x18] sm:$0xf0] }
 0x488   :  { %6997 = vmatpush.bf16.msra.mxu3 %v12359_v9  ;;  %v5271_v9 = vadd.f32 %v5270_v63, %v16147_v18  ;;  %v5627_v18 = vld [vmem:[#allocation4 + $0x78] sm:$0xff]  ;;  %v5633_v63 = vpack.c.bf16 %v5625_v11, %v14419_v54  ;;  %v12474_v11 = vld [vmem:[#allocation11 + $0x1070] sm:$0xf] }
 0x489   :  { %7054 = vmatpush.bf16.msra.mxu2 %v12139_v41  ;;  %v14418_v31 = vld [vmem:[#allocation4 + $0x58] sm:$0xff] }
 0x48a   :  { %7092 = vmatpush.bf16.msrb.mxu0 %v12587_v61  ;;  %v16210_v40 = vpop.f32.mrf.mxu1  ;;  %v5290_v41 = vadd.f32 %v16140_v43, %v5271_v9  ;;  %v5327_v61 = vpop.f32.mrf.mxu2  ;;  %v12275_v43 = vor.u32 %v14071_v57, %v12272_v1  ;;  %v5635_v16 = vpack.c.bf16 %v5627_v18, %v14418_v31  ;;  %v14124_v1 = vld [vmem:[#allocation11 + $0x1088] sm:$0xf0] }
 0x48b   :  { %v16215_v58 = vadd.f32 %v5327_v61, %v3839_v49  ;;  %v12244_v49 = vld [vmem:[#allocation11 + $0xec4] sm:$0xf0]  ;;  %v3842_v61 = vadd.f32 %v15874_v12, %v15900_v27  ;;  %v14169_v27 = vld [vmem:[#allocation11 + $0x11f4] sm:$0xf] }
 0x48c   :  { %6998 = vmatpush.bf16.msra.mxu3 %v12331_v3  ;;  %v16217_v44 = vpop.f32.mrf.mxu0  ;;  %v16221_v33 = vadd.f32 %v5308_v53, %v5290_v41  ;;  %v14019_v3 = vld [vmem:[#allocation11 + $0xd40] sm:$0xf0]  ;;  %6953 = vmatmul.bf16.gmra.mxu0 %v16172_v51  ;;  %v14012_v41 = vld [vmem:[#allocation11 + $0xd08] sm:$0xf0]  ;;  %v12247_v18 = vor.u32 %v14064_v59, %v12244_v49 }
 0x48d   :  { %7055 = vmatpush.bf16.msra.mxu2 %v12111_v17  ;;  %v12055_v0 = vor.u32 %v14019_v3, %v12054_v19  ;;  %v12503_v17 = vor.u32 %v14131_v4, %v12502_v26  ;;  %v5273_v53 = vpop.f32.mrf.mxu3 }
 0x48e   :  { %7093 = vmatpush.bf16.msrb.mxu0 %v12559_v46  ;;  %16909 = vst [vmem:[#allocation33_spill] sm:$0xff] %v16221_v33  ;;  %v14417_v46 = vld [vmem:[#allocation4 + $0x38] sm:$0xff]  ;;  %v5274_v8 = vadd.f32 %v5273_v53, %v16163_v35  ;;  %v12475_v35 = vor.u32 %v14124_v1, %v12474_v11  ;;  %v16238_v53 = vrot.slane %v5633_v63, 2  ;;  %v14117_v63 = vld [vmem:[#allocation11 + $0x1050] sm:$0xf0] }
 0x48f   :  { %v5631_v48 = vpack.c.bf16 %v14417_v46, %v5623_v47  ;;  %v16236_v47 = vrot.slane %v5635_v16, 2  ;;  %v14420_v46 = vld [vmem:[#allocation4 + $0x28] sm:$0xff]  ;;  %v11970_v1 = vld [vmem:[#allocation11 + $0xc80] sm:$0xf] }
 0x490   :  { %6999 = vmatpush.bf16.msra.mxu3 %v12303_v39  ;;  %6915 = vmatmul.bf16.gmra.mxu2 %v16175_v52  ;;  %v14176_v39 = vld [vmem:[#allocation11 + $0x122c] sm:$0xf]  ;;  %v5293_v19 = vadd.f32 %v16149_v14, %v5274_v8  ;;  %v12664_v14 = vld [vmem:[#allocation11 + $0x120c] sm:$0xf0]  ;;  %v12446_v8 = vld [vmem:[#allocation11 + $0x1038] sm:$0xf] }
 0x491   :  { %7056 = vmatpush.bf16.msra.mxu2 %v12083_v10  ;;  %v12695_v10 = vor.u32 %v14176_v39, %v12692_v21  ;;  %v5879_v4 = vrot.slane %v5631_v48, 2  ;;  %v12667_v54 = vor.u32 %v14169_v27, %v12664_v14  ;;  %v12216_v39 = vld [vmem:[#allocation11 + $0xe8c] sm:$0xf0]  ;;  %v11998_v21 = vld [vmem:[#allocation11 + $0xcb8] sm:$0xf] }
 0x492   :  { %7094 = vmatpush.bf16.msrb.mxu0 %v12531_v32  ;;  %v16227_v9 = vpop.f32.mrf.mxu1  ;;  %v12026_v32 = vld [vmem:[#allocation11 + $0xcf0] sm:$0xf]  ;;  %v16241_v12 = vadd.f32 %v16210_v40, %v5293_v19  ;;  %v14005_v48 = vld [vmem:[#allocation11 + $0xcd0] sm:$0xf0]  ;;  %v12447_v40 = vor.u32 %v14117_v63, %v12446_v8  ;;  %v13998_v19 = vld [vmem:[#allocation11 + $0xc98] sm:$0xf0] }
 0x493   :  { %v12027_v57 = vor.u32 %v14012_v41, %v12026_v32  ;;  %7039 = vmatpush.bf16.msrb.mxu1 %v12695_v10  ;;  %v11999_v59 = vor.u32 %v14005_v48, %v11998_v21  ;;  %v14162_v10 = vld [vmem:[#allocation11 + $0x11bc] sm:$0xf]  ;;  %v12636_v32 = vld [vmem:[#allocation11 + $0x11d4] sm:$0xf0]  ;;  %v11971_v14 = vor.u32 %v13998_v19, %v11970_v1  ;;  %v14043_v48 = vld [vmem:[#allocation11 + $0xe04] sm:$0xf] }
 0x494   :  { %7000 = vmatpush.bf16.msra.mxu3 %v12275_v43  ;;  %v5330_v43 = vpop.f32.mrf.mxu2  ;;  %v16234_v26 = vpop.f32.mrf.mxu0  ;;  %v14050_v41 = vld [vmem:[#allocation11 + $0xe3c] sm:$0xf]  ;;  %v12639_v11 = vor.u32 %v14162_v10, %v12636_v32  ;;  %v11942_v8 = vld [vmem:[#allocation11 + $0xc48] sm:$0xf]  ;;  %v13991_v63 = vld [vmem:[#allocation11 + $0xc60] sm:$0xf0] }
 0x495   :  { %7057 = vmatpush.bf16.msra.mxu2 %v12055_v0  ;;  %v16232_v3 = vadd.f32 %v5330_v43, %v3842_v61  ;;  %v5621_v0 = vld [vmem:[#allocation4 + $0x8] sm:$0xf0]  ;;  %v5275_v49 = vpop.f32.mrf.mxu3  ;;  %v12188_v61 = vld [vmem:[#allocation11 + $0xe54] sm:$0xf0]  ;;  %v12418_v43 = vld [vmem:[#allocation11 + $0x1000] sm:$0xf] }
 0x496   :  { %7095 = vmatpush.bf16.msrb.mxu0 %v12503_v17  ;;  %v14057_v17 = vld [vmem:[#allocation11 + $0xe74] sm:$0xf]  ;;  %v5629_v31 = vpack.c.bf16 %v14420_v46, %v5621_v0  ;;  %v12191_v27 = vor.u32 %v14050_v41, %v12188_v61  ;;  %v14103_v32 = vld [vmem:[#allocation11 + $0xfe0] sm:$0xf0]  ;;  %v12362_v61 = vld [vmem:[#allocation11 + $0xf90] sm:$0xf] }
 0x497   :  { %v12219_v16 = vor.u32 %v14057_v17, %v12216_v39  ;;  %7040 = vmatpush.bf16.msrb.mxu1 %v12667_v54  ;;  %v14110_v17 = vld [vmem:[#allocation11 + $0x1018] sm:$0xf0] }
 0x498   :  { %7001 = vmatpush.bf16.msra.mxu3 %v12247_v18  ;;  %v5276_v18 = vadd.f32 %v5275_v49, %v16178_v29  ;;  %v5873_v0 = vrot.slane %v5629_v31, 2  ;;  %v16251_v29 = vsel %vm301_vm0, %v5879_v4, %v16236_v47  ;;  %v12608_v4 = vld [vmem:[#allocation11 + $0x119c] sm:$0xf0]  ;;  %v11943_v49 = vor.u32 %v13991_v63, %v11942_v8  ;;  %v12112_v63 = vld [vmem:[#allocation11 + $0xdb4] sm:$0xf0] }
 0x499   :  { %7058 = vmatpush.bf16.msra.mxu2 %v12027_v57  ;;  %12716 = vmatmul.msk.bf16.vlgmr.msra.gmra.mxu1 %vm1382_vm3, %v16251_v29 }
 0x49a   :  { %7096 = vmatpush.bf16.msrb.mxu0 %v12475_v35  ;;  %v16244_v57 = vpop.f32.mrf.mxu1  ;;  %v3844_v35 = vadd.f32 %v15897_v24, %v15914_v15  ;;  %v5295_v46 = vadd.f32 %v16165_v34, %v5276_v18  ;;  %v16261_v24 = vsel %vm301_vm0, %v5873_v0, %v16238_v53  ;;  %v12419_v15 = vor.u32 %v14110_v17, %v12418_v43  ;;  %v14155_v34 = vld [vmem:[#allocation11 + $0x1184] sm:$0xf]  ;;  %v14096_v18 = vld [vmem:[#allocation11 + $0xfa8] sm:$0xf0]  ;;  %v14149_v0 = vld [vmem:[#allocation11 + $0x1154] sm:$0xf] }
 0x49b   :  { %6929 = vmatmul.bf16.vlgmr.msrb.gmra.mxu3 %v16261_v24  ;;  %7041 = vmatpush.bf16.msrb.mxu1 %v12639_v11  ;;  %v14037_v11 = vld [vmem:[#allocation11 + $0xdd4] sm:$0xf]  ;;  %v12363_v43 = vor.u32 %v14096_v18, %v12362_v61  ;;  %v14023_v61 = vld [vmem:[#allocation11 + $0xd64] sm:$0xf] }
 0x49c   :  { %7002 = vmatpush.bf16.msra.mxu3 %v12219_v16  ;;  %v5332_v54 = vpop.f32.mrf.mxu2  ;;  %v16255_v21 = vpop.f32.mrf.mxu0  ;;  %v16264_v31 = vadd.f32 %v16227_v9, %v5295_v46  ;;  %v12611_v16 = vor.u32 %v14155_v34, %v12608_v4  ;;  %7024 = vmatmul.bf16.vlgmr.msra.gmra.mxu0 %v16190_v55 }
 0x49d   :  { %7059 = vmatpush.bf16.msra.mxu2 %v11999_v59  ;;  %v16253_v39 = vadd.f32 %v5332_v54, %v3844_v35  ;;  %v12160_v59 = vld [vmem:[#allocation11 + $0xe1c] sm:$0xf0]  ;;  %v5344_v9 = vpop.f32.mrf.mxu3  ;;  %v12140_v35 = vld [vmem:[#allocation11 + $0xdec] sm:$0xf0] }
 0x49e   :  { %7097 = vmatpush.bf16.msrb.mxu0 %v12447_v40  ;;  %16910 = vst [vmem:[#allocation59_spill] sm:$0xff] %v16264_v31  ;;  %v12163_v10 = vor.u32 %v14043_v48, %v12160_v59  ;;  %v12390_v40 = vld [vmem:[#allocation11 + $0xfc8] sm:$0xf]  ;;  %v5345_v1 = vadd.f32 %v5344_v9, %v16202_v6  ;;  %v12143_v46 = vor.u32 %v14037_v11, %v12140_v35  ;;  %v14030_v59 = vld [vmem:[#allocation11 + $0xd9c] sm:$0xf] }
 0x49f   :  { %v12391_v41 = vor.u32 %v14103_v32, %v12390_v40  ;;  %7042 = vmatpush.bf16.msrb.mxu1 %v12611_v16  ;;  %v12334_v16 = vld [vmem:[#allocation11 + $0xf58] sm:$0xf]  ;;  %v12306_v32 = vld [vmem:[#allocation11 + $0xf20] sm:$0xf]  ;;  %v14082_v9 = vld [vmem:[#allocation11 + $0xf38] sm:$0xf0] }
 0x4a0   :  { %7003 = vmatpush.bf16.msra.mxu3 %v12191_v27  ;;  %6986 = vmatmul.bf16.vlgmr.msrb.gmra.mxu2 %v16194_v13  ;;  %v12588_v27 = vld [vmem:[#allocation11 + $0x116c] sm:$0xf0]  ;;  %v12084_v11 = vld [vmem:[#allocation11 + $0xd7c] sm:$0xf0] }
 0x4a1   :  { %7060 = vmatpush.bf16.msra.mxu2 %v11971_v14  ;;  %v16911_v14 = vld [vmem:[#allocation49_spill] sm:$0xff]  ;;  %v12591_v54 = vor.u32 %v14149_v0, %v12588_v27  ;;  %v12087_v0 = vor.u32 %v14023_v61, %v12084_v11  ;;  %v16912_v27 = vld [vmem:[#allocation51_spill] sm:$0xff] }
 0x4a2   :  { %7098 = vmatpush.bf16.msrb.mxu0 %v12419_v15  ;;  %v5384_v19 = vpop.f32.mrf.mxu1  ;;  %v3913_v17 = vadd.f32 %v16911_v14, %v15933_v30  ;;  %v5364_v15 = vadd.f32 %v16180_v37, %v5345_v1  ;;  %v14089_v30 = vld [vmem:[#allocation11 + $0xf70] sm:$0xf0]  ;;  %v12115_v37 = vor.u32 %v14030_v59, %v12112_v63  ;;  %v14135_v1 = vld [vmem:[#allocation11 + $0x10e4] sm:$0xf]  ;;  %v12250_v61 = vld [vmem:[#allocation11 + $0xeb0] sm:$0xf] }
 0x4a3   :  { %v12335_v8 = vor.u32 %v14089_v30, %v12334_v16  ;;  %v16913_v14 = vld [vmem:[#allocation34_spill] sm:$0xff] }
 0x4a4   :  { %7004 = vmatpush.bf16.msra.mxu3 %v12163_v10  ;;  %v5401_v34 = vpop.f32.mrf.mxu2  ;;  %v16275_v6 = vpop.f32.mrf.mxu0  ;;  %v16278_v48 = vadd.f32 %v16244_v57, %v5364_v15  ;;  %v14142_v10 = vld [vmem:[#allocation11 + $0x111c] sm:$0xf]  ;;  %v12532_v57 = vld [vmem:[#allocation11 + $0x10fc] sm:$0xf0]  ;;  %v12278_v30 = vld [vmem:[#allocation11 + $0xee8] sm:$0xf] }
 0x4a5   :  { %7061 = vmatpush.bf16.msra.mxu2 %v11943_v49  ;;  %v16273_v4 = vadd.f32 %v5401_v34, %v3913_v17  ;;  %v12560_v49 = vld [vmem:[#allocation11 + $0x1134] sm:$0xf0]  ;;  %v5346_v18 = vpop.f32.mrf.mxu3  ;;  %v3915_v17 = vadd.f32 %v16913_v14, %v16912_v27  ;;  %v14075_v59 = vld [vmem:[#allocation11 + $0xf00] sm:$0xf0]  ;;  %v16915_v27 = vld [vmem:[#allocation35_spill] sm:$0xff] }
 0x4a6   :  { %7099 = vmatpush.bf16.msrb.mxu0 %v12391_v41  ;;  %v12563_v40 = vor.u32 %v14142_v10, %v12560_v49  ;;  %v12307_v41 = vor.u32 %v14082_v9, %v12306_v32  ;;  %v12279_v63 = vor.u32 %v14075_v59, %v12278_v30  ;;  %v14128_v10 = vld [vmem:[#allocation11 + $0x10ac] sm:$0xf]  ;;  %v12504_v49 = vld [vmem:[#allocation11 + $0x10c4] sm:$0xf0] }
 0x4a7   :  { %v14180_v9 = vld [vmem:[#allocation11 + $0x1248] sm:$0xf0] }
 0x4a8   :  { %7073 = vmatpush.bf16.msrb.mxu3 %v12363_v43  ;;  %v5347_v43 = vadd.f32 %v5346_v18, %v16215_v58 }
 0x4a9   :  { %7130 = vmatpush.bf16.msrb.mxu2 %v12143_v46  ;;  %v12535_v46 = vor.u32 %v14135_v1, %v12532_v57  ;;  %12717 = vmatmul.msk.bf16.gmra.mxu1 %vm1382_vm3, %v16236_v47  ;;  %v14068_v1 = vld [vmem:[#allocation11 + $0xec8] sm:$0xf0]  ;;  %v14009_v57 = vld [vmem:[#allocation11 + $0xcf4] sm:$0xf] }
 0x4aa   :  { %7168 = vmatpush.bf16.msra.mxu0 %v12591_v54  ;;  %v5387_v35 = vpop.f32.mrf.mxu1  ;;  %v5366_v54 = vadd.f32 %v16204_v20, %v5347_v43  ;;  %v12056_v20 = vld [vmem:[#allocation11 + $0xd44] sm:$0xf0]  ;;  %v12028_v43 = vld [vmem:[#allocation11 + $0xd0c] sm:$0xf0] }
 0x4ab   :  { %6934 = vmatmul.bf16.gmra.mxu3 %v16238_v53 }
 0x4ac   :  { %7074 = vmatpush.bf16.msrb.mxu3 %v12335_v8  ;;  %v5403_v15 = vpop.f32.mrf.mxu2  ;;  %v16286_v16 = vpop.f32.mrf.mxu0  ;;  %v16290_v58 = vadd.f32 %v5384_v19, %v5366_v54  ;;  %v14016_v8 = vld [vmem:[#allocation11 + $0xd2c] sm:$0xf]  ;;  %7029 = vmatmul.bf16.gmra.mxu0 %v16172_v51  ;;  %v12698_v19 = vld [vmem:[#allocation11 + $0x1230] sm:$0xf]  ;;  %v14121_v54 = vld [vmem:[#allocation11 + $0x1074] sm:$0xf] }
 0x4ad   :  { %7131 = vmatpush.bf16.msrb.mxu2 %v12115_v37  ;;  %v16284_v34 = vadd.f32 %v5403_v15, %v3915_v17  ;;  %v12059_v37 = vor.u32 %v14016_v8, %v12056_v20  ;;  %v5349_v32 = vpop.f32.mrf.mxu3  ;;  %v12699_v11 = vor.u32 %v14180_v9, %v12698_v19  ;;  %v12251_v17 = vor.u32 %v14068_v1, %v12250_v61  ;;  %v12476_v15 = vld [vmem:[#allocation11 + $0x108c] sm:$0xf0]  ;;  %v14002_v19 = vld [vmem:[#allocation11 + $0xcbc] sm:$0xf]  ;;  %v12000_v9 = vld [vmem:[#allocation11 + $0xcd4] sm:$0xf0] }
 0x4ae   :  { %7169 = vmatpush.bf16.msra.mxu0 %v12563_v40  ;;  %v12507_v40 = vor.u32 %v14128_v10, %v12504_v49  ;;  %v5350_v18 = vadd.f32 %v5349_v32, %v16232_v3  ;;  %v12479_v8 = vor.u32 %v14121_v54, %v12476_v15  ;;  %v12670_v10 = vld [vmem:[#allocation11 + $0x11f8] sm:$0xf]  ;;  %v14173_v49 = vld [vmem:[#allocation11 + $0x1210] sm:$0xf0]  ;;  %v12003_v61 = vor.u32 %v14002_v19, %v12000_v9  ;;  %v12642_v1 = vld [vmem:[#allocation11 + $0x11c0] sm:$0xf] }
 0x4af   :  { %7115 = vmatpush.bf16.msra.mxu1 %v12699_v11  ;;  %v14061_v32 = vld [vmem:[#allocation11 + $0xe90] sm:$0xf0]  ;;  %v12448_v11 = vld [vmem:[#allocation11 + $0x1054] sm:$0xf0]  ;;  %v13995_v54 = vld [vmem:[#allocation11 + $0xc84] sm:$0xf] }
 0x4b0   :  { %7075 = vmatpush.bf16.msrb.mxu3 %v12307_v41  ;;  %6991 = vmatmul.bf16.gmra.mxu2 %v16175_v52  ;;  %v5369_v30 = vadd.f32 %v16217_v44, %v5350_v18  ;;  %v14114_v18 = vld [vmem:[#allocation11 + $0x103c] sm:$0xf]  ;;  %v11972_v15 = vld [vmem:[#allocation11 + $0xc9c] sm:$0xf0] }
 0x4b1   :  { %7132 = vmatpush.bf16.msrb.mxu2 %v12087_v0  ;;  %v16914_v0 = vld [vmem:[#allocation37_spill] sm:$0xff] }
 0x4b2   :  { %7170 = vmatpush.bf16.msra.mxu0 %v12535_v46  ;;  %v5389_v41 = vpop.f32.mrf.mxu1  ;;  %v3918_v14 = vadd.f32 %v16915_v27, %v16914_v0  ;;  %v12031_v46 = vor.u32 %v14009_v57, %v12028_v43  ;;  %v16303_v20 = vadd.f32 %v5387_v35, %v5369_v30  ;;  %v12451_v43 = vor.u32 %v14114_v18, %v12448_v11  ;;  %v14166_v0 = vld [vmem:[#allocation11 + $0x11d8] sm:$0xf0]  ;;  %v12194_v35 = vld [vmem:[#allocation11 + $0xe40] sm:$0xf]  ;;  %v14107_v30 = vld [vmem:[#allocation11 + $0x1004] sm:$0xf] }
 0x4b3   :  { %v14054_v27 = vld [vmem:[#allocation11 + $0xe58] sm:$0xf0]  ;;  %v12614_v18 = vld [vmem:[#allocation11 + $0x1188] sm:$0xf]  ;;  %v14159_v11 = vld [vmem:[#allocation11 + $0x11a0] sm:$0xf0] }
 0x4b4   :  { %7076 = vmatpush.bf16.msrb.mxu3 %v12279_v63  ;;  %v5406_v59 = vpop.f32.mrf.mxu2  ;;  %v16301_v63 = vpop.f32.mrf.mxu0 }
 0x4b5   :  { %7133 = vmatpush.bf16.msrb.mxu2 %v12059_v37  ;;  %v16299_v3 = vadd.f32 %v5406_v59, %v3918_v14  ;;  %v12222_v37 = vld [vmem:[#allocation11 + $0xe78] sm:$0xf]  ;;  %v5351_v57 = vpop.f32.mrf.mxu3  ;;  %v16916_v59 = vld [vmem:[#allocation38_spill] sm:$0xff] }
 0x4b6   :  { %7171 = vmatpush.bf16.msra.mxu0 %v12507_v40  ;;  %v12671_v40 = vor.u32 %v14173_v49, %v12670_v10  ;;  %v12223_v44 = vor.u32 %v14061_v32, %v12222_v37  ;;  %v5352_v14 = vadd.f32 %v5351_v57, %v16253_v39  ;;  %v12195_v49 = vor.u32 %v14054_v27, %v12194_v35  ;;  %v14047_v57 = vld [vmem:[#allocation11 + $0xe20] sm:$0xf0] }
 0x4b7   :  { %v11975_v37 = vor.u32 %v13995_v54, %v11972_v15  ;;  %v12392_v54 = vld [vmem:[#allocation11 + $0xfe4] sm:$0xf0]  ;;  %v14093_v15 = vld [vmem:[#allocation11 + $0xf94] sm:$0xf] }
 0x4b8   :  { %7077 = vmatpush.bf16.msrb.mxu3 %v12251_v17  ;;  %7116 = vmatpush.bf16.msra.mxu1 %v12671_v40  ;;  %v12420_v40 = vld [vmem:[#allocation11 + $0x101c] sm:$0xf0]  ;;  %v5371_v32 = vadd.f32 %v16234_v26, %v5352_v14  ;;  %v12615_v26 = vor.u32 %v14159_v11, %v12614_v18  ;;  %v14100_v14 = vld [vmem:[#allocation11 + $0xfcc] sm:$0xf] }
 0x4b9   :  { %7134 = vmatpush.bf16.msrb.mxu2 %v12031_v46  ;;  %v12643_v46 = vor.u32 %v14166_v0, %v12642_v1  ;;  %12718 = vmatmul.msk.bf16.vlgmr.msrb.gmra.mxu1 %vm1382_vm3, %v16251_v29  ;;  %v12166_v1 = vld [vmem:[#allocation11 + $0xe08] sm:$0xf] }
 0x4ba   :  { %7172 = vmatpush.bf16.msra.mxu0 %v12479_v8  ;;  %v5458_v17 = vpop.f32.mrf.mxu1  ;;  %v16917_v8 = vld [vmem:[#allocation50_spill] sm:$0xff]  ;;  %v12167_v35 = vor.u32 %v14047_v57, %v12166_v1 }
 0x4bb   :  { %v3920_v10 = vadd.f32 %v16917_v8, %v16916_v59  ;;  %7005 = vmatmul.bf16.vlgmr.msra.gmra.mxu3 %v16261_v24  ;;  %v11944_v0 = vld [vmem:[#allocation11 + $0xc64] sm:$0xf0]  ;;  %v12146_v59 = vld [vmem:[#allocation11 + $0xdd8] sm:$0xf] }
 0x4bc   :  { %7078 = vmatpush.bf16.msrb.mxu3 %v12223_v44  ;;  %v5408_v19 = vpop.f32.mrf.mxu2  ;;  %v16311_v39 = vpop.f32.mrf.mxu0  ;;  %v12423_v44 = vor.u32 %v14107_v30, %v12420_v40  ;;  %7117 = vmatpush.bf16.msra.mxu1 %v12643_v46  ;;  %v12395_v46 = vor.u32 %v14100_v14, %v12392_v54  ;;  %v12364_v30 = vld [vmem:[#allocation11 + $0xfac] sm:$0xf0]  ;;  %v12594_v40 = vld [vmem:[#allocation11 + $0x1158] sm:$0xf]  ;;  %v12566_v54 = vld [vmem:[#allocation11 + $0x1120] sm:$0xf] }
 0x4bd   :  { %7135 = vmatpush.bf16.msrb.mxu2 %v12003_v61  ;;  %v16309_v9 = vadd.f32 %v5408_v19, %v3920_v10  ;;  %v16315_v61 = vadd.f32 %v5389_v41, %v5371_v32  ;;  %7100 = vmatmul.bf16.vlgmr.msrb.gmra.mxu0 %v16190_v55  ;;  %v5420_v41 = vpop.f32.mrf.mxu3  ;;  %v14153_v32 = vld [vmem:[#allocation11 + $0x1170] sm:$0xf0]  ;;  %v12336_v14 = vld [vmem:[#allocation11 + $0xf74] sm:$0xf0] }
 0x4be   :  { %7173 = vmatpush.bf16.msra.mxu0 %v12451_v43  ;;  %v13988_v43 = vld [vmem:[#allocation11 + $0xc4c] sm:$0xf]  ;;  %v5421_v8 = vadd.f32 %v5420_v41, %v16273_v4  ;;  %v16918_v19 = vld [vmem:[#allocation52_spill] sm:$0xff]  ;;  %v12595_v1 = vor.u32 %v14153_v32, %v12594_v40  ;;  %v12538_v40 = vld [vmem:[#allocation11 + $0x10e8] sm:$0xf] }
 0x4bf   :  { %v11947_v27 = vor.u32 %v13988_v43, %v11944_v0  ;;  %v3989_v18 = vadd.f32 %v16918_v19, %v15991_v28  ;;  %v14086_v0 = vld [vmem:[#allocation11 + $0xf5c] sm:$0xf]  ;;  %v12118_v28 = vld [vmem:[#allocation11 + $0xda0] sm:$0xf] }
 0x4c0   :  { %7079 = vmatpush.bf16.msrb.mxu3 %v12195_v49  ;;  %7062 = vmatmul.bf16.vlgmr.msra.gmra.mxu2 %v16194_v13  ;;  %v12367_v49 = vor.u32 %v14093_v15, %v12364_v30  ;;  %v14146_v41 = vld [vmem:[#allocation11 + $0x1138] sm:$0xf0]  ;;  %v14079_v30 = vld [vmem:[#allocation11 + $0xf24] sm:$0xf] }
 0x4c1   :  { %7136 = vmatpush.bf16.msrb.mxu2 %v11975_v37  ;;  %7118 = vmatpush.bf16.msra.mxu1 %v12615_v26  ;;  %v14041_v37 = vld [vmem:[#allocation11 + $0xdf0] sm:$0xf0] }
 0x4c2   :  { %7174 = vmatpush.bf16.msra.mxu0 %v12423_v44  ;;  %v5460_v10 = vpop.f32.mrf.mxu1  ;;  %v12147_v11 = vor.u32 %v14041_v37, %v12146_v59  ;;  %v5440_v44 = vadd.f32 %v16255_v21, %v5421_v8  ;;  %v12567_v21 = vor.u32 %v14146_v41, %v12566_v54  ;;  %v12308_v59 = vld [vmem:[#allocation11 + $0xf3c] sm:$0xf0]  ;;  %v12090_v8 = vld [vmem:[#allocation11 + $0xd68] sm:$0xf]  ;;  %v12062_v41 = vld [vmem:[#allocation11 + $0xd30] sm:$0xf] }
 0x4c3   :  { %v12311_v37 = vor.u32 %v14079_v30, %v12308_v59  ;;  %v12280_v54 = vld [vmem:[#allocation11 + $0xf04] sm:$0xf0]  ;;  %v14132_v30 = vld [vmem:[#allocation11 + $0x10c8] sm:$0xf0] }
 0x4c4   :  { %7080 = vmatpush.bf16.msrb.mxu3 %v12167_v35  ;;  %v5477_v57 = vpop.f32.mrf.mxu2  ;;  %v16326_v4 = vpop.f32.mrf.mxu0  ;;  %v16328_v26 = vadd.f32 %v5458_v17, %v5440_v44  ;;  %v12339_v35 = vor.u32 %v14086_v0, %v12336_v14  ;;  %v14139_v17 = vld [vmem:[#allocation11 + $0x1100] sm:$0xf0] }
 0x4c5   :  { %7137 = vmatpush.bf16.msrb.mxu2 %v11947_v27  ;;  %v16324_v43 = vadd.f32 %v5477_v57, %v3989_v18  ;;  %v14034_v27 = vld [vmem:[#allocation11 + $0xdb8] sm:$0xf0]  ;;  %v12539_v57 = vor.u32 %v14139_v17, %v12538_v40 }
 0x4c6   :  { %7175 = vmatpush.bf16.msra.mxu0 %v12395_v46  ;;  %v12119_v15 = vor.u32 %v14034_v27, %v12118_v28  ;;  %v14027_v46 = vld [vmem:[#allocation11 + $0xd80] sm:$0xf0]  ;;  %v14072_v27 = vld [vmem:[#allocation11 + $0xeec] sm:$0xf] }
 0x4c7   :  { %v12091_v18 = vor.u32 %v14027_v46, %v12090_v8  ;;  %v14065_v46 = vld [vmem:[#allocation11 + $0xeb4] sm:$0xf] }
 0x4c8   :  { %7149 = vmatpush.bf16.msra.mxu3 %v12367_v49  ;;  %v5422_v49 = vpop.f32.mrf.mxu3 }
 0x4c9   :  { %7206 = vmatpush.bf16.msra.mxu2 %v12147_v11  ;;  %v5423_v32 = vadd.f32 %v5422_v49, %v16284_v34  ;;  %v16919_v11 = vld [vmem:[#allocation56_spill] sm:$0xff]  ;;  %12719 = vmatmul.msk.bf16.gmra.mxu1 %vm1382_vm3, %v16236_v47 }
 0x4ca   :  { %7244 = vmatpush.bf16.msrb.mxu0 %v12595_v1  ;;  %v5463_v19 = vpop.f32.mrf.mxu1  ;;  %v16920_v1 = vld [vmem:[#allocation54_spill] sm:$0xff] }
 0x4cb   :  { %v3991_v44 = vadd.f32 %v16920_v1, %v16919_v11  ;;  %v5442_v0 = vadd.f32 %v16275_v6, %v5423_v32  ;;  %7010 = vmatmul.bf16.gmra.mxu3 %v16238_v53  ;;  %v14020_v6 = vld [vmem:[#allocation11 + $0xd48] sm:$0xf0]  ;;  %v12034_v11 = vld [vmem:[#allocation11 + $0xcf8] sm:$0xf]  ;;  %v14013_v1 = vld [vmem:[#allocation11 + $0xd10] sm:$0xf0] }
 0x4cc   :  { %7150 = vmatpush.bf16.msra.mxu3 %v12339_v35  ;;  %v5479_v14 = vpop.f32.mrf.mxu2  ;;  %v16336_v35 = vpop.f32.mrf.mxu0  ;;  %v12063_v59 = vor.u32 %v14020_v6, %v12062_v41  ;;  %v14125_v41 = vld [vmem:[#allocation11 + $0x1090] sm:$0xf0] }
 0x4cd   :  { %7207 = vmatpush.bf16.msra.mxu2 %v12119_v15  ;;  %v16334_v28 = vadd.f32 %v5479_v14, %v3991_v44  ;;  %v16340_v34 = vadd.f32 %v5460_v10, %v5442_v0  ;;  %v12283_v15 = vor.u32 %v14072_v27, %v12280_v54  ;;  %7105 = vmatmul.bf16.gmra.mxu0 %v16172_v51  ;;  %v14177_v10 = vld [vmem:[#allocation11 + $0x1234] sm:$0xf]  ;;  %v12482_v54 = vld [vmem:[#allocation11 + $0x1078] sm:$0xf] }
 0x4ce   :  { %7245 = vmatpush.bf16.msrb.mxu0 %v12567_v21  ;;  %v12510_v21 = vld [vmem:[#allocation11 + $0x10b0] sm:$0xf]  ;;  %v12035_v27 = vor.u32 %v14013_v1, %v12034_v11  ;;  %v14006_v11 = vld [vmem:[#allocation11 + $0xcd8] sm:$0xf0] }
 0x4cf   :  { %v12511_v8 = vor.u32 %v14132_v30, %v12510_v21  ;;  %v16921_v44 = vld [vmem:[#allocation43_spill] sm:$0xff]  ;;  %v12483_v21 = vor.u32 %v14125_v41, %v12482_v54  ;;  %v14118_v1 = vld [vmem:[#allocation11 + $0x1058] sm:$0xf0]  ;;  %v12196_v54 = vld [vmem:[#allocation11 + $0xe5c] sm:$0xf0] }
 0x4d0   :  { %7151 = vmatpush.bf16.msra.mxu3 %v12311_v37  ;;  %7067 = vmatmul.bf16.gmra.mxu2 %v16175_v52  ;;  %v5425_v49 = vpop.f32.mrf.mxu3  ;;  %v12700_v37 = vld [vmem:[#allocation11 + $0x124c] sm:$0xf0] }
 0x4d1   :  { %7208 = vmatpush.bf16.msra.mxu2 %v12091_v18  ;;  %v5426_v40 = vadd.f32 %v5425_v49, %v16299_v3  ;;  %v12703_v32 = vor.u32 %v14177_v10, %v12700_v37  ;;  %v12252_v18 = vld [vmem:[#allocation11 + $0xecc] sm:$0xf0]  ;;  %v14170_v49 = vld [vmem:[#allocation11 + $0x11fc] sm:$0xf]  ;;  %v12672_v10 = vld [vmem:[#allocation11 + $0x1214] sm:$0xf0] }
 0x4d2   :  { %7246 = vmatpush.bf16.msrb.mxu0 %v12539_v57  ;;  %v5465_v17 = vpop.f32.mrf.mxu1  ;;  %v16922_v57 = vld [vmem:[#allocation40_spill] sm:$0xff]  ;;  %v12255_v14 = vor.u32 %v14065_v46, %v12252_v18  ;;  %v12675_v37 = vor.u32 %v14170_v49, %v12672_v10  ;;  %v12006_v18 = vld [vmem:[#allocation11 + $0xcc0] sm:$0xf]  ;;  %v12426_v49 = vld [vmem:[#allocation11 + $0x1008] sm:$0xf] }
 0x4d3   :  { %v3994_v0 = vadd.f32 %v16922_v57, %v16921_v44  ;;  %7191 = vmatpush.bf16.msrb.mxu1 %v12703_v32  ;;  %v12224_v46 = vld [vmem:[#allocation11 + $0xe94] sm:$0xf0]  ;;  %v12454_v32 = vld [vmem:[#allocation11 + $0x1040] sm:$0xf]  ;;  %v14163_v44 = vld [vmem:[#allocation11 + $0x11c4] sm:$0xf] }
 0x4d4   :  { %7152 = vmatpush.bf16.msra.mxu3 %v12283_v15  ;;  %v5445_v15 = vadd.f32 %v16286_v16, %v5426_v40  ;;  %v5482_v6 = vpop.f32.mrf.mxu2  ;;  %v16351_v30 = vpop.f32.mrf.mxu0  ;;  %v12007_v40 = vor.u32 %v14006_v11, %v12006_v18  ;;  %v16923_v10 = vld [vmem:[#allocation42_spill] sm:$0xff] }
 0x4d5   :  { %7209 = vmatpush.bf16.msra.mxu2 %v12063_v59  ;;  %v16349_v3 = vadd.f32 %v5482_v6, %v3994_v0  ;;  %v12455_v0 = vor.u32 %v14118_v1, %v12454_v32  ;;  %v11978_v6 = vld [vmem:[#allocation11 + $0xc88] sm:$0xf] }
 0x4d6   :  { %7247 = vmatpush.bf16.msrb.mxu0 %v12511_v8  ;;  %v16353_v59 = vadd.f32 %v5463_v19, %v5445_v15  ;;  %v14058_v8 = vld [vmem:[#allocation11 + $0xe7c] sm:$0xf]  ;;  %v14051_v19 = vld [vmem:[#allocation11 + $0xe44] sm:$0xf] }
 0x4d7   :  { %v12227_v16 = vor.u32 %v14058_v8, %v12224_v46  ;;  %7192 = vmatpush.bf16.msrb.mxu1 %v12675_v37  ;;  %v3996_v8 = vadd.f32 %v16923_v10, %v16026_v42  ;;  %v12199_v46 = vor.u32 %v14051_v19, %v12196_v54  ;;  %v14111_v37 = vld [vmem:[#allocation11 + $0x1020] sm:$0xf0]  ;;  %v14156_v42 = vld [vmem:[#allocation11 + $0x118c] sm:$0xf]  ;;  %v14097_v10 = vld [vmem:[#allocation11 + $0xfb0] sm:$0xf0] }
 0x4d8   :  { %7153 = vmatpush.bf16.msra.mxu3 %v12255_v14  ;;  %v5427_v57 = vpop.f32.mrf.mxu3  ;;  %v12644_v14 = vld [vmem:[#allocation11 + $0x11dc] sm:$0xf0]  ;;  %v13992_v19 = vld [vmem:[#allocation11 + $0xc68] sm:$0xf0] }
 0x4d9   :  { %7210 = vmatpush.bf16.msra.mxu2 %v12035_v27  ;;  %v5428_v27 = vadd.f32 %v5427_v57, %v16309_v9  ;;  %v12647_v15 = vor.u32 %v14163_v44, %v12644_v14  ;;  %12720 = vmatmul.msk.bf16.vlgmr.msra.gmra.mxu1 %vm1382_vm3, %v16251_v29  ;;  %v12616_v44 = vld [vmem:[#allocation11 + $0x11a4] sm:$0xf0]  ;;  %v14044_v57 = vld [vmem:[#allocation11 + $0xe0c] sm:$0xf]  ;;  %v11950_v14 = vld [vmem:[#allocation11 + $0xc50] sm:$0xf] }
 0x4da   :  { %7248 = vmatpush.bf16.msrb.mxu0 %v12483_v21  ;;  %v5534_v41 = vpop.f32.mrf.mxu1  ;;  %v13999_v21 = vld [vmem:[#allocation11 + $0xca0] sm:$0xf0] }
 0x4db   :  { %v11979_v18 = vor.u32 %v13999_v21, %v11978_v6  ;;  %v5447_v11 = vadd.f32 %v16301_v63, %v5428_v27  ;;  %7081 = vmatmul.bf16.vlgmr.msrb.gmra.mxu3 %v16261_v24  ;;  %7193 = vmatpush.bf16.msrb.mxu1 %v12647_v15  ;;  %v12619_v63 = vor.u32 %v14156_v42, %v12616_v44  ;;  %v12398_v6 = vld [vmem:[#allocation11 + $0xfd0] sm:$0xf]  ;;  %v14104_v21 = vld [vmem:[#allocation11 + $0xfe8] sm:$0xf0]  ;;  %v12596_v42 = vld [vmem:[#allocation11 + $0x1174] sm:$0xf0] }
 0x4dc   :  { %7154 = vmatpush.bf16.msra.mxu3 %v12227_v16  ;;  %v5484_v32 = vpop.f32.mrf.mxu2  ;;  %v16361_v9 = vpop.f32.mrf.mxu0  ;;  %v12427_v16 = vor.u32 %v14111_v37, %v12426_v49  ;;  %v11951_v27 = vor.u32 %v13992_v19, %v11950_v14  ;;  %v12399_v15 = vor.u32 %v14104_v21, %v12398_v6  ;;  %v12370_v49 = vld [vmem:[#allocation11 + $0xf98] sm:$0xf]  ;;  %v16924_v44 = vld [vmem:[#allocation53_spill] sm:$0xff] }
 0x4dd   :  { %7211 = vmatpush.bf16.msra.mxu2 %v12007_v40  ;;  %v16359_v1 = vadd.f32 %v5484_v32, %v3996_v8  ;;  %v16365_v40 = vadd.f32 %v5465_v17, %v5447_v11  ;;  %7176 = vmatmul.bf16.vlgmr.msra.gmra.mxu0 %v16190_v55  ;;  %v14038_v8 = vld [vmem:[#allocation11 + $0xddc] sm:$0xf]  ;;  %v12371_v37 = vor.u32 %v14097_v10, %v12370_v49  ;;  %v12148_v11 = vld [vmem:[#allocation11 + $0xdf4] sm:$0xf0]  ;;  %v12342_v21 = vld [vmem:[#allocation11 + $0xf60] sm:$0xf] }
 0x4de   :  { %7249 = vmatpush.bf16.msrb.mxu0 %v12455_v0  ;;  %v12168_v0 = vld [vmem:[#allocation11 + $0xe24] sm:$0xf0]  ;;  %v14150_v32 = vld [vmem:[#allocation11 + $0x115c] sm:$0xf]  ;;  %v14143_v49 = vld [vmem:[#allocation11 + $0x1124] sm:$0xf] }
 0x4df   :  { %v12171_v54 = vor.u32 %v14044_v57, %v12168_v0  ;;  %7194 = vmatpush.bf16.msrb.mxu1 %v12619_v63  ;;  %v4065_v57 = vadd.f32 %v16924_v44, %v16041_v5  ;;  %v12151_v0 = vor.u32 %v14038_v8, %v12148_v11  ;;  %v12599_v14 = vor.u32 %v14150_v32, %v12596_v42  ;;  %v14031_v5 = vld [vmem:[#allocation11 + $0xda4] sm:$0xf]  ;;  %v12568_v10 = vld [vmem:[#allocation11 + $0x113c] sm:$0xf0]  ;;  %v14024_v11 = vld [vmem:[#allocation11 + $0xd6c] sm:$0xf] }
 0x4e0   :  { %7155 = vmatpush.bf16.msra.mxu3 %v12199_v46  ;;  %7138 = vmatmul.bf16.vlgmr.msrb.gmra.mxu2 %v16194_v13  ;;  %v5496_v17 = vpop.f32.mrf.mxu3  ;;  %v14136_v44 = vld [vmem:[#allocation11 + $0x10ec] sm:$0xf] }
 0x4e1   :  { %7212 = vmatpush.bf16.msra.mxu2 %v11979_v18  ;;  %v5497_v46 = vadd.f32 %v5496_v17, %v16324_v43  ;;  %v14090_v17 = vld [vmem:[#allocation11 + $0xf78] sm:$0xf0] }
 0x4e2   :  { %7250 = vmatpush.bf16.msrb.mxu0 %v12427_v16  ;;  %v5536_v18 = vpop.f32.mrf.mxu1 }
 0x4e3   :  { %v5516_v16 = vadd.f32 %v16311_v39, %v5497_v46  ;;  %v12571_v39 = vor.u32 %v14143_v49, %v12568_v10  ;;  %v12314_v46 = vld [vmem:[#allocation11 + $0xf28] sm:$0xf]  ;;  %v14076_v49 = vld [vmem:[#allocation11 + $0xf08] sm:$0xf0]  ;;  %v14129_v10 = vld [vmem:[#allocation11 + $0x10b4] sm:$0xf] }
 0x4e4   :  { %7156 = vmatpush.bf16.msra.mxu3 %v12171_v54  ;;  %v5553_v19 = vpop.f32.mrf.mxu2  ;;  %v16376_v43 = vpop.f32.mrf.mxu0  ;;  %v12343_v54 = vor.u32 %v14090_v17, %v12342_v21 }
 0x4e5   :  { %7213 = vmatpush.bf16.msra.mxu2 %v11951_v27  ;;  %v16374_v6 = vadd.f32 %v5553_v19, %v4065_v57  ;;  %v16378_v63 = vadd.f32 %v5534_v41, %v5516_v16  ;;  %v12120_v27 = vld [vmem:[#allocation11 + $0xdbc] sm:$0xf0]  ;;  %v12540_v41 = vld [vmem:[#allocation11 + $0x1104] sm:$0xf0]  ;;  %v4067_v16 = vadd.f32 %v16038_v62, %v16052_v25  ;;  %v14017_v62 = vld [vmem:[#allocation11 + $0xd34] sm:$0xf] }
 0x4e6   :  { %7251 = vmatpush.bf16.msrb.mxu0 %v12399_v15  ;;  %v12123_v8 = vor.u32 %v14031_v5, %v12120_v27  ;;  %v12092_v15 = vld [vmem:[#allocation11 + $0xd84] sm:$0xf0]  ;;  %v12543_v19 = vor.u32 %v14136_v44, %v12540_v41  ;;  %v12286_v27 = vld [vmem:[#allocation11 + $0xef0] sm:$0xf]  ;;  %v14069_v41 = vld [vmem:[#allocation11 + $0xed0] sm:$0xf0] }
 0x4e7   :  { %v12287_v25 = vor.u32 %v14076_v49, %v12286_v27  ;;  %v12484_v27 = vld [vmem:[#allocation11 + $0x1094] sm:$0xf0] }
 0x4e8   :  { %7225 = vmatpush.bf16.msrb.mxu3 %v12371_v37  ;;  %v14083_v37 = vld [vmem:[#allocation11 + $0xf40] sm:$0xf0]  ;;  %v5498_v32 = vpop.f32.mrf.mxu3 }
 0x4e9   :  { %7282 = vmatpush.bf16.msrb.mxu2 %v12151_v0  ;;  %v12315_v42 = vor.u32 %v14083_v37, %v12314_v46  ;;  %v5499_v57 = vadd.f32 %v5498_v32, %v16334_v28  ;;  %12721 = vmatmul.msk.bf16.gmra.mxu1 %vm1382_vm3, %v16236_v47  ;;  %v12258_v32 = vld [vmem:[#allocation11 + $0xeb8] sm:$0xf] }
 0x4ea   :  { %7320 = vmatpush.bf16.msra.mxu0 %v12599_v14  ;;  %v5539_v0 = vpop.f32.mrf.mxu1  ;;  %v12095_v14 = vor.u32 %v14024_v11, %v12092_v15  ;;  %v14181_v11 = vld [vmem:[#allocation11 + $0x1250] sm:$0xf0] }
 0x4eb   :  { %v5518_v21 = vadd.f32 %v16326_v4, %v5499_v57  ;;  %7086 = vmatmul.bf16.gmra.mxu3 %v16238_v53  ;;  %v12064_v4 = vld [vmem:[#allocation11 + $0xd4c] sm:$0xf0]  ;;  %v14010_v57 = vld [vmem:[#allocation11 + $0xcfc] sm:$0xf] }
 0x4ec   :  { %7226 = vmatpush.bf16.msrb.mxu3 %v12343_v54  ;;  %v5555_v17 = vpop.f32.mrf.mxu2  ;;  %v16386_v54 = vpop.f32.mrf.mxu0 }
 0x4ed   :  { %7283 = vmatpush.bf16.msrb.mxu2 %v12123_v8  ;;  %v16384_v5 = vadd.f32 %v5555_v17, %v4067_v16  ;;  %v16390_v28 = vadd.f32 %v5536_v18, %v5518_v21  ;;  %v12512_v8 = vld [vmem:[#allocation11 + $0x10cc] sm:$0xf0]  ;;  %7181 = vmatmul.bf16.gmra.mxu0 %v16172_v51  ;;  %v12706_v18 = vld [vmem:[#allocation11 + $0x1238] sm:$0xf]  ;;  %v4070_v16 = vadd.f32 %v16049_v45, %v16068_v60  ;;  %v14122_v17 = vld [vmem:[#allocation11 + $0x107c] sm:$0xf] }
 0x4ee   :  { %7321 = vmatpush.bf16.msra.mxu0 %v12571_v39  ;;  %v12067_v39 = vor.u32 %v14017_v62, %v12064_v4  ;;  %v12515_v46 = vor.u32 %v14129_v10, %v12512_v8  ;;  %v12707_v44 = vor.u32 %v14181_v11, %v12706_v18  ;;  %v12678_v8 = vld [vmem:[#allocation11 + $0x1200] sm:$0xf]  ;;  %v14174_v45 = vld [vmem:[#allocation11 + $0x1218] sm:$0xf0] }
 0x4ef   :  { %v12230_v60 = vld [vmem:[#allocation11 + $0xe80] sm:$0xf] }
 0x4f0   :  { %7227 = vmatpush.bf16.msrb.mxu3 %v12315_v42  ;;  %7143 = vmatmul.bf16.gmra.mxu2 %v16175_v52  ;;  %v5501_v37 = vpop.f32.mrf.mxu3  ;;  %v12008_v18 = vld [vmem:[#allocation11 + $0xcdc] sm:$0xf0] }
 0x4f1   :  { %7284 = vmatpush.bf16.msrb.mxu2 %v12095_v14  ;;  %v5502_v42 = vadd.f32 %v5501_v37, %v16349_v3  ;;  %v12036_v14 = vld [vmem:[#allocation11 + $0xd14] sm:$0xf0]  ;;  %7267 = vmatpush.bf16.msra.mxu1 %v12707_v44  ;;  %v14003_v37 = vld [vmem:[#allocation11 + $0xcc4] sm:$0xf]  ;;  %v12650_v44 = vld [vmem:[#allocation11 + $0x11c8] sm:$0xf] }
 0x4f2   :  { %7322 = vmatpush.bf16.msra.mxu0 %v12543_v19  ;;  %v5541_v15 = vpop.f32.mrf.mxu1  ;;  %v12259_v19 = vor.u32 %v14069_v41, %v12258_v32  ;;  %v12039_v21 = vor.u32 %v14010_v57, %v12036_v14  ;;  %v12011_v11 = vor.u32 %v14003_v37, %v12008_v18  ;;  %v14115_v32 = vld [vmem:[#allocation11 + $0x1044] sm:$0xf] }
 0x4f3   :  { %v5521_v49 = vadd.f32 %v16336_v35, %v5502_v42  ;;  %v12456_v42 = vld [vmem:[#allocation11 + $0x105c] sm:$0xf0]  ;;  %v14167_v14 = vld [vmem:[#allocation11 + $0x11e0] sm:$0xf0] }
 0x4f4   :  { %7228 = vmatpush.bf16.msrb.mxu3 %v12287_v25  ;;  %v5558_v62 = vpop.f32.mrf.mxu2  ;;  %v12487_v25 = vor.u32 %v14122_v17, %v12484_v27  ;;  %v16401_v4 = vpop.f32.mrf.mxu0  ;;  %v12459_v57 = vor.u32 %v14115_v32, %v12456_v42  ;;  %v12651_v17 = vor.u32 %v14167_v14, %v12650_v44  ;;  %v13996_v27 = vld [vmem:[#allocation11 + $0xc8c] sm:$0xf]  ;;  %v12174_v42 = vld [vmem:[#allocation11 + $0xe10] sm:$0xf] }
 0x4f5   :  { %7285 = vmatpush.bf16.msrb.mxu2 %v12067_v39  ;;  %v16399_v3 = vadd.f32 %v5558_v62, %v4070_v16  ;;  %v16403_v10 = vadd.f32 %v5539_v0, %v5521_v49  ;;  %v12679_v39 = vor.u32 %v14174_v45, %v12678_v8  ;;  %v12202_v0 = vld [vmem:[#allocation11 + $0xe48] sm:$0xf]  ;;  %v14055_v16 = vld [vmem:[#allocation11 + $0xe60] sm:$0xf0]  ;;  %v14108_v62 = vld [vmem:[#allocation11 + $0x100c] sm:$0xf] }
 0x4f6   :  { %7323 = vmatpush.bf16.msra.mxu0 %v12515_v46  ;;  %v14062_v46 = vld [vmem:[#allocation11 + $0xe98] sm:$0xf0]  ;;  %v11980_v49 = vld [vmem:[#allocation11 + $0xca4] sm:$0xf0]  ;;  %v12203_v45 = vor.u32 %v14055_v16, %v12202_v0  ;;  %v14160_v32 = vld [vmem:[#allocation11 + $0x11a8] sm:$0xf0] }
 0x4f7   :  { %v12231_v35 = vor.u32 %v14062_v46, %v12230_v60  ;;  %7268 = vmatpush.bf16.msra.mxu1 %v12679_v39  ;;  %v11983_v60 = vor.u32 %v13996_v27, %v11980_v49  ;;  %v12428_v39 = vld [vmem:[#allocation11 + $0x1024] sm:$0xf0]  ;;  %v14048_v44 = vld [vmem:[#allocation11 + $0xe28] sm:$0xf0]  ;;  %v14101_v16 = vld [vmem:[#allocation11 + $0xfd4] sm:$0xf] }
 0x4f8   :  { %7229 = vmatpush.bf16.msrb.mxu3 %v12259_v19  ;;  %v5503_v41 = vpop.f32.mrf.mxu3  ;;  %v12175_v14 = vor.u32 %v14048_v44, %v12174_v42  ;;  %v14094_v27 = vld [vmem:[#allocation11 + $0xf9c] sm:$0xf]  ;;  %v12372_v49 = vld [vmem:[#allocation11 + $0xfb4] sm:$0xf0]  ;;  %v12344_v44 = vld [vmem:[#allocation11 + $0xf7c] sm:$0xf0] }
 0x4f9   :  { %7286 = vmatpush.bf16.msrb.mxu2 %v12039_v21  ;;  %v5504_v19 = vadd.f32 %v5503_v41, %v16359_v1  ;;  %12722 = vmatmul.msk.bf16.vlgmr.msrb.gmra.mxu1 %vm1382_vm3, %v16251_v29  ;;  %v13989_v41 = vld [vmem:[#allocation11 + $0xc54] sm:$0xf] }
 0x4fa   :  { %7324 = vmatpush.bf16.msra.mxu0 %v12487_v25  ;;  %v5610_v21 = vpop.f32.mrf.mxu1  ;;  %v16925_v25 = vld [vmem:[#allocation57_spill] sm:$0xff] }
 0x4fb   :  { %v4072_v8 = vadd.f32 %v16925_v25, %v16077_v50  ;;  %v5523_v46 = vadd.f32 %v16351_v30, %v5504_v19  ;;  %7157 = vmatmul.bf16.vlgmr.msra.gmra.mxu3 %v16261_v24  ;;  %7269 = vmatpush.bf16.msra.mxu1 %v12651_v17  ;;  %v12622_v50 = vld [vmem:[#allocation11 + $0x1190] sm:$0xf] }
 0x4fc   :  { %7230 = vmatpush.bf16.msrb.mxu3 %v12231_v35  ;;  %v5560_v37 = vpop.f32.mrf.mxu2  ;;  %v16411_v1 = vpop.f32.mrf.mxu0  ;;  %v12431_v35 = vor.u32 %v14108_v62, %v12428_v39  ;;  %v12623_v30 = vor.u32 %v14160_v32, %v12622_v50  ;;  %v12400_v19 = vld [vmem:[#allocation11 + $0xfec] sm:$0xf0]  ;;  %v12154_v62 = vld [vmem:[#allocation11 + $0xde0] sm:$0xf] }
 0x4fd   :  { %7287 = vmatpush.bf16.msrb.mxu2 %v12011_v11  ;;  %v16409_v18 = vadd.f32 %v5560_v37, %v4072_v8  ;;  %v16415_v11 = vadd.f32 %v5541_v15, %v5523_v46  ;;  %7252 = vmatmul.bf16.vlgmr.msrb.gmra.mxu0 %v16190_v55  ;;  %v12403_v17 = vor.u32 %v14101_v16, %v12400_v19  ;;  %v12602_v39 = vld [vmem:[#allocation11 + $0x1160] sm:$0xf]  ;;  %v14154_v46 = vld [vmem:[#allocation11 + $0x1178] sm:$0xf0]  ;;  %v12574_v16 = vld [vmem:[#allocation11 + $0x1128] sm:$0xf] }
 0x4fe   :  { %7325 = vmatpush.bf16.msra.mxu0 %v12459_v57  ;;  %v11952_v57 = vld [vmem:[#allocation11 + $0xc6c] sm:$0xf0]  ;;  %v12603_v50 = vor.u32 %v14154_v46, %v12602_v39  ;;  %v14147_v19 = vld [vmem:[#allocation11 + $0x1140] sm:$0xf0]  ;;  %v14140_v39 = vld [vmem:[#allocation11 + $0x1108] sm:$0xf0] }
 0x4ff   :  { %v11955_v0 = vor.u32 %v13989_v41, %v11952_v57  ;;  %7270 = vmatpush.bf16.msra.mxu1 %v12623_v30  ;;  %v14087_v30 = vld [vmem:[#allocation11 + $0xf64] sm:$0xf]  ;;  %v12126_v41 = vld [vmem:[#allocation11 + $0xda8] sm:$0xf] }
 0x500   :  { %7231 = vmatpush.bf16.msrb.mxu3 %v12203_v45  ;;  %7214 = vmatmul.bf16.vlgmr.msra.gmra.mxu2 %v16194_v13  ;;  %v5572_v15 = vpop.f32.mrf.mxu3  ;;  %v12375_v45 = vor.u32 %v14094_v27, %v12372_v49  ;;  %v12575_v49 = vor.u32 %v14147_v19, %v12574_v16  ;;  %v14133_v16 = vld [vmem:[#allocation11 + $0x10d0] sm:$0xf0] }
 0x501   :  { %7288 = vmatpush.bf16.msrb.mxu2 %v11983_v60  ;;  %v5573_v25 = vadd.f32 %v5572_v15, %v16374_v6  ;;  %v14042_v60 = vld [vmem:[#allocation11 + $0xdf8] sm:$0xf0] }
 0x502   :  { %7326 = vmatpush.bf16.msra.mxu0 %v12431_v35  ;;  %v5612_v8 = vpop.f32.mrf.mxu1  ;;  %v12155_v37 = vor.u32 %v14042_v60, %v12154_v62  ;;  %v14080_v62 = vld [vmem:[#allocation11 + $0xf2c] sm:$0xf]  ;;  %v12546_v60 = vld [vmem:[#allocation11 + $0x10f0] sm:$0xf] }
 0x503   :  { %v5592_v32 = vadd.f32 %v16361_v9, %v5573_v25  ;;  %v12316_v25 = vld [vmem:[#allocation11 + $0xf44] sm:$0xf0] }
 0x504   :  { %7232 = vmatpush.bf16.msrb.mxu3 %v12175_v14  ;;  %v16422_v42 = vpop.f32.mrf.mxu2  ;;  %v16424_v35 = vpop.f32.mrf.mxu0  ;;  %v12347_v14 = vor.u32 %v14087_v30, %v12344_v44  ;;  %v14073_v44 = vld [vmem:[#allocation11 + $0xef4] sm:$0xf] }
 0x505   :  { %7289 = vmatpush.bf16.msrb.mxu2 %v11955_v0  ;;  %v16426_v6 = vadd.f32 %v5610_v21, %v5592_v32  ;;  %v14035_v0 = vld [vmem:[#allocation11 + $0xdc0] sm:$0xf0]  ;;  %v12319_v21 = vor.u32 %v14080_v62, %v12316_v25  ;;  %v14066_v62 = vld [vmem:[#allocation11 + $0xebc] sm:$0xf] }
 0x506   :  { %7327 = vmatpush.bf16.msra.mxu0 %v12403_v17  ;;  %v12127_v27 = vor.u32 %v14035_v0, %v12126_v41  ;;  %v12098_v17 = vld [vmem:[#allocation11 + $0xd70] sm:$0xf]  ;;  %v12518_v0 = vld [vmem:[#allocation11 + $0x10b8] sm:$0xf] }
 0x507   :  { %v12288_v41 = vld [vmem:[#allocation11 + $0xf0c] sm:$0xf0] }
 0x508   :  { %7301 = vmatpush.bf16.msra.mxu3 %v12375_v45  ;;  %v5574_v57 = vpop.f32.mrf.mxu3  ;;  %v14028_v45 = vld [vmem:[#allocation11 + $0xd88] sm:$0xf0] }
 0x509   :  { %7358 = vmatpush.bf16.msra.mxu2 %v12155_v37  ;;  %v5575_v9 = vadd.f32 %v5574_v57, %v16384_v5  ;;  %12723 = vmatmul.msk.bf16.gmra.mxu1 %vm1382_vm3, %v16236_v47  ;;  %v12547_v5 = vor.u32 %v14140_v39, %v12546_v60  ;;  %v12070_v57 = vld [vmem:[#allocation11 + $0xd38] sm:$0xf]  ;;  %v12042_v60 = vld [vmem:[#allocation11 + $0xd00] sm:$0xf]  ;;  %v14014_v39 = vld [vmem:[#allocation11 + $0xd18] sm:$0xf0] }
 0x50a   :  { %7396 = vmatpush.bf16.msrb.mxu0 %v12603_v50  ;;  %v5615_v15 = vpop.f32.mrf.mxu1  ;;  %v12099_v50 = vor.u32 %v14028_v45, %v12098_v17  ;;  %v12260_v45 = vld [vmem:[#allocation11 + $0xed4] sm:$0xf0] }
 0x50b   :  { %v5594_v46 = vadd.f32 %v16376_v43, %v5575_v9  ;;  %7162 = vmatmul.bf16.gmra.mxu3 %v16238_v53  ;;  %v12291_v43 = vor.u32 %v14073_v44, %v12288_v41  ;;  %v12490_v44 = vld [vmem:[#allocation11 + $0x1080] sm:$0xf] }
 0x50c   :  { %7302 = vmatpush.bf16.msra.mxu3 %v12347_v14  ;;  %v16430_v37 = vpop.f32.mrf.mxu2  ;;  %v16432_v32 = vpop.f32.mrf.mxu0  ;;  %v14021_v14 = vld [vmem:[#allocation11 + $0xd50] sm:$0xf0] }
 0x50d   :  { %7359 = vmatpush.bf16.msra.mxu2 %v12127_v27  ;;  %v16436_v30 = vadd.f32 %v5612_v8, %v5594_v46  ;;  %7257 = vmatmul.bf16.gmra.mxu0 %v16172_v51  ;;  %v12071_v19 = vor.u32 %v14021_v14, %v12070_v57  ;;  %v12519_v8 = vor.u32 %v14133_v16, %v12518_v0  ;;  %v14178_v27 = vld [vmem:[#allocation11 + $0x123c] sm:$0xf]  ;;  %v14171_v16 = vld [vmem:[#allocation11 + $0x1204] sm:$0xf] }
 0x50e   :  { %7397 = vmatpush.bf16.msrb.mxu0 %v12575_v49  ;;  %v12708_v49 = vld [vmem:[#allocation11 + $0x1254] sm:$0xf0]  ;;  %v12263_v46 = vor.u32 %v14066_v62, %v12260_v45  ;;  %v12014_v62 = vld [vmem:[#allocation11 + $0xcc8] sm:$0xf] }
 0x510   :  { %7303 = vmatpush.bf16.msra.mxu3 %v12319_v21  ;;  %7219 = vmatmul.bf16.gmra.mxu2 %v16175_v52  ;;  %v5577_v9 = vpop.f32.mrf.mxu3  ;;  %v12711_v21 = vor.u32 %v14178_v27, %v12708_v49 }
 0x511   :  { %7360 = vmatpush.bf16.msra.mxu2 %v12099_v50  ;;  %v5578_v25 = vadd.f32 %v5577_v9, %v16399_v3  ;;  %v14126_v50 = vld [vmem:[#allocation11 + $0x1098] sm:$0xf0]  ;;  %v14059_v9 = vld [vmem:[#allocation11 + $0xe84] sm:$0xf] }
 0x512   :  { %7398 = vmatpush.bf16.msrb.mxu0 %v12547_v5  ;;  %v5617_v17 = vpop.f32.mrf.mxu1  ;;  %7343 = vmatpush.bf16.msrb.mxu1 %v12711_v21  ;;  %v12043_v5 = vor.u32 %v14014_v39, %v12042_v60  ;;  %v12491_v3 = vor.u32 %v14126_v50, %v12490_v44  ;;  %v14119_v39 = vld [vmem:[#allocation11 + $0x1060] sm:$0xf0]  ;;  %v12652_v44 = vld [vmem:[#allocation11 + $0x11e4] sm:$0xf0]  ;;  %v14052_v50 = vld [vmem:[#allocation11 + $0xe4c] sm:$0xf] }
 0x513   :  { %v5597_v41 = vadd.f32 %v16386_v54, %v5578_v25  ;;  %v12232_v54 = vld [vmem:[#allocation11 + $0xe9c] sm:$0xf0]  ;;  %v14007_v25 = vld [vmem:[#allocation11 + $0xce0] sm:$0xf0] }
 0x514   :  { %7304 = vmatpush.bf16.msra.mxu3 %v12291_v43  ;;  %v16443_v57 = vpop.f32.mrf.mxu2  ;;  %v16445_v14 = vpop.f32.mrf.mxu0  ;;  %v12680_v43 = vld [vmem:[#allocation11 + $0x121c] sm:$0xf0]  ;;  %v12235_v45 = vor.u32 %v14059_v9, %v12232_v54  ;;  %v12015_v60 = vor.u32 %v14007_v25, %v12014_v62  ;;  %v12434_v9 = vld [vmem:[#allocation11 + $0x1010] sm:$0xf] }
 0x515   :  { %7361 = vmatpush.bf16.msra.mxu2 %v12071_v19  ;;  %v16447_v0 = vadd.f32 %v5615_v15, %v5597_v41  ;;  %v12683_v49 = vor.u32 %v14171_v16, %v12680_v43  ;;  %v14164_v15 = vld [vmem:[#allocation11 + $0x11cc] sm:$0xf]  ;;  %v12204_v41 = vld [vmem:[#allocation11 + $0xe64] sm:$0xf0] }
 0x516   :  { %7399 = vmatpush.bf16.msrb.mxu0 %v12519_v8  ;;  %v12462_v8 = vld [vmem:[#allocation11 + $0x1048] sm:$0xf]  ;;  %v12655_v16 = vor.u32 %v14164_v15, %v12652_v44  ;;  %v12207_v43 = vor.u32 %v14052_v50, %v12204_v41  ;;  %v11958_v15 = vld [vmem:[#allocation11 + $0xc58] sm:$0xf]  ;;  %v13993_v44 = vld [vmem:[#allocation11 + $0xc70] sm:$0xf0] }
 0x517   :  { %7344 = vmatpush.bf16.msrb.mxu1 %v12683_v49  ;;  %v14112_v49 = vld [vmem:[#allocation11 + $0x1028] sm:$0xf0]  ;;  %v14105_v41 = vld [vmem:[#allocation11 + $0xff0] sm:$0xf0] }
 0x518   :  { %7305 = vmatpush.bf16.msra.mxu3 %v12263_v46  ;;  %v5579_v27 = vpop.f32.mrf.mxu3  ;;  %v12463_v46 = vor.u32 %v14119_v39, %v12462_v8  ;;  %v12435_v25 = vor.u32 %v14112_v49, %v12434_v9  ;;  %v12176_v39 = vld [vmem:[#allocation11 + $0xe2c] sm:$0xf0]  ;;  %v11959_v49 = vor.u32 %v13993_v44, %v11958_v15 }
 0x519   :  { %7362 = vmatpush.bf16.msra.mxu2 %v12043_v5  ;;  %v5580_v19 = vadd.f32 %v5579_v27, %v16409_v18  ;;  %v11986_v18 = vld [vmem:[#allocation11 + $0xc90] sm:$0xf]  ;;  %v14000_v27 = vld [vmem:[#allocation11 + $0xca8] sm:$0xf0]  ;;  %12724 = vmatmul.msk.bf16.vlgmr.msra.gmra.mxu1 %vm1382_vm3, %v16251_v29 }
 0x51a   :  { %7400 = vmatpush.bf16.msrb.mxu0 %v12491_v3  ;;  %v6968_v21 = vpop.f32.mrf.mxu1 }
 0x51b   :  { %v5599_v5 = vadd.f32 %v16401_v4, %v5580_v19  ;;  %7233 = vmatmul.bf16.vlgmr.msrb.gmra.mxu3 %v16261_v24  ;;  %v11987_v4 = vor.u32 %v14000_v27, %v11986_v18  ;;  %v14157_v19 = vld [vmem:[#allocation11 + $0x1194] sm:$0xf]  ;;  %7345 = vmatpush.bf16.msrb.mxu1 %v12655_v16  ;;  %v12378_v18 = vld [vmem:[#allocation11 + $0xfa0] sm:$0xf]  ;;  %v14098_v27 = vld [vmem:[#allocation11 + $0xfb8] sm:$0xf0] }
 0x51c   :  { %v16451_v3 = vpop.f32.mrf.mxu2  ;;  %7306 = vmatpush.bf16.msra.mxu3 %v12235_v45  ;;  %v16453_v54 = vpop.f32.mrf.mxu0  ;;  %v12624_v45 = vld [vmem:[#allocation11 + $0x11ac] sm:$0xf0] }
 0x51d   :  { %7363 = vmatpush.bf16.msra.mxu2 %v12015_v60  ;;  %v16457_v62 = vadd.f32 %v5617_v17, %v5599_v5  ;;  %v14045_v60 = vld [vmem:[#allocation11 + $0xe14] sm:$0xf]  ;;  %v12627_v8 = vor.u32 %v14157_v19, %v12624_v45  ;;  %7328 = vmatmul.bf16.vlgmr.msra.gmra.mxu0 %v16190_v55  ;;  %v12379_v19 = vor.u32 %v14098_v27, %v12378_v18  ;;  %v12294_v18 = vld [vmem:[#allocation11 + $0xef8] sm:$0xf] }
 0x51e   :  { %7401 = vmatpush.bf16.msrb.mxu0 %v12463_v46  ;;  %v12179_v50 = vor.u32 %v14045_v60, %v12176_v39  ;;  %v12406_v46 = vld [vmem:[#allocation11 + $0xfd8] sm:$0xf]  ;;  %v14077_v27 = vld [vmem:[#allocation11 + $0xf10] sm:$0xf0] }
 0x51f   :  { %v12407_v5 = vor.u32 %v14105_v41, %v12406_v46  ;;  %7346 = vmatpush.bf16.msrb.mxu1 %v12627_v8  ;;  %v14091_v46 = vld [vmem:[#allocation11 + $0xf80] sm:$0xf0]  ;;  %v14084_v8 = vld [vmem:[#allocation11 + $0xf48] sm:$0xf0] }
 0x520   :  { %7307 = vmatpush.bf16.msra.mxu3 %v12207_v43  ;;  %7290 = vmatmul.bf16.vlgmr.msrb.gmra.mxu2 %v16194_v13  ;;  %v6930_v17 = vpop.f32.mrf.mxu3 }
 0x521   :  { %v6931_v9 = vadd.f32 %v6930_v17, %v16422_v42  ;;  %7364 = vmatpush.bf16.msra.mxu2 %v11987_v4  ;;  %v12350_v42 = vld [vmem:[#allocation11 + $0xf68] sm:$0xf]  ;;  %v12322_v4 = vld [vmem:[#allocation11 + $0xf30] sm:$0xf] }
 0x522   :  { %7402 = vmatpush.bf16.msrb.mxu0 %v12435_v25  ;;  %v6970_v16 = vpop.f32.mrf.mxu1  ;;  %v12351_v44 = vor.u32 %v14091_v46, %v12350_v42 }
 0x523   :  { %v6950_v45 = vadd.f32 %v16411_v1, %v6931_v9  ;;  %v12714_v9 = vld [vmem:[#allocation11 + $0x1240] sm:$0xf] }
 0x524   :  { %v16464_v43 = vpop.f32.mrf.mxu2  ;;  %7308 = vmatpush.bf16.msra.mxu3 %v12179_v50  ;;  %v16466_v60 = vpop.f32.mrf.mxu0  ;;  %v12323_v50 = vor.u32 %v14084_v8, %v12322_v4 }
 0x525   :  { %v6969_v25 = vadd.f32 %v6968_v21, %v6950_v45  ;;  %7365 = vmatpush.bf16.msra.mxu2 %v11959_v49  ;;  %v14182_v49 = vld [vmem:[#allocation11 + $0x1258] sm:$0xf0] }
 0x526   :  { %7403 = vmatpush.bf16.msrb.mxu0 %v12407_v5  ;;  %v12715_v42 = vor.u32 %v14182_v49, %v12714_v9  ;;  %v12658_v9 = vld [vmem:[#allocation11 + $0x11d0] sm:$0xf] }
 0x527   :  { %v16469_v39 = vadd.f32 %v6969_v25, %v16096_v22 }
 0x528   :  { %7377 = vmatpush.bf16.msrb.mxu3 %v12379_v19  ;;  %v6932_v15 = vpop.f32.mrf.mxu3  ;;  %v12266_v19 = vld [vmem:[#allocation11 + $0xec0] sm:$0xf]  ;;  %7419 = vmatpush.bf16.msra.mxu1 %v12715_v42  ;;  %v14056_v42 = vld [vmem:[#allocation11 + $0xe68] sm:$0xf0] }
 0x529   :  { %v6933_v1 = vadd.f32 %v6932_v15, %v16430_v37  ;;  %12725 = vmatmul.msk.bf16.gmra.mxu1 %vm1382_vm3, %v16236_v47  ;;  %v12295_v37 = vor.u32 %v14077_v27, %v12294_v18  ;;  %v12238_v18 = vld [vmem:[#allocation11 + $0xe88] sm:$0xf] }
 0x52a   :  { %v6973_v41 = vpop.f32.mrf.mxu1 }
 0x52b   :  { %v6952_v17 = vadd.f32 %v16424_v35, %v6933_v1  ;;  %7238 = vmatmul.bf16.gmra.mxu3 %v16238_v53 }
 0x52c   :  { %7378 = vmatpush.bf16.msrb.mxu3 %v12351_v44  ;;  %v16473_v5 = vpop.f32.mrf.mxu2  ;;  %v16475_v21 = vpop.f32.mrf.mxu0 }
 0x52d   :  { %v16479_v22 = vadd.f32 %v6970_v16, %v6952_v17  ;;  %7333 = vmatmul.bf16.gmra.mxu0 %v16172_v51  ;;  %v14070_v16 = vld [vmem:[#allocation11 + $0xed8] sm:$0xf0]  ;;  %v14175_v17 = vld [vmem:[#allocation11 + $0x1220] sm:$0xf0] }
 0x52e   :  { %v12267_v46 = vor.u32 %v14070_v16, %v12266_v19 }
 0x530   :  { %7379 = vmatpush.bf16.msrb.mxu3 %v12323_v50  ;;  %7295 = vmatmul.bf16.gmra.mxu2 %v16175_v52  ;;  %v6935_v35 = vpop.f32.mrf.mxu3  ;;  %v12686_v50 = vld [vmem:[#allocation11 + $0x1208] sm:$0xf] }
 0x531   :  { %v6936_v45 = vadd.f32 %v6935_v35, %v16443_v57  ;;  %v12687_v27 = vor.u32 %v14175_v17, %v12686_v50  ;;  %v14063_v35 = vld [vmem:[#allocation11 + $0xea0] sm:$0xf0]  ;;  %v14161_v50 = vld [vmem:[#allocation11 + $0x11b0] sm:$0xf0]  ;;  %v12182_v17 = vld [vmem:[#allocation11 + $0xe18] sm:$0xf] }
 0x532   :  { %v6975_v25 = vpop.f32.mrf.mxu1  ;;  %v12239_v19 = vor.u32 %v14063_v35, %v12238_v18 }
 0x533   :  { %v6955_v4 = vadd.f32 %v16432_v32, %v6936_v45  ;;  %v12210_v45 = vld [vmem:[#allocation11 + $0xe50] sm:$0xf]  ;;  %7420 = vmatpush.bf16.msra.mxu1 %v12687_v27 }
 0x534   :  { %7380 = vmatpush.bf16.msrb.mxu3 %v12295_v37  ;;  %v6992_v15 = vpop.f32.mrf.mxu2  ;;  %v16486_v44 = vpop.f32.mrf.mxu0  ;;  %v14168_v37 = vld [vmem:[#allocation11 + $0x11e8] sm:$0xf0] }
 0x535   :  { %v6974_v8 = vadd.f32 %v6973_v41, %v6955_v4  ;;  %v12659_v41 = vor.u32 %v14168_v37, %v12658_v9 }
 0x537   :  { %v16489_v1 = vadd.f32 %v6974_v8, %v16119_v38  ;;  %7421 = vmatpush.bf16.msra.mxu1 %v12659_v41 }
 0x538   :  { %7381 = vmatpush.bf16.msrb.mxu3 %v12267_v46  ;;  %v6937_v57 = vpop.f32.mrf.mxu3  ;;  %v12211_v46 = vor.u32 %v14056_v42, %v12210_v45 }
 0x539   :  { %v6938_v49 = vadd.f32 %v6937_v57, %v16451_v3  ;;  %12726 = vmatmul.msk.bf16.vlgmr.msrb.gmra.mxu1 %vm1382_vm3, %v16251_v29  ;;  %v12630_v3 = vld [vmem:[#allocation11 + $0x1198] sm:$0xf]  ;;  %v14049_v57 = vld [vmem:[#allocation11 + $0xe30] sm:$0xf0] }
 0x53a   :  { %v7044_v32 = vpop.f32.mrf.mxu1  ;;  %v12631_v18 = vor.u32 %v14161_v50, %v12630_v3 }
 0x53b   :  { %v6957_v16 = vadd.f32 %v16445_v14, %v6938_v49  ;;  %7309 = vmatmul.bf16.vlgmr.msra.gmra.mxu3 %v16261_v24  ;;  %v12183_v14 = vor.u32 %v14049_v57, %v12182_v17 }
 0x53c   :  { %v16493_v38 = vpop.f32.mrf.mxu2  ;;  %7382 = vmatpush.bf16.msrb.mxu3 %v12239_v19  ;;  %v7101_v4 = vpop.f32.mrf.mxu0  ;;  %7422 = vmatpush.bf16.msra.mxu1 %v12631_v18 }
 0x53d   :  { %v16497_v8 = vadd.f32 %v6975_v25, %v6957_v16  ;;  %7404 = vmatmul.bf16.vlgmr.msrb.gmra.mxu0 %v16190_v55 }
 0x540   :  { %7383 = vmatpush.bf16.msrb.mxu3 %v12211_v46  ;;  %7366 = vmatmul.bf16.vlgmr.msra.gmra.mxu2 %v16194_v13  ;;  %v7006_v27 = vpop.f32.mrf.mxu3 }
 0x541   :  { %v7007_v35 = vadd.f32 %v7006_v27, %v16464_v43 }
 0x542   :  { %v16503_v9 = vpop.f32.mrf.mxu1 }
 0x543   :  { %v7026_v25 = vadd.f32 %v16453_v54, %v7007_v35 }
 0x544   :  { %v7063_v37 = vpop.f32.mrf.mxu2  ;;  %7384 = vmatpush.bf16.msrb.mxu3 %v12183_v14  ;;  %v16506_v19 = vpop.f32.mrf.mxu0 }
 0x545   :  { %v7045_v49 = vadd.f32 %v7044_v32, %v7026_v25  ;;  %16926 = vst [vmem:[#allocation58_spill] sm:$0xff] %v16506_v19 }
 0x547   :  { %v16509_v45 = vadd.f32 %v7045_v49, %v16142_v7 }
 0x548   :  { %v16511_v55 = vpop.f32.mrf.mxu3 }
 0x549   :  { %12727 = vmatmul.msk.bf16.gmra.mxu1 %vm1382_vm3, %v16236_v47 }
 0x54a   :  { %v7049_v42 = vpop.f32.mrf.mxu1 }
 0x54b   :  { %7314 = vmatmul.bf16.gmra.mxu3 %v16238_v53 }
 0x54c   :  { %v16513_v13 = vpop.f32.mrf.mxu2  ;;  %v7106_v54 = vpop.f32.mrf.mxu0 }
 0x54d   :  { %7409 = vmatmul.bf16.gmra.mxu0 %v16172_v51 }
 0x550   :  { %7371 = vmatmul.bf16.gmra.mxu2 %v16175_v52  ;;  %v7011_v43 = vpop.f32.mrf.mxu3 }
 0x551   :  { %v7012_v32 = vadd.f32 %v7011_v43, %v6992_v15 }
 0x552   :  { %v16520_v41 = vpop.f32.mrf.mxu1 }
 0x553   :  { %16927 = vst [vmem:[#allocation39_spill] sm:$0xff] %v16520_v41  ;;  %v7031_v7 = vadd.f32 %v16475_v21, %v7012_v32 }
 0x554   :  { %v7068_v16 = vpop.f32.mrf.mxu2  ;;  %v16528_v18 = vpop.f32.mrf.mxu0 }
 0x555   :  { %v7050_v46 = vadd.f32 %v7049_v42, %v7031_v7  ;;  %16929 = vst [vmem:[#allocation62_spill] sm:$0xff] %v16528_v18 }
 0x557   :  { %v16524_v3 = vadd.f32 %v7050_v46, %v16167_v36 }
 0x558   :  { %v16526_v50 = vpop.f32.mrf.mxu3 }
 0x559   :  { %16928 = vst [vmem:[#allocation36_spill] sm:$0xff] %v16524_v3  ;;  %12728 = vmatmul.msk.bf16.vlgmr.msra.gmra.mxu1 %vm1382_vm3, %v16251_v29 }
 0x55a   :  { %v7120_v17 = vpop.f32.mrf.mxu1 }
 0x55b   :  { %7385 = vmatmul.bf16.vlgmr.msrb.gmra.mxu3 %v16261_v24 }
 0x55c   :  { %v16530_v51 = vpop.f32.mrf.mxu2  ;;  %v7177_v36 = vpop.f32.mrf.mxu0 }
 0x55d   :  { %16930 = vst [vmem:[#allocation28_spill] sm:$0xff] %v16530_v51 }
 0x560   :  { %v7082_v52 = vpop.f32.mrf.mxu3 }
 0x561   :  { %v7083_v15 = vadd.f32 %v7082_v52, %v7063_v37 }
 0x562   :  { %v16535_v21 = vpop.f32.mrf.mxu1 }
 0x563   :  { %16931 = vst [vmem:[#allocation46_spill] sm:$0xff] %v16535_v21  ;;  %v7102_v57 = vadd.f32 %v7101_v4, %v7083_v15 }
 0x564   :  { %v7139_v14 = vpop.f32.mrf.mxu2  ;;  %v7179_v29 = vpop.f32.mrf.mxu0 }
 0x565   :  { %v7121_v27 = vadd.f32 %v7120_v17, %v7102_v57 }
 0x567   :  { %v16538_v35 = vadd.f32 %v7121_v27, %v16207_v56 }
 0x568   :  { %v16540_v25 = vpop.f32.mrf.mxu3 }
 0x569   :  { %16932 = vst [vmem:[#allocation60_spill] sm:$0xff] %v16538_v35  ;;  %12729 = vmatmul.msk.bf16.gmra.mxu1 %vm1382_vm3, %v16236_v47 }
 0x56a   :  { %16933 = vst [vmem:[#allocation29_spill] sm:$0xff] %v16540_v25  ;;  %v7125_v49 = vpop.f32.mrf.mxu1 }
 0x56b   :  { %7390 = vmatmul.bf16.gmra.mxu3 %v16238_v53 }
 0x56c   :  { %v7141_v42 = vpop.f32.mrf.mxu2  ;;  %v7182_v46 = vpop.f32.mrf.mxu0 }
 0x570   :  { %v7087_v24 = vpop.f32.mrf.mxu3 }
 0x571   :  { %v7088_v37 = vadd.f32 %v7087_v24, %v7068_v16  ;;  %v16556_v24 = vld [vmem:[#allocation12] sm:$0xff] }
 0x572   :  { %v16545_v43 = vpop.f32.mrf.mxu1  ;;  %v16594_v21 = vperm.slane %v16556_v24, 4 }
 0x573   :  { %16934 = vst [vmem:[#allocation41_spill] sm:$0xff] %v16545_v43  ;;  %v7107_v4 = vadd.f32 %v7106_v54, %v7088_v37  ;;  %v16564_v37 = vadd.f32 %v16479_v22, %v16107_v23 }
 0x574   :  { %v7144_v7 = vpop.f32.mrf.mxu2  ;;  %v16554_v27 = vpop.f32.mrf.mxu0 }
 0x575   :  { %v7126_v32 = vadd.f32 %v7125_v49, %v7107_v4  ;;  %v16559_v49 = vperm.slane %v16556_v24, 3 }
 0x577   :  { %v16548_v56 = vadd.f32 %v7126_v32, %v16241_v12 }
 0x578   :  { %v16550_v17 = vpop.f32.mrf.mxu3 }
 0x579   :  { %16935 = vst [vmem:[#allocation30_spill] sm:$0xff] %v16548_v56 }
 0x57a   :  { %16936 = vst [vmem:[#allocation48_spill] sm:$0xff] %v16550_v17  ;;  %v7196_v52 = vpop.f32.mrf.mxu1 }
 0x57c   :  { %v16552_v15 = vpop.f32.mrf.mxu2 }
 0x580   :  { %v7158_v47 = vpop.f32.mrf.mxu3 }
 0x581   :  { %v7159_v57 = vadd.f32 %v7158_v47, %v7139_v14 }
 0x582   :  { %v7198_v53 = vpop.f32.mrf.mxu1 }
 0x583   :  { %v7178_v16 = vadd.f32 %v7177_v36, %v7159_v57  ;;  %v7253_v57 = vpop.f32.mrf.mxu0 }
 0x584   :  { %v7215_v47 = vpop.f32.mrf.mxu2 }
 0x585   :  { %v7197_v54 = vadd.f32 %v7196_v52, %v7178_v16  ;;  %v16574_v52 = vperm.slane %v16556_v24, 0 }
 0x587   :  { %v7437_v12 = vadd.f32 %v7197_v54, %v16278_v48  ;;  %v16580_v23 = vadd.f32 %v16574_v52, %v16489_v1 }
 0x588   :  { %v7160_v4 = vpop.f32.mrf.mxu3 }
 0x589   :  { %v16567_v14 = vadd.f32 %v16559_v49, %v7437_v12  ;;  %16938 = vst [vmem:[#allocation61_spill] sm:$0xff] %v16580_v23  ;;  %v16939_v12 = vld [vmem:[#allocation27_spill] sm:$0xff]  ;;  %v7161_v2 = vadd.f32 %v7160_v4, %v7141_v42 }
 0x58a   :  { %v7201_v32 = vpop.f32.mrf.mxu1  ;;  %v7455_v31 = vadd.f32 %v16497_v8, %v16939_v12 }
 0x58b   :  { %16937 = vst [vmem:[#allocation63_spill] sm:$0xff] %v16567_v14  ;;  %v16814_v36 = vmax.f32 %v16567_v14, 0.0  ;;  %v7255_v54 = vpop.f32.mrf.mxu0  ;;  %v7180_v41 = vadd.f32 %v7179_v29, %v7161_v2 }
 0x58c   :  { %v7217_v22 = vpop.f32.mrf.mxu2 }
 0x58d   :  { %7550 = vrot.lane.b32.xlu1 %v16814_v36, %s14657_s16  ;;  %v16587_v36 = vadd.f32 %v16574_v52, %v7455_v31 }
 0x58f   :  { %16940 = vst [vmem:[#allocation31_spill] sm:$0xff] %v16587_v36 }
 0x590   :  { %v7163_v48 = vpop.f32.mrf.mxu3 }
 0x592   :  { %v16576_v16 = vpop.f32.mrf.mxu1 }
 0x593   :  { %v16591_v17 = vpop.f32.mrf.mxu0 }
 0x594   :  { %v16589_v56 = vpop.f32.mrf.mxu2 }
 0x598   :  { %v16584_v43 = vpop.f32.mrf.mxu3 }
 0x59a   :  { %v7272_v18 = vpop.f32.mrf.mxu1 }
 0x59b   :  { %v7260_v3 = vpop.f32.mrf.mxu0 }
 0x59c   :  { %v7222_v12 = vpop.f32.mrf.mxu2 }
 0x5a0   :  { %v7234_v51 = vpop.f32.mrf.mxu3 }
 0x5a1   :  { %v7235_v14 = vadd.f32 %v7234_v51, %v7215_v47 }
 0x5a2   :  { %v7274_v33 = vpop.f32.mrf.mxu1 }
 0x5a3   :  { %v7254_v1 = vadd.f32 %v7253_v57, %v7235_v14  ;;  %v7164_v14 = vadd.f32 %v7163_v48, %v7144_v7 }
 0x5a4   :  { %v7291_v57 = vpop.f32.mrf.mxu2 }
 0x5a5   :  { %v7273_v35 = vadd.f32 %v7272_v18, %v7254_v1  ;;  %v7199_v18 = vadd.f32 %v7198_v53, %v7180_v41 }
 0x5a7   :  { %v7438_v8 = vadd.f32 %v7273_v35, %v16328_v26  ;;  %v7444_v1 = vadd.f32 %v7199_v18, %v16290_v58 }
 0x5a8   :  { %v7236_v23 = vpop.f32.mrf.mxu3 }
 0x5a9   :  { %v7237_v19 = vadd.f32 %v7236_v23, %v7217_v22  ;;  %v7482_v36 = vadd.f32 %v16594_v21, %v7438_v8  ;;  %v7183_v23 = vadd.f32 %v7182_v46, %v7164_v14  ;;  %v7329_v8 = vpop.f32.mrf.mxu0 }
 0x5aa   :  { %v16597_v31 = vpop.f32.mrf.mxu1 }
 0x5ab   :  { %v7256_v25 = vadd.f32 %v7255_v54, %v7237_v19  ;;  %v7510_v51 = vmax.f32 %v7482_v36, 0.0  ;;  %v7202_v2 = vadd.f32 %v7201_v32, %v7183_v23 }
 0x5ac   :  { %v7293_v53 = vpop.f32.mrf.mxu2 }
 0x5ad   :  { %v7275_v47 = vadd.f32 %v7274_v33, %v7256_v25  ;;  %7552 = vrot.lane.b32.xlu2 %v7510_v51, %s14657_s16  ;;  %v16606_v33 = vadd.f32 %v16559_v49, %v7444_v1  ;;  %v7451_v7 = vadd.f32 %v7202_v2, %v16303_v20  ;;  %v16622_v20 = vperm.slane %v16556_v24, 5 }
 0x5af   :  { %v7445_v42 = vadd.f32 %v7275_v47, %v16340_v34  ;;  %v7516_v29 = vmax.f32 %v16606_v33, 0.0  ;;  %v16614_v32 = vadd.f32 %v16559_v49, %v7451_v7  ;;  %v16955_v33 = vld [vmem:[#allocation30_spill] sm:$0xff] }
 0x5b0   :  { %v7239_v4 = vpop.f32.mrf.mxu3 }
 0x5b1   :  { %v7489_v35 = vadd.f32 %v16594_v21, %v7445_v42  ;;  %v7331_v58 = vpop.f32.mrf.mxu0 }
 0x5b2   :  { %v7279_v26 = vpop.f32.mrf.mxu1 }
 0x5b3   :  { %v7517_v22 = vmax.f32 %v7489_v35, 0.0 }
 0x5b4   :  { %v7296_v18 = vpop.f32.mrf.mxu2 }
 0x5b5   :  { %7560 = vrot.lane.b32.xlu2 %v7517_v22, %s14657_s16 }
 0x5b8   :  { %v7241_v19 = vpop.f32.mrf.mxu3 }
 0x5b9   :  { %v7242_v41 = vadd.f32 %v7241_v19, %v7222_v12  ;;  %v14190_v19 = vld [vmem:[#allocation14 + $0x38] sm:$0xff] }
 0x5ba   :  { %v7348_v25 = vpop.f32.mrf.mxu1  ;;  %8433 = vmatpush.bf16.msrb.mxu1 %v14190_v19 }
 0x5bb   :  { %v7261_v34 = vadd.f32 %v7260_v3, %v7242_v41  ;;  %v7523_v3 = vmax.f32 %v16614_v32, 0.0  ;;  %v7240_v41 = vadd.f32 %v7239_v4, %v16589_v56  ;;  %v14188_v4 = vld [vmem:[#allocation14 + $0x28] sm:$0xff] }
 0x5bd   :  { %7558 = vrot.lane.b32.xlu2 %v7516_v29, %s14657_s16  ;;  %v7280_v46 = vadd.f32 %v7279_v26, %v7261_v34  ;;  %v7334_v26 = vpop.f32.mrf.mxu0 }
 0x5bf   :  { %v7459_v51 = vadd.f32 %v7280_v46, %v16365_v40  ;;  %v7259_v46 = vadd.f32 %v16591_v17, %v7240_v41 }
 0x5c0   :  { %v7310_v36 = vpop.f32.mrf.mxu3 }
 0x5c1   :  { %v7311_v48 = vadd.f32 %v7310_v36, %v7291_v57  ;;  %v7503_v42 = vadd.f32 %v16594_v21, %v7459_v51  ;;  %v7278_v56 = vadd.f32 %v16597_v31, %v7259_v46  ;;  %v14184_v46 = vld [vmem:[#allocation14 + $0x8] sm:$0xff] }
 0x5c2   :  { %v7350_v54 = vpop.f32.mrf.mxu1 }
 0x5c3   :  { %v7330_v12 = vadd.f32 %v7329_v8, %v7311_v48  ;;  %v7531_v1 = vmax.f32 %v7503_v42, 0.0 }
 0x5c5   :  { %v7349_v47 = vadd.f32 %v7348_v25, %v7330_v12  ;;  %7566 = vrot.lane.b32.xlu2 %v7523_v3, %s14657_s16  ;;  %v7298_v25 = vpop.f32.mrf.mxu2  ;;  %v14189_v12 = vld [vmem:[#allocation14 + $0x30] sm:$0xff] }
 0x5c6   :  { %8434 = vmatpush.bf16.msrb.mxu1 %v14189_v12 }
 0x5c7   :  { %v7439_v14 = vadd.f32 %v7349_v47, %v16378_v63 }
 0x5c8   :  { %v7312_v35 = vpop.f32.mrf.mxu3 }
 0x5c9   :  { %v7313_v57 = vadd.f32 %v7312_v35, %v7293_v53  ;;  %v7483_v23 = vadd.f32 %v16622_v20, %v7439_v14 }
 0x5ca   :  { %v7353_v8 = vpop.f32.mrf.mxu1  ;;  %8435 = vmatpush.bf16.msrb.mxu1 %v14188_v4  ;;  %v14217_v4 = vld [vmem:[#allocation14 + $0x110] sm:$0xff] }
 0x5cb   :  { %v7332_v22 = vadd.f32 %v7331_v58, %v7313_v57  ;;  %v7511_v40 = vmax.f32 %v7483_v23, 0.0  ;;  %v7336_v58 = vpop.f32.mrf.mxu0  ;;  %v14187_v23 = vld [vmem:[#allocation14 + $0x20] sm:$0xff] }
 0x5cd   :  { %v7351_v2 = vadd.f32 %v7350_v54, %v7332_v22  ;;  %7554 = vrot.lane.b32.xlu0 %v7511_v40, %s14657_s16  ;;  %7576 = vrot.lane.b32.xlu2 %v7531_v1, %s14657_s16  ;;  %v7367_v42 = vpop.f32.mrf.mxu2 }
 0x5ce   :  { %8436 = vmatpush.bf16.msrb.mxu1 %v14187_v23 }
 0x5cf   :  { %v7446_v63 = vadd.f32 %v7351_v2, %v16390_v28 }
 0x5d0   :  { %v7315_v34 = vpop.f32.mrf.mxu3 }
 0x5d1   :  { %v7316_v7 = vadd.f32 %v7315_v34, %v7296_v18  ;;  %v7490_v53 = vadd.f32 %v16622_v20, %v7446_v63  ;;  %v14185_v63 = vld [vmem:[#allocation14 + $0x10] sm:$0xff]  ;;  %v16643_v34 = vperm.slane %v16556_v24, 6 }
 0x5d2   :  { %v7355_v51 = vpop.f32.mrf.mxu1 }
 0x5d3   :  { %v7335_v36 = vadd.f32 %v7334_v26, %v7316_v7  ;;  %v7518_v48 = vmax.f32 %v7490_v53, 0.0  ;;  %v7452_v26 = vadd.f32 %v7278_v56, %v16353_v59  ;;  %v7405_v57 = vpop.f32.mrf.mxu0  ;;  %v14218_v7 = vld [vmem:[#allocation14 + $0x118] sm:$0xff] }
 0x5d4   :  { %8210 = vmatpush.bf16.msrb.mxu2 %v14218_v7 }
 0x5d5   :  { %v7354_v54 = vadd.f32 %v7353_v8, %v7335_v36  ;;  %7562 = vrot.lane.b32.xlu0 %v7518_v48, %s14657_s16  ;;  %v7496_v31 = vadd.f32 %v16594_v21, %v7452_v26  ;;  %v7369_v59 = vpop.f32.mrf.mxu2  ;;  %v14245_v26 = vld [vmem:[#allocation14 + $0x1f0] sm:$0xff] }
 0x5d7   :  { %v7453_v28 = vadd.f32 %v7354_v54, %v16403_v10  ;;  %v14186_v10 = vld [vmem:[#allocation14 + $0x18] sm:$0xff]  ;;  %v7524_v19 = vmax.f32 %v7496_v31, 0.0 }
 0x5d8   :  { %v7317_v47 = vpop.f32.mrf.mxu3  ;;  %8437 = vmatpush.bf16.msrb.mxu1 %v14186_v10  ;;  %8211 = vmatpush.bf16.msrb.mxu2 %v14217_v4 }
 0x5d9   :  { %v7318_v18 = vadd.f32 %v7317_v47, %v7298_v25  ;;  %v7497_v14 = vadd.f32 %v16622_v20, %v7453_v28  ;;  %v14183_v28 = vld [vmem:[#allocation14] sm:$0xff]  ;;  %v14246_v47 = vld [vmem:[#allocation14 + $0x1f8] sm:$0xff] }
 0x5da   :  { %v7424_v40 = vpop.f32.mrf.mxu1 }
 0x5db   :  { %v7337_v35 = vadd.f32 %v7336_v58, %v7318_v18  ;;  %v7525_v17 = vmax.f32 %v7497_v14, 0.0  ;;  %v7407_v21 = vpop.f32.mrf.mxu0  ;;  %v7166_v14 = vadd.f32 %v16584_v43, %v16552_v15 }
 0x5dc   :  { %8438 = vmatpush.bf16.msrb.mxu1 %v14185_v63  ;;  %v14243_v63 = vld [vmem:[#allocation14 + $0x1e0] sm:$0xff] }
 0x5dd   :  { %7570 = vrot.lane.b32.xlu0 %v7525_v17, %s14657_s16  ;;  %v7356_v22 = vadd.f32 %v7355_v51, %v7337_v35  ;;  %v7185_v31 = vadd.f32 %v16554_v27, %v7166_v14 }
 0x5df   :  { %v7460_v41 = vadd.f32 %v7356_v22, %v16415_v11  ;;  %v14215_v22 = vld [vmem:[#allocation14 + $0x100] sm:$0xff]  ;;  %v7204_v15 = vadd.f32 %v16576_v16, %v7185_v31 }
 0x5e0   :  { %v7386_v1 = vpop.f32.mrf.mxu3  ;;  %8439 = vmatpush.bf16.msrb.mxu1 %v14184_v46  ;;  %v14242_v46 = vld [vmem:[#allocation14 + $0x1d8] sm:$0xff] }
 0x5e1   :  { %v7387_v8 = vadd.f32 %v7386_v1, %v7367_v42  ;;  %v7504_v53 = vadd.f32 %v16622_v20, %v7460_v41  ;;  %v14216_v20 = vld [vmem:[#allocation14 + $0x108] sm:$0xff] }
 0x5e2   :  { %v7426_v54 = vpop.f32.mrf.mxu1  ;;  %8212 = vmatpush.bf16.msrb.mxu2 %v14216_v20  ;;  %v14224_v20 = vld [vmem:[#allocation14 + $0x148] sm:$0xff] }
 0x5e3   :  { %v7406_v2 = vadd.f32 %v7405_v57, %v7387_v8  ;;  %v7532_v51 = vmax.f32 %v7504_v53, 0.0  ;;  %v7410_v35 = vpop.f32.mrf.mxu0  ;;  %v14244_v8 = vld [vmem:[#allocation14 + $0x1e8] sm:$0xff]  ;;  %v7458_v53 = vadd.f32 %v7204_v15, %v16315_v61  ;;  %v7478_v61 = vadd.f32 %v16574_v52, %v16469_v39 }
 0x5e4   :  { %8440 = vmatpush.bf16.msrb.mxu1 %v14183_v28  ;;  %v14240_v28 = vld [vmem:[#allocation14 + $0x1c8] sm:$0xff] }
 0x5e5   :  { %v7425_v25 = vadd.f32 %v7424_v40, %v7406_v2  ;;  %7568 = vrot.lane.b32.xlu0 %v7524_v19, %s14657_s16 }
 0x5e6   :  { %8213 = vmatpush.bf16.msrb.mxu2 %v14215_v22 }
 0x5e7   :  { %v7440_v58 = vadd.f32 %v7425_v25, %v16426_v6  ;;  %v7372_v6 = vpop.f32.mrf.mxu2 }
 0x5e8   :  { %v7388_v36 = vpop.f32.mrf.mxu3  ;;  %8732 = vmatpush.bf16.msra.mxu1 %v14246_v47 }
 0x5e9   :  { %v7389_v11 = vadd.f32 %v7388_v36, %v7369_v59  ;;  %v7484_v48 = vadd.f32 %v16643_v34, %v7440_v58  ;;  %v14213_v58 = vld [vmem:[#allocation14 + $0xf0] sm:$0xff] }
 0x5ea   :  { %v7429_v1 = vpop.f32.mrf.mxu1 }
 0x5eb   :  { %v7408_v12 = vadd.f32 %v7407_v21, %v7389_v11  ;;  %v7512_v56 = vmax.f32 %v7484_v48, 0.0  ;;  %v7412_v25 = vpop.f32.mrf.mxu0  ;;  %v16662_v11 = vadd.f32 %v16559_v49, %v7458_v53  ;;  %v14241_v48 = vld [vmem:[#allocation14 + $0x1d0] sm:$0xff] }
 0x5ec   :  { %8733 = vmatpush.bf16.msra.mxu1 %v14245_v26  ;;  %v14225_v49 = vld [vmem:[#allocation14 + $0x150] sm:$0xff]  ;;  %v14222_v26 = vld [vmem:[#allocation14 + $0x138] sm:$0xff] }
 0x5ed   :  { %v7427_v18 = vadd.f32 %v7426_v54, %v7408_v12  ;;  %7578 = vrot.lane.b32.xlu0 %v7532_v51, %s14657_s16  ;;  %7556 = vrot.lane.b32.xlu1 %v7512_v56, %s14657_s16  ;;  %v14226_v54 = vld [vmem:[#allocation14 + $0x158] sm:$0xff]  ;;  %v14211_v12 = vld [vmem:[#allocation14 + $0xe0] sm:$0xff]  ;;  %v7530_v51 = vmax.f32 %v16662_v11, 0.0 }
 0x5ee   :  { %8223 = vmatpush.bf16.msra.mxu3 %v14226_v54  ;;  %v14197_v54 = vld [vmem:[#allocation14 + $0x70] sm:$0xff]  ;;  %v14287_v11 = vld [vmem:[#allocation14 + $0x340] sm:$0xff] }
 0x5ef   :  { %v7447_v42 = vadd.f32 %v7427_v18, %v16436_v30  ;;  %v14214_v30 = vld [vmem:[#allocation14 + $0xf8] sm:$0xff]  ;;  %v7374_v19 = vpop.f32.mrf.mxu2  ;;  %v7506_v18 = vmax.f32 %v7478_v61, 0.0  ;;  %v14272_v61 = vld [vmem:[#allocation14 + $0x2c8] sm:$0xff] }
 0x5f0   :  { %v7391_v17 = vpop.f32.mrf.mxu3  ;;  %8734 = vmatpush.bf16.msra.mxu1 %v14244_v8  ;;  %8214 = vmatpush.bf16.msrb.mxu2 %v14214_v30  ;;  %v14221_v8 = vld [vmem:[#allocation14 + $0x130] sm:$0xff] }
 0x5f1   :  { %v7392_v57 = vadd.f32 %v7391_v17, %v7372_v6  ;;  %v7491_v23 = vadd.f32 %v16643_v34, %v7447_v42 }
 0x5f2   :  { %v7431_v16 = vpop.f32.mrf.mxu1  ;;  %8224 = vmatpush.bf16.msra.mxu3 %v14225_v49 }
 0x5f3   :  { %v7411_v10 = vadd.f32 %v7410_v35, %v7392_v57  ;;  %v7519_v40 = vmax.f32 %v7491_v23, 0.0  ;;  %v14223_v35 = vld [vmem:[#allocation14 + $0x140] sm:$0xff]  ;;  %v7485_v57 = vadd.f32 %v16574_v52, %v16564_v37 }
 0x5f4   :  { %8735 = vmatpush.bf16.msra.mxu1 %v14243_v63  ;;  %8215 = vmatpush.bf16.msrb.mxu2 %v14213_v58  ;;  %v14219_v37 = vld [vmem:[#allocation14 + $0x120] sm:$0xff] }
 0x5f5   :  { %v7430_v43 = vadd.f32 %v7429_v1, %v7411_v10  ;;  %7564 = vrot.lane.b32.xlu1 %v7519_v40, %s14657_s16  ;;  %v7513_v15 = vmax.f32 %v7485_v57, 0.0  ;;  %v14233_v57 = vld [vmem:[#allocation14 + $0x190] sm:$0xff] }
 0x5f6   :  { %8225 = vmatpush.bf16.msra.mxu3 %v14224_v20  ;;  %v14234_v20 = vld [vmem:[#allocation14 + $0x198] sm:$0xff] }
 0x5f7   :  { %v7454_v2 = vadd.f32 %v7430_v43, %v16447_v0  ;;  %v14212_v0 = vld [vmem:[#allocation14 + $0xe8] sm:$0xff]  ;;  %8236 = vmatpush.bf16.msra.mxu0 %v14234_v20 }
 0x5f8   :  { %v7393_v41 = vpop.f32.mrf.mxu3  ;;  %8736 = vmatpush.bf16.msra.mxu1 %v14242_v46  ;;  %8216 = vmatpush.bf16.msrb.mxu2 %v14212_v0  ;;  %v14198_v46 = vld [vmem:[#allocation14 + $0x78] sm:$0xff] }
 0x5f9   :  { %v7394_v59 = vadd.f32 %v7393_v41, %v7374_v19  ;;  %v7498_v27 = vadd.f32 %v16643_v34, %v7454_v2  ;;  %v14220_v41 = vld [vmem:[#allocation14 + $0x128] sm:$0xff] }
 0x5fa   :  { %8226 = vmatpush.bf16.msra.mxu3 %v14223_v35 }
 0x5fb   :  { %v7413_v7 = vadd.f32 %v7412_v25, %v7394_v59  ;;  %v7526_v21 = vmax.f32 %v7498_v27, 0.0  ;;  %v14274_v59 = vld [vmem:[#allocation14 + $0x2d8] sm:$0xff]  ;;  %8237 = vmatpush.bf16.msra.mxu0 %v14233_v57  ;;  %v14228_v57 = vld [vmem:[#allocation14 + $0x168] sm:$0xff] }
 0x5fc   :  { %8737 = vmatpush.bf16.msra.mxu1 %v14241_v48  ;;  %8217 = vmatpush.bf16.msrb.mxu2 %v14211_v12 }
 0x5fd   :  { %7572 = vrot.lane.b32.xlu1 %v7526_v21, %s14657_s16  ;;  %v7432_v36 = vadd.f32 %v7431_v16, %v7413_v7  ;;  %v14273_v21 = vld [vmem:[#allocation14 + $0x2d0] sm:$0xff] }
 0x5fe   :  { %8227 = vmatpush.bf16.msra.mxu3 %v14222_v26  ;;  %v14194_v26 = vld [vmem:[#allocation14 + $0x58] sm:$0xff] }
 0x5ff   :  { %v7461_v56 = vadd.f32 %v7432_v36, %v16457_v62  ;;  %v7551_v4 = vpop.permute.xlu1 %7550  ;;  %v14239_v62 = vld [vmem:[#allocation14 + $0x1c0] sm:$0xff] }
 0x600   :  { %8738 = vmatpush.bf16.msra.mxu1 %v14240_v28 }
 0x601   :  { %v7505_v6 = vadd.f32 %v16643_v34, %v7461_v56 }
 0x602   :  { %8228 = vmatpush.bf16.msra.mxu3 %v14221_v8  ;;  %v14267_v8 = vld [vmem:[#allocation14 + $0x2a0] sm:$0xff] }
 0x603   :  { %v7533_v42 = vmax.f32 %v7505_v6, 0.0  ;;  %v14196_v6 = vld [vmem:[#allocation14 + $0x68] sm:$0xff] }
 0x604   :  { %8739 = vmatpush.bf16.msra.mxu1 %v14239_v62  ;;  %v14270_v62 = vld [vmem:[#allocation14 + $0x2b8] sm:$0xff] }
 0x605   :  { %7574 = vrot.lane.b32.xlu1 %v7530_v51, %s14657_s16 }
 0x606   :  { %8229 = vmatpush.bf16.msra.mxu3 %v14220_v41  ;;  %v14191_v41 = vld [vmem:[#allocation14 + $0x40] sm:$0xff] }
 0x607   :  { %v16671_v47 = vpop.permute.xlu2 %7552 }
 0x608   :  { %v7582_v39 = vsel %vm1382_vm3, %v7551_v4, %v16671_v47 }
 0x609   :  { %v7610_v14 = vmax.f32 %v7506_v18, %v7582_v39  ;;  %v14271_v18 = vld [vmem:[#allocation14 + $0x2c0] sm:$0xff] }
 0x60a   :  { %8230 = vmatpush.bf16.msra.mxu3 %v14219_v37  ;;  %v14195_v39 = vld [vmem:[#allocation14 + $0x60] sm:$0xff] }
 0x60b   :  { %7626 = vst [vmem:[#allocation3] sm:$0xff] %v7610_v14 }
 0x60d   :  { %7580 = vrot.lane.b32.xlu1 %v7533_v42, %s14657_s16  ;;  %v14238_v42 = vld [vmem:[#allocation14 + $0x1b8] sm:$0xff]  ;;  %s10070_s16 = sshll.u32 %s16811_s9, 4  ;;  %s10071_s16 = int_to_ptr.hbm [resolvable:$true] %s10070_s16 }
 0x60e   :  { %8446 = vmatpush.bf16.msrb.mxu3 %v14198_v46  ;;  %8253 = vmatpush.bf16.msra.mxu2 %v14238_v42 }
 0x60f   :  { %v16677_v17 = vpop.permute.xlu2 %7560 }
 0x612   :  { %v7647_v34 = vld [vmem:[#allocation3] sm:$0xc]  ;;  %v7675_v22 = vld [vmem:[#allocation3] sm:$0xc0]  ;;  %v7643_v31 = vld [vmem:[#allocation3] sm:$0x3]  ;;  %8447 = vmatpush.bf16.msrb.mxu3 %v14197_v54  ;;  %v7014_v54 = vadd.f32 %v16526_v50, %v16493_v38 }
 0x613   :  { %v7655_v23 = vrot.slane %v7647_v34, 2  ;;  %v7683_v10 = vrot.slane %v7675_v22, 2  ;;  %v7671_v1 = vld [vmem:[#allocation3] sm:$0x30]  ;;  %v14269_v34 = vld [vmem:[#allocation14 + $0x2b0] sm:$0xff] }
 0x614   :  { %v14305_v38 = vld [vmem:[#allocation14 + $0x3d0] sm:$0xff] }
 0x615   :  { %v7663_v40 = vmax.f32 %v7643_v31, %v7655_v23  ;;  %v7691_v43 = vmax.f32 %v7671_v1, %v7683_v10  ;;  %v7009_v23 = vadd.f32 %v16511_v55, %v16473_v5  ;;  %v14193_v31 = vld [vmem:[#allocation14 + $0x50] sm:$0xff]  ;;  %v14268_v10 = vld [vmem:[#allocation14 + $0x2a8] sm:$0xff]  ;;  %v16687_v1 = vperm.slane %v16556_v24, 1  ;;  %v14310_v55 = vld [vmem:[#allocation14 + $0x3f8] sm:$0xff] }
 0x616   :  { %8448 = vmatpush.bf16.msrb.mxu3 %v14196_v6  ;;  %v14205_v6 = vld [vmem:[#allocation14 + $0xb0] sm:$0xff] }
 0x617   :  { %v7559_v30 = vpop.permute.xlu2 %7558  ;;  %7667 = vst [vmem:[#allocation5] sm:$0x3] %v7663_v40  ;;  %v7699_v19 = vrot.slane %v7691_v43, 2  ;;  %v7028_v40 = vadd.f32 %v16466_v60, %v7009_v23  ;;  %v7479_v5 = vadd.f32 %v16687_v1, %v16509_v45 }
 0x618   :  { %v7585_v2 = vsel %vm1382_vm3, %v7559_v30, %v16677_v17 }
 0x619   :  { %v7614_v63 = vmax.f32 %v7513_v15, %v7585_v2  ;;  %7707 = vst [vmem:[#allocation5] sm:$0xc] %v7699_v19  ;;  %v7047_v43 = vadd.f32 %v16503_v9, %v7028_v40  ;;  %v14192_v15 = vld [vmem:[#allocation14 + $0x48] sm:$0xff]  ;;  %v14237_v2 = vld [vmem:[#allocation14 + $0x1b0] sm:$0xff] }
 0x61a   :  { %8449 = vmatpush.bf16.msrb.mxu3 %v14195_v39  ;;  %v14232_v19 = vld [vmem:[#allocation14 + $0x188] sm:$0xff]  ;;  %8254 = vmatpush.bf16.msra.mxu2 %v14237_v2  ;;  %v14229_v39 = vld [vmem:[#allocation14 + $0x170] sm:$0xff] }
 0x61b   :  { %7630 = vst [vmem:[#allocation3 + $0x20] sm:$0xff] %v7614_v63  ;;  %v7507_v63 = vmax.f32 %v7479_v5, 0.0  ;;  %v14236_v9 = vld [vmem:[#allocation14 + $0x1a8] sm:$0xff]  ;;  %8238 = vmatpush.bf16.msra.mxu0 %v14232_v19 }
 0x61c   :  { %v14304_v40 = vld [vmem:[#allocation14 + $0x3c8] sm:$0xff] }
 0x61e   :  { %v7899_v52 = vld [vmem:[#allocation5] sm:$0x3]  ;;  %8450 = vmatpush.bf16.msrb.mxu3 %v14194_v26  ;;  %8255 = vmatpush.bf16.msra.mxu2 %v14236_v9 }
 0x61f   :  { %v7903_v27 = vpack.c.bf16 %v7899_v52, %v7899_v52  ;;  %v16941_v52 = vld [vmem:[#allocation44_spill] sm:$0xff] }
 0x620   :  { %v7963_v25 = vld [vmem:[#allocation5] sm:$0xc] }
 0x621   :  { %8441 = vmatmul.bf16.vlgmr.msrb.gmra.mxu1 %v7903_v27  ;;  %v7967_v7 = vpack.c.bf16 %v7963_v25, %v7963_v25  ;;  %v14309_v27 = vld [vmem:[#allocation14 + $0x3f0] sm:$0xff]  ;;  %v14231_v25 = vld [vmem:[#allocation14 + $0x180] sm:$0xff] }
 0x622   :  { %9032 = vmatpush.bf16.msrb.mxu1 %v14274_v59  ;;  %v7715_v53 = vld [vmem:[#allocation3 + $0x20] sm:$0xc]  ;;  %v7711_v0 = vld [vmem:[#allocation3 + $0x20] sm:$0x3]  ;;  %v7755_v36 = vld [vmem:[#allocation3 + $0x20] sm:$0xc0]  ;;  %8451 = vmatpush.bf16.msrb.mxu3 %v14193_v31  ;;  %v7442_v59 = vadd.f32 %v7047_v43, %v16941_v52 }
 0x623   :  { %v7723_v58 = vrot.slane %v7715_v53, 2  ;;  %v8032_v16 = vrot.slane %v7967_v7, 1  ;;  %v7763_v12 = vrot.slane %v7755_v36, 2  ;;  %v7751_v56 = vld [vmem:[#allocation3 + $0x20] sm:$0x30]  ;;  %8239 = vmatpush.bf16.msra.mxu0 %v14231_v25  ;;  %v14346_v25 = vld [vmem:[#allocation14 + $0x518] sm:$0xff] }
 0x624   :  { %v7486_v53 = vadd.f32 %v16687_v1, %v7442_v59  ;;  %v16945_v43 = vld [vmem:[#allocation58_spill] sm:$0xff] }
 0x625   :  { %v7731_v48 = vmax.f32 %v7711_v0, %v7723_v58  ;;  %8218 = vmatmul.bf16.vlgmr.msrb.gmra.mxu2 %v8032_v16  ;;  %v7771_v49 = vmax.f32 %v7751_v56, %v7763_v12  ;;  %v14308_v58 = vld [vmem:[#allocation14 + $0x3e8] sm:$0xff]  ;;  %v14307_v0 = vld [vmem:[#allocation14 + $0x3e0] sm:$0xff]  ;;  %v14306_v56 = vld [vmem:[#allocation14 + $0x3d8] sm:$0xff] }
 0x626   :  { %9033 = vmatpush.bf16.msrb.mxu1 %v14273_v21  ;;  %8452 = vmatpush.bf16.msrb.mxu3 %v14192_v15  ;;  %v7514_v16 = vmax.f32 %v7486_v53, 0.0  ;;  %v16946_v15 = vld [vmem:[#allocation61_spill] sm:$0xff]  ;;  %v14303_v52 = vld [vmem:[#allocation14 + $0x3c0] sm:$0xff] }
 0x627   :  { %v7739_v28 = vrot.slane %v7731_v48, 4  ;;  %v7779_v4 = vrot.slane %v7771_v49, 6  ;;  %v14206_v49 = vld [vmem:[#allocation14 + $0xb8] sm:$0xff]  ;;  %v7520_v2 = vmax.f32 %v16946_v15, 0.0 }
 0x628   :  { %v14210_v59 = vld [vmem:[#allocation14 + $0xd8] sm:$0xff] }
 0x629   :  { %7747 = vst [vmem:[#allocation5] sm:$0x30] %v7739_v28 }
 0x62a   :  { %9034 = vmatpush.bf16.msrb.mxu1 %v14272_v61  ;;  %7787 = vst [vmem:[#allocation5] sm:$0xc0] %v7779_v4  ;;  %8453 = vmatpush.bf16.msrb.mxu3 %v14191_v41  ;;  %v14235_v61 = vld [vmem:[#allocation14 + $0x1a0] sm:$0xff]  ;;  %v14230_v4 = vld [vmem:[#allocation14 + $0x178] sm:$0xff] }
 0x62b   :  { %8256 = vmatpush.bf16.msra.mxu2 %v14235_v61  ;;  %8240 = vmatpush.bf16.msra.mxu0 %v14230_v4  ;;  %v16947_v41 = vld [vmem:[#allocation55_spill] sm:$0xff]  ;;  %v14345_v61 = vld [vmem:[#allocation14 + $0x510] sm:$0xff] }
 0x62e   :  { %9035 = vmatpush.bf16.msrb.mxu1 %v14271_v18 }
 0x62f   :  { %8459 = vmatpush.bf16.msrb.mxu2 %v14206_v49  ;;  %8241 = vmatpush.bf16.msra.mxu0 %v14229_v39  ;;  %v14201_v49 = vld [vmem:[#allocation14 + $0x90] sm:$0xff] }
 0x630   :  { %v8485_v14 = vld [vmem:[#allocation5] sm:$0x30]  ;;  %v16950_v39 = vld [vmem:[#allocation33_spill] sm:$0xff] }
 0x631   :  { %v8489_v35 = vpack.c.bf16 %v8485_v14, %v8485_v14  ;;  %v8785_v30 = vld [vmem:[#allocation5] sm:$0xc0] }
 0x632   :  { %9036 = vmatpush.bf16.msrb.mxu1 %v14270_v62  ;;  %v8789_v37 = vpack.c.bf16 %v8785_v30, %v8785_v30 }
 0x633   :  { %v8554_v22 = vrot.slane %v8489_v35, 2  ;;  %v16942_v35 = vld [vmem:[#allocation29_spill] sm:$0xff]  ;;  %8460 = vmatpush.bf16.msrb.mxu2 %v14205_v6  ;;  %8242 = vmatpush.bf16.msra.mxu0 %v14228_v57  ;;  %v14252_v57 = vld [vmem:[#allocation14 + $0x228] sm:$0xff] }
 0x634   :  { %v8854_v21 = vrot.slane %v8789_v37, 3  ;;  %v7085_v26 = vadd.f32 %v16942_v35, %v16513_v13  ;;  %v14227_v13 = vld [vmem:[#allocation14 + $0x160] sm:$0xff]  ;;  %v16718_v37 = vperm.slane %v16556_v24, 2  ;;  %v14202_v24 = vld [vmem:[#allocation14 + $0x98] sm:$0xff]  ;;  %v14344_v35 = vld [vmem:[#allocation14 + $0x508] sm:$0xff] }
 0x635   :  { %8740 = vmatmul.bf16.vlgmr.msra.gmra.mxu1 %v8554_v22  ;;  %v16943_v22 = vld [vmem:[#allocation39_spill] sm:$0xff] }
 0x636   :  { %9037 = vmatpush.bf16.msrb.mxu1 %v14269_v34  ;;  %v14204_v34 = vld [vmem:[#allocation14 + $0xa8] sm:$0xff]  ;;  %v7104_v5 = vadd.f32 %v16945_v43, %v7085_v26 }
 0x637   :  { %8461 = vmatpush.bf16.msrb.mxu2 %v14204_v34  ;;  %8243 = vmatpush.bf16.msra.mxu0 %v14227_v13 }
 0x63a   :  { %9038 = vmatpush.bf16.msrb.mxu1 %v14268_v10 }
 0x63b   :  { %8476 = vmatpush.bf16.msrb.mxu0 %v14210_v59  ;;  %v14342_v59 = vld [vmem:[#allocation14 + $0x4f8] sm:$0xff] }
 0x63e   :  { %9039 = vmatpush.bf16.msrb.mxu1 %v14267_v8  ;;  %v7567_v8 = vpop.permute.xlu2 %7566 }
 0x63f   :  { %v16692_v60 = vpop.permute.xlu0 %7554 }
 0x640   :  { %v7583_v45 = vsel %vm1382_vm3, %v16671_v47, %v16692_v60 }
 0x641   :  { %v7611_v7 = vmax.f32 %v7507_v63, %v7583_v45 }
 0x642   :  { %9334 = vmatpush.bf16.msra.mxu1 %v14310_v55  ;;  %v14203_v55 = vld [vmem:[#allocation14 + $0xa0] sm:$0xff] }
 0x643   :  { %7627 = vst [vmem:[#allocation3 + $0x8] sm:$0xff] %v7611_v7  ;;  %8462 = vmatpush.bf16.msrb.mxu2 %v14203_v55 }
 0x645   :  { %9040 = vmatmul.bf16.vlgmr.msrb.gmra.mxu1 %v8854_v21 }
 0x646   :  { %9335 = vmatpush.bf16.msra.mxu1 %v14309_v27 }
 0x647   :  { %v16699_v46 = vpop.permute.xlu0 %7562  ;;  %8463 = vmatpush.bf16.msrb.mxu2 %v14202_v24 }
 0x648   :  { %v7586_v47 = vsel %vm1382_vm3, %v16677_v17, %v16699_v46  ;;  %v7033_v17 = vadd.f32 %v16486_v44, %v7014_v54  ;;  %v16944_v44 = vld [vmem:[#allocation36_spill] sm:$0xff] }
 0x649   :  { %v7615_v36 = vmax.f32 %v7514_v16, %v7586_v47  ;;  %v7493_v10 = vadd.f32 %v16687_v1, %v16944_v44  ;;  %v14200_v44 = vld [vmem:[#allocation14 + $0x88] sm:$0xff] }
 0x64a   :  { %9336 = vmatpush.bf16.msra.mxu1 %v14308_v58  ;;  %v7676_v48 = vld [vmem:[#allocation3 + $0x8] sm:$0xc0]  ;;  %v7672_v28 = vld [vmem:[#allocation3 + $0x8] sm:$0x30]  ;;  %v7648_v50 = vld [vmem:[#allocation3 + $0x8] sm:$0xc]  ;;  %v7052_v31 = vadd.f32 %v16943_v22, %v7033_v17 }
 0x64b   :  { %7631 = vst [vmem:[#allocation3 + $0x28] sm:$0xff] %v7615_v36  ;;  %v7684_v12 = vrot.slane %v7676_v48, 2  ;;  %v7656_v14 = vrot.slane %v7648_v50, 2  ;;  %v7644_v42 = vld [vmem:[#allocation3 + $0x8] sm:$0x3]  ;;  %v7521_v19 = vmax.f32 %v7493_v10, 0.0  ;;  %8464 = vmatpush.bf16.msrb.mxu2 %v14201_v49 }
 0x64c   :  { %v7456_v63 = vadd.f32 %v7052_v31, %v16947_v41  ;;  %v16948_v58 = vld [vmem:[#allocation46_spill] sm:$0xff]  ;;  %v16949_v48 = vld [vmem:[#allocation60_spill] sm:$0xff]  ;;  %v16951_v50 = vld [vmem:[#allocation63_spill] sm:$0xff] }
 0x64d   :  { %v7692_v18 = vmax.f32 %v7672_v28, %v7684_v12  ;;  %v7664_v23 = vmax.f32 %v7644_v42, %v7656_v14  ;;  %v7123_v16 = vadd.f32 %v16948_v58, %v7104_v5  ;;  %v7480_v54 = vadd.f32 %v16718_v37, %v16949_v48  ;;  %v14209_v12 = vld [vmem:[#allocation14 + $0xd0] sm:$0xff]  ;;  %v14207_v5 = vld [vmem:[#allocation14 + $0xc0] sm:$0xff] }
 0x64e   :  { %9337 = vmatpush.bf16.msra.mxu1 %v14307_v0  ;;  %v14254_v0 = vld [vmem:[#allocation14 + $0x238] sm:$0xff]  ;;  %v7500_v36 = vadd.f32 %v16687_v1, %v7456_v63  ;;  %v14253_v28 = vld [vmem:[#allocation14 + $0x230] sm:$0xff]  ;;  %8477 = vmatpush.bf16.msrb.mxu0 %v14209_v12  ;;  %v16952_v14 = vmax.f32 %v16951_v50, 0.0 }
 0x64f   :  { %v16707_v62 = vpop.permute.xlu0 %7570  ;;  %v7700_v20 = vrot.slane %v7692_v18, 2  ;;  %7668 = vst [vmem:[#allocation5 + $0x8] sm:$0x3] %v7664_v23  ;;  %v7508_v6 = vmax.f32 %v7480_v54, 0.0  ;;  %v7443_v17 = vadd.f32 %v7123_v16, %v16950_v39  ;;  %8465 = vmatpush.bf16.msrb.mxu2 %v14200_v44  ;;  %v16956_v54 = vld [vmem:[#allocation62_spill] sm:$0xff] }
 0x650   :  { %v7528_v18 = vmax.f32 %v7500_v36, 0.0 }
 0x651   :  { %7708 = vst [vmem:[#allocation5 + $0x8] sm:$0xc] %v7700_v20  ;;  %v7487_v23 = vadd.f32 %v16718_v37, %v7443_v17 }
 0x652   :  { %9338 = vmatpush.bf16.msra.mxu1 %v14306_v56  ;;  %v16727_v56 = vpop.permute.xlu2 %7576  ;;  %v7716_v55 = vld [vmem:[#allocation3 + $0x28] sm:$0xc] }
 0x656   :  { %9339 = vmatpush.bf16.msra.mxu1 %v14305_v38  ;;  %v7900_v15 = vld [vmem:[#allocation5 + $0x8] sm:$0x3] }
 0x657   :  { %v7569_v30 = vpop.permute.xlu0 %7568 }
 0x658   :  { %v7588_v27 = vsel %vm1382_vm3, %v7567_v8, %v7569_v30  ;;  %v7589_v9 = vsel %vm1382_vm3, %v7569_v30, %v16707_v62  ;;  %v7964_v45 = vld [vmem:[#allocation5 + $0x8] sm:$0xc]  ;;  %v14251_v8 = vld [vmem:[#allocation14 + $0x220] sm:$0xff]  ;;  %v7515_v30 = vmax.f32 %v7487_v23, 0.0 }
 0x659   :  { %v7618_v7 = vmax.f32 %v7520_v2, %v7588_v27  ;;  %v7619_v21 = vmax.f32 %v7521_v19, %v7589_v9  ;;  %v7968_v53 = vpack.c.bf16 %v7964_v45, %v7964_v45  ;;  %v7724_v2 = vrot.slane %v7716_v55, 2  ;;  %v14199_v19 = vld [vmem:[#allocation14 + $0x80] sm:$0xff] }
 0x65a   :  { %9340 = vmatpush.bf16.msra.mxu1 %v14304_v40  ;;  %v14343_v40 = vld [vmem:[#allocation14 + $0x500] sm:$0xff]  ;;  %8466 = vmatpush.bf16.msrb.mxu2 %v14199_v19 }
 0x65b   :  { %7634 = vst [vmem:[#allocation3 + $0x40] sm:$0xff] %v7618_v7  ;;  %v8033_v47 = vrot.slane %v7968_v53, 1  ;;  %v16954_v7 = vld [vmem:[#allocation48_spill] sm:$0xff]  ;;  %v14250_v53 = vld [vmem:[#allocation14 + $0x218] sm:$0xff]  ;;  %v14247_v23 = vld [vmem:[#allocation14 + $0x200] sm:$0xff] }
 0x65c   :  { %7635 = vst [vmem:[#allocation3 + $0x48] sm:$0xff] %v7619_v21 }
 0x65d   :  { %8231 = vmatmul.bf16.vlgmr.msra.gmra.mxu3 %v8033_v47 }
 0x65e   :  { %9341 = vmatpush.bf16.msra.mxu1 %v14303_v52  ;;  %8745 = vmatpush.bf16.msra.mxu3 %v14254_v0  ;;  %v7712_v52 = vld [vmem:[#allocation3 + $0x28] sm:$0x3] }
 0x65f   :  { %v16729_v4 = vpop.permute.xlu0 %7578  ;;  %v7557_v1 = vpop.permute.xlu1 %7556  ;;  %v7732_v45 = vmax.f32 %v7712_v52, %v7724_v2  ;;  %v14266_v52 = vld [vmem:[#allocation14 + $0x298] sm:$0xff] }
 0x660   :  { %v7592_v20 = vsel %vm1382_vm3, %v16727_v56, %v16729_v4  ;;  %v7584_v38 = vsel %vm1382_vm3, %v16692_v60, %v7557_v1  ;;  %v7613_v42 = vmax.f32 %v16952_v14, %v7557_v1  ;;  %v14208_v60 = vld [vmem:[#allocation14 + $0xc8] sm:$0xff]  ;;  %v14341_v14 = vld [vmem:[#allocation14 + $0x4f0] sm:$0xff] }
 0x661   :  { %v7623_v26 = vmax.f32 %v7528_v18, %v7592_v20  ;;  %v7612_v34 = vmax.f32 %v7508_v6, %v7584_v38  ;;  %8478 = vmatpush.bf16.msrb.mxu0 %v14208_v60  ;;  %v7740_v36 = vrot.slane %v7732_v45, 4  ;;  %v16959_v60 = vld [vmem:[#allocation59_spill] sm:$0xff]  ;;  %v14289_v45 = vld [vmem:[#allocation14 + $0x350] sm:$0xff] }
 0x662   :  { %9647 = vmatpush.bf16.msrb.mxu1 %v14346_v25  ;;  %7629 = vst.msk [vmem:[#allocation3 + $0x18] sm:$0xff] %vm1382_vm3, %v7613_v42  ;;  %8746 = vmatpush.bf16.msra.mxu3 %v14253_v28  ;;  %v16953_v25 = vld [vmem:[#allocation28_spill] sm:$0xff]  ;;  %v16957_v42 = vld [vmem:[#allocation41_spill] sm:$0xff] }
 0x663   :  { %7639 = vst [vmem:[#allocation3 + $0x68] sm:$0xf] %v7623_v26  ;;  %v7796_v22 = vld [vmem:[#allocation3 + $0x48] sm:$0xc]  ;;  %v7792_v10 = vld [vmem:[#allocation3 + $0x48] sm:$0x3]  ;;  %v7090_v21 = vadd.f32 %v16954_v7, %v16953_v25 }
 0x664   :  { %7628 = vst [vmem:[#allocation3 + $0x10] sm:$0xff] %v7612_v34  ;;  %v7804_v31 = vrot.slane %v7796_v22, 2  ;;  %v14248_v26 = vld [vmem:[#allocation14 + $0x208] sm:$0xff]  ;;  %v14290_v22 = vld [vmem:[#allocation14 + $0x358] sm:$0xff] }
 0x665   :  { %8479 = vmatpush.bf16.msrb.mxu0 %v14207_v5  ;;  %v7109_v12 = vadd.f32 %v16956_v54, %v7090_v21  ;;  %7748 = vst [vmem:[#allocation5 + $0x8] sm:$0x30] %v7740_v36  ;;  %v14340_v34 = vld [vmem:[#allocation14 + $0x4e8] sm:$0xff]  ;;  %v14339_v5 = vld [vmem:[#allocation14 + $0x4e0] sm:$0xff] }
 0x666   :  { %9648 = vmatpush.bf16.msrb.mxu1 %v14345_v61  ;;  %8747 = vmatpush.bf16.msra.mxu3 %v14252_v57  ;;  %v7812_v43 = vmax.f32 %v7792_v10, %v7804_v31  ;;  %v14249_v61 = vld [vmem:[#allocation14 + $0x210] sm:$0xff] }
 0x667   :  { %v7565_v13 = vpop.permute.xlu1 %7564 }
 0x668   :  { %v7587_v41 = vsel %vm1382_vm3, %v16699_v46, %v7565_v13  ;;  %v7617_v63 = vmax.f32 %v7516_v29, %v7565_v13  ;;  %7816 = vst [vmem:[#allocation5 + $0x28] sm:$0x3] %v7812_v43  ;;  %v7904_v46 = vpack.c.bf16 %v7900_v15, %v7900_v15  ;;  %v7494_v29 = vadd.f32 %v16718_v37, %v16955_v33  ;;  %v14265_v33 = vld [vmem:[#allocation14 + $0x290] sm:$0xff] }
 0x669   :  { %v7616_v27 = vmax.f32 %v7515_v30, %v7587_v41  ;;  %v7678_v9 = vld [vmem:[#allocation3 + $0x18] sm:$0xc0]  ;;  %v7674_v16 = vld [vmem:[#allocation3 + $0x18] sm:$0x30]  ;;  %v7646_v19 = vld [vmem:[#allocation3 + $0x18] sm:$0x3] }
 0x66a   :  { %9649 = vmatpush.bf16.msrb.mxu1 %v14344_v35  ;;  %7633 = vst.msk [vmem:[#allocation3 + $0x38] sm:$0xff] %vm1382_vm3, %v7617_v63  ;;  %8748 = vmatpush.bf16.msra.mxu3 %v14251_v8  ;;  %v7686_v58 = vrot.slane %v7678_v9, 2  ;;  %v7522_v1 = vmax.f32 %v7494_v29, 0.0  ;;  %v7128_v35 = vadd.f32 %v16957_v42, %v7109_v12  ;;  %v14378_v41 = vld [vmem:[#allocation14 + $0x618] sm:$0xff] }
 0x66b   :  { %7632 = vst [vmem:[#allocation3 + $0x30] sm:$0xff] %v7616_v27  ;;  %v7677_v0 = vld [vmem:[#allocation3 + $0x10] sm:$0xc0]  ;;  %v7673_v48 = vld [vmem:[#allocation3 + $0x10] sm:$0x30] }
 0x66c   :  { %v7694_v24 = vmax.f32 %v7674_v16, %v7686_v58  ;;  %v7685_v47 = vrot.slane %v7677_v0, 2  ;;  %v7649_v32 = vld [vmem:[#allocation3 + $0x10] sm:$0xc]  ;;  %v7457_v44 = vadd.f32 %v7128_v35, %v16959_v60  ;;  %v7645_v55 = vld [vmem:[#allocation3 + $0x10] sm:$0x3]  ;;  %v14282_v60 = vld [vmem:[#allocation14 + $0x318] sm:$0xff] }
 0x66d   :  { %8454 = vmatmul.bf16.vlgmr.msrb.gmra.mxu3 %v7904_v46  ;;  %v7657_v10 = vrot.slane %v7649_v32, 2  ;;  %v14377_v46 = vld [vmem:[#allocation14 + $0x610] sm:$0xff] }
 0x66e   :  { %9650 = vmatpush.bf16.msrb.mxu1 %v14343_v40  ;;  %8749 = vmatpush.bf16.msra.mxu3 %v14250_v53  ;;  %v7702_v28 = vrot.slane %v7694_v24, 2  ;;  %v7693_v49 = vmax.f32 %v7673_v48, %v7685_v47  ;;  %v7650_v40 = vld [vmem:[#allocation3 + $0x18] sm:$0xc]  ;;  %v7501_v25 = vadd.f32 %v16718_v37, %v7457_v44  ;;  %v14288_v48 = vld [vmem:[#allocation14 + $0x348] sm:$0xff] }
 0x66f   :  { %v7573_v18 = vpop.permute.xlu1 %7572  ;;  %v9086_v6 = vld [vmem:[#allocation5 + $0x28] sm:$0x3]  ;;  %v7658_v13 = vrot.slane %v7650_v40, 2  ;;  %v7665_v2 = vmax.f32 %v7645_v55, %v7657_v10  ;;  %v14262_v53 = vld [vmem:[#allocation14 + $0x278] sm:$0xff]  ;;  %v14285_v40 = vld [vmem:[#allocation14 + $0x330] sm:$0xff] }
 0x670   :  { %v7590_v39 = vsel %vm1382_vm3, %v16707_v62, %v7573_v18  ;;  %v7621_v17 = vmax.f32 %v7523_v3, %v7573_v18  ;;  %v9090_v20 = vpack.c.bf16 %v9086_v6, %v9086_v6  ;;  %7710 = vst.msk [vmem:[#allocation5 + $0x18] sm:$0xc] %vm1537_vm6, %v7702_v28  ;;  %v7701_v38 = vrot.slane %v7693_v49, 2  ;;  %v8486_v62 = vld [vmem:[#allocation5 + $0x8] sm:$0x30] }
 0x671   :  { %v7620_v50 = vmax.f32 %v7522_v1, %v7590_v39  ;;  %v16958_v3 = vld [vmem:[#allocation31_spill] sm:$0xff]  ;;  %v8490_v31 = vpack.c.bf16 %v8486_v62, %v8486_v62  ;;  %7669 = vst [vmem:[#allocation5 + $0x10] sm:$0x3] %v7665_v2  ;;  %v7529_v0 = vmax.f32 %v7501_v25, 0.0  ;;  %v7718_v12 = vld [vmem:[#allocation3 + $0x38] sm:$0xc] }
 0x672   :  { %9651 = vmatpush.bf16.msrb.mxu1 %v14342_v59  ;;  %7637 = vst.msk [vmem:[#allocation3 + $0x58] sm:$0xff] %vm1382_vm3, %v7621_v17  ;;  %8750 = vmatpush.bf16.msra.mxu3 %v14249_v61  ;;  %v7527_v57 = vmax.f32 %v16958_v3, 0.0  ;;  %v7666_v59 = vmax.f32 %v7646_v19, %v7658_v13  ;;  %v7757_v37 = vld [vmem:[#allocation3 + $0x30] sm:$0xc0]  ;;  %v7753_v54 = vld [vmem:[#allocation3 + $0x30] sm:$0x30] }
 0x673   :  { %9342 = vmatmul.bf16.vlgmr.msra.gmra.mxu1 %v9090_v20  ;;  %7636 = vst [vmem:[#allocation3 + $0x50] sm:$0xff] %v7620_v50  ;;  %v8555_v9 = vrot.slane %v8490_v31, 2  ;;  %v7765_v47 = vrot.slane %v7757_v37, 2  ;;  %v14376_v18 = vld [vmem:[#allocation14 + $0x608] sm:$0xff]  ;;  %v7717_v6 = vld [vmem:[#allocation3 + $0x30] sm:$0xc] }
 0x674   :  { %7709 = vst [vmem:[#allocation5 + $0x10] sm:$0xc] %v7701_v38  ;;  %v14261_v17 = vld [vmem:[#allocation14 + $0x270] sm:$0xff]  ;;  %v14264_v20 = vld [vmem:[#allocation14 + $0x288] sm:$0xff]  ;;  %v7726_v38 = vrot.slane %v7718_v12, 2  ;;  %v7725_v50 = vrot.slane %v7717_v6, 2 }
 0x675   :  { %7670 = vst.msk [vmem:[#allocation5 + $0x18] sm:$0x3] %vm1491_vm5, %v7666_v59  ;;  %v7773_v1 = vmax.f32 %v7753_v54, %v7765_v47  ;;  %v7713_v42 = vld [vmem:[#allocation3 + $0x30] sm:$0x3]  ;;  %v14263_v62 = vld [vmem:[#allocation14 + $0x280] sm:$0xff]  ;;  %v14284_v59 = vld [vmem:[#allocation14 + $0x328] sm:$0xff] }
 0x676   :  { %9652 = vmatpush.bf16.msrb.mxu1 %v14341_v14  ;;  %8751 = vmatpush.bf16.msra.mxu3 %v14248_v26  ;;  %v7714_v14 = vld [vmem:[#allocation3 + $0x38] sm:$0x3]  ;;  %v7733_v35 = vmax.f32 %v7713_v42, %v7725_v50  ;;  %v14375_v26 = vld [vmem:[#allocation14 + $0x600] sm:$0xff]  ;;  %v7756_v25 = vld [vmem:[#allocation3 + $0x28] sm:$0xc0] }
 0x677   :  { %v7575_v8 = vpop.permute.xlu1 %7574  ;;  %v7966_v43 = vld [vmem:[#allocation5 + $0x18] sm:$0xc]  ;;  %v14259_v31 = vld [vmem:[#allocation14 + $0x260] sm:$0xff]  ;;  %v14320_v42 = vld [vmem:[#allocation14 + $0x448] sm:$0xff] }
 0x678   :  { %v7591_v30 = vsel %vm1382_vm3, %v7575_v8, %v16727_v56  ;;  %v7970_v15 = vpack.c.bf16 %v7966_v43, %v7966_v43  ;;  %v7741_v3 = vrot.slane %v7733_v35, 4  ;;  %v14293_v35 = vld [vmem:[#allocation14 + $0x370] sm:$0xff] }
 0x679   :  { %v7622_v63 = vmax.f32 %v7527_v57, %v7591_v30  ;;  %v14286_v57 = vld [vmem:[#allocation14 + $0x338] sm:$0xff] }
 0x67a   :  { %9653 = vmatpush.bf16.msrb.mxu1 %v14340_v34  ;;  %8752 = vmatpush.bf16.msra.mxu3 %v14247_v23  ;;  %v8035_v27 = vrot.slane %v7970_v15, 1  ;;  %v7825_v21 = vld [vmem:[#allocation3 + $0x50] sm:$0xc0]  ;;  %v7821_v29 = vld [vmem:[#allocation3 + $0x50] sm:$0x30]  ;;  %v14260_v34 = vld [vmem:[#allocation14 + $0x268] sm:$0xff] }
 0x67b   :  { %7638 = vst [vmem:[#allocation3 + $0x60] sm:$0xf] %v7622_v63  ;;  %v7965_v7 = vld [vmem:[#allocation5 + $0x10] sm:$0xc]  ;;  %v7833_v58 = vrot.slane %v7825_v21, 2  ;;  %v14258_v30 = vld [vmem:[#allocation14 + $0x258] sm:$0xff] }
 0x67c   :  { %12842 = vmatmul.msk.bf16.vlgmr.msra.gmra.mxu2 %vm1382_vm3, %v8035_v27  ;;  %v7969_v56 = vpack.c.bf16 %v7965_v7, %v7965_v7  ;;  %v7901_v23 = vld [vmem:[#allocation5 + $0x10] sm:$0x3]  ;;  %7749 = vst [vmem:[#allocation5 + $0x10] sm:$0x30] %v7741_v3  ;;  %v7902_v43 = vld [vmem:[#allocation5 + $0x18] sm:$0x3] }
 0x67d   :  { %8753 = vmatmul.bf16.vlgmr.msra.gmra.mxu3 %v8555_v9  ;;  %8775 = vmatpush.bf16.msra.mxu2 %v14266_v52  ;;  %v7841_v24 = vmax.f32 %v7821_v29, %v7833_v58  ;;  %v7905_v10 = vpack.c.bf16 %v7901_v23, %v7901_v23  ;;  %v14281_v15 = vld [vmem:[#allocation14 + $0x310] sm:$0xff]  ;;  %v7798_v2 = vld [vmem:[#allocation3 + $0x58] sm:$0xc]  ;;  %v7794_v27 = vld [vmem:[#allocation3 + $0x58] sm:$0x3] }
 0x67e   :  { %9058 = vmatpush.bf16.msrb.mxu3 %v14290_v22  ;;  %9654 = vmatpush.bf16.msrb.mxu1 %v14339_v5  ;;  %v8034_v16 = vrot.slane %v7969_v56, 1  ;;  %v7806_v52 = vrot.slane %v7798_v2, 2  ;;  %v14257_v9 = vld [vmem:[#allocation14 + $0x250] sm:$0xff]  ;;  %v14280_v7 = vld [vmem:[#allocation14 + $0x308] sm:$0xff]  ;;  %v7764_v56 = vrot.slane %v7756_v25, 2  ;;  %v14275_v23 = vld [vmem:[#allocation14 + $0x2e0] sm:$0xff] }
 0x67f   :  { %v7581_v36 = vpop.permute.xlu1 %7580  ;;  %v7849_v49 = vrot.slane %v7841_v24, 2  ;;  %v7752_v58 = vld [vmem:[#allocation3 + $0x28] sm:$0x30] }
 0x680   :  { %8244 = vmatmul.bf16.vlgmr.msra.gmra.mxu0 %v8034_v16  ;;  %v7593_v61 = vsel %vm1382_vm3, %v16729_v4, %v7581_v36  ;;  %v7625_v28 = vmax.f32 %v7530_v51, %v7581_v36  ;;  %v7781_v51 = vrot.slane %v7773_v1, 6  ;;  %v7734_v4 = vmax.f32 %v7714_v14, %v7726_v38  ;;  %v7754_v16 = vld [vmem:[#allocation3 + $0x38] sm:$0x30]  ;;  %v14256_v36 = vld [vmem:[#allocation14 + $0x248] sm:$0xff]  ;;  %v14321_v1 = vld [vmem:[#allocation14 + $0x450] sm:$0xff] }
 0x681   :  { %8758 = vmatpush.bf16.msra.mxu0 %v14262_v53  ;;  %v7624_v39 = vmax.f32 %v7529_v0, %v7593_v61  ;;  %8776 = vmatpush.bf16.msra.mxu2 %v14265_v33  ;;  %7857 = vst [vmem:[#allocation5 + $0x30] sm:$0xc] %v7849_v49  ;;  %v7758_v53 = vld [vmem:[#allocation3 + $0x38] sm:$0xc0]  ;;  %v14283_v33 = vld [vmem:[#allocation14 + $0x320] sm:$0xff]  ;;  %v7772_v37 = vmax.f32 %v7752_v58, %v7764_v56 }
 0x682   :  { %9964 = vmatpush.bf16.msra.mxu1 %v14378_v41  ;;  %9059 = vmatpush.bf16.msrb.mxu3 %v14289_v45  ;;  %7642 = vst.msk [vmem:[#allocation3 + $0x78] sm:$0xf] %vm7641_vm9, %v7625_v28  ;;  %v7742_v32 = vrot.slane %v7734_v4, 4  ;;  %v7906_v41 = vpack.c.bf16 %v7902_v43, %v7902_v43  ;;  %v7814_v45 = vmax.f32 %v7794_v27, %v7806_v52  ;;  %v14322_v0 = vld [vmem:[#allocation14 + $0x458] sm:$0xff]  ;;  %v7823_v43 = vld [vmem:[#allocation3 + $0x40] sm:$0xc0] }
 0x683   :  { %7640 = vst [vmem:[#allocation3 + $0x70] sm:$0xf] %v7624_v39  ;;  %v7780_v54 = vrot.slane %v7772_v37, 6  ;;  %v8487_v28 = vld [vmem:[#allocation5 + $0x10] sm:$0x30]  ;;  %v14255_v39 = vld [vmem:[#allocation14 + $0x240] sm:$0xff] }
 0x684   :  { %7789 = vst [vmem:[#allocation5 + $0x10] sm:$0xc0] %v7781_v51  ;;  %v8491_v50 = vpack.c.bf16 %v8487_v28, %v8487_v28  ;;  %v14301_v27 = vld [vmem:[#allocation14 + $0x3b0] sm:$0xff]  ;;  %v7824_v28 = vld [vmem:[#allocation3 + $0x48] sm:$0xc0] }
 0x685   :  { %8759 = vmatpush.bf16.msra.mxu0 %v14261_v17  ;;  %8777 = vmatpush.bf16.msra.mxu2 %v14264_v20  ;;  %7750 = vst.msk [vmem:[#allocation5 + $0x18] sm:$0x30] %vm1566_vm7, %v7742_v32  ;;  %v14278_v17 = vld [vmem:[#allocation14 + $0x2f8] sm:$0xff]  ;;  %v7793_v56 = vld [vmem:[#allocation3 + $0x50] sm:$0x3] }
 0x686   :  { %9965 = vmatpush.bf16.msra.mxu1 %v14377_v46  ;;  %9060 = vmatpush.bf16.msrb.mxu3 %v14288_v48  ;;  %7818 = vst.msk [vmem:[#allocation5 + $0x38] sm:$0x3] %vm1491_vm5, %v7814_v45  ;;  %v7766_v46 = vrot.slane %v7758_v53, 2  ;;  %v14279_v48 = vld [vmem:[#allocation14 + $0x300] sm:$0xff]  ;;  %v14294_v20 = vld [vmem:[#allocation14 + $0x378] sm:$0xff]  ;;  %v8556_v51 = vrot.slane %v8491_v50, 2 }
 0x687   :  { %7788 = vst [vmem:[#allocation5 + $0x8] sm:$0xc0] %v7780_v54  ;;  %v14330_v32 = vld [vmem:[#allocation14 + $0x498] sm:$0xff]  ;;  %v7791_v45 = vld [vmem:[#allocation3 + $0x40] sm:$0x3] }
 0x688   :  { %v9376_v5 = vld [vmem:[#allocation5 + $0x30] sm:$0xc]  ;;  %v7774_v47 = vmax.f32 %v7754_v16, %v7766_v46  ;;  %v14327_v46 = vld [vmem:[#allocation14 + $0x480] sm:$0xff]  ;;  %v14314_v54 = vld [vmem:[#allocation14 + $0x418] sm:$0xff] }
 0x689   :  { %v7866_v22 = vld [vmem:[#allocation3 + $0x78] sm:$0xc]  ;;  %8760 = vmatpush.bf16.msra.mxu0 %v14260_v34  ;;  %8778 = vmatpush.bf16.msra.mxu2 %v14263_v62  ;;  %v7862_v8 = vld [vmem:[#allocation3 + $0x78] sm:$0x3]  ;;  %v9380_v13 = vpack.c.bf16 %v9376_v5, %v9376_v5  ;;  %v14276_v34 = vld [vmem:[#allocation14 + $0x2e8] sm:$0xff]  ;;  %v7831_v5 = vrot.slane %v7823_v43, 2 }
 0x68a   :  { %9966 = vmatpush.bf16.msra.mxu1 %v14376_v18  ;;  %9061 = vmatpush.bf16.msrb.mxu3 %v14287_v11  ;;  %v7874_v44 = vrot.slane %v7866_v22, 2  ;;  %v7782_v61 = vrot.slane %v7774_v47, 6  ;;  %v14277_v11 = vld [vmem:[#allocation14 + $0x2f0] sm:$0xff]  ;;  %v14292_v62 = vld [vmem:[#allocation14 + $0x368] sm:$0xff]  ;;  %v14315_v47 = vld [vmem:[#allocation14 + $0x420] sm:$0xff] }
 0x68b   :  { %v9445_v63 = vrot.slane %v9380_v13, 1  ;;  %v8787_v21 = vld [vmem:[#allocation5 + $0x10] sm:$0xc0]  ;;  %v14350_v43 = vld [vmem:[#allocation14 + $0x538] sm:$0xff] }
 0x68c   :  { %v7882_v55 = vmax.f32 %v7862_v8, %v7874_v44  ;;  %8467 = vmatmul.bf16.vlgmr.msrb.gmra.mxu2 %v7905_v10  ;;  %v8488_v29 = vld [vmem:[#allocation5 + $0x18] sm:$0x30]  ;;  %v8791_v24 = vpack.c.bf16 %v8787_v21, %v8787_v21  ;;  %7790 = vst.msk [vmem:[#allocation5 + $0x18] sm:$0xc0] %vm1496_vm4, %v7782_v61  ;;  %v14324_v61 = vld [vmem:[#allocation14 + $0x468] sm:$0xff] }
 0x68d   :  { %8761 = vmatpush.bf16.msra.mxu0 %v14259_v31  ;;  %9045 = vmatpush.bf16.msrb.mxu2 %v14282_v60  ;;  %v8492_v12 = vpack.c.bf16 %v8488_v29, %v8488_v29  ;;  %v14302_v31 = vld [vmem:[#allocation14 + $0x3b8] sm:$0xff]  ;;  %v14329_v60 = vld [vmem:[#allocation14 + $0x490] sm:$0xff]  ;;  %v14316_v29 = vld [vmem:[#allocation14 + $0x428] sm:$0xff] }
 0x68e   :  { %9967 = vmatpush.bf16.msra.mxu1 %v14375_v26  ;;  %9062 = vmatpush.bf16.msrb.mxu3 %v14286_v57  ;;  %v7890_v19 = vrot.slane %v7882_v55, 4  ;;  %v8856_v18 = vrot.slane %v8791_v24, 3  ;;  %v14319_v26 = vld [vmem:[#allocation14 + $0x440] sm:$0xff]  ;;  %v8786_v3 = vld [vmem:[#allocation5 + $0x8] sm:$0xc0] }
 0x68f   :  { %9655 = vmatmul.bf16.vlgmr.msrb.gmra.mxu1 %v9445_v63  ;;  %v8557_v38 = vrot.slane %v8492_v12, 2  ;;  %v14291_v57 = vld [vmem:[#allocation14 + $0x360] sm:$0xff]  ;;  %v9088_v44 = vld [vmem:[#allocation5 + $0x38] sm:$0x3]  ;;  %v8790_v10 = vpack.c.bf16 %v8786_v3, %v8786_v3 }
 0x690   :  { %7898 = vst.msk [vmem:[#allocation5 + $0x38] sm:$0x30] %vm1566_vm7, %v7890_v19  ;;  %12955 = vmatmul.msk.bf16.vlgmr.msrb.gmra.mxu0 %vm1382_vm3, %v7906_v41  ;;  %v9092_v13 = vpack.c.bf16 %v9088_v44, %v9088_v44  ;;  %v14328_v19 = vld [vmem:[#allocation14 + $0x488] sm:$0xff]  ;;  %v14299_v24 = vld [vmem:[#allocation14 + $0x3a0] sm:$0xff]  ;;  %v14338_v44 = vld [vmem:[#allocation14 + $0x4d8] sm:$0xff] }
 0x691   :  { %8762 = vmatpush.bf16.msra.mxu0 %v14258_v30  ;;  %9046 = vmatpush.bf16.msrb.mxu2 %v14281_v15  ;;  %v7819_v30 = vld [vmem:[#allocation3 + $0x40] sm:$0x30]  ;;  %v7795_v15 = vld [vmem:[#allocation3 + $0x40] sm:$0xc]  ;;  %v8855_v2 = vrot.slane %v8790_v10, 3  ;;  %v14365_v10 = vld [vmem:[#allocation14 + $0x5b0] sm:$0xff] }
 0x692   :  { %9063 = vmatpush.bf16.msrb.mxu3 %v14285_v40  ;;  %v14318_v40 = vld [vmem:[#allocation14 + $0x438] sm:$0xff]  ;;  %v7839_v63 = vmax.f32 %v7819_v30, %v7831_v5  ;;  %v7803_v52 = vrot.slane %v7795_v15, 2 }
 0x693   :  { %v8788_v8 = vld [vmem:[#allocation5 + $0x18] sm:$0xc0] }
 0x694   :  { %v8792_v41 = vpack.c.bf16 %v8788_v8, %v8788_v8  ;;  %v7811_v21 = vmax.f32 %v7791_v45, %v7803_v52  ;;  %v14336_v52 = vld [vmem:[#allocation14 + $0x4c8] sm:$0xff]  ;;  %v14335_v45 = vld [vmem:[#allocation14 + $0x4c0] sm:$0xff] }
 0x695   :  { %8763 = vmatpush.bf16.msra.mxu0 %v14257_v9  ;;  %9047 = vmatpush.bf16.msrb.mxu2 %v14280_v7  ;;  %v14317_v9 = vld [vmem:[#allocation14 + $0x430] sm:$0xff]  ;;  %v7847_v7 = vrot.slane %v7839_v63, 2 }
 0x696   :  { %9064 = vmatpush.bf16.msrb.mxu3 %v14284_v59  ;;  %v7797_v59 = vld [vmem:[#allocation3 + $0x50] sm:$0xc]  ;;  %v8857_v58 = vrot.slane %v8792_v41, 3  ;;  %7815 = vst [vmem:[#allocation5 + $0x20] sm:$0x3] %v7811_v21  ;;  %v14347_v21 = vld [vmem:[#allocation14 + $0x520] sm:$0xff] }
 0x697   :  { %v9677_v49 = vld [vmem:[#allocation5 + $0x38] sm:$0x30]  ;;  %v7805_v25 = vrot.slane %v7797_v59, 2  ;;  %7855 = vst [vmem:[#allocation5 + $0x20] sm:$0xc] %v7847_v7  ;;  %v14349_v41 = vld [vmem:[#allocation14 + $0x530] sm:$0xff] }
 0x698   :  { %v9681_v6 = vpack.c.bf16 %v9677_v49, %v9677_v49  ;;  %v14297_v49 = vld [vmem:[#allocation14 + $0x390] sm:$0xff]  ;;  %v14363_v59 = vld [vmem:[#allocation14 + $0x5a0] sm:$0xff] }
 0x699   :  { %8764 = vmatpush.bf16.msra.mxu0 %v14256_v36  ;;  %9048 = vmatpush.bf16.msrb.mxu2 %v14279_v48  ;;  %v7813_v53 = vmax.f32 %v7793_v56, %v7805_v25  ;;  %v14325_v36 = vld [vmem:[#allocation14 + $0x470] sm:$0xff]  ;;  %v14298_v48 = vld [vmem:[#allocation14 + $0x398] sm:$0xff] }
 0x69a   :  { %9065 = vmatpush.bf16.msrb.mxu3 %v14283_v33  ;;  %v9746_v14 = vrot.slane %v9681_v6, 2  ;;  %v14300_v33 = vld [vmem:[#allocation14 + $0x3a8] sm:$0xff]  ;;  %v14362_v25 = vld [vmem:[#allocation14 + $0x598] sm:$0xff] }
 0x69b   :  { %7817 = vst [vmem:[#allocation5 + $0x30] sm:$0x3] %v7813_v53  ;;  %v14358_v56 = vld [vmem:[#allocation14 + $0x578] sm:$0xff] }
 0x69c   :  { %13068 = vmatmul.msk.bf16.vlgmr.msra.gmra.mxu2 %vm1382_vm3, %v8557_v38 }
 0x69d   :  { %9066 = vmatmul.bf16.vlgmr.msrb.gmra.mxu3 %v8856_v18  ;;  %8765 = vmatpush.bf16.msra.mxu0 %v14255_v39  ;;  %v14313_v18 = vld [vmem:[#allocation14 + $0x410] sm:$0xff]  ;;  %v7826_v39 = vld [vmem:[#allocation3 + $0x58] sm:$0xc0]  ;;  %v9085_v8 = vld [vmem:[#allocation5 + $0x20] sm:$0x3] }
 0x69e   :  { %9364 = vmatpush.bf16.msra.mxu3 %v14322_v0  ;;  %9049 = vmatpush.bf16.msrb.mxu2 %v14278_v17  ;;  %v16776_v4 = vpop.f32.mrf.mxu1  ;;  %v14326_v0 = vld [vmem:[#allocation14 + $0x478] sm:$0xff]  ;;  %v9374_v6 = vld [vmem:[#allocation5 + $0x20] sm:$0xc]  ;;  %v7820_v17 = vld [vmem:[#allocation3 + $0x48] sm:$0x30]  ;;  %v7834_v38 = vrot.slane %v7826_v39, 2  ;;  %v9089_v30 = vpack.c.bf16 %v9085_v8, %v9085_v8 }
 0x69f   :  { %13520 = vmatmul.msk.bf16.vlgmr.msra.gmra.mxu1 %vm1382_vm3, %v9746_v14  ;;  %v14323_v14 = vld [vmem:[#allocation14 + $0x460] sm:$0xff]  ;;  %v14370_v8 = vld [vmem:[#allocation14 + $0x5d8] sm:$0xff] }
 0x6a0   :  { %8766 = vmatmul.bf16.vlgmr.msra.gmra.mxu0 %v8556_v51  ;;  %v14312_v51 = vld [vmem:[#allocation14 + $0x408] sm:$0xff] }
 0x6a1   :  { %9075 = vmatpush.bf16.msrb.mxu0 %v14294_v20  ;;  %v7864_v20 = vld [vmem:[#allocation3 + $0x68] sm:$0xc] }
 0x6a2   :  { %9365 = vmatpush.bf16.msra.mxu3 %v14321_v1  ;;  %9050 = vmatpush.bf16.msrb.mxu2 %v14277_v11  ;;  %v7832_v1 = vrot.slane %v7824_v28, 2  ;;  %v14296_v11 = vld [vmem:[#allocation14 + $0x388] sm:$0xff]  ;;  %v9087_v5 = vld [vmem:[#allocation5 + $0x30] sm:$0x3] }
 0x6a3   :  { %v9091_v15 = vpack.c.bf16 %v9087_v5, %v9087_v5  ;;  %v14332_v28 = vld [vmem:[#allocation14 + $0x4a8] sm:$0xff]  ;;  %v14369_v5 = vld [vmem:[#allocation14 + $0x5d0] sm:$0xff] }
 0x6a4   :  { %v7840_v50 = vmax.f32 %v7820_v17, %v7832_v1 }
 0x6a5   :  { %9076 = vmatpush.bf16.msrb.mxu0 %v14293_v35  ;;  %v9378_v35 = vpack.c.bf16 %v9374_v6, %v9374_v6  ;;  %v14355_v6 = vld [vmem:[#allocation14 + $0x560] sm:$0xff] }
 0x6a6   :  { %9366 = vmatpush.bf16.msra.mxu3 %v14320_v42  ;;  %9051 = vmatpush.bf16.msrb.mxu2 %v14276_v34  ;;  %v8444_v22 = vpop.f32.mrf.mxu1  ;;  %v7822_v42 = vld [vmem:[#allocation3 + $0x58] sm:$0x30]  ;;  %v7848_v34 = vrot.slane %v7840_v50, 2 }
 0x6a7   :  { %v14295_v22 = vld [vmem:[#allocation14 + $0x380] sm:$0xff] }
 0x6a8   :  { %v16779_v55 = vpop.f32.mrf.mxu2  ;;  %7856 = vst [vmem:[#allocation5 + $0x28] sm:$0xc] %v7848_v34 }
 0x6a9   :  { %9077 = vmatpush.bf16.msrb.mxu0 %v14292_v62  ;;  %v7872_v62 = vrot.slane %v7864_v20, 2  ;;  %v14331_v20 = vld [vmem:[#allocation14 + $0x4a0] sm:$0xff] }
 0x6aa   :  { %9367 = vmatpush.bf16.msra.mxu3 %v14319_v26  ;;  %9052 = vmatpush.bf16.msrb.mxu2 %v14275_v23  ;;  %v7842_v26 = vmax.f32 %v7822_v42, %v7834_v38  ;;  %v7861_v38 = vld [vmem:[#allocation3 + $0x70] sm:$0x3]  ;;  %v14374_v42 = vld [vmem:[#allocation14 + $0x5f8] sm:$0xff] }
 0x6ac   :  { %v7850_v3 = vrot.slane %v7842_v26, 2 }
 0x6ad   :  { %9078 = vmatpush.bf16.msrb.mxu0 %v14291_v57  ;;  %13294 = vmatmul.msk.bf16.vlgmr.msra.gmra.mxu3 %vm1382_vm3, %v9092_v13  ;;  %v7860_v57 = vld [vmem:[#allocation3 + $0x68] sm:$0x3] }
 0x6ae   :  { %9621 = vmatpush.bf16.msrb.mxu3 %v14330_v32  ;;  %9347 = vmatpush.bf16.msra.mxu2 %v14318_v40  ;;  %v14366_v32 = vld [vmem:[#allocation14 + $0x5b8] sm:$0xff]  ;;  %7858 = vst.msk [vmem:[#allocation5 + $0x38] sm:$0xc] %vm1537_vm6, %v7850_v3  ;;  %v7880_v40 = vmax.f32 %v7860_v57, %v7872_v62  ;;  %v14373_v62 = vld [vmem:[#allocation14 + $0x5f0] sm:$0xff]  ;;  %v14372_v57 = vld [vmem:[#allocation14 + $0x5e8] sm:$0xff] }
 0x6af   :  { %9053 = vmatmul.bf16.vlgmr.msrb.gmra.mxu2 %v8855_v2  ;;  %v14337_v2 = vld [vmem:[#allocation14 + $0x4d0] sm:$0xff]  ;;  %v9375_v39 = vld [vmem:[#allocation5 + $0x28] sm:$0xc] }
 0x6b0   :  { %13181 = vmatmul.msk.bf16.vlgmr.msrb.gmra.mxu0 %vm1382_vm3, %v8857_v58  ;;  %v8221_v37 = vpop.f32.mrf.mxu2  ;;  %v7888_v13 = vrot.slane %v7880_v40, 4  ;;  %v7859_v58 = vld [vmem:[#allocation3 + $0x60] sm:$0x3] }
 0x6b1   :  { %9321 = vmatpush.bf16.msra.mxu0 %v14302_v31  ;;  %v9443_v31 = vrot.slane %v9378_v35, 1 }
 0x6b2   :  { %9622 = vmatpush.bf16.msrb.mxu3 %v14329_v60  ;;  %9348 = vmatpush.bf16.msra.mxu2 %v14317_v9  ;;  %v16783_v16 = vpop.f32.mrf.mxu1  ;;  %v14311_v60 = vld [vmem:[#allocation14 + $0x400] sm:$0xff]  ;;  %7896 = vst [vmem:[#allocation5 + $0x28] sm:$0x30] %v7888_v13 }
 0x6b3   :  { %v7863_v9 = vld [vmem:[#allocation3 + $0x60] sm:$0xc] }
 0x6b4   :  { %v7871_v7 = vrot.slane %v7863_v9, 2 }
 0x6b5   :  { %9322 = vmatpush.bf16.msra.mxu0 %v14301_v27  ;;  %v14348_v27 = vld [vmem:[#allocation14 + $0x528] sm:$0xff]  ;;  %v9377_v53 = vld [vmem:[#allocation5 + $0x38] sm:$0xc] }
 0x6b6   :  { %9623 = vmatpush.bf16.msrb.mxu3 %v14328_v19  ;;  %9349 = vmatpush.bf16.msra.mxu2 %v14316_v29  ;;  %v14364_v19 = vld [vmem:[#allocation14 + $0x5a8] sm:$0xff]  ;;  %v9381_v29 = vpack.c.bf16 %v9377_v53, %v9377_v53  ;;  %v7879_v37 = vmax.f32 %v7859_v58, %v7871_v7 }
 0x6b9   :  { %9323 = vmatpush.bf16.msra.mxu0 %v14300_v33  ;;  %v14361_v33 = vld [vmem:[#allocation14 + $0x590] sm:$0xff] }
 0x6ba   :  { %9624 = vmatpush.bf16.msrb.mxu3 %v14327_v46  ;;  %9350 = vmatpush.bf16.msra.mxu2 %v14315_v47  ;;  %v8743_v12 = vpop.f32.mrf.mxu1  ;;  %v14334_v46 = vld [vmem:[#allocation14 + $0x4b8] sm:$0xff]  ;;  %v14333_v47 = vld [vmem:[#allocation14 + $0x4b0] sm:$0xff] }
 0x6bb   :  { %v9675_v12 = vld [vmem:[#allocation5 + $0x28] sm:$0x30] }
 0x6bd   :  { %9324 = vmatpush.bf16.msra.mxu0 %v14299_v24  ;;  %v7887_v24 = vrot.slane %v7879_v37, 4 }
 0x6be   :  { %9625 = vmatpush.bf16.msrb.mxu3 %v14326_v0  ;;  %9351 = vmatpush.bf16.msra.mxu2 %v14314_v54  ;;  %v14357_v0 = vld [vmem:[#allocation14 + $0x570] sm:$0xff]  ;;  %v14356_v54 = vld [vmem:[#allocation14 + $0x568] sm:$0xff] }
 0x6bf   :  { %7895 = vst [vmem:[#allocation5 + $0x20] sm:$0x30] %v7887_v24 }
 0x6c1   :  { %9325 = vmatpush.bf16.msra.mxu0 %v14298_v48  ;;  %v9446_v48 = vrot.slane %v9381_v29, 1 }
 0x6c2   :  { %9626 = vmatpush.bf16.msrb.mxu3 %v14325_v36  ;;  %9352 = vmatpush.bf16.msra.mxu2 %v14313_v18  ;;  %v16785_v23 = vpop.f32.mrf.mxu1  ;;  %v14360_v36 = vld [vmem:[#allocation14 + $0x588] sm:$0xff]  ;;  %v9679_v18 = vpack.c.bf16 %v9675_v12, %v9675_v12 }
 0x6c5   :  { %9326 = vmatpush.bf16.msra.mxu0 %v14297_v49  ;;  %v14359_v49 = vld [vmem:[#allocation14 + $0x580] sm:$0xff] }
 0x6c6   :  { %9627 = vmatpush.bf16.msrb.mxu3 %v14324_v61  ;;  %9353 = vmatpush.bf16.msra.mxu2 %v14312_v51  ;;  %v7865_v61 = vld [vmem:[#allocation3 + $0x70] sm:$0xc]  ;;  %v14354_v51 = vld [vmem:[#allocation14 + $0x558] sm:$0xff] }
 0x6c7   :  { %v7873_v1 = vrot.slane %v7865_v61, 2 }
 0x6c9   :  { %9327 = vmatpush.bf16.msra.mxu0 %v14296_v11  ;;  %v9379_v11 = vpack.c.bf16 %v9375_v39, %v9375_v39  ;;  %v7881_v35 = vmax.f32 %v7861_v38, %v7873_v1 }
 0x6ca   :  { %9628 = vmatpush.bf16.msrb.mxu3 %v14323_v14  ;;  %9354 = vmatpush.bf16.msra.mxu2 %v14311_v60  ;;  %v9043_v63 = vpop.f32.mrf.mxu1  ;;  %v9744_v14 = vrot.slane %v9679_v18, 2  ;;  %v14351_v60 = vld [vmem:[#allocation14 + $0x540] sm:$0xff] }
 0x6cb   :  { %v7889_v26 = vrot.slane %v7881_v35, 4  ;;  %v9444_v34 = vrot.slane %v9379_v11, 1 }
 0x6cd   :  { %9629 = vmatmul.bf16.vlgmr.msrb.gmra.mxu3 %v9443_v31  ;;  %9328 = vmatpush.bf16.msra.mxu0 %v14295_v22  ;;  %7897 = vst [vmem:[#allocation5 + $0x30] sm:$0x30] %v7889_v26  ;;  %v9674_v22 = vld [vmem:[#allocation5 + $0x20] sm:$0x30] }
 0x6ce   :  { %9934 = vmatpush.bf16.msra.mxu3 %v14366_v32  ;;  %9664 = vmatpush.bf16.msrb.mxu2 %v14350_v43  ;;  %v14353_v32 = vld [vmem:[#allocation14 + $0x550] sm:$0xff]  ;;  %v14371_v31 = vld [vmem:[#allocation14 + $0x5e0] sm:$0xff] }
 0x6cf   :  { %9355 = vmatmul.bf16.vlgmr.msra.gmra.mxu2 %v9091_v15  ;;  %v14368_v15 = vld [vmem:[#allocation14 + $0x5c8] sm:$0xff] }
 0x6d0   :  { %9329 = vmatmul.bf16.vlgmr.msra.gmra.mxu0 %v9089_v30 }
 0x6d1   :  { %9634 = vmatpush.bf16.msrb.mxu0 %v14338_v44 }
 0x6d2   :  { %9935 = vmatpush.bf16.msra.mxu3 %v14365_v10  ;;  %9665 = vmatpush.bf16.msrb.mxu2 %v14349_v41  ;;  %v9678_v10 = vpack.c.bf16 %v9674_v22, %v9674_v22  ;;  %v14367_v41 = vld [vmem:[#allocation14 + $0x5c0] sm:$0xff] }
 0x6d4   :  { %v9743_v43 = vrot.slane %v9678_v10, 2 }
 0x6d5   :  { %9635 = vmatpush.bf16.msrb.mxu0 %v14337_v2  ;;  %v9676_v2 = vld [vmem:[#allocation5 + $0x30] sm:$0x30] }
 0x6d6   :  { %9936 = vmatpush.bf16.msra.mxu3 %v14364_v19  ;;  %9666 = vmatpush.bf16.msrb.mxu2 %v14348_v27 }
 0x6d9   :  { %9636 = vmatpush.bf16.msrb.mxu0 %v14336_v52  ;;  %v9680_v52 = vpack.c.bf16 %v9676_v2, %v9676_v2  ;;  %v14381_v2 = vld [vmem:[#allocation17 + $0x10] sm:$0xff] }
 0x6da   :  { %9937 = vmatpush.bf16.msra.mxu3 %v14363_v59  ;;  %9667 = vmatpush.bf16.msrb.mxu2 %v14347_v21 }
 0x6dd   :  { %9637 = vmatpush.bf16.msrb.mxu0 %v14335_v45 }
 0x6de   :  { %9938 = vmatpush.bf16.msra.mxu3 %v14362_v25  ;;  %9921 = vmatpush.bf16.msra.mxu2 %v14358_v56  ;;  %v9745_v25 = vrot.slane %v9680_v52, 2 }
 0x6df   :  { %13407 = vmatmul.msk.bf16.vlgmr.msrb.gmra.mxu2 %vm1382_vm3, %v9446_v48 }
 0x6e0   :  { %v8232_v17 = vpop.f32.mrf.mxu3 }
 0x6e1   :  { %9638 = vmatpush.bf16.msrb.mxu0 %v14334_v46  ;;  %v8233_v50 = vadd.f32 %v8232_v17, %v16779_v55  ;;  %v14352_v55 = vld [vmem:[#allocation14 + $0x548] sm:$0xff] }
 0x6e2   :  { %9939 = vmatpush.bf16.msra.mxu3 %v14361_v33  ;;  %9922 = vmatpush.bf16.msra.mxu2 %v14357_v0 }
 0x6e5   :  { %9639 = vmatpush.bf16.msrb.mxu0 %v14333_v47 }
 0x6e6   :  { %9940 = vmatpush.bf16.msra.mxu3 %v14360_v36  ;;  %9923 = vmatpush.bf16.msra.mxu2 %v14356_v54 }
 0x6e8   :  { %v8234_v3 = vpop.f32.mrf.mxu3 }
 0x6e9   :  { %9640 = vmatpush.bf16.msrb.mxu0 %v14332_v28 }
 0x6ea   :  { %9941 = vmatpush.bf16.msra.mxu3 %v14359_v49  ;;  %9924 = vmatpush.bf16.msra.mxu2 %v14355_v6 }
 0x6ed   :  { %9942 = vmatmul.bf16.vlgmr.msra.gmra.mxu3 %v9744_v14  ;;  %9641 = vmatpush.bf16.msrb.mxu0 %v14331_v20 }
 0x6ee   :  { %9925 = vmatpush.bf16.msra.mxu2 %v14354_v51 }
 0x6f0   :  { %9642 = vmatmul.bf16.vlgmr.msrb.gmra.mxu0 %v9444_v34  ;;  %v16790_v44 = vpop.f32.mrf.mxu1  ;;  %v8455_v40 = vpop.f32.mrf.mxu3 }
 0x6f1   :  { %9947 = vmatpush.bf16.msra.mxu0 %v14374_v42 }
 0x6f2   :  { %9926 = vmatpush.bf16.msra.mxu2 %v14353_v32 }
 0x6f5   :  { %9948 = vmatpush.bf16.msra.mxu0 %v14373_v62 }
 0x6f6   :  { %9927 = vmatpush.bf16.msra.mxu2 %v14352_v55 }
 0x6f8   :  { %v9345_v13 = vpop.f32.mrf.mxu1  ;;  %v8457_v30 = vpop.f32.mrf.mxu3 }
 0x6f9   :  { %9949 = vmatpush.bf16.msra.mxu0 %v14372_v57  ;;  %v14386_v57 = vld [vmem:[#allocation17 + $0x38] sm:$0xff] }
 0x6fa   :  { %9928 = vmatpush.bf16.msra.mxu2 %v14351_v60  ;;  %10049 = vmatpush.bf16.msrb.mxu1 %v14386_v57  ;;  %v14385_v60 = vld [vmem:[#allocation17 + $0x30] sm:$0xff] }
 0x6fd   :  { %9950 = vmatpush.bf16.msra.mxu0 %v14371_v31  ;;  %9929 = vmatmul.bf16.vlgmr.msra.gmra.mxu2 %v9743_v43  ;;  %v8245_v19 = vpop.f32.mrf.mxu0  ;;  %v14382_v43 = vld [vmem:[#allocation17 + $0x18] sm:$0xff] }
 0x6fe   :  { %v8246_v63 = vadd.f32 %v8245_v19, %v8233_v50  ;;  %10050 = vmatpush.bf16.msrb.mxu1 %v14385_v60 }
 0x6ff   :  { %v8258_v59 = vpop.f32.mrf.mxu2 }
 0x700   :  { %v8259_v27 = vadd.f32 %v8258_v59, %v8246_v63  ;;  %v8754_v9 = vpop.f32.mrf.mxu3  ;;  %v14379_v63 = vld [vmem:[#allocation17] sm:$0xff] }
 0x701   :  { %9951 = vmatpush.bf16.msra.mxu0 %v14370_v8  ;;  %v8755_v36 = vadd.f32 %v8754_v9, %v16783_v16  ;;  %v14383_v8 = vld [vmem:[#allocation17 + $0x20] sm:$0xff] }
 0x702   :  { %v8443_v45 = vadd.f32 %v16776_v4, %v8259_v27 }
 0x704   :  { %v8456_v7 = vadd.f32 %v8455_v40, %v8443_v45 }
 0x705   :  { %9952 = vmatpush.bf16.msra.mxu0 %v14369_v5  ;;  %v8247_v21 = vpop.f32.mrf.mxu0 }
 0x707   :  { %v8260_v56 = vpop.f32.mrf.mxu2 }
 0x708   :  { %v8756_v53 = vpop.f32.mrf.mxu3 }
 0x709   :  { %9953 = vmatpush.bf16.msra.mxu0 %v14368_v15 }
 0x70c   :  { %v16793_v46 = vpop.f32.mrf.mxu1 }
 0x70d   :  { %9954 = vmatpush.bf16.msra.mxu0 %v14367_v41  ;;  %v8481_v58 = vpop.f32.mrf.mxu0  ;;  %v14380_v41 = vld [vmem:[#allocation17 + $0x8] sm:$0xff] }
 0x70f   :  { %v8468_v33 = vpop.f32.mrf.mxu2 }
 0x710   :  { %9955 = vmatmul.bf16.vlgmr.msra.gmra.mxu0 %v9745_v25  ;;  %v8469_v29 = vadd.f32 %v8468_v33, %v8456_v7 }
 0x712   :  { %v8482_v37 = vadd.f32 %v8481_v58, %v8469_v29  ;;  %v14403_v58 = vld [vmem:[#allocation15] ss:$0 sm:$0xff] }
 0x714   :  { %v9658_v24 = vpop.f32.mrf.mxu1 }
 0x715   :  { %v8483_v0 = vpop.f32.mrf.mxu0 }
 0x717   :  { %v8470_v47 = vpop.f32.mrf.mxu2 }
 0x718   :  { %v14404_v47 = vld [vmem:[#allocation18] ss:$0 sm:$0xff] }
 0x71c   :  { %v9969_v54 = vpop.f32.mrf.mxu1 }
 0x71d   :  { %v8767_v48 = vpop.f32.mrf.mxu0 }
 0x71e   :  { %v8768_v4 = vadd.f32 %v8767_v48, %v8755_v36 }
 0x71f   :  { %v8780_v61 = vpop.f32.mrf.mxu2 }
 0x720   :  { %v9067_v12 = vpop.f32.mrf.mxu3  ;;  %v8781_v28 = vadd.f32 %v8780_v61, %v8768_v4 }
 0x722   :  { %v8784_v49 = vadd.f32 %v8781_v28, %v8482_v37 }
 0x724   :  { %v9971_v1 = vpop.f32.mrf.mxu1 }
 0x725   :  { %v8769_v18 = vpop.f32.mrf.mxu0 }
 0x727   :  { %v8782_v39 = vpop.f32.mrf.mxu2 }
 0x728   :  { %v9069_v6 = vpop.f32.mrf.mxu3 }
 0x72d   :  { %v9080_v17 = vpop.f32.mrf.mxu0 }
 0x730   :  { %v9369_v20 = vpop.f32.mrf.mxu3 }
 0x732   :  { %v9054_v38 = vpop.f32.mrf.mxu2 }
 0x733   :  { %v9055_v50 = vadd.f32 %v9054_v38, %v16785_v23  ;;  %v14384_v23 = vld [vmem:[#allocation17 + $0x28] sm:$0xff] }
 0x734   :  { %10051 = vmatpush.bf16.msrb.mxu1 %v14384_v23 }
 0x735   :  { %v9068_v14 = vadd.f32 %v9067_v12, %v9055_v50  ;;  %v9082_v11 = vpop.f32.mrf.mxu0 }
 0x737   :  { %v9081_v42 = vadd.f32 %v9080_v17, %v9068_v14 }
 0x738   :  { %v9371_v51 = vpop.f32.mrf.mxu3  ;;  %10052 = vmatpush.bf16.msrb.mxu1 %v14383_v8 }
 0x739   :  { %v9084_v16 = vadd.f32 %v9081_v42, %v8784_v49 }
 0x73a   :  { %v9056_v35 = vpop.f32.mrf.mxu2 }
 0x73c   :  { %10053 = vmatpush.bf16.msrb.mxu1 %v14382_v43 }
 0x740   :  { %10054 = vmatpush.bf16.msrb.mxu1 %v14381_v2 }
 0x744   :  { %10055 = vmatpush.bf16.msrb.mxu1 %v14380_v41 }
 0x748   :  { %10056 = vmatpush.bf16.msrb.mxu1 %v14379_v63 }
 0x74d   :  { %v9330_v26 = vpop.f32.mrf.mxu0 }
 0x74e   :  { %v9344_v62 = vadd.f32 %v16790_v44, %v9330_v26 }
 0x750   :  { %v9630_v34 = vpop.f32.mrf.mxu3 }
 0x752   :  { %v9356_v32 = vpop.f32.mrf.mxu2 }
 0x753   :  { %v9357_v3 = vadd.f32 %v9356_v32, %v9344_v62 }
 0x755   :  { %v9332_v55 = vpop.f32.mrf.mxu0  ;;  %v9370_v22 = vadd.f32 %v9369_v20, %v9357_v3 }
 0x757   :  { %v9373_v10 = vadd.f32 %v9370_v22, %v9084_v16 }
 0x758   :  { %v9632_v31 = vpop.f32.mrf.mxu3 }
 0x75a   :  { %v9358_v40 = vpop.f32.mrf.mxu2 }
 0x762   :  { %v9669_v5 = vpop.f32.mrf.mxu2 }
 0x76a   :  { %v9671_v44 = vpop.f32.mrf.mxu2 }
 0x76d   :  { %v9643_v13 = vpop.f32.mrf.mxu0 }
 0x76e   :  { %v9644_v52 = vadd.f32 %v9643_v13, %v9630_v34 }
 0x770   :  { %v9943_v30 = vpop.f32.mrf.mxu3  ;;  %v9657_v27 = vadd.f32 %v16793_v46, %v9644_v52 }
 0x772   :  { %v9670_v9 = vadd.f32 %v9669_v5, %v9657_v27 }
 0x774   :  { %v9673_v56 = vadd.f32 %v9670_v9, %v9373_v10 }
 0x775   :  { %v9645_v15 = vpop.f32.mrf.mxu0 }
 0x778   :  { %v9945_v19 = vpop.f32.mrf.mxu3 }
 0x780   :  { %v9930_v59 = vpop.f32.mrf.mxu2 }
 0x781   :  { %v9944_v45 = vadd.f32 %v9943_v30, %v9930_v59 }
 0x788   :  { %v9932_v25 = vpop.f32.mrf.mxu2 }
 0x78d   :  { %v9956_v7 = vpop.f32.mrf.mxu0 }
 0x78e   :  { %v9957_v21 = vadd.f32 %v9956_v7, %v9944_v45 }
 0x790   :  { %v9970_v53 = vadd.f32 %v9969_v54, %v9957_v21 }
 0x792   :  { %v9973_v33 = vadd.f32 %v9970_v53, %v9673_v56 }
 0x794   :  { %v9978_v29 = vadd.f32 %v14403_v58, %v9973_v33 }
 0x795   :  { %v9958_v37 = vpop.f32.mrf.mxu0 }
 0x796   :  { %v9979_v0 = vmax.f32 %v9978_v29, 0.0 }
 0x798   :  { %v9980_v24 = vpack.c.bf16 %v9979_v0, %v9979_v0 }
 0x79a   :  { %10057 = vmatmul.bf16.vlgmr.msrb.gmra.mxu1 %v9980_v24 }
 0x817   :  { %v10058_v46 = vpop.f32.mrf.mxu1 }
 0x818   :  { %v10059_v36 = vadd.f32 %v14404_v47, %v10058_v46 }
 0x81a   :  { %10062 = vst [vmem:[#allocation20] sm:$0x3] %v10059_v36 }
 0x81b   :  { %10073 = dma.vmem_to_hbm [thread:$0]  %s10069_s13, 32, %s10071_s16, [#allocation8]  }
 0x81f   :  { %v10060_v48 = vpop.f32.mrf.mxu1 }
 0x820   :  { %14647 = dma.done.wait [#allocation8], 32  }
 0x821   :  { %14648 = vsyncadd [#allocation8], 4294967264 }
 0x822   :  { %10078 = vsyncpa [#allocation7], 1 }
 0x823   :  { %10079 = vsyncpa [#allocation10], 1 }
 0x824   :  { %10080 = vsyncpa [#allocation13], 1 }
 0x825   :  { %10081 = vsyncpa [#allocation16], 1 }
 0x826   :  { %10082 = vsyncpa [#allocation19], 1 }
 0x827   :  { %10083 = vsyncpa [#allocation8], 1 }

</bundles_post_ra>
